<compile_context>
chip_gen: v6e
topology: v6e:2x2x1
jax: 0.10.0
libtpu: 0.0.40
codegen_flags: <defaults>
</compile_context>

<pallas_src>
import functools

import jax
import jax.numpy as jnp
import numpy as np
from jax import lax
from jax.experimental import pallas as pl
from jax.experimental.pallas import tpu as pltpu


def _round_up(x, m):
    return ((x + m - 1) // m) * m


# ----------------------------------------------------------------------------
# Glue: exact PyTorch trilinear upsample (align_corners=False), separable lerp.
# ----------------------------------------------------------------------------
def _upsample_indices(in_size, scale):
    out_size = in_size * scale
    src = (jnp.arange(out_size, dtype=jnp.float32) + 0.5) / scale - 0.5
    src = jnp.maximum(src, 0.0)            # PyTorch clamps negative source coords
    i0 = jnp.floor(src).astype(jnp.int32)
    i0 = jnp.clip(i0, 0, in_size - 1)
    i1 = jnp.minimum(i0 + 1, in_size - 1)
    w1 = src - i0.astype(jnp.float32)
    w0 = 1.0 - w1
    return i0, i1, w0, w1


def trilinear_upsample(x, scale, axes):
    # TODO(synk): parity with torch.nn.Upsample asserted by construction only
    # (no torch available in-script).
    for axis in axes:
        size = x.shape[axis]
        i0, i1, w0, w1 = _upsample_indices(size, scale)
        b = [1] * x.ndim
        b[axis] = -1
        x = (jnp.take(x, i0, axis=axis) * w0.reshape(b)
             + jnp.take(x, i1, axis=axis) * w1.reshape(b))
    return x


# ----------------------------------------------------------------------------
# Pallas kernel: per grid step, td output depth-planes of Conv3d(k=3,p=1)+bias+ReLU.
# Conv tap (kh, kw) is a constant column shift kh*Wp + kw on the flattened padded
# (H, W) plane; tap kd selects one of the td+2 padded depth rows in VMEM.
# ----------------------------------------------------------------------------
def _make_conv_kernel(td, Wp, Lm, Cout):
    def kernel(xa_ref, xb_ref, w_ref, b_ref, o_ref):
        # xa_ref: (1, td, Cin, Lp)  padded-depth rows [c*td, c*td + td)
        # xb_ref: (1, 2,  Cin, Lp)  halo rows         [c*td + td, c*td + td + 2)
        # w_ref : (27, Cout, Cin)   bf16, tap t = (kd*3 + kh)*3 + kw
        # b_ref : (Cout, 1) f32
        # o_ref : (1, td, Cout, Lm) f32
        rows = [xa_ref[0, k] for k in range(td)] + [xb_ref[0, j] for j in range(2)]
        bias = b_ref[...]
        for dz in range(td):
            acc = jnp.zeros((Cout, Lm), dtype=jnp.float32)
            for kd in range(3):
                xr = rows[dz + kd]                      # (Cin, Lp) bf16
                for kh in range(3):
                    base = kh * Wp
                    for kw in range(3):
                        t = (kd * 3 + kh) * 3 + kw
                        acc = acc + jnp.dot(
                            w_ref[t],
                            xr[:, base + kw: base + kw + Lm],
                            preferred_element_type=jnp.float32,
                        )
            o_ref[0, dz] = jnp.maximum(acc + bias, 0.0).astype(o_ref.dtype)

    return kernel


def conv3d_relu_pallas(xf, w2, b2, *, td, Wp, Lm, Do):
    # xf: (N, Dp_pad, Cin, Lp) bf16 ; w2: (27, Cout, Cin) bf16 ; b2: (Cout, 1) f32
    N, Dp_pad, Cin, Lp = xf.shape
    Cout = w2.shape[1]
    nc = Do // td
    kernel = _make_conv_kernel(td, Wp, Lm, Cout)
    return pl.pallas_call(
        kernel,
        out_shape=jax.ShapeDtypeStruct((N, Do, Cout, Lm), jnp.float32),
        grid=(N, nc),
        in_specs=[
            # body rows: [c*td, c*td + td)
            pl.BlockSpec((1, td, Cin, Lp), lambda n, c: (n, c, 0, 0)),
            # halo rows: [c*td + td, c*td + td + 2) -- second blocked view of xf
            pl.BlockSpec((1, 2, Cin, Lp),
                         lambda n, c: (n, c * (td // 2) + td // 2, 0, 0)),
            pl.BlockSpec((27, Cout, Cin), lambda n, c: (0, 0, 0)),   # VMEM resident
            pl.BlockSpec((Cout, 1), lambda n, c: (0, 0)),            # VMEM resident
        ],
        out_specs=pl.BlockSpec((1, td, Cout, Lm), lambda n, c: (n, c, 0, 0)),
        compiler_params=pltpu.CompilerParams(
            dimension_semantics=("parallel", "parallel")),
    )(xf, xf, w2, b2)


# ----------------------------------------------------------------------------
# Full forward: Upsample(trilinear, x2) -> Conv3d(k=3, p=1) -> ReLU
# ----------------------------------------------------------------------------
@functools.partial(jax.jit, static_argnames=("stride",))
def upsampling_forward(x, weight, bias, stride=2):
    N, Cin, D, H, W = x.shape
    Cout = weight.shape[0]
    Do, Ho, Wo = D * stride, H * stride, W * stride
    Hp, Wp = Ho + 2, Wo + 2

    # Upsample in (N, D, C, H, W) layout (transpose the SMALL pre-upsample tensor).
    xt = jnp.transpose(x, (0, 2, 1, 3, 4))
    xu = trilinear_upsample(xt, stride, axes=(1, 3, 4))   # (N, Do, Cin, Ho, Wo)
    xu = xu.astype(jnp.bfloat16)                          # halve HBM bytes

    # Output plane columns (lane-dense) and input plane columns incl. max tap shift.
    Lm = _round_up(Ho * Wp, 128)
    Lp = _round_up(Lm + 2 * Wp + 2, 128)
    td = 4 if Do % 4 == 0 else 2                          # depth planes per grid step
    assert Do % td == 0 and td % 2 == 0
    Dp_pad = _round_up(Do + 2, td)

    # Zero pad (conv padding=1) + flatten (H, W) plane + pad flat axis.
    xp = jnp.pad(xu, ((0, 0), (1, 1 + Dp_pad - (Do + 2)), (0, 0), (1, 1), (1, 1)))
    xf = xp.reshape(N, Dp_pad, Cin, Hp * Wp)
    xf = jnp.pad(xf, ((0, 0), (0, 0), (0, 0), (0, Lp - Hp * Wp)))

    # PyTorch weight (Cout, Cin, kd, kh, kw) -> (27, Cout, Cin), taps ordered (kd,kh,kw).
    w2 = jnp.transpose(weight, (2, 3, 4, 0, 1)).reshape(27, Cout, Cin)
    w2 = w2.astype(jnp.bfloat16)
    b2 = bias.reshape(Cout, 1).astype(jnp.float32)

    out_f = conv3d_relu_pallas(xf, w2, b2, td=td, Wp=Wp, Lm=Lm, Do=Do)  # (N,Do,Cout,Lm)

    out = out_f[:, :, :, : Ho * Wp].reshape(N, Do, Cout, Ho, Wp)[..., :Wo]
    # TODO(synk): keep channels-last output for the consumer to save this transpose.
    return jnp.transpose(out, (0, 2, 1, 3, 4))            # NCDHW


if __name__ == "__main__":
    key = jax.random.PRNGKey(0)
    kx, kw_, kb = jax.random.split(key, 3)

    N, Cin, Cout, D, H, W = 2, 4, 8, 8, 8, 8
    x = jax.random.normal(kx, (N, Cin, D, H, W), dtype=jnp.float32)

    # Deterministic Conv3d-style init (PyTorch default bounds: 1/sqrt(fan_in))
    fan_in = Cin * 3 * 3 * 3
    bound = 1.0 / np.sqrt(fan_in)
    weight = jax.random.uniform(
        kw_, (Cout, Cin, 3, 3, 3), minval=-bound, maxval=bound, dtype=jnp.float32)
    bias = jax.random.uniform(
        kb, (Cout,), minval=-bound, maxval=bound, dtype=jnp.float32)

    out = jax.block_until_ready(upsampling_forward(x, weight, bias, stride=2))

    def conv_relu_ref(xu_ncdhw, wgt):
        y = lax.conv_general_dilated(
            xu_ncdhw, wgt, window_strides=(1, 1, 1),
            padding=((1, 1), (1, 1), (1, 1)),
            dimension_numbers=("NCDHW", "OIDHW", "NCDHW"),
            precision=lax.Precision.HIGHEST)
        return jnp.maximum(y + bias[None, :, None, None, None], 0.0)

    xu_ref = trilinear_upsample(x, 2, axes=(2, 3, 4))      # NCDHW, f32

    # Check 1 (tight): same bf16-quantized activations/weights, XLA conv, f32 accum.
    xu_q = xu_ref.astype(jnp.bfloat16).astype(jnp.float32)
    w_q = weight.astype(jnp.bfloat16).astype(jnp.float32)
    ref_q = conv_relu_ref(xu_q, w_q)
    np.testing.assert_allclose(np.asarray(out), np.asarray(ref_q), rtol=5e-3, atol=5e-3)

    # Check 2 (module semantics, pure f32): only bf16 quantization error expected.
    ref_f32 = conv_relu_ref(xu_ref, weight)
    np.testing.assert_allclose(np.asarray(out), np.asarray(ref_f32), rtol=5e-2, atol=5e-2)

    print("KERNEL_OK")
</pallas_src>

<mosaic_0001>
module attributes {stable_mosaic.version = 11 : i64} {
  func.func @kernel(%arg0: i32, %arg1: i32, %arg2: memref<1x4x4x512xbf16, #tpu.memory_space<vmem>>, %arg3: memref<1x2x4x512xbf16, #tpu.memory_space<vmem>>, %arg4: memref<27x8x4xbf16, #tpu.memory_space<vmem>>, %arg5: memref<8x1xf32, #tpu.memory_space<vmem>>, %arg6: memref<1x4x8x384xf32, #tpu.memory_space<vmem>>) attributes {dimension_semantics = [#tpu.dimension_semantics<parallel>, #tpu.dimension_semantics<parallel>], iteration_bounds = array<i64: 2, 4>, scalar_prefetch = 0 : i64, scratch_operands = 0 : i64, tpu.core_type = #tpu.core_type<tc>, window_params = [{transform_indices = @transform_0, window_bounds = array<i64: 1, 4, 4, 512>}, {transform_indices = @transform_1, window_bounds = array<i64: 1, 2, 4, 512>}, {pipeline_mode = #tpu.pipeline_mode<synchronous>, transform_indices = @transform_2, window_bounds = array<i64: 27, 8, 4>}, {pipeline_mode = #tpu.pipeline_mode<synchronous>, transform_indices = @transform_3, window_bounds = array<i64: 8, 1>}, {transform_indices = @transform_4, window_bounds = array<i64: 1, 4, 8, 384>}]} {
    %c0 = arith.constant 0 : index
    %c0_0 = arith.constant 0 : index
    %c0_1 = arith.constant 0 : index
    %c0_2 = arith.constant 0 : index
    %0 = vector.load %arg2[%c0, %c0_0, %c0_1, %c0_2] : memref<1x4x4x512xbf16, #tpu.memory_space<vmem>>, vector<1x1x4x512xbf16>
    %1 = vector.shape_cast %0 : vector<1x1x4x512xbf16> to vector<4x512xbf16>
    %c0_3 = arith.constant 0 : index
    %c1 = arith.constant 1 : index
    %c0_4 = arith.constant 0 : index
    %c0_5 = arith.constant 0 : index
    %2 = vector.load %arg2[%c0_3, %c1, %c0_4, %c0_5] : memref<1x4x4x512xbf16, #tpu.memory_space<vmem>>, vector<1x1x4x512xbf16>
    %3 = vector.shape_cast %2 : vector<1x1x4x512xbf16> to vector<4x512xbf16>
    %c0_6 = arith.constant 0 : index
    %c2 = arith.constant 2 : index
    %c0_7 = arith.constant 0 : index
    %c0_8 = arith.constant 0 : index
    %4 = vector.load %arg2[%c0_6, %c2, %c0_7, %c0_8] : memref<1x4x4x512xbf16, #tpu.memory_space<vmem>>, vector<1x1x4x512xbf16>
    %5 = vector.shape_cast %4 : vector<1x1x4x512xbf16> to vector<4x512xbf16>
    %c0_9 = arith.constant 0 : index
    %c3 = arith.constant 3 : index
    %c0_10 = arith.constant 0 : index
    %c0_11 = arith.constant 0 : index
    %6 = vector.load %arg2[%c0_9, %c3, %c0_10, %c0_11] : memref<1x4x4x512xbf16, #tpu.memory_space<vmem>>, vector<1x1x4x512xbf16>
    %7 = vector.shape_cast %6 : vector<1x1x4x512xbf16> to vector<4x512xbf16>
    %c0_12 = arith.constant 0 : index
    %c0_13 = arith.constant 0 : index
    %c0_14 = arith.constant 0 : index
    %c0_15 = arith.constant 0 : index
    %8 = vector.load %arg3[%c0_12, %c0_13, %c0_14, %c0_15] : memref<1x2x4x512xbf16, #tpu.memory_space<vmem>>, vector<1x1x4x512xbf16>
    %9 = vector.shape_cast %8 : vector<1x1x4x512xbf16> to vector<4x512xbf16>
    %c0_16 = arith.constant 0 : index
    %c1_17 = arith.constant 1 : index
    %c0_18 = arith.constant 0 : index
    %c0_19 = arith.constant 0 : index
    %10 = vector.load %arg3[%c0_16, %c1_17, %c0_18, %c0_19] : memref<1x2x4x512xbf16, #tpu.memory_space<vmem>>, vector<1x1x4x512xbf16>
    %11 = vector.shape_cast %10 : vector<1x1x4x512xbf16> to vector<4x512xbf16>
    %c0_20 = arith.constant 0 : index
    %c0_21 = arith.constant 0 : index
    %12 = vector.load %arg5[%c0_20, %c0_21] : memref<8x1xf32, #tpu.memory_space<vmem>>, vector<8x1xf32>
    %cst = arith.constant 0.000000e+00 : f32
    %13 = vector.broadcast %cst : f32 to vector<8x384xf32>
    %c0_22 = arith.constant 0 : index
    %c0_23 = arith.constant 0 : index
    %c0_24 = arith.constant 0 : index
    %14 = vector.load %arg4[%c0_22, %c0_23, %c0_24] : memref<27x8x4xbf16, #tpu.memory_space<vmem>>, vector<1x8x4xbf16>
    %15 = vector.shape_cast %14 : vector<1x8x4xbf16> to vector<8x4xbf16>
    %16 = vector.extract_strided_slice %1 {offsets = [0, 0], sizes = [4, 384], strides = [1, 1]} : vector<4x512xbf16> to vector<4x384xbf16>
    %cst_25 = arith.constant dense<0.000000e+00> : vector<8x384xf32>
    %17 = tpu.matmul %15, %16, %cst_25 {dimension_numbers = #tpu.dot_dimension_numbers<[1], [0], [0], [1], [0, 0, 1, 1], [], []>} : vector<8x4xbf16>, vector<4x384xbf16>, vector<8x384xf32> -> vector<8x384xf32>
    %18 = arith.addf %13, %17 : vector<8x384xf32>
    %c1_26 = arith.constant 1 : index
    %c0_27 = arith.constant 0 : index
    %c0_28 = arith.constant 0 : index
    %19 = vector.load %arg4[%c1_26, %c0_27, %c0_28] : memref<27x8x4xbf16, #tpu.memory_space<vmem>>, vector<1x8x4xbf16>
    %20 = vector.shape_cast %19 : vector<1x8x4xbf16> to vector<8x4xbf16>
    %21 = vector.extract_strided_slice %1 {offsets = [0, 1], sizes = [4, 384], strides = [1, 1]} : vector<4x512xbf16> to vector<4x384xbf16>
    %cst_29 = arith.constant dense<0.000000e+00> : vector<8x384xf32>
    %22 = tpu.matmul %20, %21, %cst_29 {dimension_numbers = #tpu.dot_dimension_numbers<[1], [0], [0], [1], [0, 0, 1, 1], [], []>} : vector<8x4xbf16>, vector<4x384xbf16>, vector<8x384xf32> -> vector<8x384xf32>
    %23 = arith.addf %18, %22 : vector<8x384xf32>
    %c2_30 = arith.constant 2 : index
    %c0_31 = arith.constant 0 : index
    %c0_32 = arith.constant 0 : index
    %24 = vector.load %arg4[%c2_30, %c0_31, %c0_32] : memref<27x8x4xbf16, #tpu.memory_space<vmem>>, vector<1x8x4xbf16>
    %25 = vector.shape_cast %24 : vector<1x8x4xbf16> to vector<8x4xbf16>
    %26 = vector.extract_strided_slice %1 {offsets = [0, 2], sizes = [4, 384], strides = [1, 1]} : vector<4x512xbf16> to vector<4x384xbf16>
    %cst_33 = arith.constant dense<0.000000e+00> : vector<8x384xf32>
    %27 = tpu.matmul %25, %26, %cst_33 {dimension_numbers = #tpu.dot_dimension_numbers<[1], [0], [0], [1], [0, 0, 1, 1], [], []>} : vector<8x4xbf16>, vector<4x384xbf16>, vector<8x384xf32> -> vector<8x384xf32>
    %28 = arith.addf %23, %27 : vector<8x384xf32>
    %c3_34 = arith.constant 3 : index
    %c0_35 = arith.constant 0 : index
    %c0_36 = arith.constant 0 : index
    %29 = vector.load %arg4[%c3_34, %c0_35, %c0_36] : memref<27x8x4xbf16, #tpu.memory_space<vmem>>, vector<1x8x4xbf16>
    %30 = vector.shape_cast %29 : vector<1x8x4xbf16> to vector<8x4xbf16>
    %31 = vector.extract_strided_slice %1 {offsets = [0, 18], sizes = [4, 384], strides = [1, 1]} : vector<4x512xbf16> to vector<4x384xbf16>
    %cst_37 = arith.constant dense<0.000000e+00> : vector<8x384xf32>
    %32 = tpu.matmul %30, %31, %cst_37 {dimension_numbers = #tpu.dot_dimension_numbers<[1], [0], [0], [1], [0, 0, 1, 1], [], []>} : vector<8x4xbf16>, vector<4x384xbf16>, vector<8x384xf32> -> vector<8x384xf32>
    %33 = arith.addf %28, %32 : vector<8x384xf32>
    %c4 = arith.constant 4 : index
    %c0_38 = arith.constant 0 : index
    %c0_39 = arith.constant 0 : index
    %34 = vector.load %arg4[%c4, %c0_38, %c0_39] : memref<27x8x4xbf16, #tpu.memory_space<vmem>>, vector<1x8x4xbf16>
    %35 = vector.shape_cast %34 : vector<1x8x4xbf16> to vector<8x4xbf16>
    %36 = vector.extract_strided_slice %1 {offsets = [0, 19], sizes = [4, 384], strides = [1, 1]} : vector<4x512xbf16> to vector<4x384xbf16>
    %cst_40 = arith.constant dense<0.000000e+00> : vector<8x384xf32>
    %37 = tpu.matmul %35, %36, %cst_40 {dimension_numbers = #tpu.dot_dimension_numbers<[1], [0], [0], [1], [0, 0, 1, 1], [], []>} : vector<8x4xbf16>, vector<4x384xbf16>, vector<8x384xf32> -> vector<8x384xf32>
    %38 = arith.addf %33, %37 : vector<8x384xf32>
    %c5 = arith.constant 5 : index
    %c0_41 = arith.constant 0 : index
    %c0_42 = arith.constant 0 : index
    %39 = vector.load %arg4[%c5, %c0_41, %c0_42] : memref<27x8x4xbf16, #tpu.memory_space<vmem>>, vector<1x8x4xbf16>
    %40 = vector.shape_cast %39 : vector<1x8x4xbf16> to vector<8x4xbf16>
    %41 = vector.extract_strided_slice %1 {offsets = [0, 20], sizes = [4, 384], strides = [1, 1]} : vector<4x512xbf16> to vector<4x384xbf16>
    %cst_43 = arith.constant dense<0.000000e+00> : vector<8x384xf32>
    %42 = tpu.matmul %40, %41, %cst_43 {dimension_numbers = #tpu.dot_dimension_numbers<[1], [0], [0], [1], [0, 0, 1, 1], [], []>} : vector<8x4xbf16>, vector<4x384xbf16>, vector<8x384xf32> -> vector<8x384xf32>
    %43 = arith.addf %38, %42 : vector<8x384xf32>
    %c6 = arith.constant 6 : index
    %c0_44 = arith.constant 0 : index
    %c0_45 = arith.constant 0 : index
    %44 = vector.load %arg4[%c6, %c0_44, %c0_45] : memref<27x8x4xbf16, #tpu.memory_space<vmem>>, vector<1x8x4xbf16>
    %45 = vector.shape_cast %44 : vector<1x8x4xbf16> to vector<8x4xbf16>
    %46 = vector.extract_strided_slice %1 {offsets = [0, 36], sizes = [4, 384], strides = [1, 1]} : vector<4x512xbf16> to vector<4x384xbf16>
    %cst_46 = arith.constant dense<0.000000e+00> : vector<8x384xf32>
    %47 = tpu.matmul %45, %46, %cst_46 {dimension_numbers = #tpu.dot_dimension_numbers<[1], [0], [0], [1], [0, 0, 1, 1], [], []>} : vector<8x4xbf16>, vector<4x384xbf16>, vector<8x384xf32> -> vector<8x384xf32>
    %48 = arith.addf %43, %47 : vector<8x384xf32>
    %c7 = arith.constant 7 : index
    %c0_47 = arith.constant 0 : index
    %c0_48 = arith.constant 0 : index
    %49 = vector.load %arg4[%c7, %c0_47, %c0_48] : memref<27x8x4xbf16, #tpu.memory_space<vmem>>, vector<1x8x4xbf16>
    %50 = vector.shape_cast %49 : vector<1x8x4xbf16> to vector<8x4xbf16>
    %51 = vector.extract_strided_slice %1 {offsets = [0, 37], sizes = [4, 384], strides = [1, 1]} : vector<4x512xbf16> to vector<4x384xbf16>
    %cst_49 = arith.constant dense<0.000000e+00> : vector<8x384xf32>
    %52 = tpu.matmul %50, %51, %cst_49 {dimension_numbers = #tpu.dot_dimension_numbers<[1], [0], [0], [1], [0, 0, 1, 1], [], []>} : vector<8x4xbf16>, vector<4x384xbf16>, vector<8x384xf32> -> vector<8x384xf32>
    %53 = arith.addf %48, %52 : vector<8x384xf32>
    %c8 = arith.constant 8 : index
    %c0_50 = arith.constant 0 : index
    %c0_51 = arith.constant 0 : index
    %54 = vector.load %arg4[%c8, %c0_50, %c0_51] : memref<27x8x4xbf16, #tpu.memory_space<vmem>>, vector<1x8x4xbf16>
    %55 = vector.shape_cast %54 : vector<1x8x4xbf16> to vector<8x4xbf16>
    %56 = vector.extract_strided_slice %1 {offsets = [0, 38], sizes = [4, 384], strides = [1, 1]} : vector<4x512xbf16> to vector<4x384xbf16>
    %cst_52 = arith.constant dense<0.000000e+00> : vector<8x384xf32>
    %57 = tpu.matmul %55, %56, %cst_52 {dimension_numbers = #tpu.dot_dimension_numbers<[1], [0], [0], [1], [0, 0, 1, 1], [], []>} : vector<8x4xbf16>, vector<4x384xbf16>, vector<8x384xf32> -> vector<8x384xf32>
    %58 = arith.addf %53, %57 : vector<8x384xf32>
    %c9 = arith.constant 9 : index
    %c0_53 = arith.constant 0 : index
    %c0_54 = arith.constant 0 : index
    %59 = vector.load %arg4[%c9, %c0_53, %c0_54] : memref<27x8x4xbf16, #tpu.memory_space<vmem>>, vector<1x8x4xbf16>
    %60 = vector.shape_cast %59 : vector<1x8x4xbf16> to vector<8x4xbf16>
    %61 = vector.extract_strided_slice %3 {offsets = [0, 0], sizes = [4, 384], strides = [1, 1]} : vector<4x512xbf16> to vector<4x384xbf16>
    %cst_55 = arith.constant dense<0.000000e+00> : vector<8x384xf32>
    %62 = tpu.matmul %60, %61, %cst_55 {dimension_numbers = #tpu.dot_dimension_numbers<[1], [0], [0], [1], [0, 0, 1, 1], [], []>} : vector<8x4xbf16>, vector<4x384xbf16>, vector<8x384xf32> -> vector<8x384xf32>
    %63 = arith.addf %58, %62 : vector<8x384xf32>
    %c10 = arith.constant 10 : index
    %c0_56 = arith.constant 0 : index
    %c0_57 = arith.constant 0 : index
    %64 = vector.load %arg4[%c10, %c0_56, %c0_57] : memref<27x8x4xbf16, #tpu.memory_space<vmem>>, vector<1x8x4xbf16>
    %65 = vector.shape_cast %64 : vector<1x8x4xbf16> to vector<8x4xbf16>
    %66 = vector.extract_strided_slice %3 {offsets = [0, 1], sizes = [4, 384], strides = [1, 1]} : vector<4x512xbf16> to vector<4x384xbf16>
    %cst_58 = arith.constant dense<0.000000e+00> : vector<8x384xf32>
    %67 = tpu.matmul %65, %66, %cst_58 {dimension_numbers = #tpu.dot_dimension_numbers<[1], [0], [0], [1], [0, 0, 1, 1], [], []>} : vector<8x4xbf16>, vector<4x384xbf16>, vector<8x384xf32> -> vector<8x384xf32>
    %68 = arith.addf %63, %67 : vector<8x384xf32>
    %c11 = arith.constant 11 : index
    %c0_59 = arith.constant 0 : index
    %c0_60 = arith.constant 0 : index
    %69 = vector.load %arg4[%c11, %c0_59, %c0_60] : memref<27x8x4xbf16, #tpu.memory_space<vmem>>, vector<1x8x4xbf16>
    %70 = vector.shape_cast %69 : vector<1x8x4xbf16> to vector<8x4xbf16>
    %71 = vector.extract_strided_slice %3 {offsets = [0, 2], sizes = [4, 384], strides = [1, 1]} : vector<4x512xbf16> to vector<4x384xbf16>
    %cst_61 = arith.constant dense<0.000000e+00> : vector<8x384xf32>
    %72 = tpu.matmul %70, %71, %cst_61 {dimension_numbers = #tpu.dot_dimension_numbers<[1], [0], [0], [1], [0, 0, 1, 1], [], []>} : vector<8x4xbf16>, vector<4x384xbf16>, vector<8x384xf32> -> vector<8x384xf32>
    %73 = arith.addf %68, %72 : vector<8x384xf32>
    %c12 = arith.constant 12 : index
    %c0_62 = arith.constant 0 : index
    %c0_63 = arith.constant 0 : index
    %74 = vector.load %arg4[%c12, %c0_62, %c0_63] : memref<27x8x4xbf16, #tpu.memory_space<vmem>>, vector<1x8x4xbf16>
    %75 = vector.shape_cast %74 : vector<1x8x4xbf16> to vector<8x4xbf16>
    %76 = vector.extract_strided_slice %3 {offsets = [0, 18], sizes = [4, 384], strides = [1, 1]} : vector<4x512xbf16> to vector<4x384xbf16>
    %cst_64 = arith.constant dense<0.000000e+00> : vector<8x384xf32>
    %77 = tpu.matmul %75, %76, %cst_64 {dimension_numbers = #tpu.dot_dimension_numbers<[1], [0], [0], [1], [0, 0, 1, 1], [], []>} : vector<8x4xbf16>, vector<4x384xbf16>, vector<8x384xf32> -> vector<8x384xf32>
    %78 = arith.addf %73, %77 : vector<8x384xf32>
    %c13 = arith.constant 13 : index
    %c0_65 = arith.constant 0 : index
    %c0_66 = arith.constant 0 : index
    %79 = vector.load %arg4[%c13, %c0_65, %c0_66] : memref<27x8x4xbf16, #tpu.memory_space<vmem>>, vector<1x8x4xbf16>
    %80 = vector.shape_cast %79 : vector<1x8x4xbf16> to vector<8x4xbf16>
    %81 = vector.extract_strided_slice %3 {offsets = [0, 19], sizes = [4, 384], strides = [1, 1]} : vector<4x512xbf16> to vector<4x384xbf16>
    %cst_67 = arith.constant dense<0.000000e+00> : vector<8x384xf32>
    %82 = tpu.matmul %80, %81, %cst_67 {dimension_numbers = #tpu.dot_dimension_numbers<[1], [0], [0], [1], [0, 0, 1, 1], [], []>} : vector<8x4xbf16>, vector<4x384xbf16>, vector<8x384xf32> -> vector<8x384xf32>
    %83 = arith.addf %78, %82 : vector<8x384xf32>
    %c14 = arith.constant 14 : index
    %c0_68 = arith.constant 0 : index
    %c0_69 = arith.constant 0 : index
    %84 = vector.load %arg4[%c14, %c0_68, %c0_69] : memref<27x8x4xbf16, #tpu.memory_space<vmem>>, vector<1x8x4xbf16>
    %85 = vector.shape_cast %84 : vector<1x8x4xbf16> to vector<8x4xbf16>
    %86 = vector.extract_strided_slice %3 {offsets = [0, 20], sizes = [4, 384], strides = [1, 1]} : vector<4x512xbf16> to vector<4x384xbf16>
    %cst_70 = arith.constant dense<0.000000e+00> : vector<8x384xf32>
    %87 = tpu.matmul %85, %86, %cst_70 {dimension_numbers = #tpu.dot_dimension_numbers<[1], [0], [0], [1], [0, 0, 1, 1], [], []>} : vector<8x4xbf16>, vector<4x384xbf16>, vector<8x384xf32> -> vector<8x384xf32>
    %88 = arith.addf %83, %87 : vector<8x384xf32>
    %c15 = arith.constant 15 : index
    %c0_71 = arith.constant 0 : index
    %c0_72 = arith.constant 0 : index
    %89 = vector.load %arg4[%c15, %c0_71, %c0_72] : memref<27x8x4xbf16, #tpu.memory_space<vmem>>, vector<1x8x4xbf16>
    %90 = vector.shape_cast %89 : vector<1x8x4xbf16> to vector<8x4xbf16>
    %91 = vector.extract_strided_slice %3 {offsets = [0, 36], sizes = [4, 384], strides = [1, 1]} : vector<4x512xbf16> to vector<4x384xbf16>
    %cst_73 = arith.constant dense<0.000000e+00> : vector<8x384xf32>
    %92 = tpu.matmul %90, %91, %cst_73 {dimension_numbers = #tpu.dot_dimension_numbers<[1], [0], [0], [1], [0, 0, 1, 1], [], []>} : vector<8x4xbf16>, vector<4x384xbf16>, vector<8x384xf32> -> vector<8x384xf32>
    %93 = arith.addf %88, %92 : vector<8x384xf32>
    %c16 = arith.constant 16 : index
    %c0_74 = arith.constant 0 : index
    %c0_75 = arith.constant 0 : index
    %94 = vector.load %arg4[%c16, %c0_74, %c0_75] : memref<27x8x4xbf16, #tpu.memory_space<vmem>>, vector<1x8x4xbf16>
    %95 = vector.shape_cast %94 : vector<1x8x4xbf16> to vector<8x4xbf16>
    %96 = vector.extract_strided_slice %3 {offsets = [0, 37], sizes = [4, 384], strides = [1, 1]} : vector<4x512xbf16> to vector<4x384xbf16>
    %cst_76 = arith.constant dense<0.000000e+00> : vector<8x384xf32>
    %97 = tpu.matmul %95, %96, %cst_76 {dimension_numbers = #tpu.dot_dimension_numbers<[1], [0], [0], [1], [0, 0, 1, 1], [], []>} : vector<8x4xbf16>, vector<4x384xbf16>, vector<8x384xf32> -> vector<8x384xf32>
    %98 = arith.addf %93, %97 : vector<8x384xf32>
    %c17 = arith.constant 17 : index
    %c0_77 = arith.constant 0 : index
    %c0_78 = arith.constant 0 : index
    %99 = vector.load %arg4[%c17, %c0_77, %c0_78] : memref<27x8x4xbf16, #tpu.memory_space<vmem>>, vector<1x8x4xbf16>
    %100 = vector.shape_cast %99 : vector<1x8x4xbf16> to vector<8x4xbf16>
    %101 = vector.extract_strided_slice %3 {offsets = [0, 38], sizes = [4, 384], strides = [1, 1]} : vector<4x512xbf16> to vector<4x384xbf16>
    %cst_79 = arith.constant dense<0.000000e+00> : vector<8x384xf32>
    %102 = tpu.matmul %100, %101, %cst_79 {dimension_numbers = #tpu.dot_dimension_numbers<[1], [0], [0], [1], [0, 0, 1, 1], [], []>} : vector<8x4xbf16>, vector<4x384xbf16>, vector<8x384xf32> -> vector<8x384xf32>
    %103 = arith.addf %98, %102 : vector<8x384xf32>
    %c18 = arith.constant 18 : index
    %c0_80 = arith.constant 0 : index
    %c0_81 = arith.constant 0 : index
    %104 = vector.load %arg4[%c18, %c0_80, %c0_81] : memref<27x8x4xbf16, #tpu.memory_space<vmem>>, vector<1x8x4xbf16>
    %105 = vector.shape_cast %104 : vector<1x8x4xbf16> to vector<8x4xbf16>
    %106 = vector.extract_strided_slice %5 {offsets = [0, 0], sizes = [4, 384], strides = [1, 1]} : vector<4x512xbf16> to vector<4x384xbf16>
    %cst_82 = arith.constant dense<0.000000e+00> : vector<8x384xf32>
    %107 = tpu.matmul %105, %106, %cst_82 {dimension_numbers = #tpu.dot_dimension_numbers<[1], [0], [0], [1], [0, 0, 1, 1], [], []>} : vector<8x4xbf16>, vector<4x384xbf16>, vector<8x384xf32> -> vector<8x384xf32>
    %108 = arith.addf %103, %107 : vector<8x384xf32>
    %c19 = arith.constant 19 : index
    %c0_83 = arith.constant 0 : index
    %c0_84 = arith.constant 0 : index
    %109 = vector.load %arg4[%c19, %c0_83, %c0_84] : memref<27x8x4xbf16, #tpu.memory_space<vmem>>, vector<1x8x4xbf16>
    %110 = vector.shape_cast %109 : vector<1x8x4xbf16> to vector<8x4xbf16>
    %111 = vector.extract_strided_slice %5 {offsets = [0, 1], sizes = [4, 384], strides = [1, 1]} : vector<4x512xbf16> to vector<4x384xbf16>
    %cst_85 = arith.constant dense<0.000000e+00> : vector<8x384xf32>
    %112 = tpu.matmul %110, %111, %cst_85 {dimension_numbers = #tpu.dot_dimension_numbers<[1], [0], [0], [1], [0, 0, 1, 1], [], []>} : vector<8x4xbf16>, vector<4x384xbf16>, vector<8x384xf32> -> vector<8x384xf32>
    %113 = arith.addf %108, %112 : vector<8x384xf32>
    %c20 = arith.constant 20 : index
    %c0_86 = arith.constant 0 : index
    %c0_87 = arith.constant 0 : index
    %114 = vector.load %arg4[%c20, %c0_86, %c0_87] : memref<27x8x4xbf16, #tpu.memory_space<vmem>>, vector<1x8x4xbf16>
    %115 = vector.shape_cast %114 : vector<1x8x4xbf16> to vector<8x4xbf16>
    %116 = vector.extract_strided_slice %5 {offsets = [0, 2], sizes = [4, 384], strides = [1, 1]} : vector<4x512xbf16> to vector<4x384xbf16>
    %cst_88 = arith.constant dense<0.000000e+00> : vector<8x384xf32>
    %117 = tpu.matmul %115, %116, %cst_88 {dimension_numbers = #tpu.dot_dimension_numbers<[1], [0], [0], [1], [0, 0, 1, 1], [], []>} : vector<8x4xbf16>, vector<4x384xbf16>, vector<8x384xf32> -> vector<8x384xf32>
    %118 = arith.addf %113, %117 : vector<8x384xf32>
    %c21 = arith.constant 21 : index
    %c0_89 = arith.constant 0 : index
    %c0_90 = arith.constant 0 : index
    %119 = vector.load %arg4[%c21, %c0_89, %c0_90] : memref<27x8x4xbf16, #tpu.memory_space<vmem>>, vector<1x8x4xbf16>
    %120 = vector.shape_cast %119 : vector<1x8x4xbf16> to vector<8x4xbf16>
    %121 = vector.extract_strided_slice %5 {offsets = [0, 18], sizes = [4, 384], strides = [1, 1]} : vector<4x512xbf16> to vector<4x384xbf16>
    %cst_91 = arith.constant dense<0.000000e+00> : vector<8x384xf32>
    %122 = tpu.matmul %120, %121, %cst_91 {dimension_numbers = #tpu.dot_dimension_numbers<[1], [0], [0], [1], [0, 0, 1, 1], [], []>} : vector<8x4xbf16>, vector<4x384xbf16>, vector<8x384xf32> -> vector<8x384xf32>
    %123 = arith.addf %118, %122 : vector<8x384xf32>
    %c22 = arith.constant 22 : index
    %c0_92 = arith.constant 0 : index
    %c0_93 = arith.constant 0 : index
    %124 = vector.load %arg4[%c22, %c0_92, %c0_93] : memref<27x8x4xbf16, #tpu.memory_space<vmem>>, vector<1x8x4xbf16>
    %125 = vector.shape_cast %124 : vector<1x8x4xbf16> to vector<8x4xbf16>
    %126 = vector.extract_strided_slice %5 {offsets = [0, 19], sizes = [4, 384], strides = [1, 1]} : vector<4x512xbf16> to vector<4x384xbf16>
    %cst_94 = arith.constant dense<0.000000e+00> : vector<8x384xf32>
    %127 = tpu.matmul %125, %126, %cst_94 {dimension_numbers = #tpu.dot_dimension_numbers<[1], [0], [0], [1], [0, 0, 1, 1], [], []>} : vector<8x4xbf16>, vector<4x384xbf16>, vector<8x384xf32> -> vector<8x384xf32>
    %128 = arith.addf %123, %127 : vector<8x384xf32>
    %c23 = arith.constant 23 : index
    %c0_95 = arith.constant 0 : index
    %c0_96 = arith.constant 0 : index
    %129 = vector.load %arg4[%c23, %c0_95, %c0_96] : memref<27x8x4xbf16, #tpu.memory_space<vmem>>, vector<1x8x4xbf16>
    %130 = vector.shape_cast %129 : vector<1x8x4xbf16> to vector<8x4xbf16>
    %131 = vector.extract_strided_slice %5 {offsets = [0, 20], sizes = [4, 384], strides = [1, 1]} : vector<4x512xbf16> to vector<4x384xbf16>
    %cst_97 = arith.constant dense<0.000000e+00> : vector<8x384xf32>
    %132 = tpu.matmul %130, %131, %cst_97 {dimension_numbers = #tpu.dot_dimension_numbers<[1], [0], [0], [1], [0, 0, 1, 1], [], []>} : vector<8x4xbf16>, vector<4x384xbf16>, vector<8x384xf32> -> vector<8x384xf32>
    %133 = arith.addf %128, %132 : vector<8x384xf32>
    %c24 = arith.constant 24 : index
    %c0_98 = arith.constant 0 : index
    %c0_99 = arith.constant 0 : index
    %134 = vector.load %arg4[%c24, %c0_98, %c0_99] : memref<27x8x4xbf16, #tpu.memory_space<vmem>>, vector<1x8x4xbf16>
    %135 = vector.shape_cast %134 : vector<1x8x4xbf16> to vector<8x4xbf16>
    %136 = vector.extract_strided_slice %5 {offsets = [0, 36], sizes = [4, 384], strides = [1, 1]} : vector<4x512xbf16> to vector<4x384xbf16>
    %cst_100 = arith.constant dense<0.000000e+00> : vector<8x384xf32>
    %137 = tpu.matmul %135, %136, %cst_100 {dimension_numbers = #tpu.dot_dimension_numbers<[1], [0], [0], [1], [0, 0, 1, 1], [], []>} : vector<8x4xbf16>, vector<4x384xbf16>, vector<8x384xf32> -> vector<8x384xf32>
    %138 = arith.addf %133, %137 : vector<8x384xf32>
    %c25 = arith.constant 25 : index
    %c0_101 = arith.constant 0 : index
    %c0_102 = arith.constant 0 : index
    %139 = vector.load %arg4[%c25, %c0_101, %c0_102] : memref<27x8x4xbf16, #tpu.memory_space<vmem>>, vector<1x8x4xbf16>
    %140 = vector.shape_cast %139 : vector<1x8x4xbf16> to vector<8x4xbf16>
    %141 = vector.extract_strided_slice %5 {offsets = [0, 37], sizes = [4, 384], strides = [1, 1]} : vector<4x512xbf16> to vector<4x384xbf16>
    %cst_103 = arith.constant dense<0.000000e+00> : vector<8x384xf32>
    %142 = tpu.matmul %140, %141, %cst_103 {dimension_numbers = #tpu.dot_dimension_numbers<[1], [0], [0], [1], [0, 0, 1, 1], [], []>} : vector<8x4xbf16>, vector<4x384xbf16>, vector<8x384xf32> -> vector<8x384xf32>
    %143 = arith.addf %138, %142 : vector<8x384xf32>
    %c26 = arith.constant 26 : index
    %c0_104 = arith.constant 0 : index
    %c0_105 = arith.constant 0 : index
    %144 = vector.load %arg4[%c26, %c0_104, %c0_105] : memref<27x8x4xbf16, #tpu.memory_space<vmem>>, vector<1x8x4xbf16>
    %145 = vector.shape_cast %144 : vector<1x8x4xbf16> to vector<8x4xbf16>
    %146 = vector.extract_strided_slice %5 {offsets = [0, 38], sizes = [4, 384], strides = [1, 1]} : vector<4x512xbf16> to vector<4x384xbf16>
    %cst_106 = arith.constant dense<0.000000e+00> : vector<8x384xf32>
    %147 = tpu.matmul %145, %146, %cst_106 {dimension_numbers = #tpu.dot_dimension_numbers<[1], [0], [0], [1], [0, 0, 1, 1], [], []>} : vector<8x4xbf16>, vector<4x384xbf16>, vector<8x384xf32> -> vector<8x384xf32>
    %148 = arith.addf %143, %147 : vector<8x384xf32>
    %149 = vector.broadcast %12 : vector<8x1xf32> to vector<8x384xf32>
    %150 = arith.addf %148, %149 : vector<8x384xf32>
    %cst_107 = arith.constant 0.000000e+00 : f32
    %151 = vector.broadcast %cst_107 : f32 to vector<8x384xf32>
    %152 = arith.maximumf %150, %151 : vector<8x384xf32>
    %c0_108 = arith.constant 0 : index
    %c0_109 = arith.constant 0 : index
    %c0_110 = arith.constant 0 : index
    %c0_111 = arith.constant 0 : index
    %153 = vector.load %arg6[%c0_108, %c0_109, %c0_110, %c0_111] : memref<1x4x8x384xf32, #tpu.memory_space<vmem>>, vector<1x1x8x384xf32>
    %154 = vector.shape_cast %153 : vector<1x1x8x384xf32> to vector<8x384xf32>
    %155 = vector.shape_cast %152 : vector<8x384xf32> to vector<1x1x8x384xf32>
    tpu.vector_store %arg6[%c0_108, %c0_109, %c0_110, %c0_111], %155 {strides = array<i32>} : memref<1x4x8x384xf32, #tpu.memory_space<vmem>>, vector<1x1x8x384xf32>,
    %cst_112 = arith.constant 0.000000e+00 : f32
    %156 = vector.broadcast %cst_112 : f32 to vector<8x384xf32>
    %c0_113 = arith.constant 0 : index
    %c0_114 = arith.constant 0 : index
    %c0_115 = arith.constant 0 : index
    %157 = vector.load %arg4[%c0_113, %c0_114, %c0_115] : memref<27x8x4xbf16, #tpu.memory_space<vmem>>, vector<1x8x4xbf16>
    %158 = vector.shape_cast %157 : vector<1x8x4xbf16> to vector<8x4xbf16>
    %159 = vector.extract_strided_slice %3 {offsets = [0, 0], sizes = [4, 384], strides = [1, 1]} : vector<4x512xbf16> to vector<4x384xbf16>
    %cst_116 = arith.constant dense<0.000000e+00> : vector<8x384xf32>
    %160 = tpu.matmul %158, %159, %cst_116 {dimension_numbers = #tpu.dot_dimension_numbers<[1], [0], [0], [1], [0, 0, 1, 1], [], []>} : vector<8x4xbf16>, vector<4x384xbf16>, vector<8x384xf32> -> vector<8x384xf32>
    %161 = arith.addf %156, %160 : vector<8x384xf32>
    %c1_117 = arith.constant 1 : index
    %c0_118 = arith.constant 0 : index
    %c0_119 = arith.constant 0 : index
    %162 = vector.load %arg4[%c1_117, %c0_118, %c0_119] : memref<27x8x4xbf16, #tpu.memory_space<vmem>>, vector<1x8x4xbf16>
    %163 = vector.shape_cast %162 : vector<1x8x4xbf16> to vector<8x4xbf16>
    %164 = vector.extract_strided_slice %3 {offsets = [0, 1], sizes = [4, 384], strides = [1, 1]} : vector<4x512xbf16> to vector<4x384xbf16>
    %cst_120 = arith.constant dense<0.000000e+00> : vector<8x384xf32>
    %165 = tpu.matmul %163, %164, %cst_120 {dimension_numbers = #tpu.dot_dimension_numbers<[1], [0], [0], [1], [0, 0, 1, 1], [], []>} : vector<8x4xbf16>, vector<4x384xbf16>, vector<8x384xf32> -> vector<8x384xf32>
    %166 = arith.addf %161, %165 : vector<8x384xf32>
    %c2_121 = arith.constant 2 : index
    %c0_122 = arith.constant 0 : index
    %c0_123 = arith.constant 0 : index
    %167 = vector.load %arg4[%c2_121, %c0_122, %c0_123] : memref<27x8x4xbf16, #tpu.memory_space<vmem>>, vector<1x8x4xbf16>
    %168 = vector.shape_cast %167 : vector<1x8x4xbf16> to vector<8x4xbf16>
    %169 = vector.extract_strided_slice %3 {offsets = [0, 2], sizes = [4, 384], strides = [1, 1]} : vector<4x512xbf16> to vector<4x384xbf16>
    %cst_124 = arith.constant dense<0.000000e+00> : vector<8x384xf32>
    %170 = tpu.matmul %168, %169, %cst_124 {dimension_numbers = #tpu.dot_dimension_numbers<[1], [0], [0], [1], [0, 0, 1, 1], [], []>} : vector<8x4xbf16>, vector<4x384xbf16>, vector<8x384xf32> -> vector<8x384xf32>
    %171 = arith.addf %166, %170 : vector<8x384xf32>
    %c3_125 = arith.constant 3 : index
    %c0_126 = arith.constant 0 : index
    %c0_127 = arith.constant 0 : index
    %172 = vector.load %arg4[%c3_125, %c0_126, %c0_127] : memref<27x8x4xbf16, #tpu.memory_space<vmem>>, vector<1x8x4xbf16>
    %173 = vector.shape_cast %172 : vector<1x8x4xbf16> to vector<8x4xbf16>
    %174 = vector.extract_strided_slice %3 {offsets = [0, 18], sizes = [4, 384], strides = [1, 1]} : vector<4x512xbf16> to vector<4x384xbf16>
    %cst_128 = arith.constant dense<0.000000e+00> : vector<8x384xf32>
    %175 = tpu.matmul %173, %174, %cst_128 {dimension_numbers = #tpu.dot_dimension_numbers<[1], [0], [0], [1], [0, 0, 1, 1], [], []>} : vector<8x4xbf16>, vector<4x384xbf16>, vector<8x384xf32> -> vector<8x384xf32>
    %176 = arith.addf %171, %175 : vector<8x384xf32>
    %c4_129 = arith.constant 4 : index
    %c0_130 = arith.constant 0 : index
    %c0_131 = arith.constant 0 : index
    %177 = vector.load %arg4[%c4_129, %c0_130, %c0_131] : memref<27x8x4xbf16, #tpu.memory_space<vmem>>, vector<1x8x4xbf16>
    %178 = vector.shape_cast %177 : vector<1x8x4xbf16> to vector<8x4xbf16>
    %179 = vector.extract_strided_slice %3 {offsets = [0, 19], sizes = [4, 384], strides = [1, 1]} : vector<4x512xbf16> to vector<4x384xbf16>
    %cst_132 = arith.constant dense<0.000000e+00> : vector<8x384xf32>
    %180 = tpu.matmul %178, %179, %cst_132 {dimension_numbers = #tpu.dot_dimension_numbers<[1], [0], [0], [1], [0, 0, 1, 1], [], []>} : vector<8x4xbf16>, vector<4x384xbf16>, vector<8x384xf32> -> vector<8x384xf32>
    %181 = arith.addf %176, %180 : vector<8x384xf32>
    %c5_133 = arith.constant 5 : index
    %c0_134 = arith.constant 0 : index
    %c0_135 = arith.constant 0 : index
    %182 = vector.load %arg4[%c5_133, %c0_134, %c0_135] : memref<27x8x4xbf16, #tpu.memory_space<vmem>>, vector<1x8x4xbf16>
    %183 = vector.shape_cast %182 : vector<1x8x4xbf16> to vector<8x4xbf16>
    %184 = vector.extract_strided_slice %3 {offsets = [0, 20], sizes = [4, 384], strides = [1, 1]} : vector<4x512xbf16> to vector<4x384xbf16>
    %cst_136 = arith.constant dense<0.000000e+00> : vector<8x384xf32>
    %185 = tpu.matmul %183, %184, %cst_136 {dimension_numbers = #tpu.dot_dimension_numbers<[1], [0], [0], [1], [0, 0, 1, 1], [], []>} : vector<8x4xbf16>, vector<4x384xbf16>, vector<8x384xf32> -> vector<8x384xf32>
    %186 = arith.addf %181, %185 : vector<8x384xf32>
    %c6_137 = arith.constant 6 : index
    %c0_138 = arith.constant 0 : index
    %c0_139 = arith.constant 0 : index
    %187 = vector.load %arg4[%c6_137, %c0_138, %c0_139] : memref<27x8x4xbf16, #tpu.memory_space<vmem>>, vector<1x8x4xbf16>
    %188 = vector.shape_cast %187 : vector<1x8x4xbf16> to vector<8x4xbf16>
    %189 = vector.extract_strided_slice %3 {offsets = [0, 36], sizes = [4, 384], strides = [1, 1]} : vector<4x512xbf16> to vector<4x384xbf16>
    %cst_140 = arith.constant dense<0.000000e+00> : vector<8x384xf32>
    %190 = tpu.matmul %188, %189, %cst_140 {dimension_numbers = #tpu.dot_dimension_numbers<[1], [0], [0], [1], [0, 0, 1, 1], [], []>} : vector<8x4xbf16>, vector<4x384xbf16>, vector<8x384xf32> -> vector<8x384xf32>
    %191 = arith.addf %186, %190 : vector<8x384xf32>
    %c7_141 = arith.constant 7 : index
    %c0_142 = arith.constant 0 : index
    %c0_143 = arith.constant 0 : index
    %192 = vector.load %arg4[%c7_141, %c0_142, %c0_143] : memref<27x8x4xbf16, #tpu.memory_space<vmem>>, vector<1x8x4xbf16>
    %193 = vector.shape_cast %192 : vector<1x8x4xbf16> to vector<8x4xbf16>
    %194 = vector.extract_strided_slice %3 {offsets = [0, 37], sizes = [4, 384], strides = [1, 1]} : vector<4x512xbf16> to vector<4x384xbf16>
    %cst_144 = arith.constant dense<0.000000e+00> : vector<8x384xf32>
    %195 = tpu.matmul %193, %194, %cst_144 {dimension_numbers = #tpu.dot_dimension_numbers<[1], [0], [0], [1], [0, 0, 1, 1], [], []>} : vector<8x4xbf16>, vector<4x384xbf16>, vector<8x384xf32> -> vector<8x384xf32>
    %196 = arith.addf %191, %195 : vector<8x384xf32>
    %c8_145 = arith.constant 8 : index
    %c0_146 = arith.constant 0 : index
    %c0_147 = arith.constant 0 : index
    %197 = vector.load %arg4[%c8_145, %c0_146, %c0_147] : memref<27x8x4xbf16, #tpu.memory_space<vmem>>, vector<1x8x4xbf16>
    %198 = vector.shape_cast %197 : vector<1x8x4xbf16> to vector<8x4xbf16>
    %199 = vector.extract_strided_slice %3 {offsets = [0, 38], sizes = [4, 384], strides = [1, 1]} : vector<4x512xbf16> to vector<4x384xbf16>
    %cst_148 = arith.constant dense<0.000000e+00> : vector<8x384xf32>
    %200 = tpu.matmul %198, %199, %cst_148 {dimension_numbers = #tpu.dot_dimension_numbers<[1], [0], [0], [1], [0, 0, 1, 1], [], []>} : vector<8x4xbf16>, vector<4x384xbf16>, vector<8x384xf32> -> vector<8x384xf32>
    %201 = arith.addf %196, %200 : vector<8x384xf32>
    %c9_149 = arith.constant 9 : index
    %c0_150 = arith.constant 0 : index
    %c0_151 = arith.constant 0 : index
    %202 = vector.load %arg4[%c9_149, %c0_150, %c0_151] : memref<27x8x4xbf16, #tpu.memory_space<vmem>>, vector<1x8x4xbf16>
    %203 = vector.shape_cast %202 : vector<1x8x4xbf16> to vector<8x4xbf16>
    %204 = vector.extract_strided_slice %5 {offsets = [0, 0], sizes = [4, 384], strides = [1, 1]} : vector<4x512xbf16> to vector<4x384xbf16>
    %cst_152 = arith.constant dense<0.000000e+00> : vector<8x384xf32>
    %205 = tpu.matmul %203, %204, %cst_152 {dimension_numbers = #tpu.dot_dimension_numbers<[1], [0], [0], [1], [0, 0, 1, 1], [], []>} : vector<8x4xbf16>, vector<4x384xbf16>, vector<8x384xf32> -> vector<8x384xf32>
    %206 = arith.addf %201, %205 : vector<8x384xf32>
    %c10_153 = arith.constant 10 : index
    %c0_154 = arith.constant 0 : index
    %c0_155 = arith.constant 0 : index
    %207 = vector.load %arg4[%c10_153, %c0_154, %c0_155] : memref<27x8x4xbf16, #tpu.memory_space<vmem>>, vector<1x8x4xbf16>
    %208 = vector.shape_cast %207 : vector<1x8x4xbf16> to vector<8x4xbf16>
    %209 = vector.extract_strided_slice %5 {offsets = [0, 1], sizes = [4, 384], strides = [1, 1]} : vector<4x512xbf16> to vector<4x384xbf16>
    %cst_156 = arith.constant dense<0.000000e+00> : vector<8x384xf32>
    %210 = tpu.matmul %208, %209, %cst_156 {dimension_numbers = #tpu.dot_dimension_numbers<[1], [0], [0], [1], [0, 0, 1, 1], [], []>} : vector<8x4xbf16>, vector<4x384xbf16>, vector<8x384xf32> -> vector<8x384xf32>
    %211 = arith.addf %206, %210 : vector<8x384xf32>
    %c11_157 = arith.constant 11 : index
    %c0_158 = arith.constant 0 : index
    %c0_159 = arith.constant 0 : index
    %212 = vector.load %arg4[%c11_157, %c0_158, %c0_159] : memref<27x8x4xbf16, #tpu.memory_space<vmem>>, vector<1x8x4xbf16>
    %213 = vector.shape_cast %212 : vector<1x8x4xbf16> to vector<8x4xbf16>
    %214 = vector.extract_strided_slice %5 {offsets = [0, 2], sizes = [4, 384], strides = [1, 1]} : vector<4x512xbf16> to vector<4x384xbf16>
    %cst_160 = arith.constant dense<0.000000e+00> : vector<8x384xf32>
    %215 = tpu.matmul %213, %214, %cst_160 {dimension_numbers = #tpu.dot_dimension_numbers<[1], [0], [0], [1], [0, 0, 1, 1], [], []>} : vector<8x4xbf16>, vector<4x384xbf16>, vector<8x384xf32> -> vector<8x384xf32>
    %216 = arith.addf %211, %215 : vector<8x384xf32>
    %c12_161 = arith.constant 12 : index
    %c0_162 = arith.constant 0 : index
    %c0_163 = arith.constant 0 : index
    %217 = vector.load %arg4[%c12_161, %c0_162, %c0_163] : memref<27x8x4xbf16, #tpu.memory_space<vmem>>, vector<1x8x4xbf16>
    %218 = vector.shape_cast %217 : vector<1x8x4xbf16> to vector<8x4xbf16>
    %219 = vector.extract_strided_slice %5 {offsets = [0, 18], sizes = [4, 384], strides = [1, 1]} : vector<4x512xbf16> to vector<4x384xbf16>
    %cst_164 = arith.constant dense<0.000000e+00> : vector<8x384xf32>
    %220 = tpu.matmul %218, %219, %cst_164 {dimension_numbers = #tpu.dot_dimension_numbers<[1], [0], [0], [1], [0, 0, 1, 1], [], []>} : vector<8x4xbf16>, vector<4x384xbf16>, vector<8x384xf32> -> vector<8x384xf32>
    %221 = arith.addf %216, %220 : vector<8x384xf32>
    %c13_165 = arith.constant 13 : index
    %c0_166 = arith.constant 0 : index
    %c0_167 = arith.constant 0 : index
    %222 = vector.load %arg4[%c13_165, %c0_166, %c0_167] : memref<27x8x4xbf16, #tpu.memory_space<vmem>>, vector<1x8x4xbf16>
    %223 = vector.shape_cast %222 : vector<1x8x4xbf16> to vector<8x4xbf16>
    %224 = vector.extract_strided_slice %5 {offsets = [0, 19], sizes = [4, 384], strides = [1, 1]} : vector<4x512xbf16> to vector<4x384xbf16>
    %cst_168 = arith.constant dense<0.000000e+00> : vector<8x384xf32>
    %225 = tpu.matmul %223, %224, %cst_168 {dimension_numbers = #tpu.dot_dimension_numbers<[1], [0], [0], [1], [0, 0, 1, 1], [], []>} : vector<8x4xbf16>, vector<4x384xbf16>, vector<8x384xf32> -> vector<8x384xf32>
    %226 = arith.addf %221, %225 : vector<8x384xf32>
    %c14_169 = arith.constant 14 : index
    %c0_170 = arith.constant 0 : index
    %c0_171 = arith.constant 0 : index
    %227 = vector.load %arg4[%c14_169, %c0_170, %c0_171] : memref<27x8x4xbf16, #tpu.memory_space<vmem>>, vector<1x8x4xbf16>
    %228 = vector.shape_cast %227 : vector<1x8x4xbf16> to vector<8x4xbf16>
    %229 = vector.extract_strided_slice %5 {offsets = [0, 20], sizes = [4, 384], strides = [1, 1]} : vector<4x512xbf16> to vector<4x384xbf16>
    %cst_172 = arith.constant dense<0.000000e+00> : vector<8x384xf32>
    %230 = tpu.matmul %228, %229, %cst_172 {dimension_numbers = #tpu.dot_dimension_numbers<[1], [0], [0], [1], [0, 0, 1, 1], [], []>} : vector<8x4xbf16>, vector<4x384xbf16>, vector<8x384xf32> -> vector<8x384xf32>
    %231 = arith.addf %226, %230 : vector<8x384xf32>
    %c15_173 = arith.constant 15 : index
    %c0_174 = arith.constant 0 : index
    %c0_175 = arith.constant 0 : index
    %232 = vector.load %arg4[%c15_173, %c0_174, %c0_175] : memref<27x8x4xbf16, #tpu.memory_space<vmem>>, vector<1x8x4xbf16>
    %233 = vector.shape_cast %232 : vector<1x8x4xbf16> to vector<8x4xbf16>
    %234 = vector.extract_strided_slice %5 {offsets = [0, 36], sizes = [4, 384], strides = [1, 1]} : vector<4x512xbf16> to vector<4x384xbf16>
    %cst_176 = arith.constant dense<0.000000e+00> : vector<8x384xf32>
    %235 = tpu.matmul %233, %234, %cst_176 {dimension_numbers = #tpu.dot_dimension_numbers<[1], [0], [0], [1], [0, 0, 1, 1], [], []>} : vector<8x4xbf16>, vector<4x384xbf16>, vector<8x384xf32> -> vector<8x384xf32>
    %236 = arith.addf %231, %235 : vector<8x384xf32>
    %c16_177 = arith.constant 16 : index
    %c0_178 = arith.constant 0 : index
    %c0_179 = arith.constant 0 : index
    %237 = vector.load %arg4[%c16_177, %c0_178, %c0_179] : memref<27x8x4xbf16, #tpu.memory_space<vmem>>, vector<1x8x4xbf16>
    %238 = vector.shape_cast %237 : vector<1x8x4xbf16> to vector<8x4xbf16>
    %239 = vector.extract_strided_slice %5 {offsets = [0, 37], sizes = [4, 384], strides = [1, 1]} : vector<4x512xbf16> to vector<4x384xbf16>
    %cst_180 = arith.constant dense<0.000000e+00> : vector<8x384xf32>
    %240 = tpu.matmul %238, %239, %cst_180 {dimension_numbers = #tpu.dot_dimension_numbers<[1], [0], [0], [1], [0, 0, 1, 1], [], []>} : vector<8x4xbf16>, vector<4x384xbf16>, vector<8x384xf32> -> vector<8x384xf32>
    %241 = arith.addf %236, %240 : vector<8x384xf32>
    %c17_181 = arith.constant 17 : index
    %c0_182 = arith.constant 0 : index
    %c0_183 = arith.constant 0 : index
    %242 = vector.load %arg4[%c17_181, %c0_182, %c0_183] : memref<27x8x4xbf16, #tpu.memory_space<vmem>>, vector<1x8x4xbf16>
    %243 = vector.shape_cast %242 : vector<1x8x4xbf16> to vector<8x4xbf16>
    %244 = vector.extract_strided_slice %5 {offsets = [0, 38], sizes = [4, 384], strides = [1, 1]} : vector<4x512xbf16> to vector<4x384xbf16>
    %cst_184 = arith.constant dense<0.000000e+00> : vector<8x384xf32>
    %245 = tpu.matmul %243, %244, %cst_184 {dimension_numbers = #tpu.dot_dimension_numbers<[1], [0], [0], [1], [0, 0, 1, 1], [], []>} : vector<8x4xbf16>, vector<4x384xbf16>, vector<8x384xf32> -> vector<8x384xf32>
    %246 = arith.addf %241, %245 : vector<8x384xf32>
    %c18_185 = arith.constant 18 : index
    %c0_186 = arith.constant 0 : index
    %c0_187 = arith.constant 0 : index
    %247 = vector.load %arg4[%c18_185, %c0_186, %c0_187] : memref<27x8x4xbf16, #tpu.memory_space<vmem>>, vector<1x8x4xbf16>
    %248 = vector.shape_cast %247 : vector<1x8x4xbf16> to vector<8x4xbf16>
    %249 = vector.extract_strided_slice %7 {offsets = [0, 0], sizes = [4, 384], strides = [1, 1]} : vector<4x512xbf16> to vector<4x384xbf16>
    %cst_188 = arith.constant dense<0.000000e+00> : vector<8x384xf32>
    %250 = tpu.matmul %248, %249, %cst_188 {dimension_numbers = #tpu.dot_dimension_numbers<[1], [0], [0], [1], [0, 0, 1, 1], [], []>} : vector<8x4xbf16>, vector<4x384xbf16>, vector<8x384xf32> -> vector<8x384xf32>
    %251 = arith.addf %246, %250 : vector<8x384xf32>
    %c19_189 = arith.constant 19 : index
    %c0_190 = arith.constant 0 : index
    %c0_191 = arith.constant 0 : index
    %252 = vector.load %arg4[%c19_189, %c0_190, %c0_191] : memref<27x8x4xbf16, #tpu.memory_space<vmem>>, vector<1x8x4xbf16>
    %253 = vector.shape_cast %252 : vector<1x8x4xbf16> to vector<8x4xbf16>
    %254 = vector.extract_strided_slice %7 {offsets = [0, 1], sizes = [4, 384], strides = [1, 1]} : vector<4x512xbf16> to vector<4x384xbf16>
    %cst_192 = arith.constant dense<0.000000e+00> : vector<8x384xf32>
    %255 = tpu.matmul %253, %254, %cst_192 {dimension_numbers = #tpu.dot_dimension_numbers<[1], [0], [0], [1], [0, 0, 1, 1], [], []>} : vector<8x4xbf16>, vector<4x384xbf16>, vector<8x384xf32> -> vector<8x384xf32>
    %256 = arith.addf %251, %255 : vector<8x384xf32>
    %c20_193 = arith.constant 20 : index
    %c0_194 = arith.constant 0 : index
    %c0_195 = arith.constant 0 : index
    %257 = vector.load %arg4[%c20_193, %c0_194, %c0_195] : memref<27x8x4xbf16, #tpu.memory_space<vmem>>, vector<1x8x4xbf16>
    %258 = vector.shape_cast %257 : vector<1x8x4xbf16> to vector<8x4xbf16>
    %259 = vector.extract_strided_slice %7 {offsets = [0, 2], sizes = [4, 384], strides = [1, 1]} : vector<4x512xbf16> to vector<4x384xbf16>
    %cst_196 = arith.constant dense<0.000000e+00> : vector<8x384xf32>
    %260 = tpu.matmul %258, %259, %cst_196 {dimension_numbers = #tpu.dot_dimension_numbers<[1], [0], [0], [1], [0, 0, 1, 1], [], []>} : vector<8x4xbf16>, vector<4x384xbf16>, vector<8x384xf32> -> vector<8x384xf32>
    %261 = arith.addf %256, %260 : vector<8x384xf32>
    %c21_197 = arith.constant 21 : index
    %c0_198 = arith.constant 0 : index
    %c0_199 = arith.constant 0 : index
    %262 = vector.load %arg4[%c21_197, %c0_198, %c0_199] : memref<27x8x4xbf16, #tpu.memory_space<vmem>>, vector<1x8x4xbf16>
    %263 = vector.shape_cast %262 : vector<1x8x4xbf16> to vector<8x4xbf16>
    %264 = vector.extract_strided_slice %7 {offsets = [0, 18], sizes = [4, 384], strides = [1, 1]} : vector<4x512xbf16> to vector<4x384xbf16>
    %cst_200 = arith.constant dense<0.000000e+00> : vector<8x384xf32>
    %265 = tpu.matmul %263, %264, %cst_200 {dimension_numbers = #tpu.dot_dimension_numbers<[1], [0], [0], [1], [0, 0, 1, 1], [], []>} : vector<8x4xbf16>, vector<4x384xbf16>, vector<8x384xf32> -> vector<8x384xf32>
    %266 = arith.addf %261, %265 : vector<8x384xf32>
    %c22_201 = arith.constant 22 : index
    %c0_202 = arith.constant 0 : index
    %c0_203 = arith.constant 0 : index
    %267 = vector.load %arg4[%c22_201, %c0_202, %c0_203] : memref<27x8x4xbf16, #tpu.memory_space<vmem>>, vector<1x8x4xbf16>
    %268 = vector.shape_cast %267 : vector<1x8x4xbf16> to vector<8x4xbf16>
    %269 = vector.extract_strided_slice %7 {offsets = [0, 19], sizes = [4, 384], strides = [1, 1]} : vector<4x512xbf16> to vector<4x384xbf16>
    %cst_204 = arith.constant dense<0.000000e+00> : vector<8x384xf32>
    %270 = tpu.matmul %268, %269, %cst_204 {dimension_numbers = #tpu.dot_dimension_numbers<[1], [0], [0], [1], [0, 0, 1, 1], [], []>} : vector<8x4xbf16>, vector<4x384xbf16>, vector<8x384xf32> -> vector<8x384xf32>
    %271 = arith.addf %266, %270 : vector<8x384xf32>
    %c23_205 = arith.constant 23 : index
    %c0_206 = arith.constant 0 : index
    %c0_207 = arith.constant 0 : index
    %272 = vector.load %arg4[%c23_205, %c0_206, %c0_207] : memref<27x8x4xbf16, #tpu.memory_space<vmem>>, vector<1x8x4xbf16>
    %273 = vector.shape_cast %272 : vector<1x8x4xbf16> to vector<8x4xbf16>
    %274 = vector.extract_strided_slice %7 {offsets = [0, 20], sizes = [4, 384], strides = [1, 1]} : vector<4x512xbf16> to vector<4x384xbf16>
    %cst_208 = arith.constant dense<0.000000e+00> : vector<8x384xf32>
    %275 = tpu.matmul %273, %274, %cst_208 {dimension_numbers = #tpu.dot_dimension_numbers<[1], [0], [0], [1], [0, 0, 1, 1], [], []>} : vector<8x4xbf16>, vector<4x384xbf16>, vector<8x384xf32> -> vector<8x384xf32>
    %276 = arith.addf %271, %275 : vector<8x384xf32>
    %c24_209 = arith.constant 24 : index
    %c0_210 = arith.constant 0 : index
    %c0_211 = arith.constant 0 : index
    %277 = vector.load %arg4[%c24_209, %c0_210, %c0_211] : memref<27x8x4xbf16, #tpu.memory_space<vmem>>, vector<1x8x4xbf16>
    %278 = vector.shape_cast %277 : vector<1x8x4xbf16> to vector<8x4xbf16>
    %279 = vector.extract_strided_slice %7 {offsets = [0, 36], sizes = [4, 384], strides = [1, 1]} : vector<4x512xbf16> to vector<4x384xbf16>
    %cst_212 = arith.constant dense<0.000000e+00> : vector<8x384xf32>
    %280 = tpu.matmul %278, %279, %cst_212 {dimension_numbers = #tpu.dot_dimension_numbers<[1], [0], [0], [1], [0, 0, 1, 1], [], []>} : vector<8x4xbf16>, vector<4x384xbf16>, vector<8x384xf32> -> vector<8x384xf32>
    %281 = arith.addf %276, %280 : vector<8x384xf32>
    %c25_213 = arith.constant 25 : index
    %c0_214 = arith.constant 0 : index
    %c0_215 = arith.constant 0 : index
    %282 = vector.load %arg4[%c25_213, %c0_214, %c0_215] : memref<27x8x4xbf16, #tpu.memory_space<vmem>>, vector<1x8x4xbf16>
    %283 = vector.shape_cast %282 : vector<1x8x4xbf16> to vector<8x4xbf16>
    %284 = vector.extract_strided_slice %7 {offsets = [0, 37], sizes = [4, 384], strides = [1, 1]} : vector<4x512xbf16> to vector<4x384xbf16>
    %cst_216 = arith.constant dense<0.000000e+00> : vector<8x384xf32>
    %285 = tpu.matmul %283, %284, %cst_216 {dimension_numbers = #tpu.dot_dimension_numbers<[1], [0], [0], [1], [0, 0, 1, 1], [], []>} : vector<8x4xbf16>, vector<4x384xbf16>, vector<8x384xf32> -> vector<8x384xf32>
    %286 = arith.addf %281, %285 : vector<8x384xf32>
    %c26_217 = arith.constant 26 : index
    %c0_218 = arith.constant 0 : index
    %c0_219 = arith.constant 0 : index
    %287 = vector.load %arg4[%c26_217, %c0_218, %c0_219] : memref<27x8x4xbf16, #tpu.memory_space<vmem>>, vector<1x8x4xbf16>
    %288 = vector.shape_cast %287 : vector<1x8x4xbf16> to vector<8x4xbf16>
    %289 = vector.extract_strided_slice %7 {offsets = [0, 38], sizes = [4, 384], strides = [1, 1]} : vector<4x512xbf16> to vector<4x384xbf16>
    %cst_220 = arith.constant dense<0.000000e+00> : vector<8x384xf32>
    %290 = tpu.matmul %288, %289, %cst_220 {dimension_numbers = #tpu.dot_dimension_numbers<[1], [0], [0], [1], [0, 0, 1, 1], [], []>} : vector<8x4xbf16>, vector<4x384xbf16>, vector<8x384xf32> -> vector<8x384xf32>
    %291 = arith.addf %286, %290 : vector<8x384xf32>
    %292 = vector.broadcast %12 : vector<8x1xf32> to vector<8x384xf32>
    %293 = arith.addf %291, %292 : vector<8x384xf32>
    %cst_221 = arith.constant 0.000000e+00 : f32
    %294 = vector.broadcast %cst_221 : f32 to vector<8x384xf32>
    %295 = arith.maximumf %293, %294 : vector<8x384xf32>
    %c0_222 = arith.constant 0 : index
    %c1_223 = arith.constant 1 : index
    %c0_224 = arith.constant 0 : index
    %c0_225 = arith.constant 0 : index
    %296 = vector.load %arg6[%c0_222, %c1_223, %c0_224, %c0_225] : memref<1x4x8x384xf32, #tpu.memory_space<vmem>>, vector<1x1x8x384xf32>
    %297 = vector.shape_cast %296 : vector<1x1x8x384xf32> to vector<8x384xf32>
    %298 = vector.shape_cast %295 : vector<8x384xf32> to vector<1x1x8x384xf32>
    tpu.vector_store %arg6[%c0_222, %c1_223, %c0_224, %c0_225], %298 {strides = array<i32>} : memref<1x4x8x384xf32, #tpu.memory_space<vmem>>, vector<1x1x8x384xf32>,
    %cst_226 = arith.constant 0.000000e+00 : f32
    %299 = vector.broadcast %cst_226 : f32 to vector<8x384xf32>
    %c0_227 = arith.constant 0 : index
    %c0_228 = arith.constant 0 : index
    %c0_229 = arith.constant 0 : index
    %300 = vector.load %arg4[%c0_227, %c0_228, %c0_229] : memref<27x8x4xbf16, #tpu.memory_space<vmem>>, vector<1x8x4xbf16>
    %301 = vector.shape_cast %300 : vector<1x8x4xbf16> to vector<8x4xbf16>
    %302 = vector.extract_strided_slice %5 {offsets = [0, 0], sizes = [4, 384], strides = [1, 1]} : vector<4x512xbf16> to vector<4x384xbf16>
    %cst_230 = arith.constant dense<0.000000e+00> : vector<8x384xf32>
    %303 = tpu.matmul %301, %302, %cst_230 {dimension_numbers = #tpu.dot_dimension_numbers<[1], [0], [0], [1], [0, 0, 1, 1], [], []>} : vector<8x4xbf16>, vector<4x384xbf16>, vector<8x384xf32> -> vector<8x384xf32>
    %304 = arith.addf %299, %303 : vector<8x384xf32>
    %c1_231 = arith.constant 1 : index
    %c0_232 = arith.constant 0 : index
    %c0_233 = arith.constant 0 : index
    %305 = vector.load %arg4[%c1_231, %c0_232, %c0_233] : memref<27x8x4xbf16, #tpu.memory_space<vmem>>, vector<1x8x4xbf16>
    %306 = vector.shape_cast %305 : vector<1x8x4xbf16> to vector<8x4xbf16>
    %307 = vector.extract_strided_slice %5 {offsets = [0, 1], sizes = [4, 384], strides = [1, 1]} : vector<4x512xbf16> to vector<4x384xbf16>
    %cst_234 = arith.constant dense<0.000000e+00> : vector<8x384xf32>
    %308 = tpu.matmul %306, %307, %cst_234 {dimension_numbers = #tpu.dot_dimension_numbers<[1], [0], [0], [1], [0, 0, 1, 1], [], []>} : vector<8x4xbf16>, vector<4x384xbf16>, vector<8x384xf32> -> vector<8x384xf32>
    %309 = arith.addf %304, %308 : vector<8x384xf32>
    %c2_235 = arith.constant 2 : index
    %c0_236 = arith.constant 0 : index
    %c0_237 = arith.constant 0 : index
    %310 = vector.load %arg4[%c2_235, %c0_236, %c0_237] : memref<27x8x4xbf16, #tpu.memory_space<vmem>>, vector<1x8x4xbf16>
    %311 = vector.shape_cast %310 : vector<1x8x4xbf16> to vector<8x4xbf16>
    %312 = vector.extract_strided_slice %5 {offsets = [0, 2], sizes = [4, 384], strides = [1, 1]} : vector<4x512xbf16> to vector<4x384xbf16>
    %cst_238 = arith.constant dense<0.000000e+00> : vector<8x384xf32>
    %313 = tpu.matmul %311, %312, %cst_238 {dimension_numbers = #tpu.dot_dimension_numbers<[1], [0], [0], [1], [0, 0, 1, 1], [], []>} : vector<8x4xbf16>, vector<4x384xbf16>, vector<8x384xf32> -> vector<8x384xf32>
    %314 = arith.addf %309, %313 : vector<8x384xf32>
    %c3_239 = arith.constant 3 : index
    %c0_240 = arith.constant 0 : index
    %c0_241 = arith.constant 0 : index
    %315 = vector.load %arg4[%c3_239, %c0_240, %c0_241] : memref<27x8x4xbf16, #tpu.memory_space<vmem>>, vector<1x8x4xbf16>
    %316 = vector.shape_cast %315 : vector<1x8x4xbf16> to vector<8x4xbf16>
    %317 = vector.extract_strided_slice %5 {offsets = [0, 18], sizes = [4, 384], strides = [1, 1]} : vector<4x512xbf16> to vector<4x384xbf16>
    %cst_242 = arith.constant dense<0.000000e+00> : vector<8x384xf32>
    %318 = tpu.matmul %316, %317, %cst_242 {dimension_numbers = #tpu.dot_dimension_numbers<[1], [0], [0], [1], [0, 0, 1, 1], [], []>} : vector<8x4xbf16>, vector<4x384xbf16>, vector<8x384xf32> -> vector<8x384xf32>
    %319 = arith.addf %314, %318 : vector<8x384xf32>
    %c4_243 = arith.constant 4 : index
    %c0_244 = arith.constant 0 : index
    %c0_245 = arith.constant 0 : index
    %320 = vector.load %arg4[%c4_243, %c0_244, %c0_245] : memref<27x8x4xbf16, #tpu.memory_space<vmem>>, vector<1x8x4xbf16>
    %321 = vector.shape_cast %320 : vector<1x8x4xbf16> to vector<8x4xbf16>
    %322 = vector.extract_strided_slice %5 {offsets = [0, 19], sizes = [4, 384], strides = [1, 1]} : vector<4x512xbf16> to vector<4x384xbf16>
    %cst_246 = arith.constant dense<0.000000e+00> : vector<8x384xf32>
    %323 = tpu.matmul %321, %322, %cst_246 {dimension_numbers = #tpu.dot_dimension_numbers<[1], [0], [0], [1], [0, 0, 1, 1], [], []>} : vector<8x4xbf16>, vector<4x384xbf16>, vector<8x384xf32> -> vector<8x384xf32>
    %324 = arith.addf %319, %323 : vector<8x384xf32>
    %c5_247 = arith.constant 5 : index
    %c0_248 = arith.constant 0 : index
    %c0_249 = arith.constant 0 : index
    %325 = vector.load %arg4[%c5_247, %c0_248, %c0_249] : memref<27x8x4xbf16, #tpu.memory_space<vmem>>, vector<1x8x4xbf16>
    %326 = vector.shape_cast %325 : vector<1x8x4xbf16> to vector<8x4xbf16>
    %327 = vector.extract_strided_slice %5 {offsets = [0, 20], sizes = [4, 384], strides = [1, 1]} : vector<4x512xbf16> to vector<4x384xbf16>
    %cst_250 = arith.constant dense<0.000000e+00> : vector<8x384xf32>
    %328 = tpu.matmul %326, %327, %cst_250 {dimension_numbers = #tpu.dot_dimension_numbers<[1], [0], [0], [1], [0, 0, 1, 1], [], []>} : vector<8x4xbf16>, vector<4x384xbf16>, vector<8x384xf32> -> vector<8x384xf32>
    %329 = arith.addf %324, %328 : vector<8x384xf32>
    %c6_251 = arith.constant 6 : index
    %c0_252 = arith.constant 0 : index
    %c0_253 = arith.constant 0 : index
    %330 = vector.load %arg4[%c6_251, %c0_252, %c0_253] : memref<27x8x4xbf16, #tpu.memory_space<vmem>>, vector<1x8x4xbf16>
    %331 = vector.shape_cast %330 : vector<1x8x4xbf16> to vector<8x4xbf16>
    %332 = vector.extract_strided_slice %5 {offsets = [0, 36], sizes = [4, 384], strides = [1, 1]} : vector<4x512xbf16> to vector<4x384xbf16>
    %cst_254 = arith.constant dense<0.000000e+00> : vector<8x384xf32>
    %333 = tpu.matmul %331, %332, %cst_254 {dimension_numbers = #tpu.dot_dimension_numbers<[1], [0], [0], [1], [0, 0, 1, 1], [], []>} : vector<8x4xbf16>, vector<4x384xbf16>, vector<8x384xf32> -> vector<8x384xf32>
    %334 = arith.addf %329, %333 : vector<8x384xf32>
    %c7_255 = arith.constant 7 : index
    %c0_256 = arith.constant 0 : index
    %c0_257 = arith.constant 0 : index
    %335 = vector.load %arg4[%c7_255, %c0_256, %c0_257] : memref<27x8x4xbf16, #tpu.memory_space<vmem>>, vector<1x8x4xbf16>
    %336 = vector.shape_cast %335 : vector<1x8x4xbf16> to vector<8x4xbf16>
    %337 = vector.extract_strided_slice %5 {offsets = [0, 37], sizes = [4, 384], strides = [1, 1]} : vector<4x512xbf16> to vector<4x384xbf16>
    %cst_258 = arith.constant dense<0.000000e+00> : vector<8x384xf32>
    %338 = tpu.matmul %336, %337, %cst_258 {dimension_numbers = #tpu.dot_dimension_numbers<[1], [0], [0], [1], [0, 0, 1, 1], [], []>} : vector<8x4xbf16>, vector<4x384xbf16>, vector<8x384xf32> -> vector<8x384xf32>
    %339 = arith.addf %334, %338 : vector<8x384xf32>
    %c8_259 = arith.constant 8 : index
    %c0_260 = arith.constant 0 : index
    %c0_261 = arith.constant 0 : index
    %340 = vector.load %arg4[%c8_259, %c0_260, %c0_261] : memref<27x8x4xbf16, #tpu.memory_space<vmem>>, vector<1x8x4xbf16>
    %341 = vector.shape_cast %340 : vector<1x8x4xbf16> to vector<8x4xbf16>
    %342 = vector.extract_strided_slice %5 {offsets = [0, 38], sizes = [4, 384], strides = [1, 1]} : vector<4x512xbf16> to vector<4x384xbf16>
    %cst_262 = arith.constant dense<0.000000e+00> : vector<8x384xf32>
    %343 = tpu.matmul %341, %342, %cst_262 {dimension_numbers = #tpu.dot_dimension_numbers<[1], [0], [0], [1], [0, 0, 1, 1], [], []>} : vector<8x4xbf16>, vector<4x384xbf16>, vector<8x384xf32> -> vector<8x384xf32>
    %344 = arith.addf %339, %343 : vector<8x384xf32>
    %c9_263 = arith.constant 9 : index
    %c0_264 = arith.constant 0 : index
    %c0_265 = arith.constant 0 : index
    %345 = vector.load %arg4[%c9_263, %c0_264, %c0_265] : memref<27x8x4xbf16, #tpu.memory_space<vmem>>, vector<1x8x4xbf16>
    %346 = vector.shape_cast %345 : vector<1x8x4xbf16> to vector<8x4xbf16>
    %347 = vector.extract_strided_slice %7 {offsets = [0, 0], sizes = [4, 384], strides = [1, 1]} : vector<4x512xbf16> to vector<4x384xbf16>
    %cst_266 = arith.constant dense<0.000000e+00> : vector<8x384xf32>
    %348 = tpu.matmul %346, %347, %cst_266 {dimension_numbers = #tpu.dot_dimension_numbers<[1], [0], [0], [1], [0, 0, 1, 1], [], []>} : vector<8x4xbf16>, vector<4x384xbf16>, vector<8x384xf32> -> vector<8x384xf32>
    %349 = arith.addf %344, %348 : vector<8x384xf32>
    %c10_267 = arith.constant 10 : index
    %c0_268 = arith.constant 0 : index
    %c0_269 = arith.constant 0 : index
    %350 = vector.load %arg4[%c10_267, %c0_268, %c0_269] : memref<27x8x4xbf16, #tpu.memory_space<vmem>>, vector<1x8x4xbf16>
    %351 = vector.shape_cast %350 : vector<1x8x4xbf16> to vector<8x4xbf16>
    %352 = vector.extract_strided_slice %7 {offsets = [0, 1], sizes = [4, 384], strides = [1, 1]} : vector<4x512xbf16> to vector<4x384xbf16>
    %cst_270 = arith.constant dense<0.000000e+00> : vector<8x384xf32>
    %353 = tpu.matmul %351, %352, %cst_270 {dimension_numbers = #tpu.dot_dimension_numbers<[1], [0], [0], [1], [0, 0, 1, 1], [], []>} : vector<8x4xbf16>, vector<4x384xbf16>, vector<8x384xf32> -> vector<8x384xf32>
    %354 = arith.addf %349, %353 : vector<8x384xf32>
    %c11_271 = arith.constant 11 : index
    %c0_272 = arith.constant 0 : index
    %c0_273 = arith.constant 0 : index
    %355 = vector.load %arg4[%c11_271, %c0_272, %c0_273] : memref<27x8x4xbf16, #tpu.memory_space<vmem>>, vector<1x8x4xbf16>
    %356 = vector.shape_cast %355 : vector<1x8x4xbf16> to vector<8x4xbf16>
    %357 = vector.extract_strided_slice %7 {offsets = [0, 2], sizes = [4, 384], strides = [1, 1]} : vector<4x512xbf16> to vector<4x384xbf16>
    %cst_274 = arith.constant dense<0.000000e+00> : vector<8x384xf32>
    %358 = tpu.matmul %356, %357, %cst_274 {dimension_numbers = #tpu.dot_dimension_numbers<[1], [0], [0], [1], [0, 0, 1, 1], [], []>} : vector<8x4xbf16>, vector<4x384xbf16>, vector<8x384xf32> -> vector<8x384xf32>
    %359 = arith.addf %354, %358 : vector<8x384xf32>
    %c12_275 = arith.constant 12 : index
    %c0_276 = arith.constant 0 : index
    %c0_277 = arith.constant 0 : index
    %360 = vector.load %arg4[%c12_275, %c0_276, %c0_277] : memref<27x8x4xbf16, #tpu.memory_space<vmem>>, vector<1x8x4xbf16>
    %361 = vector.shape_cast %360 : vector<1x8x4xbf16> to vector<8x4xbf16>
    %362 = vector.extract_strided_slice %7 {offsets = [0, 18], sizes = [4, 384], strides = [1, 1]} : vector<4x512xbf16> to vector<4x384xbf16>
    %cst_278 = arith.constant dense<0.000000e+00> : vector<8x384xf32>
    %363 = tpu.matmul %361, %362, %cst_278 {dimension_numbers = #tpu.dot_dimension_numbers<[1], [0], [0], [1], [0, 0, 1, 1], [], []>} : vector<8x4xbf16>, vector<4x384xbf16>, vector<8x384xf32> -> vector<8x384xf32>
    %364 = arith.addf %359, %363 : vector<8x384xf32>
    %c13_279 = arith.constant 13 : index
    %c0_280 = arith.constant 0 : index
    %c0_281 = arith.constant 0 : index
    %365 = vector.load %arg4[%c13_279, %c0_280, %c0_281] : memref<27x8x4xbf16, #tpu.memory_space<vmem>>, vector<1x8x4xbf16>
    %366 = vector.shape_cast %365 : vector<1x8x4xbf16> to vector<8x4xbf16>
    %367 = vector.extract_strided_slice %7 {offsets = [0, 19], sizes = [4, 384], strides = [1, 1]} : vector<4x512xbf16> to vector<4x384xbf16>
    %cst_282 = arith.constant dense<0.000000e+00> : vector<8x384xf32>
    %368 = tpu.matmul %366, %367, %cst_282 {dimension_numbers = #tpu.dot_dimension_numbers<[1], [0], [0], [1], [0, 0, 1, 1], [], []>} : vector<8x4xbf16>, vector<4x384xbf16>, vector<8x384xf32> -> vector<8x384xf32>
    %369 = arith.addf %364, %368 : vector<8x384xf32>
    %c14_283 = arith.constant 14 : index
    %c0_284 = arith.constant 0 : index
    %c0_285 = arith.constant 0 : index
    %370 = vector.load %arg4[%c14_283, %c0_284, %c0_285] : memref<27x8x4xbf16, #tpu.memory_space<vmem>>, vector<1x8x4xbf16>
    %371 = vector.shape_cast %370 : vector<1x8x4xbf16> to vector<8x4xbf16>
    %372 = vector.extract_strided_slice %7 {offsets = [0, 20], sizes = [4, 384], strides = [1, 1]} : vector<4x512xbf16> to vector<4x384xbf16>
    %cst_286 = arith.constant dense<0.000000e+00> : vector<8x384xf32>
    %373 = tpu.matmul %371, %372, %cst_286 {dimension_numbers = #tpu.dot_dimension_numbers<[1], [0], [0], [1], [0, 0, 1, 1], [], []>} : vector<8x4xbf16>, vector<4x384xbf16>, vector<8x384xf32> -> vector<8x384xf32>
    %374 = arith.addf %369, %373 : vector<8x384xf32>
    %c15_287 = arith.constant 15 : index
    %c0_288 = arith.constant 0 : index
    %c0_289 = arith.constant 0 : index
    %375 = vector.load %arg4[%c15_287, %c0_288, %c0_289] : memref<27x8x4xbf16, #tpu.memory_space<vmem>>, vector<1x8x4xbf16>
    %376 = vector.shape_cast %375 : vector<1x8x4xbf16> to vector<8x4xbf16>
    %377 = vector.extract_strided_slice %7 {offsets = [0, 36], sizes = [4, 384], strides = [1, 1]} : vector<4x512xbf16> to vector<4x384xbf16>
    %cst_290 = arith.constant dense<0.000000e+00> : vector<8x384xf32>
    %378 = tpu.matmul %376, %377, %cst_290 {dimension_numbers = #tpu.dot_dimension_numbers<[1], [0], [0], [1], [0, 0, 1, 1], [], []>} : vector<8x4xbf16>, vector<4x384xbf16>, vector<8x384xf32> -> vector<8x384xf32>
    %379 = arith.addf %374, %378 : vector<8x384xf32>
    %c16_291 = arith.constant 16 : index
    %c0_292 = arith.constant 0 : index
    %c0_293 = arith.constant 0 : index
    %380 = vector.load %arg4[%c16_291, %c0_292, %c0_293] : memref<27x8x4xbf16, #tpu.memory_space<vmem>>, vector<1x8x4xbf16>
    %381 = vector.shape_cast %380 : vector<1x8x4xbf16> to vector<8x4xbf16>
    %382 = vector.extract_strided_slice %7 {offsets = [0, 37], sizes = [4, 384], strides = [1, 1]} : vector<4x512xbf16> to vector<4x384xbf16>
    %cst_294 = arith.constant dense<0.000000e+00> : vector<8x384xf32>
    %383 = tpu.matmul %381, %382, %cst_294 {dimension_numbers = #tpu.dot_dimension_numbers<[1], [0], [0], [1], [0, 0, 1, 1], [], []>} : vector<8x4xbf16>, vector<4x384xbf16>, vector<8x384xf32> -> vector<8x384xf32>
    %384 = arith.addf %379, %383 : vector<8x384xf32>
    %c17_295 = arith.constant 17 : index
    %c0_296 = arith.constant 0 : index
    %c0_297 = arith.constant 0 : index
    %385 = vector.load %arg4[%c17_295, %c0_296, %c0_297] : memref<27x8x4xbf16, #tpu.memory_space<vmem>>, vector<1x8x4xbf16>
    %386 = vector.shape_cast %385 : vector<1x8x4xbf16> to vector<8x4xbf16>
    %387 = vector.extract_strided_slice %7 {offsets = [0, 38], sizes = [4, 384], strides = [1, 1]} : vector<4x512xbf16> to vector<4x384xbf16>
    %cst_298 = arith.constant dense<0.000000e+00> : vector<8x384xf32>
    %388 = tpu.matmul %386, %387, %cst_298 {dimension_numbers = #tpu.dot_dimension_numbers<[1], [0], [0], [1], [0, 0, 1, 1], [], []>} : vector<8x4xbf16>, vector<4x384xbf16>, vector<8x384xf32> -> vector<8x384xf32>
    %389 = arith.addf %384, %388 : vector<8x384xf32>
    %c18_299 = arith.constant 18 : index
    %c0_300 = arith.constant 0 : index
    %c0_301 = arith.constant 0 : index
    %390 = vector.load %arg4[%c18_299, %c0_300, %c0_301] : memref<27x8x4xbf16, #tpu.memory_space<vmem>>, vector<1x8x4xbf16>
    %391 = vector.shape_cast %390 : vector<1x8x4xbf16> to vector<8x4xbf16>
    %392 = vector.extract_strided_slice %9 {offsets = [0, 0], sizes = [4, 384], strides = [1, 1]} : vector<4x512xbf16> to vector<4x384xbf16>
    %cst_302 = arith.constant dense<0.000000e+00> : vector<8x384xf32>
    %393 = tpu.matmul %391, %392, %cst_302 {dimension_numbers = #tpu.dot_dimension_numbers<[1], [0], [0], [1], [0, 0, 1, 1], [], []>} : vector<8x4xbf16>, vector<4x384xbf16>, vector<8x384xf32> -> vector<8x384xf32>
    %394 = arith.addf %389, %393 : vector<8x384xf32>
    %c19_303 = arith.constant 19 : index
    %c0_304 = arith.constant 0 : index
    %c0_305 = arith.constant 0 : index
    %395 = vector.load %arg4[%c19_303, %c0_304, %c0_305] : memref<27x8x4xbf16, #tpu.memory_space<vmem>>, vector<1x8x4xbf16>
    %396 = vector.shape_cast %395 : vector<1x8x4xbf16> to vector<8x4xbf16>
    %397 = vector.extract_strided_slice %9 {offsets = [0, 1], sizes = [4, 384], strides = [1, 1]} : vector<4x512xbf16> to vector<4x384xbf16>
    %cst_306 = arith.constant dense<0.000000e+00> : vector<8x384xf32>
    %398 = tpu.matmul %396, %397, %cst_306 {dimension_numbers = #tpu.dot_dimension_numbers<[1], [0], [0], [1], [0, 0, 1, 1], [], []>} : vector<8x4xbf16>, vector<4x384xbf16>, vector<8x384xf32> -> vector<8x384xf32>
    %399 = arith.addf %394, %398 : vector<8x384xf32>
    %c20_307 = arith.constant 20 : index
    %c0_308 = arith.constant 0 : index
    %c0_309 = arith.constant 0 : index
    %400 = vector.load %arg4[%c20_307, %c0_308, %c0_309] : memref<27x8x4xbf16, #tpu.memory_space<vmem>>, vector<1x8x4xbf16>
    %401 = vector.shape_cast %400 : vector<1x8x4xbf16> to vector<8x4xbf16>
    %402 = vector.extract_strided_slice %9 {offsets = [0, 2], sizes = [4, 384], strides = [1, 1]} : vector<4x512xbf16> to vector<4x384xbf16>
    %cst_310 = arith.constant dense<0.000000e+00> : vector<8x384xf32>
    %403 = tpu.matmul %401, %402, %cst_310 {dimension_numbers = #tpu.dot_dimension_numbers<[1], [0], [0], [1], [0, 0, 1, 1], [], []>} : vector<8x4xbf16>, vector<4x384xbf16>, vector<8x384xf32> -> vector<8x384xf32>
    %404 = arith.addf %399, %403 : vector<8x384xf32>
    %c21_311 = arith.constant 21 : index
    %c0_312 = arith.constant 0 : index
    %c0_313 = arith.constant 0 : index
    %405 = vector.load %arg4[%c21_311, %c0_312, %c0_313] : memref<27x8x4xbf16, #tpu.memory_space<vmem>>, vector<1x8x4xbf16>
    %406 = vector.shape_cast %405 : vector<1x8x4xbf16> to vector<8x4xbf16>
    %407 = vector.extract_strided_slice %9 {offsets = [0, 18], sizes = [4, 384], strides = [1, 1]} : vector<4x512xbf16> to vector<4x384xbf16>
    %cst_314 = arith.constant dense<0.000000e+00> : vector<8x384xf32>
    %408 = tpu.matmul %406, %407, %cst_314 {dimension_numbers = #tpu.dot_dimension_numbers<[1], [0], [0], [1], [0, 0, 1, 1], [], []>} : vector<8x4xbf16>, vector<4x384xbf16>, vector<8x384xf32> -> vector<8x384xf32>
    %409 = arith.addf %404, %408 : vector<8x384xf32>
    %c22_315 = arith.constant 22 : index
    %c0_316 = arith.constant 0 : index
    %c0_317 = arith.constant 0 : index
    %410 = vector.load %arg4[%c22_315, %c0_316, %c0_317] : memref<27x8x4xbf16, #tpu.memory_space<vmem>>, vector<1x8x4xbf16>
    %411 = vector.shape_cast %410 : vector<1x8x4xbf16> to vector<8x4xbf16>
    %412 = vector.extract_strided_slice %9 {offsets = [0, 19], sizes = [4, 384], strides = [1, 1]} : vector<4x512xbf16> to vector<4x384xbf16>
    %cst_318 = arith.constant dense<0.000000e+00> : vector<8x384xf32>
    %413 = tpu.matmul %411, %412, %cst_318 {dimension_numbers = #tpu.dot_dimension_numbers<[1], [0], [0], [1], [0, 0, 1, 1], [], []>} : vector<8x4xbf16>, vector<4x384xbf16>, vector<8x384xf32> -> vector<8x384xf32>
    %414 = arith.addf %409, %413 : vector<8x384xf32>
    %c23_319 = arith.constant 23 : index
    %c0_320 = arith.constant 0 : index
    %c0_321 = arith.constant 0 : index
    %415 = vector.load %arg4[%c23_319, %c0_320, %c0_321] : memref<27x8x4xbf16, #tpu.memory_space<vmem>>, vector<1x8x4xbf16>
    %416 = vector.shape_cast %415 : vector<1x8x4xbf16> to vector<8x4xbf16>
    %417 = vector.extract_strided_slice %9 {offsets = [0, 20], sizes = [4, 384], strides = [1, 1]} : vector<4x512xbf16> to vector<4x384xbf16>
    %cst_322 = arith.constant dense<0.000000e+00> : vector<8x384xf32>
    %418 = tpu.matmul %416, %417, %cst_322 {dimension_numbers = #tpu.dot_dimension_numbers<[1], [0], [0], [1], [0, 0, 1, 1], [], []>} : vector<8x4xbf16>, vector<4x384xbf16>, vector<8x384xf32> -> vector<8x384xf32>
    %419 = arith.addf %414, %418 : vector<8x384xf32>
    %c24_323 = arith.constant 24 : index
    %c0_324 = arith.constant 0 : index
    %c0_325 = arith.constant 0 : index
    %420 = vector.load %arg4[%c24_323, %c0_324, %c0_325] : memref<27x8x4xbf16, #tpu.memory_space<vmem>>, vector<1x8x4xbf16>
    %421 = vector.shape_cast %420 : vector<1x8x4xbf16> to vector<8x4xbf16>
    %422 = vector.extract_strided_slice %9 {offsets = [0, 36], sizes = [4, 384], strides = [1, 1]} : vector<4x512xbf16> to vector<4x384xbf16>
    %cst_326 = arith.constant dense<0.000000e+00> : vector<8x384xf32>
    %423 = tpu.matmul %421, %422, %cst_326 {dimension_numbers = #tpu.dot_dimension_numbers<[1], [0], [0], [1], [0, 0, 1, 1], [], []>} : vector<8x4xbf16>, vector<4x384xbf16>, vector<8x384xf32> -> vector<8x384xf32>
    %424 = arith.addf %419, %423 : vector<8x384xf32>
    %c25_327 = arith.constant 25 : index
    %c0_328 = arith.constant 0 : index
    %c0_329 = arith.constant 0 : index
    %425 = vector.load %arg4[%c25_327, %c0_328, %c0_329] : memref<27x8x4xbf16, #tpu.memory_space<vmem>>, vector<1x8x4xbf16>
    %426 = vector.shape_cast %425 : vector<1x8x4xbf16> to vector<8x4xbf16>
    %427 = vector.extract_strided_slice %9 {offsets = [0, 37], sizes = [4, 384], strides = [1, 1]} : vector<4x512xbf16> to vector<4x384xbf16>
    %cst_330 = arith.constant dense<0.000000e+00> : vector<8x384xf32>
    %428 = tpu.matmul %426, %427, %cst_330 {dimension_numbers = #tpu.dot_dimension_numbers<[1], [0], [0], [1], [0, 0, 1, 1], [], []>} : vector<8x4xbf16>, vector<4x384xbf16>, vector<8x384xf32> -> vector<8x384xf32>
    %429 = arith.addf %424, %428 : vector<8x384xf32>
    %c26_331 = arith.constant 26 : index
    %c0_332 = arith.constant 0 : index
    %c0_333 = arith.constant 0 : index
    %430 = vector.load %arg4[%c26_331, %c0_332, %c0_333] : memref<27x8x4xbf16, #tpu.memory_space<vmem>>, vector<1x8x4xbf16>
    %431 = vector.shape_cast %430 : vector<1x8x4xbf16> to vector<8x4xbf16>
    %432 = vector.extract_strided_slice %9 {offsets = [0, 38], sizes = [4, 384], strides = [1, 1]} : vector<4x512xbf16> to vector<4x384xbf16>
    %cst_334 = arith.constant dense<0.000000e+00> : vector<8x384xf32>
    %433 = tpu.matmul %431, %432, %cst_334 {dimension_numbers = #tpu.dot_dimension_numbers<[1], [0], [0], [1], [0, 0, 1, 1], [], []>} : vector<8x4xbf16>, vector<4x384xbf16>, vector<8x384xf32> -> vector<8x384xf32>
    %434 = arith.addf %429, %433 : vector<8x384xf32>
    %435 = vector.broadcast %12 : vector<8x1xf32> to vector<8x384xf32>
    %436 = arith.addf %434, %435 : vector<8x384xf32>
    %cst_335 = arith.constant 0.000000e+00 : f32
    %437 = vector.broadcast %cst_335 : f32 to vector<8x384xf32>
    %438 = arith.maximumf %436, %437 : vector<8x384xf32>
    %c0_336 = arith.constant 0 : index
    %c2_337 = arith.constant 2 : index
    %c0_338 = arith.constant 0 : index
    %c0_339 = arith.constant 0 : index
    %439 = vector.load %arg6[%c0_336, %c2_337, %c0_338, %c0_339] : memref<1x4x8x384xf32, #tpu.memory_space<vmem>>, vector<1x1x8x384xf32>
    %440 = vector.shape_cast %439 : vector<1x1x8x384xf32> to vector<8x384xf32>
    %441 = vector.shape_cast %438 : vector<8x384xf32> to vector<1x1x8x384xf32>
    tpu.vector_store %arg6[%c0_336, %c2_337, %c0_338, %c0_339], %441 {strides = array<i32>} : memref<1x4x8x384xf32, #tpu.memory_space<vmem>>, vector<1x1x8x384xf32>,
    %cst_340 = arith.constant 0.000000e+00 : f32
    %442 = vector.broadcast %cst_340 : f32 to vector<8x384xf32>
    %c0_341 = arith.constant 0 : index
    %c0_342 = arith.constant 0 : index
    %c0_343 = arith.constant 0 : index
    %443 = vector.load %arg4[%c0_341, %c0_342, %c0_343] : memref<27x8x4xbf16, #tpu.memory_space<vmem>>, vector<1x8x4xbf16>
    %444 = vector.shape_cast %443 : vector<1x8x4xbf16> to vector<8x4xbf16>
    %445 = vector.extract_strided_slice %7 {offsets = [0, 0], sizes = [4, 384], strides = [1, 1]} : vector<4x512xbf16> to vector<4x384xbf16>
    %cst_344 = arith.constant dense<0.000000e+00> : vector<8x384xf32>
    %446 = tpu.matmul %444, %445, %cst_344 {dimension_numbers = #tpu.dot_dimension_numbers<[1], [0], [0], [1], [0, 0, 1, 1], [], []>} : vector<8x4xbf16>, vector<4x384xbf16>, vector<8x384xf32> -> vector<8x384xf32>
    %447 = arith.addf %442, %446 : vector<8x384xf32>
    %c1_345 = arith.constant 1 : index
    %c0_346 = arith.constant 0 : index
    %c0_347 = arith.constant 0 : index
    %448 = vector.load %arg4[%c1_345, %c0_346, %c0_347] : memref<27x8x4xbf16, #tpu.memory_space<vmem>>, vector<1x8x4xbf16>
    %449 = vector.shape_cast %448 : vector<1x8x4xbf16> to vector<8x4xbf16>
    %450 = vector.extract_strided_slice %7 {offsets = [0, 1], sizes = [4, 384], strides = [1, 1]} : vector<4x512xbf16> to vector<4x384xbf16>
    %cst_348 = arith.constant dense<0.000000e+00> : vector<8x384xf32>
    %451 = tpu.matmul %449, %450, %cst_348 {dimension_numbers = #tpu.dot_dimension_numbers<[1], [0], [0], [1], [0, 0, 1, 1], [], []>} : vector<8x4xbf16>, vector<4x384xbf16>, vector<8x384xf32> -> vector<8x384xf32>
    %452 = arith.addf %447, %451 : vector<8x384xf32>
    %c2_349 = arith.constant 2 : index
    %c0_350 = arith.constant 0 : index
    %c0_351 = arith.constant 0 : index
    %453 = vector.load %arg4[%c2_349, %c0_350, %c0_351] : memref<27x8x4xbf16, #tpu.memory_space<vmem>>, vector<1x8x4xbf16>
    %454 = vector.shape_cast %453 : vector<1x8x4xbf16> to vector<8x4xbf16>
    %455 = vector.extract_strided_slice %7 {offsets = [0, 2], sizes = [4, 384], strides = [1, 1]} : vector<4x512xbf16> to vector<4x384xbf16>
    %cst_352 = arith.constant dense<0.000000e+00> : vector<8x384xf32>
    %456 = tpu.matmul %454, %455, %cst_352 {dimension_numbers = #tpu.dot_dimension_numbers<[1], [0], [0], [1], [0, 0, 1, 1], [], []>} : vector<8x4xbf16>, vector<4x384xbf16>, vector<8x384xf32> -> vector<8x384xf32>
    %457 = arith.addf %452, %456 : vector<8x384xf32>
    %c3_353 = arith.constant 3 : index
    %c0_354 = arith.constant 0 : index
    %c0_355 = arith.constant 0 : index
    %458 = vector.load %arg4[%c3_353, %c0_354, %c0_355] : memref<27x8x4xbf16, #tpu.memory_space<vmem>>, vector<1x8x4xbf16>
    %459 = vector.shape_cast %458 : vector<1x8x4xbf16> to vector<8x4xbf16>
    %460 = vector.extract_strided_slice %7 {offsets = [0, 18], sizes = [4, 384], strides = [1, 1]} : vector<4x512xbf16> to vector<4x384xbf16>
    %cst_356 = arith.constant dense<0.000000e+00> : vector<8x384xf32>
    %461 = tpu.matmul %459, %460, %cst_356 {dimension_numbers = #tpu.dot_dimension_numbers<[1], [0], [0], [1], [0, 0, 1, 1], [], []>} : vector<8x4xbf16>, vector<4x384xbf16>, vector<8x384xf32> -> vector<8x384xf32>
    %462 = arith.addf %457, %461 : vector<8x384xf32>
    %c4_357 = arith.constant 4 : index
    %c0_358 = arith.constant 0 : index
    %c0_359 = arith.constant 0 : index
    %463 = vector.load %arg4[%c4_357, %c0_358, %c0_359] : memref<27x8x4xbf16, #tpu.memory_space<vmem>>, vector<1x8x4xbf16>
    %464 = vector.shape_cast %463 : vector<1x8x4xbf16> to vector<8x4xbf16>
    %465 = vector.extract_strided_slice %7 {offsets = [0, 19], sizes = [4, 384], strides = [1, 1]} : vector<4x512xbf16> to vector<4x384xbf16>
    %cst_360 = arith.constant dense<0.000000e+00> : vector<8x384xf32>
    %466 = tpu.matmul %464, %465, %cst_360 {dimension_numbers = #tpu.dot_dimension_numbers<[1], [0], [0], [1], [0, 0, 1, 1], [], []>} : vector<8x4xbf16>, vector<4x384xbf16>, vector<8x384xf32> -> vector<8x384xf32>
    %467 = arith.addf %462, %466 : vector<8x384xf32>
    %c5_361 = arith.constant 5 : index
    %c0_362 = arith.constant 0 : index
    %c0_363 = arith.constant 0 : index
    %468 = vector.load %arg4[%c5_361, %c0_362, %c0_363] : memref<27x8x4xbf16, #tpu.memory_space<vmem>>, vector<1x8x4xbf16>
    %469 = vector.shape_cast %468 : vector<1x8x4xbf16> to vector<8x4xbf16>
    %470 = vector.extract_strided_slice %7 {offsets = [0, 20], sizes = [4, 384], strides = [1, 1]} : vector<4x512xbf16> to vector<4x384xbf16>
    %cst_364 = arith.constant dense<0.000000e+00> : vector<8x384xf32>
    %471 = tpu.matmul %469, %470, %cst_364 {dimension_numbers = #tpu.dot_dimension_numbers<[1], [0], [0], [1], [0, 0, 1, 1], [], []>} : vector<8x4xbf16>, vector<4x384xbf16>, vector<8x384xf32> -> vector<8x384xf32>
    %472 = arith.addf %467, %471 : vector<8x384xf32>
    %c6_365 = arith.constant 6 : index
    %c0_366 = arith.constant 0 : index
    %c0_367 = arith.constant 0 : index
    %473 = vector.load %arg4[%c6_365, %c0_366, %c0_367] : memref<27x8x4xbf16, #tpu.memory_space<vmem>>, vector<1x8x4xbf16>
    %474 = vector.shape_cast %473 : vector<1x8x4xbf16> to vector<8x4xbf16>
    %475 = vector.extract_strided_slice %7 {offsets = [0, 36], sizes = [4, 384], strides = [1, 1]} : vector<4x512xbf16> to vector<4x384xbf16>
    %cst_368 = arith.constant dense<0.000000e+00> : vector<8x384xf32>
    %476 = tpu.matmul %474, %475, %cst_368 {dimension_numbers = #tpu.dot_dimension_numbers<[1], [0], [0], [1], [0, 0, 1, 1], [], []>} : vector<8x4xbf16>, vector<4x384xbf16>, vector<8x384xf32> -> vector<8x384xf32>
    %477 = arith.addf %472, %476 : vector<8x384xf32>
    %c7_369 = arith.constant 7 : index
    %c0_370 = arith.constant 0 : index
    %c0_371 = arith.constant 0 : index
    %478 = vector.load %arg4[%c7_369, %c0_370, %c0_371] : memref<27x8x4xbf16, #tpu.memory_space<vmem>>, vector<1x8x4xbf16>
    %479 = vector.shape_cast %478 : vector<1x8x4xbf16> to vector<8x4xbf16>
    %480 = vector.extract_strided_slice %7 {offsets = [0, 37], sizes = [4, 384], strides = [1, 1]} : vector<4x512xbf16> to vector<4x384xbf16>
    %cst_372 = arith.constant dense<0.000000e+00> : vector<8x384xf32>
    %481 = tpu.matmul %479, %480, %cst_372 {dimension_numbers = #tpu.dot_dimension_numbers<[1], [0], [0], [1], [0, 0, 1, 1], [], []>} : vector<8x4xbf16>, vector<4x384xbf16>, vector<8x384xf32> -> vector<8x384xf32>
    %482 = arith.addf %477, %481 : vector<8x384xf32>
    %c8_373 = arith.constant 8 : index
    %c0_374 = arith.constant 0 : index
    %c0_375 = arith.constant 0 : index
    %483 = vector.load %arg4[%c8_373, %c0_374, %c0_375] : memref<27x8x4xbf16, #tpu.memory_space<vmem>>, vector<1x8x4xbf16>
    %484 = vector.shape_cast %483 : vector<1x8x4xbf16> to vector<8x4xbf16>
    %485 = vector.extract_strided_slice %7 {offsets = [0, 38], sizes = [4, 384], strides = [1, 1]} : vector<4x512xbf16> to vector<4x384xbf16>
    %cst_376 = arith.constant dense<0.000000e+00> : vector<8x384xf32>
    %486 = tpu.matmul %484, %485, %cst_376 {dimension_numbers = #tpu.dot_dimension_numbers<[1], [0], [0], [1], [0, 0, 1, 1], [], []>} : vector<8x4xbf16>, vector<4x384xbf16>, vector<8x384xf32> -> vector<8x384xf32>
    %487 = arith.addf %482, %486 : vector<8x384xf32>
    %c9_377 = arith.constant 9 : index
    %c0_378 = arith.constant 0 : index
    %c0_379 = arith.constant 0 : index
    %488 = vector.load %arg4[%c9_377, %c0_378, %c0_379] : memref<27x8x4xbf16, #tpu.memory_space<vmem>>, vector<1x8x4xbf16>
    %489 = vector.shape_cast %488 : vector<1x8x4xbf16> to vector<8x4xbf16>
    %490 = vector.extract_strided_slice %9 {offsets = [0, 0], sizes = [4, 384], strides = [1, 1]} : vector<4x512xbf16> to vector<4x384xbf16>
    %cst_380 = arith.constant dense<0.000000e+00> : vector<8x384xf32>
    %491 = tpu.matmul %489, %490, %cst_380 {dimension_numbers = #tpu.dot_dimension_numbers<[1], [0], [0], [1], [0, 0, 1, 1], [], []>} : vector<8x4xbf16>, vector<4x384xbf16>, vector<8x384xf32> -> vector<8x384xf32>
    %492 = arith.addf %487, %491 : vector<8x384xf32>
    %c10_381 = arith.constant 10 : index
    %c0_382 = arith.constant 0 : index
    %c0_383 = arith.constant 0 : index
    %493 = vector.load %arg4[%c10_381, %c0_382, %c0_383] : memref<27x8x4xbf16, #tpu.memory_space<vmem>>, vector<1x8x4xbf16>
    %494 = vector.shape_cast %493 : vector<1x8x4xbf16> to vector<8x4xbf16>
    %495 = vector.extract_strided_slice %9 {offsets = [0, 1], sizes = [4, 384], strides = [1, 1]} : vector<4x512xbf16> to vector<4x384xbf16>
    %cst_384 = arith.constant dense<0.000000e+00> : vector<8x384xf32>
    %496 = tpu.matmul %494, %495, %cst_384 {dimension_numbers = #tpu.dot_dimension_numbers<[1], [0], [0], [1], [0, 0, 1, 1], [], []>} : vector<8x4xbf16>, vector<4x384xbf16>, vector<8x384xf32> -> vector<8x384xf32>
    %497 = arith.addf %492, %496 : vector<8x384xf32>
    %c11_385 = arith.constant 11 : index
    %c0_386 = arith.constant 0 : index
    %c0_387 = arith.constant 0 : index
    %498 = vector.load %arg4[%c11_385, %c0_386, %c0_387] : memref<27x8x4xbf16, #tpu.memory_space<vmem>>, vector<1x8x4xbf16>
    %499 = vector.shape_cast %498 : vector<1x8x4xbf16> to vector<8x4xbf16>
    %500 = vector.extract_strided_slice %9 {offsets = [0, 2], sizes = [4, 384], strides = [1, 1]} : vector<4x512xbf16> to vector<4x384xbf16>
    %cst_388 = arith.constant dense<0.000000e+00> : vector<8x384xf32>
    %501 = tpu.matmul %499, %500, %cst_388 {dimension_numbers = #tpu.dot_dimension_numbers<[1], [0], [0], [1], [0, 0, 1, 1], [], []>} : vector<8x4xbf16>, vector<4x384xbf16>, vector<8x384xf32> -> vector<8x384xf32>
    %502 = arith.addf %497, %501 : vector<8x384xf32>
    %c12_389 = arith.constant 12 : index
    %c0_390 = arith.constant 0 : index
    %c0_391 = arith.constant 0 : index
    %503 = vector.load %arg4[%c12_389, %c0_390, %c0_391] : memref<27x8x4xbf16, #tpu.memory_space<vmem>>, vector<1x8x4xbf16>
    %504 = vector.shape_cast %503 : vector<1x8x4xbf16> to vector<8x4xbf16>
    %505 = vector.extract_strided_slice %9 {offsets = [0, 18], sizes = [4, 384], strides = [1, 1]} : vector<4x512xbf16> to vector<4x384xbf16>
    %cst_392 = arith.constant dense<0.000000e+00> : vector<8x384xf32>
    %506 = tpu.matmul %504, %505, %cst_392 {dimension_numbers = #tpu.dot_dimension_numbers<[1], [0], [0], [1], [0, 0, 1, 1], [], []>} : vector<8x4xbf16>, vector<4x384xbf16>, vector<8x384xf32> -> vector<8x384xf32>
    %507 = arith.addf %502, %506 : vector<8x384xf32>
    %c13_393 = arith.constant 13 : index
    %c0_394 = arith.constant 0 : index
    %c0_395 = arith.constant 0 : index
    %508 = vector.load %arg4[%c13_393, %c0_394, %c0_395] : memref<27x8x4xbf16, #tpu.memory_space<vmem>>, vector<1x8x4xbf16>
    %509 = vector.shape_cast %508 : vector<1x8x4xbf16> to vector<8x4xbf16>
    %510 = vector.extract_strided_slice %9 {offsets = [0, 19], sizes = [4, 384], strides = [1, 1]} : vector<4x512xbf16> to vector<4x384xbf16>
    %cst_396 = arith.constant dense<0.000000e+00> : vector<8x384xf32>
    %511 = tpu.matmul %509, %510, %cst_396 {dimension_numbers = #tpu.dot_dimension_numbers<[1], [0], [0], [1], [0, 0, 1, 1], [], []>} : vector<8x4xbf16>, vector<4x384xbf16>, vector<8x384xf32> -> vector<8x384xf32>
    %512 = arith.addf %507, %511 : vector<8x384xf32>
    %c14_397 = arith.constant 14 : index
    %c0_398 = arith.constant 0 : index
    %c0_399 = arith.constant 0 : index
    %513 = vector.load %arg4[%c14_397, %c0_398, %c0_399] : memref<27x8x4xbf16, #tpu.memory_space<vmem>>, vector<1x8x4xbf16>
    %514 = vector.shape_cast %513 : vector<1x8x4xbf16> to vector<8x4xbf16>
    %515 = vector.extract_strided_slice %9 {offsets = [0, 20], sizes = [4, 384], strides = [1, 1]} : vector<4x512xbf16> to vector<4x384xbf16>
    %cst_400 = arith.constant dense<0.000000e+00> : vector<8x384xf32>
    %516 = tpu.matmul %514, %515, %cst_400 {dimension_numbers = #tpu.dot_dimension_numbers<[1], [0], [0], [1], [0, 0, 1, 1], [], []>} : vector<8x4xbf16>, vector<4x384xbf16>, vector<8x384xf32> -> vector<8x384xf32>
    %517 = arith.addf %512, %516 : vector<8x384xf32>
    %c15_401 = arith.constant 15 : index
    %c0_402 = arith.constant 0 : index
    %c0_403 = arith.constant 0 : index
    %518 = vector.load %arg4[%c15_401, %c0_402, %c0_403] : memref<27x8x4xbf16, #tpu.memory_space<vmem>>, vector<1x8x4xbf16>
    %519 = vector.shape_cast %518 : vector<1x8x4xbf16> to vector<8x4xbf16>
    %520 = vector.extract_strided_slice %9 {offsets = [0, 36], sizes = [4, 384], strides = [1, 1]} : vector<4x512xbf16> to vector<4x384xbf16>
    %cst_404 = arith.constant dense<0.000000e+00> : vector<8x384xf32>
    %521 = tpu.matmul %519, %520, %cst_404 {dimension_numbers = #tpu.dot_dimension_numbers<[1], [0], [0], [1], [0, 0, 1, 1], [], []>} : vector<8x4xbf16>, vector<4x384xbf16>, vector<8x384xf32> -> vector<8x384xf32>
    %522 = arith.addf %517, %521 : vector<8x384xf32>
    %c16_405 = arith.constant 16 : index
    %c0_406 = arith.constant 0 : index
    %c0_407 = arith.constant 0 : index
    %523 = vector.load %arg4[%c16_405, %c0_406, %c0_407] : memref<27x8x4xbf16, #tpu.memory_space<vmem>>, vector<1x8x4xbf16>
    %524 = vector.shape_cast %523 : vector<1x8x4xbf16> to vector<8x4xbf16>
    %525 = vector.extract_strided_slice %9 {offsets = [0, 37], sizes = [4, 384], strides = [1, 1]} : vector<4x512xbf16> to vector<4x384xbf16>
    %cst_408 = arith.constant dense<0.000000e+00> : vector<8x384xf32>
    %526 = tpu.matmul %524, %525, %cst_408 {dimension_numbers = #tpu.dot_dimension_numbers<[1], [0], [0], [1], [0, 0, 1, 1], [], []>} : vector<8x4xbf16>, vector<4x384xbf16>, vector<8x384xf32> -> vector<8x384xf32>
    %527 = arith.addf %522, %526 : vector<8x384xf32>
    %c17_409 = arith.constant 17 : index
    %c0_410 = arith.constant 0 : index
    %c0_411 = arith.constant 0 : index
    %528 = vector.load %arg4[%c17_409, %c0_410, %c0_411] : memref<27x8x4xbf16, #tpu.memory_space<vmem>>, vector<1x8x4xbf16>
    %529 = vector.shape_cast %528 : vector<1x8x4xbf16> to vector<8x4xbf16>
    %530 = vector.extract_strided_slice %9 {offsets = [0, 38], sizes = [4, 384], strides = [1, 1]} : vector<4x512xbf16> to vector<4x384xbf16>
    %cst_412 = arith.constant dense<0.000000e+00> : vector<8x384xf32>
    %531 = tpu.matmul %529, %530, %cst_412 {dimension_numbers = #tpu.dot_dimension_numbers<[1], [0], [0], [1], [0, 0, 1, 1], [], []>} : vector<8x4xbf16>, vector<4x384xbf16>, vector<8x384xf32> -> vector<8x384xf32>
    %532 = arith.addf %527, %531 : vector<8x384xf32>
    %c18_413 = arith.constant 18 : index
    %c0_414 = arith.constant 0 : index
    %c0_415 = arith.constant 0 : index
    %533 = vector.load %arg4[%c18_413, %c0_414, %c0_415] : memref<27x8x4xbf16, #tpu.memory_space<vmem>>, vector<1x8x4xbf16>
    %534 = vector.shape_cast %533 : vector<1x8x4xbf16> to vector<8x4xbf16>
    %535 = vector.extract_strided_slice %11 {offsets = [0, 0], sizes = [4, 384], strides = [1, 1]} : vector<4x512xbf16> to vector<4x384xbf16>
    %cst_416 = arith.constant dense<0.000000e+00> : vector<8x384xf32>
    %536 = tpu.matmul %534, %535, %cst_416 {dimension_numbers = #tpu.dot_dimension_numbers<[1], [0], [0], [1], [0, 0, 1, 1], [], []>} : vector<8x4xbf16>, vector<4x384xbf16>, vector<8x384xf32> -> vector<8x384xf32>
    %537 = arith.addf %532, %536 : vector<8x384xf32>
    %c19_417 = arith.constant 19 : index
    %c0_418 = arith.constant 0 : index
    %c0_419 = arith.constant 0 : index
    %538 = vector.load %arg4[%c19_417, %c0_418, %c0_419] : memref<27x8x4xbf16, #tpu.memory_space<vmem>>, vector<1x8x4xbf16>
    %539 = vector.shape_cast %538 : vector<1x8x4xbf16> to vector<8x4xbf16>
    %540 = vector.extract_strided_slice %11 {offsets = [0, 1], sizes = [4, 384], strides = [1, 1]} : vector<4x512xbf16> to vector<4x384xbf16>
    %cst_420 = arith.constant dense<0.000000e+00> : vector<8x384xf32>
    %541 = tpu.matmul %539, %540, %cst_420 {dimension_numbers = #tpu.dot_dimension_numbers<[1], [0], [0], [1], [0, 0, 1, 1], [], []>} : vector<8x4xbf16>, vector<4x384xbf16>, vector<8x384xf32> -> vector<8x384xf32>
    %542 = arith.addf %537, %541 : vector<8x384xf32>
    %c20_421 = arith.constant 20 : index
    %c0_422 = arith.constant 0 : index
    %c0_423 = arith.constant 0 : index
    %543 = vector.load %arg4[%c20_421, %c0_422, %c0_423] : memref<27x8x4xbf16, #tpu.memory_space<vmem>>, vector<1x8x4xbf16>
    %544 = vector.shape_cast %543 : vector<1x8x4xbf16> to vector<8x4xbf16>
    %545 = vector.extract_strided_slice %11 {offsets = [0, 2], sizes = [4, 384], strides = [1, 1]} : vector<4x512xbf16> to vector<4x384xbf16>
    %cst_424 = arith.constant dense<0.000000e+00> : vector<8x384xf32>
    %546 = tpu.matmul %544, %545, %cst_424 {dimension_numbers = #tpu.dot_dimension_numbers<[1], [0], [0], [1], [0, 0, 1, 1], [], []>} : vector<8x4xbf16>, vector<4x384xbf16>, vector<8x384xf32> -> vector<8x384xf32>
    %547 = arith.addf %542, %546 : vector<8x384xf32>
    %c21_425 = arith.constant 21 : index
    %c0_426 = arith.constant 0 : index
    %c0_427 = arith.constant 0 : index
    %548 = vector.load %arg4[%c21_425, %c0_426, %c0_427] : memref<27x8x4xbf16, #tpu.memory_space<vmem>>, vector<1x8x4xbf16>
    %549 = vector.shape_cast %548 : vector<1x8x4xbf16> to vector<8x4xbf16>
    %550 = vector.extract_strided_slice %11 {offsets = [0, 18], sizes = [4, 384], strides = [1, 1]} : vector<4x512xbf16> to vector<4x384xbf16>
    %cst_428 = arith.constant dense<0.000000e+00> : vector<8x384xf32>
    %551 = tpu.matmul %549, %550, %cst_428 {dimension_numbers = #tpu.dot_dimension_numbers<[1], [0], [0], [1], [0, 0, 1, 1], [], []>} : vector<8x4xbf16>, vector<4x384xbf16>, vector<8x384xf32> -> vector<8x384xf32>
    %552 = arith.addf %547, %551 : vector<8x384xf32>
    %c22_429 = arith.constant 22 : index
    %c0_430 = arith.constant 0 : index
    %c0_431 = arith.constant 0 : index
    %553 = vector.load %arg4[%c22_429, %c0_430, %c0_431] : memref<27x8x4xbf16, #tpu.memory_space<vmem>>, vector<1x8x4xbf16>
    %554 = vector.shape_cast %553 : vector<1x8x4xbf16> to vector<8x4xbf16>
    %555 = vector.extract_strided_slice %11 {offsets = [0, 19], sizes = [4, 384], strides = [1, 1]} : vector<4x512xbf16> to vector<4x384xbf16>
    %cst_432 = arith.constant dense<0.000000e+00> : vector<8x384xf32>
    %556 = tpu.matmul %554, %555, %cst_432 {dimension_numbers = #tpu.dot_dimension_numbers<[1], [0], [0], [1], [0, 0, 1, 1], [], []>} : vector<8x4xbf16>, vector<4x384xbf16>, vector<8x384xf32> -> vector<8x384xf32>
    %557 = arith.addf %552, %556 : vector<8x384xf32>
    %c23_433 = arith.constant 23 : index
    %c0_434 = arith.constant 0 : index
    %c0_435 = arith.constant 0 : index
    %558 = vector.load %arg4[%c23_433, %c0_434, %c0_435] : memref<27x8x4xbf16, #tpu.memory_space<vmem>>, vector<1x8x4xbf16>
    %559 = vector.shape_cast %558 : vector<1x8x4xbf16> to vector<8x4xbf16>
    %560 = vector.extract_strided_slice %11 {offsets = [0, 20], sizes = [4, 384], strides = [1, 1]} : vector<4x512xbf16> to vector<4x384xbf16>
    %cst_436 = arith.constant dense<0.000000e+00> : vector<8x384xf32>
    %561 = tpu.matmul %559, %560, %cst_436 {dimension_numbers = #tpu.dot_dimension_numbers<[1], [0], [0], [1], [0, 0, 1, 1], [], []>} : vector<8x4xbf16>, vector<4x384xbf16>, vector<8x384xf32> -> vector<8x384xf32>
    %562 = arith.addf %557, %561 : vector<8x384xf32>
    %c24_437 = arith.constant 24 : index
    %c0_438 = arith.constant 0 : index
    %c0_439 = arith.constant 0 : index
    %563 = vector.load %arg4[%c24_437, %c0_438, %c0_439] : memref<27x8x4xbf16, #tpu.memory_space<vmem>>, vector<1x8x4xbf16>
    %564 = vector.shape_cast %563 : vector<1x8x4xbf16> to vector<8x4xbf16>
    %565 = vector.extract_strided_slice %11 {offsets = [0, 36], sizes = [4, 384], strides = [1, 1]} : vector<4x512xbf16> to vector<4x384xbf16>
    %cst_440 = arith.constant dense<0.000000e+00> : vector<8x384xf32>
    %566 = tpu.matmul %564, %565, %cst_440 {dimension_numbers = #tpu.dot_dimension_numbers<[1], [0], [0], [1], [0, 0, 1, 1], [], []>} : vector<8x4xbf16>, vector<4x384xbf16>, vector<8x384xf32> -> vector<8x384xf32>
    %567 = arith.addf %562, %566 : vector<8x384xf32>
    %c25_441 = arith.constant 25 : index
    %c0_442 = arith.constant 0 : index
    %c0_443 = arith.constant 0 : index
    %568 = vector.load %arg4[%c25_441, %c0_442, %c0_443] : memref<27x8x4xbf16, #tpu.memory_space<vmem>>, vector<1x8x4xbf16>
    %569 = vector.shape_cast %568 : vector<1x8x4xbf16> to vector<8x4xbf16>
    %570 = vector.extract_strided_slice %11 {offsets = [0, 37], sizes = [4, 384], strides = [1, 1]} : vector<4x512xbf16> to vector<4x384xbf16>
    %cst_444 = arith.constant dense<0.000000e+00> : vector<8x384xf32>
    %571 = tpu.matmul %569, %570, %cst_444 {dimension_numbers = #tpu.dot_dimension_numbers<[1], [0], [0], [1], [0, 0, 1, 1], [], []>} : vector<8x4xbf16>, vector<4x384xbf16>, vector<8x384xf32> -> vector<8x384xf32>
    %572 = arith.addf %567, %571 : vector<8x384xf32>
    %c26_445 = arith.constant 26 : index
    %c0_446 = arith.constant 0 : index
    %c0_447 = arith.constant 0 : index
    %573 = vector.load %arg4[%c26_445, %c0_446, %c0_447] : memref<27x8x4xbf16, #tpu.memory_space<vmem>>, vector<1x8x4xbf16>
    %574 = vector.shape_cast %573 : vector<1x8x4xbf16> to vector<8x4xbf16>
    %575 = vector.extract_strided_slice %11 {offsets = [0, 38], sizes = [4, 384], strides = [1, 1]} : vector<4x512xbf16> to vector<4x384xbf16>
    %cst_448 = arith.constant dense<0.000000e+00> : vector<8x384xf32>
    %576 = tpu.matmul %574, %575, %cst_448 {dimension_numbers = #tpu.dot_dimension_numbers<[1], [0], [0], [1], [0, 0, 1, 1], [], []>} : vector<8x4xbf16>, vector<4x384xbf16>, vector<8x384xf32> -> vector<8x384xf32>
    %577 = arith.addf %572, %576 : vector<8x384xf32>
    %578 = vector.broadcast %12 : vector<8x1xf32> to vector<8x384xf32>
    %579 = arith.addf %577, %578 : vector<8x384xf32>
    %cst_449 = arith.constant 0.000000e+00 : f32
    %580 = vector.broadcast %cst_449 : f32 to vector<8x384xf32>
    %581 = arith.maximumf %579, %580 : vector<8x384xf32>
    %c0_450 = arith.constant 0 : index
    %c3_451 = arith.constant 3 : index
    %c0_452 = arith.constant 0 : index
    %c0_453 = arith.constant 0 : index
    %582 = vector.load %arg6[%c0_450, %c3_451, %c0_452, %c0_453] : memref<1x4x8x384xf32, #tpu.memory_space<vmem>>, vector<1x1x8x384xf32>
    %583 = vector.shape_cast %582 : vector<1x1x8x384xf32> to vector<8x384xf32>
    %584 = vector.shape_cast %581 : vector<8x384xf32> to vector<1x1x8x384xf32>
    tpu.vector_store %arg6[%c0_450, %c3_451, %c0_452, %c0_453], %584 {strides = array<i32>} : memref<1x4x8x384xf32, #tpu.memory_space<vmem>>, vector<1x1x8x384xf32>,
    return
  }
  func.func @transform_0(%arg0: i32, %arg1: i32) -> (i32, i32, i32, i32) {
    %c0_i32 = arith.constant 0 : i32
    %c0_i32_0 = arith.constant 0 : i32
    %c0_i32_1 = arith.constant 0 : i32
    return %arg0, %arg1, %c0_i32, %c0_i32_0 : i32, i32, i32, i32
  }
  func.func @transform_1(%arg0: i32, %arg1: i32) -> (i32, i32, i32, i32) {
    %c2_i32 = arith.constant 2 : i32
    %0 = arith.muli %arg1, %c2_i32 : i32
    %c2_i32_0 = arith.constant 2 : i32
    %1 = arith.addi %0, %c2_i32_0 : i32
    %c0_i32 = arith.constant 0 : i32
    %c0_i32_1 = arith.constant 0 : i32
    %c0_i32_2 = arith.constant 0 : i32
    return %arg0, %1, %c0_i32, %c0_i32_1 : i32, i32, i32, i32
  }
  func.func @transform_2(%arg0: i32, %arg1: i32) -> (i32, i32, i32) {
    %c0_i32 = arith.constant 0 : i32
    %c0_i32_0 = arith.constant 0 : i32
    %c0_i32_1 = arith.constant 0 : i32
    %c0_i32_2 = arith.constant 0 : i32
    return %c0_i32, %c0_i32_0, %c0_i32_1 : i32, i32, i32
  }
  func.func @transform_3(%arg0: i32, %arg1: i32) -> (i32, i32) {
    %c0_i32 = arith.constant 0 : i32
    %c0_i32_0 = arith.constant 0 : i32
    %c0_i32_1 = arith.constant 0 : i32
    return %c0_i32, %c0_i32_0 : i32, i32
  }
  func.func @transform_4(%arg0: i32, %arg1: i32) -> (i32, i32, i32, i32) {
    %c0_i32 = arith.constant 0 : i32
    %c0_i32_0 = arith.constant 0 : i32
    %c0_i32_1 = arith.constant 0 : i32
    return %arg0, %arg1, %c0_i32, %c0_i32_0 : i32, i32, i32, i32
  }
}

</mosaic_0001>

<bundles_post_ra>
// kernel: upsampling_forward.1
= control target key start
LH: loop header
LB: loop body
LE: loop exit
PB: predicated region body
PF: predicated region fallthrough
CT: control target
= control target key end

     0   :  { %s12574_s15 = smov 0   ;;  %s12576_s16 = smov 0   ;;  %s15520_s0 = inlined_call_operand.vmem [shape: bf16[2,20,4,512], index: 0, kind: input, shape index: {}, may-alias: {0,1}]   ;;  %s15521_s1 = inlined_call_operand.vmem [shape: bf16[2,20,4,512], index: 1, kind: input, shape index: {}, may-alias: {0,1}]   ;;  %s15522_s2 = inlined_call_operand.vmem [shape: bf16[27,8,4], index: 2, kind: input, shape index: {}]   ;;  %s15523_s3 = inlined_call_operand.vmem [shape: f32[8,1], index: 3, kind: input, shape index: {}]   ;;  %s15524_s4 = inlined_call_operand.vmem [shape: f32[2,16,8,384], index: 4, kind: output, shape index: {}]  }
   0x1   :  { %s12578_s17 = smov 0   ;;  %s12580_s18 = smov 0  }
   0x2   :  { %s12582_s19 = smov 0  }
   0x3 LB: > { %s23_s20 = sadd.s32 1, %s12527_s17  ;;  %s26_s21 = sadd.s32 1, %s12531_s18  ;;  %s12535_s19 = sphi %s12582_s19, %s14_s19   ;;  %s12531_s18 = sphi %s12580_s18, %s15834_s18   ;;  %s12527_s17 = sphi %s12578_s17, %s15833_s17   ;;  %s12523_s16 = sphi %s12576_s16, %s15832_s16   ;;  %s12519_s15 = sphi %s12574_s15, %s15831_s15  }
   0x4   : > { %p24_p0 = scmp.ge.s32.totalorder %s23_s20, 4  ;;  %p11115_p1 = scmp.ge.s32.totalorder %s12535_s19, 1 }
   0x5   : > { %p210_p2 = scmp.lt.s32.totalorder %s12535_s19, 9 }
   0x6   : > { %s15836_s20 = smov (%p24_p0, %s23_s20), 0  ;;  %s15838_s21 = smov (!%p24_p0, %s26_s21), %s12531_s18 }
   0x7   : > { %p211_p3 = pnand %p11115_p1, %p210_p2  ;;  %p28_p4 = scmp.ge.s32.totalorder %s15838_s21, 2 }
   0x9   : > { %s15840_s21 = smov (%p28_p4, %s15838_s21), 0  ;;  %214 = sbr.rel (%p211_p3) target bundleno = 1208 (0x4b8), region = 36 }
   0xe   : > { %s12604_s22 = sshll.u32 %s12519_s15, 2  ;;  %p259_p5 = scmp.lt.s32.totalorder %s12523_s16, 1  ;;  %v315_v0 = vlaneseq  ;;  %v12537_v1 = vmov 1983009808   ;;  %v15527_v6 = vmov 0.0   ;;  %v15525_v7 = vmov 0  }
   0xf   : > { %p261_p6 = scmp.lt.s32.totalorder %s12604_s22, 19  ;;  %v313_v2 = vunpack.c.l.s4 %v12537_v1  ;;  %11787 = vmatprep.subr.bf16.mxu1 %v15527_v6  ;;  %386 = vmatprep.mubr.bf16.mxu0 %v15525_v7  ;;  %vm12540_vm0 = vmmov 0   ;;  %s12541_s5 = smov 127   ;;  %vm336_vm1 = vcmask 1039360   ;;  %vm344_vm2 = vcmask 1041408  }
  0x10   : > { %s15842_s16 = smov (!%p259_p5, %s12523_s16), 1  ;;  %v316_v3 = vshrl.u32 %v315_v0, 7  ;;  %12490 = vset.pattern.permute.xlu0 %v15525_v7  ;;  %11789 = vmatprep.mubr.msk.bf16.mxu1 %vm12540_vm0, %v15527_v6  ;;  %s12542_s6 = smov 126   ;;  %v11129_v28 = vld [vmem:[%s15522_s2 + $0x4] sm:$0xf]  ;;  %vm340_vm3 = vcmask 31744  }
  0x11   : > { %s262_s23 = scalar_select %p261_p6, %s12604_s22, 19  ;;  %v314_v4 = vunpack.c.0.s8 %v313_v2  ;;  %vm538_vm4 = vcmask 1031168   ;;  %v307_v42 = vld [vmem:[%s15522_s2] sm:$0xf]  ;;  %vm648_vm5 = vcmask 900096   ;;  %vm758_vm6 = vcmask 891904  }
  0x12   : > { %s12435_s24 = smul.u32 80, %s15842_s16  ;;  %s12543_s7 = smov 110   ;;  %v11136_v55 = vld [vmem:[%s15522_s2 + $0x8] sm:$0xf]  ;;  %v11140_v1 = vld [vmem:[%s15522_s2 + $0xc] sm:$0xf] }
  0x13   : > { %s11117_s25 = sshll.u32 %s262_s23, 2  ;;  %v12613_v5 = vsub.s32 %v314_v4, %v316_v3  ;;  %s12544_s8 = smov 109   ;;  %vm868_vm7 = vcmask 883712   ;;  %vm978_vm8 = vcmask 752640   ;;  %vm1088_vm9 = vcmask 744448  }
  0x14   : > { %s265_s26 = sadd.s32 %s12435_s24, %s11117_s25  ;;  %s12545_s9 = smov 108   ;;  %vm1198_vm10 = vcmask 736256  }
  0x15   : > { %s11118_s27 = sshll.u32 %s265_s26, 1  ;;  %s12546_s10 = smov 92  }
  0x16   : > { %s12621_s30 = scalar_lea.vmem %s15520_s0, %s11118_s27  ;;  %s12547_s11 = smov 91  }
  0x17   : > { %v296_v8 = vld [vmem:[%s12621_s30] sm:$0xff]  ;;  %s12548_s12 = smov 90   ;;  %v11125_v14 = vld [vmem:[%s12621_s30 + $0x8] sm:$0xff]  ;;  %v11126_v32 = vld [vmem:[%s12621_s30 + $0x10] sm:$0xff]  ;;  %s11569_s15 = sadd.s32 4, %s12604_s22 }
  0x18   : > { %v12627_v9 = vrot.slane %v296_v8, %v12613_v5  ;;  %v311_v10 = vcombine.high %v296_v8, %v296_v8  ;;  %v12695_v15 = vrot.slane %v11125_v14, %v12613_v5  ;;  %v1301_v16 = vcombine.high %v11125_v14, %v11125_v14  ;;  %v11144_v14 = vld [vmem:[%s15522_s2 + $0x10] sm:$0xf]  ;;  %p274_p7 = scmp.lt.s32.totalorder %s11569_s15, 19  ;;  %p287_p8 = scmp.lt.s32.totalorder %s12604_s22, 15 }
  0x19   : > { %v12792_v36 = vrot.slane %v11126_v32, %v12613_v5  ;;  %v2289_v40 = vcombine.high %v11126_v32, %v11126_v32  ;;  %s12437_s25 = smul.u32 48, %s15842_s16 }
  0x1a   : > { %328 = vrot.lane.b32.xlu0 %v12627_v9, %s12541_s5  ;;  %v12632_v11 = vrot.slane %v311_v10, %v12613_v5  ;;  %v12636_v12 = vcombine.high %v12627_v9, %v12627_v9  ;;  %v12700_v17 = vcombine.high %v12695_v15, %v12695_v15  ;;  %v12705_v18 = vrot.slane %v1301_v16, %v12613_v5  ;;  %s15844_s15 = smov (!%p274_p7, %s11569_s15), 19  ;;  %s15846_s22 = smov (!%p287_p8, %s12604_s22), 15 }
  0x1b   : > { %v439_v31 = vsel %vm344_vm2, %v12627_v9, 0  ;;  %v12811_v45 = vcombine.high %v12792_v36, %v12792_v36  ;;  %v12816_v48 = vrot.slane %v2289_v40, %v12613_v5  ;;  %s11121_s27 = sshll.u32 %s15844_s15, 2  ;;  %s12436_s26 = smul.u32 3, %s15846_s22 }
  0x1c   : > { %332 = vrot.lane.b32.xlu1 %v12632_v11, %s12541_s5  ;;  %v327_v13 = vcombine.high %v12632_v11, %v12632_v11  ;;  %v12711_v19 = vcombine.high %v12705_v18, %v12705_v18  ;;  %v445_v34 = vsel %vm344_vm2, %v12632_v11, 0  ;;  %s278_s28 = sadd.s32 %s12435_s24, %s11121_s27 }
  0x1d   : > { %v12824_v50 = vcombine.high %v12816_v48, %v12816_v48  ;;  %s11122_s29 = sshll.u32 %s278_s28, 1  ;;  %s291_s27 = sadd.s32 %s12437_s25, %s12436_s26 }
  0x1e   : > { %330 = vrot.lane.b32.xlu0 %v12636_v12, %s12541_s5  ;;  %s13261_s23 = scalar_lea.vmem %s15521_s1, %s11122_s29  ;;  %s11124_s28 = sshll.u32 %s291_s27, 3 }
  0x1f   : > { %s14276_s14 = scalar_lea.vmem %s15524_s4, %s11124_s28 }
  0x20   : > { %334 = vrot.lane.b32.xlu1 %v327_v13, %s12541_s5 }
  0x22   : > { %530 = vrot.lane.b32.xlu0 %v12627_v9, %s12542_s6 }
  0x24   : > { %532 = vrot.lane.b32.xlu1 %v12636_v12, %s12542_s6 }
  0x26   : > { %534 = vrot.lane.b32.xlu0 %v12632_v11, %s12542_s6 }
  0x28   : > { %536 = vrot.lane.b32.xlu1 %v327_v13, %s12542_s6 }
  0x2a   : > { %640 = vrot.lane.b32.xlu0 %v12627_v9, %s12543_s7 }
  0x2c   : > { %642 = vrot.lane.b32.xlu1 %v12636_v12, %s12543_s7 }
  0x2e   : > { %644 = vrot.lane.b32.xlu0 %v12632_v11, %s12543_s7 }
  0x30   : > { %646 = vrot.lane.b32.xlu1 %v327_v13, %s12543_s7 }
  0x32   : > { %750 = vrot.lane.b32.xlu0 %v12627_v9, %s12544_s8 }
  0x34   : > { %752 = vrot.lane.b32.xlu1 %v12636_v12, %s12544_s8 }
  0x36   : > { %754 = vrot.lane.b32.xlu0 %v12632_v11, %s12544_s8 }
  0x38   : > { %756 = vrot.lane.b32.xlu1 %v327_v13, %s12544_s8 }
  0x3a   : > { %860 = vrot.lane.b32.xlu0 %v12627_v9, %s12545_s9 }
  0x3c   : > { %862 = vrot.lane.b32.xlu1 %v12636_v12, %s12545_s9 }
  0x3e   : > { %864 = vrot.lane.b32.xlu0 %v12632_v11, %s12545_s9 }
  0x40   : > { %866 = vrot.lane.b32.xlu1 %v327_v13, %s12545_s9 }
  0x42   : > { %970 = vrot.lane.b32.xlu0 %v12627_v9, %s12546_s10 }
  0x44   : > { %972 = vrot.lane.b32.xlu1 %v12636_v12, %s12546_s10 }
  0x46   : > { %974 = vrot.lane.b32.xlu0 %v12632_v11, %s12546_s10 }
  0x48   : > { %976 = vrot.lane.b32.xlu1 %v327_v13, %s12546_s10 }
  0x4a   : > { %1080 = vrot.lane.b32.xlu0 %v12627_v9, %s12547_s11 }
  0x4c   : > { %1082 = vrot.lane.b32.xlu1 %v12636_v12, %s12547_s11 }
  0x4e   : > { %1084 = vrot.lane.b32.xlu0 %v12632_v11, %s12547_s11 }
  0x50   : > { %1086 = vrot.lane.b32.xlu1 %v327_v13, %s12547_s11 }
  0x52   : > { %1190 = vrot.lane.b32.xlu0 %v12627_v9, %s12548_s12 }
  0x54   : > { %1192 = vrot.lane.b32.xlu1 %v12636_v12, %s12548_s12 }
  0x56   : > { %1194 = vrot.lane.b32.xlu0 %v12632_v11, %s12548_s12 }
  0x58   : > { %1196 = vrot.lane.b32.xlu1 %v327_v13, %s12548_s12 }
  0x5a   : > { %1416 = vrot.lane.b32.xlu0 %v12695_v15, %s12541_s5 }
  0x5c   : > { %1418 = vrot.lane.b32.xlu1 %v12700_v17, %s12541_s5 }
  0x5e   : > { %1420 = vrot.lane.b32.xlu0 %v12705_v18, %s12541_s5 }
  0x60   : > { %1422 = vrot.lane.b32.xlu1 %v12711_v19, %s12541_s5 }
  0x62   : > { %1525 = vrot.lane.b32.xlu0 %v12695_v15, %s12542_s6 }
  0x64   : > { %1527 = vrot.lane.b32.xlu1 %v12700_v17, %s12542_s6 }
  0x66   : > { %1529 = vrot.lane.b32.xlu0 %v12705_v18, %s12542_s6 }
  0x68   : > { %1531 = vrot.lane.b32.xlu1 %v12711_v19, %s12542_s6 }
  0x6a   : > { %1634 = vrot.lane.b32.xlu0 %v12695_v15, %s12543_s7 }
  0x6c   : > { %1636 = vrot.lane.b32.xlu1 %v12700_v17, %s12543_s7 }
  0x6e   : > { %1638 = vrot.lane.b32.xlu0 %v12705_v18, %s12543_s7 }
  0x70   : > { %1640 = vrot.lane.b32.xlu1 %v12711_v19, %s12543_s7 }
  0x72   : > { %1743 = vrot.lane.b32.xlu0 %v12695_v15, %s12544_s8 }
  0x74   : > { %1745 = vrot.lane.b32.xlu1 %v12700_v17, %s12544_s8 }
  0x76   : > { %1747 = vrot.lane.b32.xlu0 %v12705_v18, %s12544_s8 }
  0x78   : > { %1749 = vrot.lane.b32.xlu1 %v12711_v19, %s12544_s8 }
  0x7a   : > { %1852 = vrot.lane.b32.xlu0 %v12695_v15, %s12545_s9 }
  0x7c   : > { %1854 = vrot.lane.b32.xlu1 %v12700_v17, %s12545_s9 }
  0x7e   : > { %1856 = vrot.lane.b32.xlu0 %v12705_v18, %s12545_s9 }
  0x80   : > { %1858 = vrot.lane.b32.xlu1 %v12711_v19, %s12545_s9 }
  0x82   : > { %1961 = vrot.lane.b32.xlu0 %v12695_v15, %s12546_s10 }
  0x84   : > { %1963 = vrot.lane.b32.xlu1 %v12700_v17, %s12546_s10 }
  0x86   : > { %1965 = vrot.lane.b32.xlu0 %v12705_v18, %s12546_s10 }
  0x88   : > { %1967 = vrot.lane.b32.xlu1 %v12711_v19, %s12546_s10 }
  0x8a   : > { %2070 = vrot.lane.b32.xlu0 %v12695_v15, %s12547_s11 }
  0x8c   : > { %v329_v20 = vpop.permute.xlu0 %328  ;;  %2072 = vrot.lane.b32.xlu1 %v12700_v17, %s12547_s11 }
  0x8e   : > { %v333_v21 = vpop.permute.xlu1 %332  ;;  %2074 = vrot.lane.b32.xlu0 %v12705_v18, %s12547_s11 }
  0x90   : > { %v331_v22 = vpop.permute.xlu0 %330  ;;  %2076 = vrot.lane.b32.xlu1 %v12711_v19, %s12547_s11 }
  0x91   : > { %v338_v23 = vsel %vm336_vm1, %v331_v22, %v333_v21  ;;  %v337_v24 = vsel %vm336_vm1, %v329_v20, %v331_v22 }
  0x92   : > { %11130 = vmatprep.subr.msk.bf16.mxu0 %vm344_vm2, %v338_v23  ;;  %v335_v25 = vpop.permute.xlu1 %334  ;;  %v346_v26 = vsel %vm344_vm2, %v337_v24, 0  ;;  %2179 = vrot.lane.b32.xlu0 %v12695_v15, %s12548_s12 }
  0x93   : > { %369 = vmatpush1.bf16.msra.mxu0 %v346_v26  ;;  %v339_v27 = vsel %vm336_vm1, %v333_v21, %v335_v25 }
  0x94   : > { %v352_v29 = vsel %vm344_vm2, %v339_v27, 0  ;;  %v531_v30 = vpop.permute.xlu0 %530  ;;  %11133 = vmatprep.subr.msk.bf16.mxu0 %vm344_vm2, %v12636_v12  ;;  %2181 = vrot.lane.b32.xlu1 %v12700_v17, %s12548_s12  ;;  %v11148_v27 = vld [vmem:[%s15522_s2 + $0x14] sm:$0xf] }
  0x95   : > { %11788 = vmatpush3.bf16.msra.mxu1 %v352_v29 }
  0x96   : > { %11131 = vmatmul.mubr.msk.bf16.vlgmr.msra.gmra.mxu0 %vm340_vm3, %v11129_v28  ;;  %11793 = vmatprep.subr.bf16.mxu1 %v15527_v6  ;;  %v533_v33 = vpop.permute.xlu1 %532 }
  0x97   : > { %462 = vmatpush1.bf16.msra.mxu0 %v439_v31  ;;  %479 = vmatprep.mubr.bf16.mxu0 %v15525_v7  ;;  %v539_v37 = vsel %vm538_vm4, %v531_v30, %v533_v33 }
  0x98   : > { %11790 = vmatmul.mubr.msk.bf16.vlgmr.msra.gmra.mxu1 %vm340_vm3, %v11129_v28  ;;  %v535_v35 = vpop.permute.xlu0 %534  ;;  %2183 = vrot.lane.b32.xlu0 %v12705_v18, %s12548_s12  ;;  %v546_v44 = vsel %vm344_vm2, %v539_v37, 0 }
  0x99   : > { %11794 = vmatpush3.bf16.msra.mxu1 %v445_v34  ;;  %v540_v38 = vsel %vm538_vm4, %v533_v33, %v535_v35  ;;  %11795 = vmatprep.mubr.msk.bf16.mxu1 %vm12540_vm0, %v15527_v6 }
  0x9a   : > { %11137 = vmatprep.subr.msk.bf16.mxu0 %vm344_vm2, %v540_v38  ;;  %v537_v39 = vpop.permute.xlu1 %536  ;;  %11799 = vmatprep.subr.bf16.mxu1 %v15527_v6  ;;  %v11152_v38 = vld [vmem:[%s15522_s2 + $0x18] sm:$0xf] }
  0x9b   : > { %v541_v41 = vsel %vm538_vm4, %v535_v35, %v537_v39  ;;  %2185 = vrot.lane.b32.xlu1 %v12711_v19, %s12548_s12 }
  0x9c   : > { %v641_v43 = vpop.permute.xlu0 %640  ;;  %2404 = vrot.lane.b32.xlu0 %v12792_v36, %s12541_s5  ;;  %v552_v46 = vsel %vm344_vm2, %v541_v41, 0 }
  0x9e   : > { %11134 = vmatmul.mubr.msk.bf16.vlgmr.msra.gmra.mxu0 %vm340_vm3, %v307_v42  ;;  %v643_v47 = vpop.permute.xlu1 %642 }
  0x9f   : > { %569 = vmatpush1.bf16.msra.mxu0 %v546_v44  ;;  %586 = vmatprep.mubr.bf16.mxu0 %v15525_v7  ;;  %v649_v51 = vsel %vm648_vm5, %v641_v43, %v643_v47 }
  0xa0   : > { %11796 = vmatmul.mubr.msk.bf16.vlgmr.msra.gmra.mxu1 %vm340_vm3, %v307_v42  ;;  %v645_v49 = vpop.permute.xlu0 %644  ;;  %2406 = vrot.lane.b32.xlu1 %v12811_v45, %s12541_s5  ;;  %v656_v57 = vsel %vm344_vm2, %v649_v51, 0  ;;  %v11156_v51 = vld [vmem:[%s15522_s2 + $0x1c] sm:$0xf] }
  0xa1   : > { %11800 = vmatpush3.bf16.msra.mxu1 %v552_v46  ;;  %v650_v52 = vsel %vm648_vm5, %v643_v47, %v645_v49  ;;  %11801 = vmatprep.mubr.msk.bf16.mxu1 %vm12540_vm0, %v15527_v6 }
  0xa2   : > { %11141 = vmatprep.subr.msk.bf16.mxu0 %vm344_vm2, %v650_v52  ;;  %v647_v53 = vpop.permute.xlu1 %646  ;;  %11805 = vmatprep.subr.bf16.mxu1 %v15527_v6 }
  0xa3   : > { %v651_v54 = vsel %vm648_vm5, %v645_v49, %v647_v53  ;;  %2408 = vrot.lane.b32.xlu0 %v12816_v48, %s12541_s5 }
  0xa4   : > { %v751_v56 = vpop.permute.xlu0 %750  ;;  %2410 = vrot.lane.b32.xlu1 %v12824_v50, %s12541_s5  ;;  %v662_v58 = vsel %vm344_vm2, %v651_v54, 0 }
  0xa6   : > { %11138 = vmatmul.mubr.msk.bf16.vlgmr.msra.gmra.mxu0 %vm340_vm3, %v11136_v55  ;;  %v753_v59 = vpop.permute.xlu1 %752 }
  0xa7   : > { %679 = vmatpush1.bf16.msra.mxu0 %v656_v57  ;;  %696 = vmatprep.mubr.bf16.mxu0 %v15525_v7  ;;  %v759_v61 = vsel %vm758_vm6, %v751_v56, %v753_v59 }
  0xa8   : > { %11802 = vmatmul.mubr.msk.bf16.vlgmr.msra.gmra.mxu1 %vm340_vm3, %v11136_v55  ;;  %v755_v60 = vpop.permute.xlu0 %754  ;;  %2513 = vrot.lane.b32.xlu0 %v12792_v36, %s12542_s6  ;;  %v766_v3 = vsel %vm344_vm2, %v759_v61, 0 }
  0xa9   : > { %11806 = vmatpush3.bf16.msra.mxu1 %v662_v58  ;;  %v760_v62 = vsel %vm758_vm6, %v753_v59, %v755_v60  ;;  %11807 = vmatprep.mubr.msk.bf16.mxu1 %vm12540_vm0, %v15527_v6  ;;  %v11160_v58 = vld [vmem:[%s15522_s2 + $0x20] sm:$0xf]  ;;  %v12968_v59 = vsel %vm344_vm2, %v12695_v15, 0 }
  0xaa   : > { %11145 = vmatprep.subr.msk.bf16.mxu0 %vm344_vm2, %v760_v62  ;;  %v757_v63 = vpop.permute.xlu1 %756  ;;  %11811 = vmatprep.subr.bf16.mxu1 %v15527_v6  ;;  %v12978_v62 = vsel %vm344_vm2, %v12705_v18, 0 }
  0xab   : > { %v761_v0 = vsel %vm758_vm6, %v755_v60, %v757_v63  ;;  %2515 = vrot.lane.b32.xlu1 %v12811_v45, %s12542_s6 }
  0xac   : > { %v861_v2 = vpop.permute.xlu0 %860  ;;  %2517 = vrot.lane.b32.xlu0 %v12816_v48, %s12542_s6  ;;  %v772_v4 = vsel %vm344_vm2, %v761_v0, 0 }
  0xae   : > { %11142 = vmatmul.mubr.msk.bf16.vlgmr.msra.gmra.mxu0 %vm340_vm3, %v11140_v1  ;;  %v863_v8 = vpop.permute.xlu1 %862 }
  0xaf   : > { %789 = vmatpush1.bf16.msra.mxu0 %v766_v3  ;;  %806 = vmatprep.mubr.bf16.mxu0 %v15525_v7  ;;  %v869_v10 = vsel %vm868_vm7, %v861_v2, %v863_v8  ;;  %v11164_v2 = vld [vmem:[%s15522_s2 + $0x24] sm:$0xf] }
  0xb0   : > { %11808 = vmatmul.mubr.msk.bf16.vlgmr.msra.gmra.mxu1 %vm340_vm3, %v11140_v1  ;;  %v865_v9 = vpop.permute.xlu0 %864  ;;  %2519 = vrot.lane.b32.xlu1 %v12824_v50, %s12542_s6  ;;  %v876_v19 = vsel %vm344_vm2, %v869_v10, 0 }
  0xb1   : > { %11812 = vmatpush3.bf16.msra.mxu1 %v772_v4  ;;  %v870_v11 = vsel %vm868_vm7, %v863_v8, %v865_v9  ;;  %11813 = vmatprep.mubr.msk.bf16.mxu1 %vm12540_vm0, %v15527_v6 }
  0xb2   : > { %11149 = vmatprep.subr.msk.bf16.mxu0 %vm344_vm2, %v870_v11  ;;  %v867_v12 = vpop.permute.xlu1 %866  ;;  %11817 = vmatprep.subr.bf16.mxu1 %v15527_v6 }
  0xb3   : > { %v871_v13 = vsel %vm868_vm7, %v865_v9, %v867_v12  ;;  %2622 = vrot.lane.b32.xlu0 %v12792_v36, %s12543_s7  ;;  %v11127_v12 = vld [vmem:[%s12621_s30 + $0x18] sm:$0xff] }
  0xb4   : > { %v971_v16 = vpop.permute.xlu0 %970  ;;  %2624 = vrot.lane.b32.xlu1 %v12811_v45, %s12543_s7  ;;  %v882_v20 = vsel %vm344_vm2, %v871_v13, 0 }
  0xb6   : > { %11146 = vmatmul.mubr.msk.bf16.vlgmr.msra.gmra.mxu0 %vm340_vm3, %v11144_v14  ;;  %v973_v21 = vpop.permute.xlu1 %972 }
  0xb7   : > { %899 = vmatpush1.bf16.msra.mxu0 %v876_v19  ;;  %916 = vmatprep.mubr.bf16.mxu0 %v15525_v7  ;;  %v979_v23 = vsel %vm978_vm8, %v971_v16, %v973_v21  ;;  %v11168_v19 = vld [vmem:[%s15522_s2 + $0x28] sm:$0xf] }
  0xb8   : > { %11814 = vmatmul.mubr.msk.bf16.vlgmr.msra.gmra.mxu1 %vm340_vm3, %v11144_v14  ;;  %v975_v22 = vpop.permute.xlu0 %974  ;;  %2626 = vrot.lane.b32.xlu0 %v12816_v48, %s12543_s7  ;;  %v986_v29 = vsel %vm344_vm2, %v979_v23, 0 }
  0xb9   : > { %11818 = vmatpush3.bf16.msra.mxu1 %v882_v20  ;;  %v980_v24 = vsel %vm978_vm8, %v973_v21, %v975_v22  ;;  %11819 = vmatprep.mubr.msk.bf16.mxu1 %vm12540_vm0, %v15527_v6  ;;  %v13034_v20 = vrot.slane %v11127_v12, %v12613_v5  ;;  %v4868_v21 = vcombine.high %v11127_v12, %v11127_v12 }
  0xba   : > { %11153 = vmatprep.subr.msk.bf16.mxu0 %vm344_vm2, %v980_v24  ;;  %v977_v25 = vpop.permute.xlu1 %976  ;;  %11823 = vmatprep.subr.bf16.mxu1 %v15527_v6 }
  0xbb   : > { %v981_v26 = vsel %vm978_vm8, %v975_v22, %v977_v25  ;;  %2628 = vrot.lane.b32.xlu1 %v12824_v50, %s12543_s7  ;;  %15630 = vst [vmem:[#allocation2_spill] sm:$0xff] %v13034_v20 }
  0xbc   : > { %v1081_v28 = vpop.permute.xlu0 %1080  ;;  %2731 = vrot.lane.b32.xlu0 %v12792_v36, %s12544_s8  ;;  %v992_v30 = vsel %vm344_vm2, %v981_v26, 0 }
  0xbe   : > { %11150 = vmatmul.mubr.msk.bf16.vlgmr.msra.gmra.mxu0 %vm340_vm3, %v11148_v27  ;;  %v1083_v31 = vpop.permute.xlu1 %1082 }
  0xbf   : > { %1009 = vmatpush1.bf16.msra.mxu0 %v986_v29  ;;  %1026 = vmatprep.mubr.bf16.mxu0 %v15525_v7  ;;  %v1089_v33 = vsel %vm1088_vm9, %v1081_v28, %v1083_v31 }
  0xc0   : > { %11820 = vmatmul.mubr.msk.bf16.vlgmr.msra.gmra.mxu1 %vm340_vm3, %v11148_v27  ;;  %v1085_v32 = vpop.permute.xlu0 %1084  ;;  %2733 = vrot.lane.b32.xlu1 %v12811_v45, %s12544_s8  ;;  %v1096_v40 = vsel %vm344_vm2, %v1089_v33, 0  ;;  %v13052_v27 = vrot.slane %v4868_v21, %v12613_v5 }
  0xc1   : > { %11824 = vmatpush3.bf16.msra.mxu1 %v992_v30  ;;  %v1090_v34 = vsel %vm1088_vm9, %v1083_v31, %v1085_v32  ;;  %11825 = vmatprep.mubr.msk.bf16.mxu1 %vm12540_vm0, %v15527_v6  ;;  %v11172_v31 = vld [vmem:[%s15522_s2 + $0x2c] sm:$0xf] }
  0xc2   : > { %11157 = vmatprep.subr.msk.bf16.mxu0 %vm344_vm2, %v1090_v34  ;;  %v1087_v35 = vpop.permute.xlu1 %1086  ;;  %11829 = vmatprep.subr.bf16.mxu1 %v15527_v6  ;;  %15631 = vst [vmem:[#allocation3_spill] sm:$0xff] %v13052_v27 }
  0xc3   : > { %v1091_v37 = vsel %vm1088_vm9, %v1085_v32, %v1087_v35  ;;  %2735 = vrot.lane.b32.xlu0 %v12816_v48, %s12544_s8 }
  0xc4   : > { %v1191_v39 = vpop.permute.xlu0 %1190  ;;  %2737 = vrot.lane.b32.xlu1 %v12824_v50, %s12544_s8  ;;  %v1102_v41 = vsel %vm344_vm2, %v1091_v37, 0 }
  0xc6   : > { %11154 = vmatmul.mubr.msk.bf16.vlgmr.msra.gmra.mxu0 %vm340_vm3, %v11152_v38  ;;  %v1193_v42 = vpop.permute.xlu1 %1192 }
  0xc7   : > { %1119 = vmatpush1.bf16.msra.mxu0 %v1096_v40  ;;  %2840 = vrot.lane.b32.xlu0 %v12792_v36, %s12545_s9  ;;  %v1199_v44 = vsel %vm1198_vm10, %v1191_v39, %v1193_v42 }
  0xc8   : > { %11826 = vmatmul.mubr.msk.bf16.vlgmr.msra.gmra.mxu1 %vm340_vm3, %v11152_v38  ;;  %v1195_v43 = vpop.permute.xlu0 %1194  ;;  %1136 = vmatprep.mubr.bf16.mxu0 %v15525_v7  ;;  %v1206_v52 = vsel %vm344_vm2, %v1199_v44, 0 }
  0xc9   : > { %11830 = vmatpush3.bf16.msra.mxu1 %v1102_v41  ;;  %v1200_v46 = vsel %vm1198_vm10, %v1193_v42, %v1195_v43  ;;  %2842 = vrot.lane.b32.xlu1 %v12811_v45, %s12545_s9  ;;  %v11176_v42 = vld [vmem:[%s15522_s2 + $0x30] sm:$0xf] }
  0xca   : > { %11161 = vmatprep.subr.msk.bf16.mxu0 %vm344_vm2, %v1200_v46  ;;  %v1197_v47 = vpop.permute.xlu1 %1196  ;;  %11831 = vmatprep.mubr.msk.bf16.mxu1 %vm12540_vm0, %v15527_v6 }
  0xcb   : > { %v1201_v49 = vsel %vm1198_vm10, %v1195_v43, %v1197_v47  ;;  %11835 = vmatprep.subr.bf16.mxu1 %v15527_v6  ;;  %2844 = vrot.lane.b32.xlu0 %v12816_v48, %s12545_s9 }
  0xcc   : > { %v1417_v53 = vpop.permute.xlu0 %1416  ;;  %v1212_v54 = vsel %vm344_vm2, %v1201_v49, 0 }
  0xcd   : > { %2846 = vrot.lane.b32.xlu1 %v12824_v50, %s12545_s9 }
  0xce   : > { %11158 = vmatmul.mubr.msk.bf16.vlgmr.msra.gmra.mxu0 %vm340_vm3, %v11156_v51  ;;  %v1419_v55 = vpop.permute.xlu1 %1418 }
  0xcf   : > { %1229 = vmatpush1.bf16.msra.mxu0 %v1206_v52  ;;  %2949 = vrot.lane.b32.xlu0 %v12792_v36, %s12546_s10  ;;  %v1424_v0 = vsel %vm336_vm1, %v1417_v53, %v1419_v55 }
  0xd0   : > { %11832 = vmatmul.mubr.msk.bf16.vlgmr.msra.gmra.mxu1 %vm340_vm3, %v11156_v51  ;;  %1246 = vmatprep.mubr.bf16.mxu0 %v15525_v7  ;;  %v1421_v56 = vpop.permute.xlu0 %1420  ;;  %v13001_v3 = vsel %vm344_vm2, %v1424_v0, 0 }
  0xd1   : > { %11836 = vmatpush3.bf16.msra.mxu1 %v1212_v54  ;;  %2951 = vrot.lane.b32.xlu1 %v12811_v45, %s12546_s10  ;;  %v12973_v61 = vsel %vm336_vm1, %v1419_v55, %v1421_v56  ;;  %v11180_v55 = vld [vmem:[%s15522_s2 + $0x34] sm:$0xf] }
  0xd2   : > { %11165 = vmatprep.subr.msk.bf16.mxu0 %vm344_vm2, %v12700_v17  ;;  %11837 = vmatprep.mubr.msk.bf16.mxu1 %vm12540_vm0, %v15527_v6  ;;  %v1423_v57 = vpop.permute.xlu1 %1422 }
  0xd3   : > { %2953 = vrot.lane.b32.xlu0 %v12816_v48, %s12546_s10  ;;  %11841 = vmatprep.subr.bf16.mxu1 %v15527_v6  ;;  %v1426_v1 = vsel %vm336_vm1, %v1421_v56, %v1423_v57 }
  0xd4   : > { %v1526_v60 = vpop.permute.xlu0 %1525  ;;  %v13007_v9 = vsel %vm344_vm2, %v1426_v1, 0 }
  0xd5   : > { %2955 = vrot.lane.b32.xlu1 %v12824_v50, %s12546_s10 }
  0xd6   : > { %11162 = vmatmul.mubr.msk.bf16.vlgmr.msra.gmra.mxu0 %vm340_vm3, %v11160_v58  ;;  %v1528_v63 = vpop.permute.xlu1 %1527 }
  0xd7   : > { %1344 = vmatpush1.bf16.msra.mxu0 %v12968_v59  ;;  %3058 = vrot.lane.b32.xlu0 %v12792_v36, %s12547_s11  ;;  %v1533_v13 = vsel %vm538_vm4, %v1526_v60, %v1528_v63 }
  0xd8   : > { %11838 = vmatmul.mubr.msk.bf16.vlgmr.msra.gmra.mxu1 %vm340_vm3, %v11160_v58  ;;  %11169 = vmatprep.subr.msk.bf16.mxu0 %vm344_vm2, %v12973_v61  ;;  %v1530_v15 = vpop.permute.xlu0 %1529  ;;  %v13037_v22 = vsel %vm344_vm2, %v1533_v13, 0 }
  0xd9   : > { %11842 = vmatpush3.bf16.msra.mxu1 %v12978_v62  ;;  %1361 = vmatprep.mubr.bf16.mxu0 %v15525_v7  ;;  %v13004_v8 = vsel %vm538_vm4, %v1528_v63, %v1530_v15 }
  0xda   : > { %3060 = vrot.lane.b32.xlu1 %v12811_v45, %s12547_s11  ;;  %11843 = vmatprep.mubr.msk.bf16.mxu1 %vm12540_vm0, %v15527_v6  ;;  %v1532_v18 = vpop.permute.xlu1 %1531 }
  0xdb   : > { %11847 = vmatprep.subr.bf16.mxu1 %v15527_v6  ;;  %3062 = vrot.lane.b32.xlu0 %v12816_v48, %s12547_s11  ;;  %v1535_v16 = vsel %vm538_vm4, %v1530_v15, %v1532_v18 }
  0xdc   : > { %v1635_v4 = vpop.permute.xlu0 %1634  ;;  %v13043_v25 = vsel %vm344_vm2, %v1535_v16, 0 }
  0xde   : > { %11166 = vmatmul.mubr.msk.bf16.vlgmr.msra.gmra.mxu0 %vm340_vm3, %v11164_v2  ;;  %3064 = vrot.lane.b32.xlu1 %v12824_v50, %s12547_s11  ;;  %v1637_v10 = vpop.permute.xlu1 %1636 }
  0xdf   : > { %1454 = vmatpush1.bf16.msra.mxu0 %v13001_v3  ;;  %3167 = vrot.lane.b32.xlu0 %v12792_v36, %s12548_s12  ;;  %v1642_v29 = vsel %vm648_vm5, %v1635_v4, %v1637_v10 }
  0xe0   : > { %11844 = vmatmul.mubr.msk.bf16.vlgmr.msra.gmra.mxu1 %vm340_vm3, %v11164_v2  ;;  %11173 = vmatprep.subr.msk.bf16.mxu0 %vm344_vm2, %v13004_v8  ;;  %v1639_v11 = vpop.permute.xlu0 %1638  ;;  %v13070_v32 = vsel %vm344_vm2, %v1642_v29, 0  ;;  %v11184_v2 = vld [vmem:[%s15522_s2 + $0x38] sm:$0xf] }
  0xe1   : > { %11848 = vmatpush3.bf16.msra.mxu1 %v13007_v9  ;;  %1471 = vmatprep.mubr.bf16.mxu0 %v15525_v7  ;;  %v13040_v24 = vsel %vm648_vm5, %v1637_v10, %v1639_v11 }
  0xe2   : > { %3169 = vrot.lane.b32.xlu1 %v12811_v45, %s12548_s12  ;;  %11849 = vmatprep.mubr.msk.bf16.mxu1 %vm12540_vm0, %v15527_v6  ;;  %v1641_v14 = vpop.permute.xlu1 %1640 }
  0xe3   : > { %11853 = vmatprep.subr.bf16.mxu1 %v15527_v6  ;;  %3171 = vrot.lane.b32.xlu0 %v12816_v48, %s12548_s12  ;;  %v1644_v30 = vsel %vm648_vm5, %v1639_v11, %v1641_v14  ;;  %v13158_v11 = vcombine.high %v13034_v20, %v13034_v20 }
  0xe4   : > { %v1744_v23 = vpop.permute.xlu0 %1743  ;;  %v13076_v35 = vsel %vm344_vm2, %v1644_v30, 0 }
  0xe5   : > { %15632 = vst [vmem:[#allocation4_spill] sm:$0xff] %v13158_v11 }
  0xe6   : > { %11170 = vmatmul.mubr.msk.bf16.vlgmr.msra.gmra.mxu0 %vm340_vm3, %v11168_v19  ;;  %3173 = vrot.lane.b32.xlu1 %v12824_v50, %s12548_s12  ;;  %v1746_v26 = vpop.permute.xlu1 %1745 }
  0xe7   : > { %1563 = vmatpush1.bf16.msra.mxu0 %v13037_v22  ;;  %4982 = vrot.lane.b32.xlu0 %v13034_v20, %s12541_s5  ;;  %v1751_v39 = vsel %vm758_vm6, %v1744_v23, %v1746_v26 }
  0xe8   : > { %11850 = vmatmul.mubr.msk.bf16.vlgmr.msra.gmra.mxu1 %vm340_vm3, %v11168_v19  ;;  %11177 = vmatprep.subr.msk.bf16.mxu0 %vm344_vm2, %v13040_v24  ;;  %v1748_v28 = vpop.permute.xlu0 %1747  ;;  %v13098_v43 = vsel %vm344_vm2, %v1751_v39, 0  ;;  %v13181_v19 = vcombine.high %v13052_v27, %v13052_v27  ;;  %v11192_v39 = vld [vmem:[%s15522_s2 + $0x40] sm:$0xf] }
  0xe9   : > { %11854 = vmatpush3.bf16.msra.mxu1 %v13043_v25  ;;  %1580 = vmatprep.mubr.bf16.mxu0 %v15525_v7  ;;  %v13073_v34 = vsel %vm758_vm6, %v1746_v26, %v1748_v28  ;;  %v11188_v26 = vld [vmem:[%s15522_s2 + $0x3c] sm:$0xf] }
  0xea   : > { %11855 = vmatprep.mubr.msk.bf16.mxu1 %vm12540_vm0, %v15527_v6  ;;  %11859 = vmatprep.subr.bf16.mxu1 %v15527_v6  ;;  %v1750_v50 = vpop.permute.xlu1 %1749 }
  0xeb   : > { %4986 = vrot.lane.b32.xlu0 %v13052_v27, %s12541_s5  ;;  %v1753_v41 = vsel %vm758_vm6, %v1748_v28, %v1750_v50  ;;  %4984 = vrot.lane.b32.xlu1 %v13158_v11, %s12541_s5 }
  0xec   : > { %v1853_v33 = vpop.permute.xlu0 %1852  ;;  %v13104_v47 = vsel %vm344_vm2, %v1753_v41, 0 }
  0xee   : > { %11174 = vmatmul.mubr.msk.bf16.vlgmr.msra.gmra.mxu0 %vm340_vm3, %v11172_v31  ;;  %v1855_v37 = vpop.permute.xlu1 %1854 }
  0xef   : > { %1672 = vmatpush1.bf16.msra.mxu0 %v13070_v32  ;;  %5090 = vrot.lane.b32.xlu0 %v13034_v20, %s12542_s6  ;;  %v1860_v52 = vsel %vm868_vm7, %v1853_v33, %v1855_v37 }
  0xf0   : > { %11856 = vmatmul.mubr.msk.bf16.vlgmr.msra.gmra.mxu1 %vm340_vm3, %v11172_v31  ;;  %11181 = vmatprep.subr.msk.bf16.mxu0 %vm344_vm2, %v13073_v34  ;;  %v1857_v38 = vpop.permute.xlu0 %1856  ;;  %v13126_v56 = vsel %vm344_vm2, %v1860_v52, 0  ;;  %v13253_v52 = vsel %vm344_vm2, %v12792_v36, 0 }
  0xf1   : > { %11860 = vmatpush3.bf16.msra.mxu1 %v13076_v35  ;;  %1689 = vmatprep.mubr.bf16.mxu0 %v15525_v7  ;;  %v13101_v46 = vsel %vm868_vm7, %v1855_v37, %v1857_v38 }
  0xf2   : > { %11861 = vmatprep.mubr.msk.bf16.mxu1 %vm12540_vm0, %v15527_v6  ;;  %11865 = vmatprep.subr.bf16.mxu1 %v15527_v6  ;;  %v1859_v40 = vpop.permute.xlu1 %1858 }
  0xf3   : > { %5094 = vrot.lane.b32.xlu0 %v13052_v27, %s12542_s6  ;;  %v1862_v54 = vsel %vm868_vm7, %v1857_v38, %v1859_v40  ;;  %4988 = vrot.lane.b32.xlu1 %v13181_v19, %s12541_s5 }
  0xf4   : > { %v1962_v44 = vpop.permute.xlu0 %1961  ;;  %v13132_v60 = vsel %vm344_vm2, %v1862_v54, 0 }
  0xf6   : > { %11178 = vmatmul.mubr.msk.bf16.vlgmr.msra.gmra.mxu0 %vm340_vm3, %v11176_v42  ;;  %v1964_v49 = vpop.permute.xlu1 %1963 }
  0xf7   : > { %1781 = vmatpush1.bf16.msra.mxu0 %v13098_v43  ;;  %5198 = vrot.lane.b32.xlu0 %v13034_v20, %s12543_s7  ;;  %v1969_v0 = vsel %vm978_vm8, %v1962_v44, %v1964_v49 }
  0xf8   : > { %11862 = vmatmul.mubr.msk.bf16.vlgmr.msra.gmra.mxu1 %vm340_vm3, %v11176_v42  ;;  %11185 = vmatprep.subr.msk.bf16.mxu0 %vm344_vm2, %v13101_v46  ;;  %v1966_v51 = vpop.permute.xlu0 %1965  ;;  %v13154_v4 = vsel %vm344_vm2, %v1969_v0, 0  ;;  %v11200_v0 = vld [vmem:[%s15522_s2 + $0x48] sm:$0xf] }
  0xf9   : > { %11866 = vmatpush3.bf16.msra.mxu1 %v13104_v47  ;;  %1798 = vmatprep.mubr.bf16.mxu0 %v15525_v7  ;;  %v13129_v58 = vsel %vm978_vm8, %v1964_v49, %v1966_v51 }
  0xfa   : > { %11867 = vmatprep.mubr.msk.bf16.mxu1 %vm12540_vm0, %v15527_v6  ;;  %11871 = vmatprep.subr.bf16.mxu1 %v15527_v6  ;;  %v1968_v53 = vpop.permute.xlu1 %1967 }
  0xfb   : > { %5202 = vrot.lane.b32.xlu0 %v13052_v27, %s12543_s7  ;;  %v1971_v1 = vsel %vm978_vm8, %v1966_v51, %v1968_v53  ;;  %5092 = vrot.lane.b32.xlu1 %v13158_v11, %s12542_s6  ;;  %v11196_v51 = vld [vmem:[%s15522_s2 + $0x44] sm:$0xf] }
  0xfc   : > { %v2071_v57 = vpop.permute.xlu0 %2070  ;;  %v13164_v13 = vsel %vm344_vm2, %v1971_v1, 0 }
  0xfe   : > { %11182 = vmatmul.mubr.msk.bf16.vlgmr.msra.gmra.mxu0 %vm340_vm3, %v11180_v55  ;;  %v2073_v63 = vpop.permute.xlu1 %2072 }
  0xff   : > { %1890 = vmatpush1.bf16.msra.mxu0 %v13126_v56  ;;  %5306 = vrot.lane.b32.xlu0 %v13034_v20, %s12544_s8  ;;  %v2078_v16 = vsel %vm1088_vm9, %v2071_v57, %v2073_v63  ;;  %v303_v57 = vld [vmem:[%s13261_s23] sm:$0xff] }
 0x100   : > { %11868 = vmatmul.mubr.msk.bf16.vlgmr.msra.gmra.mxu1 %vm340_vm3, %v11180_v55  ;;  %11189 = vmatprep.subr.msk.bf16.mxu0 %vm344_vm2, %v13129_v58  ;;  %v2075_v15 = vpop.permute.xlu0 %2074  ;;  %v13195_v28 = vsel %vm344_vm2, %v2078_v16, 0  ;;  %v13266_v55 = vsel %vm344_vm2, %v12816_v48, 0  ;;  %v7435_v1 = vcombine.high %v303_v57, %v303_v57 }
 0x101   : > { %11872 = vmatpush3.bf16.msra.mxu1 %v13132_v60  ;;  %1907 = vmatprep.mubr.bf16.mxu0 %v15525_v7  ;;  %v13161_v12 = vsel %vm1088_vm9, %v2073_v63, %v2075_v15 }
 0x102   : > { %11873 = vmatprep.mubr.msk.bf16.mxu1 %vm12540_vm0, %v15527_v6  ;;  %11877 = vmatprep.subr.bf16.mxu1 %v15527_v6  ;;  %v2077_v18 = vpop.permute.xlu1 %2076 }
 0x103   : > { %5310 = vrot.lane.b32.xlu0 %v13052_v27, %s12544_s8  ;;  %v2080_v23 = vsel %vm1088_vm9, %v2075_v15, %v2077_v18  ;;  %5096 = vrot.lane.b32.xlu1 %v13181_v19, %s12542_s6  ;;  %v13288_v18 = vrot.slane %v303_v57, %v12613_v5 }
 0x104   : > { %v2180_v10 = vpop.permute.xlu0 %2179  ;;  %v13201_v50 = vsel %vm344_vm2, %v2080_v23, 0  ;;  %v13306_v23 = vrot.slane %v7435_v1, %v12613_v5 }
 0x105   : > { %15633 = vst [vmem:[#allocation5_spill] sm:$0xff] %v13288_v18 }
 0x106   : > { %11186 = vmatmul.mubr.msk.bf16.vlgmr.msra.gmra.mxu0 %vm340_vm3, %v11184_v2  ;;  %v2182_v14 = vpop.permute.xlu1 %2181  ;;  %15634 = vst [vmem:[#allocation6_spill] sm:$0xff] %v13306_v23 }
 0x107   : > { %1999 = vmatpush1.bf16.msra.mxu0 %v13154_v4  ;;  %5414 = vrot.lane.b32.xlu0 %v13034_v20, %s12545_s9  ;;  %v2187_v33 = vsel %vm1198_vm10, %v2180_v10, %v2182_v14 }
 0x108   : > { %11874 = vmatmul.mubr.msk.bf16.vlgmr.msra.gmra.mxu1 %vm340_vm3, %v11184_v2  ;;  %11193 = vmatprep.subr.msk.bf16.mxu0 %vm344_vm2, %v13161_v12  ;;  %v13225_v40 = vsel %vm344_vm2, %v2187_v33, 0  ;;  %v11204_v33 = vld [vmem:[%s15522_s2 + $0x4c] sm:$0xf] }
 0x109   : > { %11878 = vmatpush3.bf16.msra.mxu1 %v13164_v13  ;;  %2016 = vmatprep.mubr.bf16.mxu0 %v15525_v7 }
 0x10a   : > { %11879 = vmatprep.mubr.msk.bf16.mxu1 %vm12540_vm0, %v15527_v6  ;;  %11883 = vmatprep.subr.bf16.mxu1 %v15527_v6  ;;  %v2184_v21 = vpop.permute.xlu0 %2183 }
 0x10b   : > { %5418 = vrot.lane.b32.xlu0 %v13052_v27, %s12545_s9  ;;  %v13198_v29 = vsel %vm1198_vm10, %v2182_v14, %v2184_v21  ;;  %5200 = vrot.lane.b32.xlu1 %v13158_v11, %s12543_s7 }
 0x10d   : > { %v2186_v30 = vpop.permute.xlu1 %2185 }
 0x10e   : > { %11190 = vmatmul.mubr.msk.bf16.vlgmr.msra.gmra.mxu0 %vm340_vm3, %v11188_v26  ;;  %v2405_v31 = vpop.permute.xlu0 %2404  ;;  %v2189_v38 = vsel %vm1198_vm10, %v2184_v21, %v2186_v30 }
 0x10f   : > { %2108 = vmatpush1.bf16.msra.mxu0 %v13195_v28  ;;  %5522 = vrot.lane.b32.xlu0 %v13034_v20, %s12546_s10  ;;  %v13228_v42 = vsel %vm344_vm2, %v2189_v38, 0 }
 0x110   : > { %11880 = vmatmul.mubr.msk.bf16.vlgmr.msra.gmra.mxu1 %vm340_vm3, %v11188_v26  ;;  %11197 = vmatprep.subr.msk.bf16.mxu0 %vm344_vm2, %v13198_v29 }
 0x111   : > { %11884 = vmatpush3.bf16.msra.mxu1 %v13201_v50  ;;  %2125 = vmatprep.mubr.bf16.mxu0 %v15525_v7 }
 0x112   : > { %11885 = vmatprep.mubr.msk.bf16.mxu1 %vm12540_vm0, %v15527_v6  ;;  %11889 = vmatprep.subr.bf16.mxu1 %v15527_v6  ;;  %v2407_v37 = vpop.permute.xlu1 %2406 }
 0x113   : > { %5526 = vrot.lane.b32.xlu0 %v13052_v27, %s12546_s10  ;;  %v2412_v63 = vsel %vm336_vm1, %v2405_v31, %v2407_v37  ;;  %5204 = vrot.lane.b32.xlu1 %v13181_v19, %s12543_s7 }
 0x114   : > { %v13293_v2 = vsel %vm344_vm2, %v2412_v63, 0 }
 0x115   : > { %v2409_v41 = vpop.permute.xlu0 %2408 }
 0x116   : > { %11194 = vmatmul.mubr.msk.bf16.vlgmr.msra.gmra.mxu0 %vm340_vm3, %v11192_v39  ;;  %v2411_v44 = vpop.permute.xlu1 %2410  ;;  %v13256_v53 = vsel %vm336_vm1, %v2407_v37, %v2409_v41 }
 0x117   : > { %2217 = vmatpush1.bf16.msra.mxu0 %v13225_v40  ;;  %5630 = vrot.lane.b32.xlu0 %v13034_v20, %s12547_s11  ;;  %v2414_v15 = vsel %vm336_vm1, %v2409_v41, %v2411_v44 }
 0x118   : > { %11886 = vmatmul.mubr.msk.bf16.vlgmr.msra.gmra.mxu1 %vm340_vm3, %v11192_v39  ;;  %2234 = vmatprep.mubr.bf16.mxu0 %v15525_v7  ;;  %v13299_v16 = vsel %vm344_vm2, %v2414_v15, 0 }
 0x119   : > { %11890 = vmatpush3.bf16.msra.mxu1 %v13228_v42  ;;  %11201 = vmatprep.subr.msk.bf16.mxu0 %vm344_vm2, %v12811_v45 }
 0x11a   : > { %11891 = vmatprep.mubr.msk.bf16.mxu1 %vm12540_vm0, %v15527_v6  ;;  %11895 = vmatprep.subr.bf16.mxu1 %v15527_v6  ;;  %v2514_v49 = vpop.permute.xlu0 %2513 }
 0x11b   : > { %5634 = vrot.lane.b32.xlu0 %v13052_v27, %s12547_s11  ;;  %5308 = vrot.lane.b32.xlu1 %v13158_v11, %s12544_s8 }
 0x11d   : > { %v2516_v54 = vpop.permute.xlu1 %2515 }
 0x11e   : > { %11198 = vmatmul.mubr.msk.bf16.vlgmr.msra.gmra.mxu0 %vm340_vm3, %v11196_v51  ;;  %v2518_v36 = vpop.permute.xlu0 %2517  ;;  %v2521_v26 = vsel %vm538_vm4, %v2514_v49, %v2516_v54 }
 0x11f   : > { %2332 = vmatpush1.bf16.msra.mxu0 %v13253_v52  ;;  %5738 = vrot.lane.b32.xlu0 %v13034_v20, %s12548_s12  ;;  %v13296_v10 = vsel %vm538_vm4, %v2516_v54, %v2518_v36  ;;  %v13326_v37 = vsel %vm344_vm2, %v2521_v26, 0  ;;  %v11212_v26 = vld [vmem:[%s15522_s2 + $0x54] sm:$0xf] }
 0x120   : > { %11892 = vmatmul.mubr.msk.bf16.vlgmr.msra.gmra.mxu1 %vm340_vm3, %v11196_v51  ;;  %11205 = vmatprep.subr.msk.bf16.mxu0 %vm344_vm2, %v13256_v53 }
 0x121   : > { %11896 = vmatpush3.bf16.msra.mxu1 %v13266_v55  ;;  %2349 = vmatprep.mubr.bf16.mxu0 %v15525_v7 }
 0x122   : > { %11897 = vmatprep.mubr.msk.bf16.mxu1 %vm12540_vm0, %v15527_v6  ;;  %11901 = vmatprep.subr.bf16.mxu1 %v15527_v6  ;;  %v2520_v48 = vpop.permute.xlu1 %2519 }
 0x123   : > { %5742 = vrot.lane.b32.xlu0 %v13052_v27, %s12548_s12  ;;  %v2523_v31 = vsel %vm538_vm4, %v2518_v36, %v2520_v48  ;;  %v11208_v36 = vld [vmem:[%s15522_s2 + $0x50] sm:$0xf]  ;;  %5312 = vrot.lane.b32.xlu1 %v13181_v19, %s12544_s8  ;;  %v15647_v27 = vmov 0.0  }
 0x124   : > { %v13332_v41 = vsel %vm344_vm2, %v2523_v31, 0 }
 0x125   : > { %v2623_v14 = vpop.permute.xlu0 %2622 }
 0x126   : > { %11202 = vmatmul.mubr.msk.bf16.vlgmr.msra.gmra.mxu0 %vm340_vm3, %v11200_v0  ;;  %v2625_v21 = vpop.permute.xlu1 %2624 }
 0x127   : > { %2442 = vmatpush1.bf16.msra.mxu0 %v13293_v2  ;;  %7549 = vrot.lane.b32.xlu0 %v13288_v18, %s12541_s5  ;;  %v2630_v49 = vsel %vm648_vm5, %v2623_v14, %v2625_v21 }
 0x128   : > { %11898 = vmatmul.mubr.msk.bf16.vlgmr.msra.gmra.mxu1 %vm340_vm3, %v11200_v0  ;;  %11209 = vmatprep.subr.msk.bf16.mxu0 %vm344_vm2, %v13296_v10  ;;  %v13356_v57 = vsel %vm344_vm2, %v2630_v49, 0 }
 0x129   : > { %11902 = vmatpush3.bf16.msra.mxu1 %v13299_v16  ;;  %2459 = vmatprep.mubr.bf16.mxu0 %v15525_v7 }
 0x12a   : > { %11903 = vmatprep.mubr.msk.bf16.mxu1 %vm12540_vm0, %v15527_v6  ;;  %11907 = vmatprep.subr.bf16.mxu1 %v15527_v6  ;;  %v2627_v30 = vpop.permute.xlu0 %2626 }
 0x12b   : > { %7553 = vrot.lane.b32.xlu0 %v13306_v23, %s12541_s5  ;;  %v13329_v38 = vsel %vm648_vm5, %v2625_v21, %v2627_v30  ;;  %5416 = vrot.lane.b32.xlu1 %v13158_v11, %s12545_s9 }
 0x12d   : > { %v2629_v39 = vpop.permute.xlu1 %2628 }
 0x12e   : > { %11206 = vmatmul.mubr.msk.bf16.vlgmr.msra.gmra.mxu0 %vm340_vm3, %v11204_v33  ;;  %v2732_v44 = vpop.permute.xlu0 %2731  ;;  %v2632_v54 = vsel %vm648_vm5, %v2627_v30, %v2629_v39 }
 0x12f   : > { %2551 = vmatpush1.bf16.msra.mxu0 %v13326_v37  ;;  %7657 = vrot.lane.b32.xlu0 %v13288_v18, %s12542_s6  ;;  %v13359_v48 = vsel %vm344_vm2, %v2632_v54, 0 }
 0x130   : > { %11904 = vmatmul.mubr.msk.bf16.vlgmr.msra.gmra.mxu1 %vm340_vm3, %v11204_v33  ;;  %11213 = vmatprep.subr.msk.bf16.mxu0 %vm344_vm2, %v13329_v38  ;;  %15635 = vst [vmem:[#allocation7_spill] sm:$0xff] %v13359_v48 }
 0x131   : > { %11908 = vmatpush3.bf16.msra.mxu1 %v13332_v41  ;;  %2568 = vmatprep.mubr.bf16.mxu0 %v15525_v7 }
 0x132   : > { %11909 = vmatprep.mubr.msk.bf16.mxu1 %vm12540_vm0, %v15527_v6  ;;  %11913 = vmatprep.subr.bf16.mxu1 %v15527_v6  ;;  %v2734_v51 = vpop.permute.xlu1 %2733 }
 0x133   : > { %7661 = vrot.lane.b32.xlu0 %v13306_v23, %s12542_s6  ;;  %v2739_v1 = vsel %vm758_vm6, %v2732_v44, %v2734_v51  ;;  %5420 = vrot.lane.b32.xlu1 %v13181_v19, %s12545_s9 }
 0x134   : > { %v13386_v31 = vsel %vm344_vm2, %v2739_v1, 0 }
 0x135   : > { %v2736_v63 = vpop.permute.xlu0 %2735  ;;  %15637 = vst [vmem:[#allocation9_spill] sm:$0xff] %v13386_v31 }
 0x136   : > { %11210 = vmatmul.mubr.msk.bf16.vlgmr.msra.gmra.mxu0 %vm340_vm3, %v11208_v36  ;;  %v13363_v15 = vsel %vm758_vm6, %v2734_v51, %v2736_v63  ;;  %v2738_v0 = vpop.permute.xlu1 %2737 }
 0x137   : > { %15636 = vst [vmem:[#allocation8_spill] sm:$0xff] %v13363_v15  ;;  %2660 = vmatpush1.bf16.msra.mxu0 %v13356_v57  ;;  %7765 = vrot.lane.b32.xlu0 %v13288_v18, %s12543_s7  ;;  %v2741_v21 = vsel %vm758_vm6, %v2736_v63, %v2738_v0  ;;  %v11216_v63 = vld [vmem:[%s15522_s2 + $0x58] sm:$0xf] }
 0x138   : > { %11910 = vmatmul.mubr.msk.bf16.vlgmr.msra.gmra.mxu1 %vm340_vm3, %v11208_v36  ;;  %11217 = vmatprep.subr.msk.bf16.mxu0 %vm344_vm2, %v13363_v15  ;;  %v13389_v39 = vsel %vm344_vm2, %v2741_v21, 0 }
 0x139   : > { %11914 = vmatpush3.bf16.msra.mxu1 %v13359_v48  ;;  %2677 = vmatprep.mubr.bf16.mxu0 %v15525_v7  ;;  %v2841_v14 = vpop.permute.xlu0 %2840  ;;  %15638 = vst [vmem:[#allocation10_spill] sm:$0xff] %v13389_v39 }
 0x13a   : > { %11915 = vmatprep.mubr.msk.bf16.mxu1 %vm12540_vm0, %v15527_v6  ;;  %11919 = vmatprep.subr.bf16.mxu1 %v15527_v6 }
 0x13b   : > { %v2843_v30 = vpop.permute.xlu1 %2842  ;;  %7769 = vrot.lane.b32.xlu0 %v13306_v23, %s12543_s7  ;;  %5524 = vrot.lane.b32.xlu1 %v13158_v11, %s12546_s10 }
 0x13c   : > { %v2848_v51 = vsel %vm868_vm7, %v2841_v14, %v2843_v30 }
 0x13d   : > { %v2845_v33 = vpop.permute.xlu0 %2844  ;;  %v13416_v1 = vsel %vm344_vm2, %v2848_v51, 0 }
 0x13e   : > { %11214 = vmatmul.mubr.msk.bf16.vlgmr.msra.gmra.mxu0 %vm340_vm3, %v11212_v26  ;;  %v13393_v44 = vsel %vm868_vm7, %v2843_v30, %v2845_v33  ;;  %15640 = vst [vmem:[#allocation12_spill] sm:$0xff] %v13416_v1 }
 0x13f   : > { %15639 = vst [vmem:[#allocation11_spill] sm:$0xff] %v13393_v44  ;;  %2769 = vmatpush1.bf16.msra.mxu0 %v13386_v31  ;;  %v2847_v49 = vpop.permute.xlu1 %2846  ;;  %7873 = vrot.lane.b32.xlu0 %v13288_v18, %s12544_s8 }
 0x140   : > { %11916 = vmatmul.mubr.msk.bf16.vlgmr.msra.gmra.mxu1 %vm340_vm3, %v11212_v26  ;;  %11221 = vmatprep.subr.msk.bf16.mxu0 %vm344_vm2, %v13393_v44  ;;  %v2850_v36 = vsel %vm868_vm7, %v2845_v33, %v2847_v49 }
 0x141   : > { %11920 = vmatpush3.bf16.msra.mxu1 %v13389_v39  ;;  %2786 = vmatprep.mubr.bf16.mxu0 %v15525_v7  ;;  %v2950_v54 = vpop.permute.xlu0 %2949  ;;  %v13419_v21 = vsel %vm344_vm2, %v2850_v36, 0  ;;  %v11220_v36 = vld [vmem:[%s15522_s2 + $0x5c] sm:$0xf] }
 0x142   : > { %11921 = vmatprep.mubr.msk.bf16.mxu1 %vm12540_vm0, %v15527_v6  ;;  %11925 = vmatprep.subr.bf16.mxu1 %v15527_v6  ;;  %15641 = vst [vmem:[#allocation13_spill] sm:$0xff] %v13419_v21 }
 0x143   : > { %v2952_v0 = vpop.permute.xlu1 %2951  ;;  %7877 = vrot.lane.b32.xlu0 %v13306_v23, %s12544_s8  ;;  %5528 = vrot.lane.b32.xlu1 %v13181_v19, %s12546_s10 }
 0x144   : > { %v2957_v33 = vsel %vm978_vm8, %v2950_v54, %v2952_v0 }
 0x145   : > { %v2954_v14 = vpop.permute.xlu0 %2953  ;;  %v13446_v54 = vsel %vm344_vm2, %v2957_v33, 0 }
 0x146   : > { %11218 = vmatmul.mubr.msk.bf16.vlgmr.msra.gmra.mxu0 %vm340_vm3, %v11216_v63  ;;  %v13423_v26 = vsel %vm978_vm8, %v2952_v0, %v2954_v14  ;;  %15643 = vst [vmem:[#allocation15_spill] sm:$0xff] %v13446_v54 }
 0x147   : > { %15642 = vst [vmem:[#allocation14_spill] sm:$0xff] %v13423_v26  ;;  %2878 = vmatpush1.bf16.msra.mxu0 %v13416_v1  ;;  %v2956_v30 = vpop.permute.xlu1 %2955  ;;  %7981 = vrot.lane.b32.xlu0 %v13288_v18, %s12545_s9 }
 0x148   : > { %11922 = vmatmul.mubr.msk.bf16.vlgmr.msra.gmra.mxu1 %vm340_vm3, %v11216_v63  ;;  %11225 = vmatprep.subr.msk.bf16.mxu0 %vm344_vm2, %v13423_v26  ;;  %v2959_v51 = vsel %vm978_vm8, %v2954_v14, %v2956_v30 }
 0x149   : > { %11926 = vmatpush3.bf16.msra.mxu1 %v13419_v21  ;;  %2895 = vmatprep.mubr.bf16.mxu0 %v15525_v7  ;;  %v3059_v49 = vpop.permute.xlu0 %3058  ;;  %v13449_v7 = vsel %vm344_vm2, %v2959_v51, 0  ;;  %v15646_v51 = vmov 0  }
 0x14a   : > { %11927 = vmatprep.mubr.msk.bf16.mxu1 %vm12540_vm0, %v15527_v6  ;;  %11931 = vmatprep.subr.bf16.mxu1 %v15527_v6  ;;  %15644 = vst [vmem:[#allocation16_spill] sm:$0xff] %v13449_v7 }
 0x14b   : > { %7985 = vrot.lane.b32.xlu0 %v13306_v23, %s12545_s9  ;;  %5632 = vrot.lane.b32.xlu1 %v13158_v11, %s12547_s11 }
 0x14c   : > { %v3061_v63 = vpop.permute.xlu1 %3060 }
 0x14d   : > { %v3063_v0 = vpop.permute.xlu0 %3062  ;;  %v3066_v33 = vsel %vm1088_vm9, %v3059_v49, %v3061_v63 }
 0x14e   : > { %11222 = vmatmul.mubr.msk.bf16.vlgmr.msra.gmra.mxu0 %vm340_vm3, %v11220_v36  ;;  %v13453_v14 = vsel %vm1088_vm9, %v3061_v63, %v3063_v0  ;;  %v13476_v49 = vsel %vm344_vm2, %v3066_v33, 0 }
 0x14f   : > { %15645 = vst [vmem:[#allocation17_spill] sm:$0xff] %v13453_v14  ;;  %2987 = vmatpush1.bf16.msra.mxu0 %v13446_v54  ;;  %8089 = vrot.lane.b32.xlu0 %v13288_v18, %s12546_s10  ;;  %15648 = vst [vmem:[#allocation18_spill] sm:$0xff] %v13476_v49 }
 0x150   : > { %11928 = vmatmul.mubr.msk.bf16.vlgmr.msra.gmra.mxu1 %vm340_vm3, %v11220_v36  ;;  %11229 = vmatprep.subr.msk.bf16.mxu0 %vm344_vm2, %v13453_v14  ;;  %v3065_v30 = vpop.permute.xlu1 %3064  ;;  %v11224_v36 = vld [vmem:[%s15522_s2 + $0x60] sm:$0xf] }
 0x151   : > { %11932 = vmatpush3.bf16.msra.mxu1 %v13449_v7  ;;  %3004 = vmatprep.mubr.bf16.mxu0 %v15646_v51  ;;  %v3168_v6 = vpop.permute.xlu0 %3167  ;;  %v3068_v20 = vsel %vm1088_vm9, %v3063_v0, %v3065_v30 }
 0x152   : > { %11933 = vmatprep.mubr.msk.bf16.mxu1 %vm12540_vm0, %v15647_v27  ;;  %11937 = vmatprep.subr.bf16.mxu1 %v15647_v27  ;;  %v13479_v14 = vsel %vm344_vm2, %v3068_v20, 0 }
 0x153   : > { %8093 = vrot.lane.b32.xlu0 %v13306_v23, %s12546_s10  ;;  %15649 = vst [vmem:[#allocation19_spill] sm:$0xff] %v13479_v14  ;;  %5636 = vrot.lane.b32.xlu1 %v13181_v19, %s12547_s11 }
 0x154   : > { %v3170_v63 = vpop.permute.xlu1 %3169 }
 0x155   : > { %v3172_v7 = vpop.permute.xlu0 %3171  ;;  %v3175_v20 = vsel %vm1198_vm10, %v3168_v6, %v3170_v63 }
 0x156   : > { %v388_v54 = vpop.f32.mrf.mxu0  ;;  %11226 = vmatmul.mubr.msk.bf16.vlgmr.msra.gmra.mxu0 %vm340_vm3, %v11224_v36  ;;  %v13483_v0 = vsel %vm1198_vm10, %v3170_v63, %v3172_v7 }
 0x157   : > { %15650 = vst [vmem:[#allocation20_spill] sm:$0xff] %v13483_v0  ;;  %3096 = vmatpush1.bf16.msra.mxu0 %v13476_v49  ;;  %8197 = vrot.lane.b32.xlu0 %v13288_v18, %s12547_s11 }
 0x158   : > { %v390_v30 = vpop.f32.mrf.mxu0  ;;  %v429_v21 = vpop.f32.mrf.mxu1  ;;  %11934 = vmatmul.mubr.msk.bf16.vlgmr.msra.gmra.mxu1 %vm340_vm3, %v11224_v36  ;;  %11233 = vmatprep.subr.msk.bf16.mxu0 %vm344_vm2, %v13483_v0 }
 0x159   : > { %11938 = vmatpush3.bf16.msra.mxu1 %v13479_v14  ;;  %v3174_v33 = vpop.permute.xlu1 %3173  ;;  %3113 = vmatprep.mubr.bf16.mxu0 %v15646_v51  ;;  %v13494_v26 = vpop.permute.xlu0 %4982  ;;  %v11228_v14 = vld [vmem:[%s15522_s2 + $0x64] sm:$0xf] }
 0x15a   : > { %15651 = vst [vmem:[#allocation21_spill] sm:$0xff] %v13494_v26  ;;  %v392_v49 = vpop.f32.mrf.mxu0  ;;  %v11791_v1 = vpop.f32.mrf.mxu1  ;;  %11939 = vmatprep.mubr.msk.bf16.mxu1 %vm12540_vm0, %v15647_v27  ;;  %11943 = vmatprep.subr.bf16.mxu1 %v15647_v27  ;;  %v3177_v36 = vsel %vm1198_vm10, %v3172_v7, %v3174_v33 }
 0x15b   : > { %8201 = vrot.lane.b32.xlu0 %v13306_v23, %s12547_s11  ;;  %v13508_v49 = vsel %vm344_vm2, %v3175_v20, 0  ;;  %v13513_v7 = vsel %vm344_vm2, %v3177_v36, 0  ;;  %5740 = vrot.lane.b32.xlu1 %v13158_v11, %s12548_s12 }
 0x15c   : > { %v393_v6 = vpop.f32.mrf.mxu0  ;;  %v432_v1 = vpop.f32.mrf.mxu1  ;;  %15652 = vst [vmem:[#allocation22_spill] sm:$0xff] %v13508_v49  ;;  %15654 = vst [vmem:[#allocation24_spill] sm:$0xff] %v13513_v7 }
 0x15d   : > { %v13510_v63 = vpop.permute.xlu0 %4986  ;;  %v11128_v1 = vld [vmem:[%s13261_s23 + $0x8] sm:$0xff] }
 0x15e   : > { %15653 = vst [vmem:[#allocation23_spill] sm:$0xff] %v13510_v63  ;;  %v11792_v33 = vpop.f32.mrf.mxu1  ;;  %v481_v26 = vpop.f32.mrf.mxu0  ;;  %11230 = vmatmul.mubr.msk.bf16.vlgmr.msra.gmra.mxu0 %vm340_vm3, %v11228_v14 }
 0x15f   : > { %v482_v0 = vadd.f32 %v481_v26, %v388_v54  ;;  %3205 = vmatpush1.bf16.msra.mxu0 %v13508_v49  ;;  %8305 = vrot.lane.b32.xlu0 %v13288_v18, %s12548_s12 }
 0x160   : > { %11237 = vmatprep.subr.msk.bf16.mxu0 %vm344_vm2, %v12973_v61  ;;  %v483_v20 = vpop.f32.mrf.mxu0  ;;  %v522_v6 = vpop.f32.mrf.mxu1  ;;  %11940 = vmatmul.mubr.msk.bf16.vlgmr.msra.gmra.mxu1 %vm340_vm3, %v11228_v14  ;;  %v11232_v61 = vld [vmem:[%s15522_s2 + $0x68] sm:$0xf]  ;;  %v10002_v14 = vcombine.high %v11128_v1, %v11128_v1 }
 0x161   : > { %v484_v36 = vadd.f32 %v483_v20, %v390_v30  ;;  %v523_v63 = vadd.f32 %v522_v6, %v429_v21  ;;  %11944 = vmatpush3.bf16.msra.mxu1 %v13513_v7  ;;  %3222 = vmatprep.mubr.bf16.mxu0 %v15646_v51  ;;  %v13525_v26 = vpop.permute.xlu0 %5090  ;;  %v13536_v21 = vrot.slane %v11128_v1, %v12613_v5 }
 0x162   : > { %15655 = vst [vmem:[#allocation25_spill] sm:$0xff] %v13525_v26  ;;  %v485_v54 = vpop.f32.mrf.mxu0  ;;  %v11797_v33 = vpop.f32.mrf.mxu1  ;;  %11945 = vmatprep.mubr.msk.bf16.mxu1 %vm12540_vm0, %v15647_v27  ;;  %11949 = vmatprep.subr.bf16.mxu1 %v15647_v27  ;;  %v13547_v7 = vrot.slane %v10002_v14, %v12613_v5  ;;  %v11236_v5 = vld [vmem:[%s15522_s2 + $0x4] sm:$0xf] }
 0x163   : > { %8309 = vrot.lane.b32.xlu0 %v13306_v23, %s12548_s12  ;;  %15656 = vst [vmem:[#allocation26_spill] sm:$0xff] %v13536_v21  ;;  %5744 = vrot.lane.b32.xlu1 %v13181_v19, %s12548_s12 }
 0x164   : > { %v486_v30 = vpop.f32.mrf.mxu0  ;;  %v525_v20 = vpop.f32.mrf.mxu1  ;;  %15657 = vst [vmem:[#allocation27_spill] sm:$0xff] %v13547_v7 }
 0x165   : > { %v13540_v6 = vpop.permute.xlu0 %5094 }
 0x166   : > { %v11798_v54 = vpop.f32.mrf.mxu1  ;;  %v588_v33 = vpop.f32.mrf.mxu0  ;;  %11234 = vmatmul.mubr.msk.bf16.vlgmr.msra.gmra.mxu0 %vm340_vm3, %v11232_v61 }
 0x167   : > { %v635_v26 = vadd.f32 %v588_v33, %v482_v0  ;;  %3308 = vmatpush1.bf16.msra.mxu0 %v13001_v3  ;;  %10116 = vrot.lane.b32.xlu0 %v13536_v21, %s12541_s5 }
 0x168   : > { %v590_v1 = vpop.f32.mrf.mxu0  ;;  %v629_v49 = vpop.f32.mrf.mxu1  ;;  %11946 = vmatmul.mubr.msk.bf16.vlgmr.msra.gmra.mxu1 %vm340_vm3, %v11232_v61  ;;  %3325 = vmatprep.mubr.bf16.mxu0 %v15646_v51 }
 0x169   : > { %v636_v30 = vadd.f32 %v590_v1, %v484_v36  ;;  %v637_v20 = vadd.f32 %v629_v49, %v523_v63  ;;  %11950 = vmatpush3.bf16.msra.mxu1 %v13007_v9  ;;  %11240 = vmatprep.subr.msk.bf16.mxu0 %vm344_vm2, %v12700_v17  ;;  %v13554_v3 = vpop.permute.xlu0 %5198 }
 0x16a   : > { %v592_v0 = vpop.f32.mrf.mxu0  ;;  %v11803_v54 = vpop.f32.mrf.mxu1  ;;  %11951 = vmatprep.mubr.msk.bf16.mxu1 %vm12540_vm0, %v15647_v27  ;;  %11955 = vmatprep.subr.bf16.mxu1 %v15647_v27 }
 0x16b   : > { %10120 = vrot.lane.b32.xlu0 %v13547_v7, %s12541_s5 }
 0x16c   : > { %v593_v17 = vpop.f32.mrf.mxu0  ;;  %v632_v9 = vpop.f32.mrf.mxu1 }
 0x16d   : > { %v13566_v49 = vpop.permute.xlu0 %5202 }
 0x16e   : > { %v11804_v63 = vpop.f32.mrf.mxu1  ;;  %v698_v36 = vpop.f32.mrf.mxu0  ;;  %11238 = vmatmul.mubr.msk.bf16.vlgmr.msra.gmra.mxu0 %vm340_vm3, %v11236_v5 }
 0x16f   : > { %v745_v61 = vadd.f32 %v698_v36, %v635_v26  ;;  %3392 = vmatpush1.bf16.msra.mxu0 %v12968_v59  ;;  %10224 = vrot.lane.b32.xlu0 %v13536_v21, %s12542_s6 }
 0x170   : > { %11244 = vmatprep.subr.msk.bf16.mxu0 %vm344_vm2, %v13004_v8  ;;  %v700_v14 = vpop.f32.mrf.mxu0  ;;  %v739_v33 = vpop.f32.mrf.mxu1  ;;  %11952 = vmatmul.mubr.msk.bf16.vlgmr.msra.gmra.mxu1 %vm340_vm3, %v11236_v5  ;;  %v3288_v8 = vld [vmem:[%s15522_s2] sm:$0xf] }
 0x171   : > { %v746_v1 = vadd.f32 %v700_v14, %v636_v30  ;;  %v747_v0 = vadd.f32 %v739_v33, %v637_v20  ;;  %11956 = vmatpush3.bf16.msra.mxu1 %v12978_v62  ;;  %3409 = vmatprep.mubr.bf16.mxu0 %v15646_v51  ;;  %v13577_v54 = vpop.permute.xlu0 %5306 }
 0x172   : > { %v702_v26 = vpop.f32.mrf.mxu0  ;;  %v11809_v59 = vpop.f32.mrf.mxu1  ;;  %11957 = vmatprep.mubr.msk.bf16.mxu1 %vm12540_vm0, %v15647_v27  ;;  %11961 = vmatprep.subr.bf16.mxu1 %v15647_v27 }
 0x173   : > { %10228 = vrot.lane.b32.xlu0 %v13547_v7, %s12542_s6 }
 0x174   : > { %v703_v62 = vpop.f32.mrf.mxu0  ;;  %v742_v30 = vpop.f32.mrf.mxu1 }
 0x175   : > { %v13589_v20 = vpop.permute.xlu0 %5310 }
 0x176   : > { %v11810_v5 = vpop.f32.mrf.mxu1  ;;  %v808_v17 = vpop.f32.mrf.mxu0  ;;  %11241 = vmatmul.mubr.msk.bf16.vlgmr.msra.gmra.mxu0 %vm340_vm3, %v3288_v8 }
 0x177   : > { %v855_v9 = vadd.f32 %v808_v17, %v745_v61  ;;  %3477 = vmatpush1.bf16.msra.mxu0 %v13037_v22  ;;  %10332 = vrot.lane.b32.xlu0 %v13536_v21, %s12543_s7 }
 0x178   : > { %11248 = vmatprep.subr.msk.bf16.mxu0 %vm344_vm2, %v13040_v24  ;;  %v810_v63 = vpop.f32.mrf.mxu0  ;;  %v849_v36 = vpop.f32.mrf.mxu1  ;;  %11958 = vmatmul.mubr.msk.bf16.vlgmr.msra.gmra.mxu1 %vm340_vm3, %v3288_v8  ;;  %v11243_v24 = vld [vmem:[%s15522_s2 + $0x8] sm:$0xf] }
 0x179   : > { %v856_v14 = vadd.f32 %v810_v63, %v746_v1  ;;  %v857_v33 = vadd.f32 %v849_v36, %v747_v0  ;;  %11962 = vmatpush3.bf16.msra.mxu1 %v13043_v25  ;;  %3494 = vmatprep.mubr.bf16.mxu0 %v15646_v51  ;;  %v13600_v26 = vpop.permute.xlu0 %5414 }
 0x17a   : > { %v812_v61 = vpop.f32.mrf.mxu0  ;;  %v11815_v22 = vpop.f32.mrf.mxu1  ;;  %11963 = vmatprep.mubr.msk.bf16.mxu1 %vm12540_vm0, %v15647_v27  ;;  %11967 = vmatprep.subr.bf16.mxu1 %v15647_v27 }
 0x17b   : > { %10336 = vrot.lane.b32.xlu0 %v13547_v7, %s12543_s7 }
 0x17c   : > { %v813_v25 = vpop.f32.mrf.mxu0  ;;  %v852_v1 = vpop.f32.mrf.mxu1 }
 0x17d   : > { %v13612_v0 = vpop.permute.xlu0 %5418 }
 0x17e   : > { %v11816_v59 = vpop.f32.mrf.mxu1  ;;  %v918_v8 = vpop.f32.mrf.mxu0  ;;  %11245 = vmatmul.mubr.msk.bf16.vlgmr.msra.gmra.mxu0 %vm340_vm3, %v11243_v24 }
 0x17f   : > { %v965_v62 = vadd.f32 %v918_v8, %v855_v9  ;;  %3565 = vmatpush1.bf16.msra.mxu0 %v13070_v32  ;;  %10440 = vrot.lane.b32.xlu0 %v13536_v21, %s12544_s8 }
 0x180   : > { %11252 = vmatprep.subr.msk.bf16.mxu0 %vm344_vm2, %v13073_v34  ;;  %v920_v30 = vpop.f32.mrf.mxu0  ;;  %v959_v5 = vpop.f32.mrf.mxu1  ;;  %11964 = vmatmul.mubr.msk.bf16.vlgmr.msra.gmra.mxu1 %vm340_vm3, %v11243_v24  ;;  %v11247_v34 = vld [vmem:[%s15522_s2 + $0xc] sm:$0xf] }
 0x181   : > { %v966_v19 = vadd.f32 %v920_v30, %v856_v14  ;;  %v967_v17 = vadd.f32 %v959_v5, %v857_v33  ;;  %11968 = vmatpush3.bf16.msra.mxu1 %v13076_v35  ;;  %3582 = vmatprep.mubr.bf16.mxu0 %v15646_v51  ;;  %v13623_v63 = vpop.permute.xlu0 %5522 }
 0x182   : > { %v922_v9 = vpop.f32.mrf.mxu0  ;;  %v11821_v32 = vpop.f32.mrf.mxu1  ;;  %11969 = vmatprep.mubr.msk.bf16.mxu1 %vm12540_vm0, %v15647_v27  ;;  %11973 = vmatprep.subr.bf16.mxu1 %v15647_v27 }
 0x183   : > { %10444 = vrot.lane.b32.xlu0 %v13547_v7, %s12544_s8 }
 0x184   : > { %v923_v36 = vpop.f32.mrf.mxu0  ;;  %v962_v35 = vpop.f32.mrf.mxu1 }
 0x185   : > { %v13633_v14 = vpop.permute.xlu0 %5526 }
 0x186   : > { %v11822_v33 = vpop.f32.mrf.mxu1  ;;  %v1028_v61 = vpop.f32.mrf.mxu0  ;;  %11249 = vmatmul.mubr.msk.bf16.vlgmr.msra.gmra.mxu0 %vm340_vm3, %v11247_v34 }
 0x187   : > { %v1075_v22 = vadd.f32 %v1028_v61, %v965_v62  ;;  %3653 = vmatpush1.bf16.msra.mxu0 %v13098_v43  ;;  %10548 = vrot.lane.b32.xlu0 %v13536_v21, %s12545_s9 }
 0x188   : > { %11256 = vmatprep.subr.msk.bf16.mxu0 %vm344_vm2, %v13101_v46  ;;  %v1030_v24 = vpop.f32.mrf.mxu0  ;;  %v1069_v25 = vpop.f32.mrf.mxu1  ;;  %11970 = vmatmul.mubr.msk.bf16.vlgmr.msra.gmra.mxu1 %vm340_vm3, %v11247_v34  ;;  %v11251_v46 = vld [vmem:[%s15522_s2 + $0x10] sm:$0xf] }
 0x189   : > { %v1076_v1 = vadd.f32 %v1030_v24, %v966_v19  ;;  %v1077_v59 = vadd.f32 %v1069_v25, %v967_v17  ;;  %11974 = vmatpush3.bf16.msra.mxu1 %v13104_v47  ;;  %3670 = vmatprep.mubr.bf16.mxu0 %v15646_v51  ;;  %v13644_v8 = vpop.permute.xlu0 %5630 }
 0x18a   : > { %v1032_v62 = vpop.f32.mrf.mxu0  ;;  %v11827_v43 = vpop.f32.mrf.mxu1  ;;  %11975 = vmatprep.mubr.msk.bf16.mxu1 %vm12540_vm0, %v15647_v27  ;;  %11979 = vmatprep.subr.bf16.mxu1 %v15647_v27 }
 0x18b   : > { %10552 = vrot.lane.b32.xlu0 %v13547_v7, %s12545_s9 }
 0x18c   : > { %v1033_v30 = vpop.f32.mrf.mxu0  ;;  %v1072_v47 = vpop.f32.mrf.mxu1 }
 0x18d   : > { %v13654_v5 = vpop.permute.xlu0 %5634 }
 0x18e   : > { %v11828_v19 = vpop.f32.mrf.mxu1  ;;  %v1138_v17 = vpop.f32.mrf.mxu0  ;;  %11253 = vmatmul.mubr.msk.bf16.vlgmr.msra.gmra.mxu0 %vm340_vm3, %v11251_v46 }
 0x18f   : > { %v1185_v9 = vadd.f32 %v1138_v17, %v1075_v22  ;;  %3741 = vmatpush1.bf16.msra.mxu0 %v13126_v56  ;;  %10656 = vrot.lane.b32.xlu0 %v13536_v21, %s12546_s10 }
 0x190   : > { %11260 = vmatprep.subr.msk.bf16.mxu0 %vm344_vm2, %v13129_v58  ;;  %v1140_v32 = vpop.f32.mrf.mxu0  ;;  %v1179_v34 = vpop.f32.mrf.mxu1  ;;  %11976 = vmatmul.mubr.msk.bf16.vlgmr.msra.gmra.mxu1 %vm340_vm3, %v11251_v46  ;;  %v11255_v58 = vld [vmem:[%s15522_s2 + $0x14] sm:$0xf] }
 0x191   : > { %v1186_v36 = vadd.f32 %v1140_v32, %v1076_v1  ;;  %v1187_v35 = vadd.f32 %v1179_v34, %v1077_v59  ;;  %11980 = vmatpush3.bf16.msra.mxu1 %v13132_v60  ;;  %3758 = vmatprep.mubr.bf16.mxu0 %v15646_v51  ;;  %v13665_v33 = vpop.permute.xlu0 %5738 }
 0x192   : > { %v1142_v61 = vpop.f32.mrf.mxu0  ;;  %v11833_v56 = vpop.f32.mrf.mxu1  ;;  %11981 = vmatprep.mubr.msk.bf16.mxu1 %vm12540_vm0, %v15647_v27  ;;  %11985 = vmatprep.subr.bf16.mxu1 %v15647_v27 }
 0x193   : > { %10660 = vrot.lane.b32.xlu0 %v13547_v7, %s12546_s10 }
 0x194   : > { %v1143_v22 = vpop.f32.mrf.mxu0  ;;  %v1182_v60 = vpop.f32.mrf.mxu1 }
 0x195   : > { %v13675_v24 = vpop.permute.xlu0 %5742 }
 0x196   : > { %v11834_v25 = vpop.f32.mrf.mxu1  ;;  %v1248_v1 = vpop.f32.mrf.mxu0  ;;  %11257 = vmatmul.mubr.msk.bf16.vlgmr.msra.gmra.mxu0 %vm340_vm3, %v11255_v58 }
 0x197   : > { %v1295_v59 = vadd.f32 %v1248_v1, %v1185_v9  ;;  %3829 = vmatpush1.bf16.msra.mxu0 %v13154_v4  ;;  %10764 = vrot.lane.b32.xlu0 %v13536_v21, %s12547_s11  ;;  %v306_v1 = vld [vmem:[%s15523_s3] sm:$0xff] }
 0x198   : > { %11264 = vmatprep.subr.msk.bf16.mxu0 %vm344_vm2, %v13161_v12  ;;  %v1250_v62 = vpop.f32.mrf.mxu0  ;;  %v1289_v43 = vpop.f32.mrf.mxu1  ;;  %11982 = vmatmul.mubr.msk.bf16.vlgmr.msra.gmra.mxu1 %vm340_vm3, %v11255_v58  ;;  %v11259_v12 = vld [vmem:[%s15522_s2 + $0x18] sm:$0xf] }
 0x199   : > { %v1296_v46 = vadd.f32 %v1250_v62, %v1186_v36  ;;  %v1297_v30 = vadd.f32 %v1289_v43, %v1187_v35  ;;  %11986 = vmatpush3.bf16.msra.mxu1 %v13164_v13  ;;  %3846 = vmatprep.mubr.bf16.mxu0 %v15646_v51  ;;  %v13686_v47 = vpop.permute.xlu0 %7549 }
 0x19a   : > { %15658 = vst [vmem:[#allocation28_spill] sm:$0xff] %v13686_v47  ;;  %v1252_v19 = vpop.f32.mrf.mxu0  ;;  %v11839_v4 = vpop.f32.mrf.mxu1  ;;  %11987 = vmatprep.mubr.msk.bf16.mxu1 %vm12540_vm0, %v15647_v27  ;;  %11991 = vmatprep.subr.bf16.mxu1 %v15647_v27 }
 0x19b   : > { %10768 = vrot.lane.b32.xlu0 %v13547_v7, %s12547_s11 }
 0x19c   : > { %v1253_v17 = vpop.f32.mrf.mxu0  ;;  %v1292_v13 = vpop.f32.mrf.mxu1 }
 0x19d   : > { %v13696_v9 = vpop.permute.xlu0 %7553 }
 0x19e   : > { %15659 = vst [vmem:[#allocation29_spill] sm:$0xff] %v13696_v9  ;;  %v11840_v32 = vpop.f32.mrf.mxu1  ;;  %v1363_v34 = vpop.f32.mrf.mxu0  ;;  %11261 = vmatmul.mubr.msk.bf16.vlgmr.msra.gmra.mxu0 %vm340_vm3, %v11259_v12 }
 0x19f   : > { %v1410_v36 = vadd.f32 %v1363_v34, %v1295_v59  ;;  %3917 = vmatpush1.bf16.msra.mxu0 %v13195_v28  ;;  %10872 = vrot.lane.b32.xlu0 %v13536_v21, %s12548_s12  ;;  %v11299_v21 = vld [vmem:[%s15522_s2 + $0x40] sm:$0xf] }
 0x1a0   : > { %11268 = vmatprep.subr.msk.bf16.mxu0 %vm344_vm2, %v13198_v29  ;;  %v1365_v35 = vpop.f32.mrf.mxu0  ;;  %v1404_v61 = vpop.f32.mrf.mxu1  ;;  %11988 = vmatmul.mubr.msk.bf16.vlgmr.msra.gmra.mxu1 %vm340_vm3, %v11259_v12  ;;  %v11263_v29 = vld [vmem:[%s15522_s2 + $0x1c] sm:$0xf] }
 0x1a1   : > { %v1411_v56 = vadd.f32 %v1365_v35, %v1296_v46  ;;  %v1412_v58 = vadd.f32 %v1404_v61, %v1297_v30  ;;  %11992 = vmatpush3.bf16.msra.mxu1 %v13201_v50  ;;  %3934 = vmatprep.mubr.bf16.mxu0 %v15646_v51  ;;  %v13707_v22 = vpop.permute.xlu0 %7657 }
 0x1a2   : > { %15660 = vst [vmem:[#allocation30_spill] sm:$0xff] %v13707_v22  ;;  %v1367_v60 = vpop.f32.mrf.mxu0  ;;  %v11845_v28 = vpop.f32.mrf.mxu1  ;;  %11993 = vmatprep.mubr.msk.bf16.mxu1 %vm12540_vm0, %v15647_v27  ;;  %11997 = vmatprep.subr.bf16.mxu1 %v15647_v27 }
 0x1a3   : > { %10876 = vrot.lane.b32.xlu0 %v13547_v7, %s12548_s12 }
 0x1a4   : > { %v1368_v25 = vpop.f32.mrf.mxu0  ;;  %v1407_v50 = vpop.f32.mrf.mxu1 }
 0x1a5   : > { %v13720_v59 = vpop.permute.xlu0 %7661 }
 0x1a6   : > { %15661 = vst [vmem:[#allocation31_spill] sm:$0xff] %v13720_v59  ;;  %v11846_v62 = vpop.f32.mrf.mxu1  ;;  %v1473_v43 = vpop.f32.mrf.mxu0  ;;  %11265 = vmatmul.mubr.msk.bf16.vlgmr.msra.gmra.mxu0 %vm340_vm3, %v11263_v29 }
 0x1a7   : > { %v1520_v46 = vadd.f32 %v1473_v43, %v1410_v36  ;;  %4005 = vmatpush1.bf16.msra.mxu0 %v13225_v40  ;;  %3276 = vperm.xlu0 %12490, %v306_v1   ;;  %v11267_v40 = vld [vmem:[%s15522_s2 + $0x20] sm:$0xf]  ;;  %v11271_v62 = vld [vmem:[%s15522_s2 + $0x24] sm:$0xf] }
 0x1a8   : > { %v1475_v30 = vpop.f32.mrf.mxu0  ;;  %v1514_v19 = vpop.f32.mrf.mxu1  ;;  %11994 = vmatmul.mubr.msk.bf16.vlgmr.msra.gmra.mxu1 %vm340_vm3, %v11263_v29  ;;  %4022 = vmatprep.mubr.bf16.mxu0 %v15646_v51 }
 0x1a9   : > { %v1521_v4 = vadd.f32 %v1475_v30, %v1411_v56  ;;  %v1522_v12 = vadd.f32 %v1514_v19, %v1412_v58  ;;  %11998 = vmatpush3.bf16.msra.mxu1 %v13228_v42  ;;  %11272 = vmatprep.subr.msk.bf16.mxu0 %vm344_vm2, %v12811_v45  ;;  %v13729_v17 = vpop.permute.xlu0 %7765 }
 0x1aa   : > { %15662 = vst [vmem:[#allocation32_spill] sm:$0xff] %v13729_v17  ;;  %v1477_v13 = vpop.f32.mrf.mxu0  ;;  %v11851_v32 = vpop.f32.mrf.mxu1  ;;  %11999 = vmatprep.mubr.msk.bf16.mxu1 %vm12540_vm0, %v15647_v27  ;;  %12003 = vmatprep.subr.bf16.mxu1 %v15647_v27 }
 0x1ac   : > { %v1478_v34 = vpop.f32.mrf.mxu0  ;;  %v1517_v36 = vpop.f32.mrf.mxu1 }
 0x1ad   : > { %v13737_v35 = vpop.permute.xlu0 %7769 }
 0x1ae   : > { %15663 = vst [vmem:[#allocation33_spill] sm:$0xff] %v13737_v35  ;;  %v11852_v42 = vpop.f32.mrf.mxu1  ;;  %v1582_v61 = vpop.f32.mrf.mxu0  ;;  %11269 = vmatmul.mubr.msk.bf16.vlgmr.msra.gmra.mxu0 %vm340_vm3, %v11267_v40 }
 0x1af   : > { %v1629_v56 = vadd.f32 %v1582_v61, %v1520_v46  ;;  %4093 = vmatpush1.bf16.msra.mxu0 %v13253_v52  ;;  %4110 = vmatprep.mubr.bf16.mxu0 %v15646_v51 }
 0x1b0   : > { %11276 = vmatprep.subr.msk.bf16.mxu0 %vm344_vm2, %v13256_v53  ;;  %v1584_v58 = vpop.f32.mrf.mxu0  ;;  %v1623_v60 = vpop.f32.mrf.mxu1  ;;  %12000 = vmatmul.mubr.msk.bf16.vlgmr.msra.gmra.mxu1 %vm340_vm3, %v11267_v40 }
 0x1b1   : > { %v1630_v28 = vadd.f32 %v1584_v58, %v1521_v4  ;;  %v1631_v29 = vadd.f32 %v1623_v60, %v1522_v12  ;;  %12004 = vmatpush3.bf16.msra.mxu1 %v13266_v55  ;;  %12005 = vmatprep.mubr.msk.bf16.mxu1 %vm12540_vm0, %v15647_v27  ;;  %v13748_v25 = vpop.permute.xlu0 %7873 }
 0x1b2   : > { %15664 = vst [vmem:[#allocation34_spill] sm:$0xff] %v13748_v25  ;;  %v1586_v50 = vpop.f32.mrf.mxu0  ;;  %v11857_v1 = vpop.f32.mrf.mxu1  ;;  %12009 = vmatprep.subr.bf16.mxu1 %v15647_v27 }
 0x1b4   : > { %v1587_v43 = vpop.f32.mrf.mxu0  ;;  %v1626_v46 = vpop.f32.mrf.mxu1 }
 0x1b5   : > { %v13754_v30 = vpop.permute.xlu0 %7877 }
 0x1b6   : > { %15665 = vst [vmem:[#allocation35_spill] sm:$0xff] %v13754_v30  ;;  %v11858_v19 = vpop.f32.mrf.mxu1  ;;  %v1691_v4 = vpop.f32.mrf.mxu0  ;;  %11273 = vmatmul.mubr.msk.bf16.vlgmr.msra.gmra.mxu0 %vm340_vm3, %v11271_v62  ;;  %v13884_v30 = vcombine.high %v13306_v23, %v13306_v23  ;;  %v15686_v23 = vld [vmem:[#allocation20_spill] sm:$0xff] }
 0x1b7   : > { %v1738_v12 = vadd.f32 %v1691_v4, %v1629_v56  ;;  %4181 = vmatpush1.bf16.msra.mxu0 %v13293_v2  ;;  %4198 = vmatprep.mubr.bf16.mxu0 %v15646_v51  ;;  %v11275_v56 = vld [vmem:[%s15522_s2 + $0x28] sm:$0xf] }
 0x1b8   : > { %11280 = vmatprep.subr.msk.bf16.mxu0 %vm344_vm2, %v13296_v10  ;;  %v1693_v13 = vpop.f32.mrf.mxu0  ;;  %v1732_v32 = vpop.f32.mrf.mxu1  ;;  %12006 = vmatmul.mubr.msk.bf16.vlgmr.msra.gmra.mxu1 %vm340_vm3, %v11271_v62 }
 0x1b9   : > { %v1739_v40 = vadd.f32 %v1693_v13, %v1630_v28  ;;  %v1740_v34 = vadd.f32 %v1732_v32, %v1631_v29  ;;  %12010 = vmatpush3.bf16.msra.mxu1 %v13299_v16  ;;  %12011 = vmatprep.mubr.msk.bf16.mxu1 %vm12540_vm0, %v15647_v27  ;;  %v13765_v36 = vpop.permute.xlu0 %7981  ;;  %v11279_v32 = vld [vmem:[%s15522_s2 + $0x2c] sm:$0xf] }
 0x1ba   : > { %15666 = vst [vmem:[#allocation36_spill] sm:$0xff] %v13765_v36  ;;  %v1695_v42 = vpop.f32.mrf.mxu0  ;;  %v11863_v61 = vpop.f32.mrf.mxu1  ;;  %12015 = vmatprep.subr.bf16.mxu1 %v15647_v27 }
 0x1bc   : > { %v1696_v58 = vpop.f32.mrf.mxu0  ;;  %v1735_v60 = vpop.f32.mrf.mxu1 }
 0x1bd   : > { %v13771_v50 = vpop.permute.xlu0 %7985 }
 0x1be   : > { %15667 = vst [vmem:[#allocation37_spill] sm:$0xff] %v13771_v50  ;;  %v11864_v28 = vpop.f32.mrf.mxu1  ;;  %v1800_v29 = vpop.f32.mrf.mxu0  ;;  %11277 = vmatmul.mubr.msk.bf16.vlgmr.msra.gmra.mxu0 %vm340_vm3, %v11275_v56 }
 0x1bf   : > { %v1847_v1 = vadd.f32 %v1800_v29, %v1738_v12  ;;  %4269 = vmatpush1.bf16.msra.mxu0 %v13326_v37  ;;  %4286 = vmatprep.mubr.bf16.mxu0 %v15646_v51 }
 0x1c0   : > { %11284 = vmatprep.subr.msk.bf16.mxu0 %vm344_vm2, %v13329_v38  ;;  %v1802_v62 = vpop.f32.mrf.mxu0  ;;  %v1841_v43 = vpop.f32.mrf.mxu1  ;;  %12012 = vmatmul.mubr.msk.bf16.vlgmr.msra.gmra.mxu1 %vm340_vm3, %v11275_v56 }
 0x1c1   : > { %v1848_v46 = vadd.f32 %v1802_v62, %v1739_v40  ;;  %v1849_v19 = vadd.f32 %v1841_v43, %v1740_v34  ;;  %12016 = vmatpush3.bf16.msra.mxu1 %v13332_v41  ;;  %12017 = vmatprep.mubr.msk.bf16.mxu1 %vm12540_vm0, %v15647_v27  ;;  %v13782_v4 = vpop.permute.xlu0 %8089 }
 0x1c2   : > { %15668 = vst [vmem:[#allocation38_spill] sm:$0xff] %v13782_v4  ;;  %v1804_v12 = vpop.f32.mrf.mxu0  ;;  %v11869_v13 = vpop.f32.mrf.mxu1  ;;  %12021 = vmatprep.subr.bf16.mxu1 %v15647_v27 }
 0x1c3   : > { %v11283_v13 = vld [vmem:[%s15522_s2 + $0x30] sm:$0xf] }
 0x1c4   : > { %v1805_v42 = vpop.f32.mrf.mxu0  ;;  %v1844_v61 = vpop.f32.mrf.mxu1 }
 0x1c5   : > { %v13788_v56 = vpop.permute.xlu0 %8093 }
 0x1c6   : > { %15669 = vst [vmem:[#allocation39_spill] sm:$0xff] %v13788_v56  ;;  %v11870_v40 = vpop.f32.mrf.mxu1  ;;  %v1909_v34 = vpop.f32.mrf.mxu0  ;;  %11281 = vmatmul.mubr.msk.bf16.vlgmr.msra.gmra.mxu0 %vm340_vm3, %v11279_v32 }
 0x1c7   : > { %v1956_v58 = vadd.f32 %v1909_v34, %v1847_v1  ;;  %4357 = vmatpush1.bf16.msra.mxu0 %v13356_v57  ;;  %4374 = vmatprep.mubr.bf16.mxu0 %v15646_v51 }
 0x1c8   : > { %11288 = vmatprep.subr.msk.bf16.mxu0 %vm344_vm2, %v13363_v15  ;;  %v1911_v60 = vpop.f32.mrf.mxu0  ;;  %v1950_v28 = vpop.f32.mrf.mxu1  ;;  %12018 = vmatmul.mubr.msk.bf16.vlgmr.msra.gmra.mxu1 %vm340_vm3, %v11279_v32 }
 0x1c9   : > { %v1957_v29 = vadd.f32 %v1911_v60, %v1848_v46  ;;  %v1958_v62 = vadd.f32 %v1950_v28, %v1849_v19  ;;  %12022 = vmatpush3.bf16.msra.mxu1 %v13359_v48  ;;  %12023 = vmatprep.mubr.msk.bf16.mxu1 %vm12540_vm0, %v15647_v27  ;;  %v13799_v43 = vpop.permute.xlu0 %8197 }
 0x1ca   : > { %15670 = vst [vmem:[#allocation40_spill] sm:$0xff] %v13799_v43  ;;  %v1913_v1 = vpop.f32.mrf.mxu0  ;;  %v11875_v12 = vpop.f32.mrf.mxu1  ;;  %12027 = vmatprep.subr.bf16.mxu1 %v15647_v27  ;;  %v11291_v43 = vld [vmem:[%s15522_s2 + $0x38] sm:$0xf] }
 0x1cc   : > { %v1914_v42 = vpop.f32.mrf.mxu0  ;;  %v1953_v61 = vpop.f32.mrf.mxu1 }
 0x1cd   : > { %v13805_v32 = vpop.permute.xlu0 %8201  ;;  %v11287_v61 = vld [vmem:[%s15522_s2 + $0x34] sm:$0xf] }
 0x1ce   : > { %15671 = vst [vmem:[#allocation41_spill] sm:$0xff] %v13805_v32  ;;  %v11876_v46 = vpop.f32.mrf.mxu1  ;;  %v2018_v19 = vpop.f32.mrf.mxu0  ;;  %11285 = vmatmul.mubr.msk.bf16.vlgmr.msra.gmra.mxu0 %vm340_vm3, %v11283_v13 }
 0x1cf   : > { %v13808_v40 = vadd.f32 %v2018_v19, %v1956_v58  ;;  %4445 = vmatpush1.bf16.msra.mxu0 %v13386_v31  ;;  %4462 = vmatprep.mubr.bf16.mxu0 %v15646_v51 }
 0x1d0   : > { %11292 = vmatprep.subr.msk.bf16.mxu0 %vm344_vm2, %v13393_v44  ;;  %v2020_v34 = vpop.f32.mrf.mxu0  ;;  %v2059_v60 = vpop.f32.mrf.mxu1  ;;  %12024 = vmatmul.mubr.msk.bf16.vlgmr.msra.gmra.mxu1 %vm340_vm3, %v11283_v13 }
 0x1d1   : > { %v13815_v28 = vadd.f32 %v2020_v34, %v1957_v29  ;;  %v13817_v1 = vadd.f32 %v2059_v60, %v1958_v62  ;;  %12028 = vmatpush3.bf16.msra.mxu1 %v13389_v39  ;;  %12029 = vmatprep.mubr.msk.bf16.mxu1 %vm12540_vm0, %v15647_v27  ;;  %v13822_v58 = vpop.permute.xlu0 %8305  ;;  %v13830_v62 = vpop.permute.xlu1 %4984  ;;  %v15674_v60 = vld [vmem:[#allocation12_spill] sm:$0xff]  ;;  %v15698_v39 = vld [vmem:[#allocation3_spill] sm:$0xff] }
 0x1d2   : > { %15672 = vst [vmem:[#allocation42_spill] sm:$0xff] %v13822_v58  ;;  %v2022_v12 = vpop.f32.mrf.mxu0  ;;  %v11881_v42 = vpop.f32.mrf.mxu1  ;;  %12033 = vmatprep.subr.bf16.mxu1 %v15647_v27 }
 0x1d3   : > { %v15675_v12 = vld [vmem:[#allocation14_spill] sm:$0xff] }
 0x1d4   : > { %v2023_v13 = vpop.f32.mrf.mxu0  ;;  %v2062_v29 = vpop.f32.mrf.mxu1 }
 0x1d5   : > { %v13828_v46 = vpop.permute.xlu0 %8309  ;;  %v15676_v29 = vld [vmem:[#allocation13_spill] sm:$0xff]  ;;  %v13853_v32 = vpop.permute.xlu1 %4988 }
 0x1d6   : > { %15673 = vst [vmem:[#allocation43_spill] sm:$0xff] %v13828_v46  ;;  %v11882_v19 = vpop.f32.mrf.mxu1  ;;  %v13832_v34 = vpop.f32.mrf.mxu0  ;;  %11289 = vmatmul.mubr.msk.bf16.vlgmr.msra.gmra.mxu0 %vm340_vm3, %v11287_v61 }
 0x1d7   : > { %4533 = vmatpush1.bf16.msra.mxu0 %v15674_v60  ;;  %4550 = vmatprep.mubr.bf16.mxu0 %v15646_v51 }
 0x1d8   : > { %11296 = vmatprep.subr.msk.bf16.mxu0 %vm344_vm2, %v15675_v12  ;;  %v13839_v42 = vpop.f32.mrf.mxu0  ;;  %v13841_v13 = vpop.f32.mrf.mxu1  ;;  %12030 = vmatmul.mubr.msk.bf16.vlgmr.msra.gmra.mxu1 %vm340_vm3, %v11287_v61  ;;  %v13857_v61 = vcombine.high %v13288_v18, %v13288_v18 }
 0x1d9   : > { %12034 = vmatpush3.bf16.msra.mxu1 %v15676_v29  ;;  %12035 = vmatprep.mubr.msk.bf16.mxu1 %vm12540_vm0, %v15647_v27  ;;  %v13847_v19 = vpop.permute.xlu0 %10116  ;;  %v13880_v25 = vpop.permute.xlu1 %5092 }
 0x1da   : > { %15677 = vst [vmem:[#allocation44_spill] sm:$0xff] %v13847_v19  ;;  %v2131_v58 = vpop.f32.mrf.mxu0  ;;  %v11887_v46 = vpop.f32.mrf.mxu1  ;;  %12039 = vmatprep.subr.bf16.mxu1 %v15647_v27  ;;  %15678 = vst [vmem:[#allocation45_spill] sm:$0xff] %v13857_v61  ;;  %7551 = vrot.lane.b32.xlu1 %v13857_v61, %s12541_s5 }
 0x1db   : > { %v15680_v58 = vld [vmem:[#allocation15_spill] sm:$0xff] }
 0x1dc   : > { %v2132_v4 = vpop.f32.mrf.mxu0  ;;  %v2171_v56 = vpop.f32.mrf.mxu1 }
 0x1dd   : > { %v13859_v36 = vpop.permute.xlu0 %10120  ;;  %v15681_v4 = vld [vmem:[#allocation17_spill] sm:$0xff] }
 0x1de   : > { %15679 = vst [vmem:[#allocation46_spill] sm:$0xff] %v13859_v36  ;;  %v11888_v50 = vpop.f32.mrf.mxu1  ;;  %v13861_v19 = vpop.f32.mrf.mxu0  ;;  %11293 = vmatmul.mubr.msk.bf16.vlgmr.msra.gmra.mxu0 %vm340_vm3, %v11291_v43  ;;  %7555 = vrot.lane.b32.xlu1 %v13884_v30, %s12541_s5 }
 0x1df   : > { %4621 = vmatpush1.bf16.msra.mxu0 %v15680_v58  ;;  %4638 = vmatprep.mubr.bf16.mxu0 %v15646_v51  ;;  %v15682_v50 = vld [vmem:[#allocation16_spill] sm:$0xff]  ;;  %v15693_v58 = vld [vmem:[#allocation2_spill] sm:$0xff] }
 0x1e0   : > { %11300 = vmatprep.subr.msk.bf16.mxu0 %vm344_vm2, %v15681_v4  ;;  %v13870_v56 = vpop.f32.mrf.mxu0  ;;  %v13872_v46 = vpop.f32.mrf.mxu1  ;;  %12036 = vmatmul.mubr.msk.bf16.vlgmr.msra.gmra.mxu1 %vm340_vm3, %v11291_v43  ;;  %v11295_v43 = vld [vmem:[%s15522_s2 + $0x3c] sm:$0xf]  ;;  %v13952_v29 = vsel %vm344_vm2, %v15693_v58, 0 }
 0x1e1   : > { %12040 = vmatpush3.bf16.msra.mxu1 %v15682_v50  ;;  %12041 = vmatprep.mubr.msk.bf16.mxu1 %vm12540_vm0, %v15647_v27  ;;  %v13878_v36 = vpop.permute.xlu0 %10224  ;;  %15694 = vst [vmem:[#allocation2_spill] sm:$0xff] %v13952_v29 }
 0x1e2   : > { %15683 = vst [vmem:[#allocation47_spill] sm:$0xff] %v13878_v36  ;;  %v2240_v17 = vpop.f32.mrf.mxu0  ;;  %v11893_v35 = vpop.f32.mrf.mxu1  ;;  %12045 = vmatprep.subr.bf16.mxu1 %v15647_v27  ;;  %7659 = vrot.lane.b32.xlu1 %v13857_v61, %s12542_s6 }
 0x1e3   : > { %v15685_v17 = vld [vmem:[#allocation18_spill] sm:$0xff]  ;;  %v13899_v35 = vpop.permute.xlu1 %5096 }
 0x1e4   : > { %v2241_v22 = vpop.f32.mrf.mxu0  ;;  %v2280_v59 = vpop.f32.mrf.mxu1 }
 0x1e5   : > { %v13892_v36 = vpop.permute.xlu0 %10228 }
 0x1e6   : > { %15684 = vst [vmem:[#allocation48_spill] sm:$0xff] %v13892_v36  ;;  %v11894_v47 = vpop.f32.mrf.mxu1  ;;  %v13894_v9 = vpop.f32.mrf.mxu0  ;;  %11297 = vmatmul.mubr.msk.bf16.vlgmr.msra.gmra.mxu0 %vm340_vm3, %v11295_v43  ;;  %7663 = vrot.lane.b32.xlu1 %v13884_v30, %s12542_s6 }
 0x1e7   : > { %4709 = vmatpush1.bf16.msra.mxu0 %v15685_v17  ;;  %4726 = vmatprep.mubr.bf16.mxu0 %v15646_v51  ;;  %v15687_v47 = vld [vmem:[#allocation19_spill] sm:$0xff] }
 0x1e8   : > { %11304 = vmatprep.subr.msk.bf16.mxu0 %vm344_vm2, %v15686_v23  ;;  %v13903_v18 = vpop.f32.mrf.mxu0  ;;  %v13905_v22 = vpop.f32.mrf.mxu1  ;;  %12042 = vmatmul.mubr.msk.bf16.vlgmr.msra.gmra.mxu1 %vm340_vm3, %v11295_v43 }
 0x1e9   : > { %12046 = vmatpush3.bf16.msra.mxu1 %v15687_v47  ;;  %12047 = vmatprep.mubr.msk.bf16.mxu1 %vm12540_vm0, %v15647_v27  ;;  %v13911_v59 = vpop.permute.xlu0 %10332  ;;  %v13921_v47 = vpop.permute.xlu1 %5200 }
 0x1ea   : > { %15688 = vst [vmem:[#allocation49_spill] sm:$0xff] %v13911_v59  ;;  %v2355_v36 = vpop.f32.mrf.mxu0  ;;  %v11899_v7 = vpop.f32.mrf.mxu1  ;;  %12051 = vmatprep.subr.bf16.mxu1 %v15647_v27  ;;  %7767 = vrot.lane.b32.xlu1 %v13857_v61, %s12543_s7 }
 0x1eb   : > { %v15690_v7 = vld [vmem:[#allocation22_spill] sm:$0xff] }
 0x1ec   : > { %v2356_v23 = vpop.f32.mrf.mxu0  ;;  %v2395_v43 = vpop.f32.mrf.mxu1 }
 0x1ed   : > { %v13919_v17 = vpop.permute.xlu0 %10336 }
 0x1ee   : > { %15689 = vst [vmem:[#allocation50_spill] sm:$0xff] %v13919_v17  ;;  %v11900_v50 = vpop.f32.mrf.mxu1  ;;  %v13923_v4 = vpop.f32.mrf.mxu0  ;;  %11301 = vmatmul.mubr.msk.bf16.vlgmr.msra.gmra.mxu0 %vm340_vm3, %v11299_v21  ;;  %7771 = vrot.lane.b32.xlu1 %v13884_v30, %s12543_s7 }
 0x1ef   : > { %4797 = vmatpush1.bf16.msra.mxu0 %v15690_v7  ;;  %4814 = vmatprep.mubr.bf16.mxu0 %v15646_v51  ;;  %v15691_v50 = vld [vmem:[#allocation24_spill] sm:$0xff]  ;;  %v13948_v7 = vpop.permute.xlu1 %5204 }
 0x1f0   : > { %v13930_v36 = vpop.f32.mrf.mxu0  ;;  %v13932_v23 = vpop.f32.mrf.mxu1  ;;  %12048 = vmatmul.mubr.msk.bf16.vlgmr.msra.gmra.mxu1 %vm340_vm3, %v11299_v21  ;;  %11308 = vmatprep.subr.msk.bf16.mxu0 %vm344_vm2, %v13158_v11  ;;  %v11303_v21 = vld [vmem:[%s15522_s2 + $0x44] sm:$0xf] }
 0x1f1   : > { %12052 = vmatpush3.bf16.msra.mxu1 %v15691_v50  ;;  %12053 = vmatprep.mubr.msk.bf16.mxu1 %vm12540_vm0, %v15647_v27  ;;  %v13940_v43 = vpop.permute.xlu0 %10440 }
 0x1f2   : > { %15692 = vst [vmem:[#allocation51_spill] sm:$0xff] %v13940_v43  ;;  %v2465_v59 = vpop.f32.mrf.mxu0  ;;  %v11905_v17 = vpop.f32.mrf.mxu1  ;;  %12057 = vmatprep.subr.bf16.mxu1 %v15647_v27  ;;  %v15695_v43 = vld [vmem:[#allocation23_spill] sm:$0xff]  ;;  %7875 = vrot.lane.b32.xlu1 %v13857_v61, %s12544_s8 }
 0x1f3   : > { %v13957_v17 = vsel %vm336_vm1, %v13830_v62, %v15695_v43 }
 0x1f4   : > { %v2466_v11 = vpop.f32.mrf.mxu0  ;;  %v2505_v50 = vpop.f32.mrf.mxu1  ;;  %15696 = vst [vmem:[#allocation23_spill] sm:$0xff] %v13957_v17 }
 0x1f5   : > { %v13959_v59 = vpop.permute.xlu0 %10444  ;;  %v13966_v11 = vsel %vm344_vm2, %v15698_v39, 0 }
 0x1f6   : > { %15697 = vst [vmem:[#allocation52_spill] sm:$0xff] %v13959_v59  ;;  %v11906_v12 = vpop.f32.mrf.mxu1  ;;  %v13961_v60 = vpop.f32.mrf.mxu0  ;;  %11305 = vmatmul.mubr.msk.bf16.vlgmr.msra.gmra.mxu0 %vm340_vm3, %v11303_v21  ;;  %15699 = vst [vmem:[#allocation3_spill] sm:$0xff] %v13966_v11  ;;  %7879 = vrot.lane.b32.xlu1 %v13884_v30, %s12544_s8 }
 0x1f7   : > { %4911 = vmatpush1.bf16.msra.mxu0 %v13952_v29  ;;  %4928 = vmatprep.mubr.bf16.mxu0 %v15646_v51  ;;  %v15700_v12 = vld [vmem:[#allocation21_spill] sm:$0xff]  ;;  %v13987_v29 = vpop.permute.xlu1 %5308 }
 0x1f8   : > { %v13972_v58 = vpop.f32.mrf.mxu0  ;;  %v13974_v50 = vpop.f32.mrf.mxu1  ;;  %12054 = vmatmul.mubr.msk.bf16.vlgmr.msra.gmra.mxu1 %vm340_vm3, %v11303_v21  ;;  %11312 = vmatprep.subr.msk.bf16.mxu0 %vm344_vm2, %v13957_v17  ;;  %v4990_v39 = vsel %vm336_vm1, %v15700_v12, %v13830_v62  ;;  %v4992_v62 = vsel %vm336_vm1, %v15695_v43, %v13853_v32  ;;  %v11307_v21 = vld [vmem:[%s15522_s2 + $0x48] sm:$0xf] }
 0x1f9   : > { %12058 = vmatpush3.bf16.msra.mxu1 %v13966_v11  ;;  %12059 = vmatprep.mubr.msk.bf16.mxu1 %vm12540_vm0, %v15647_v27  ;;  %v13985_v59 = vpop.permute.xlu0 %10548  ;;  %v13999_v12 = vsel %vm344_vm2, %v4990_v39, 0  ;;  %v14009_v17 = vsel %vm344_vm2, %v4992_v62, 0  ;;  %v15706_v62 = vld [vmem:[#allocation25_spill] sm:$0xff] }
 0x1fa   : > { %15701 = vst [vmem:[#allocation21_spill] sm:$0xff] %v13985_v59  ;;  %v2574_v44 = vpop.f32.mrf.mxu0  ;;  %v11911_v31 = vpop.f32.mrf.mxu1  ;;  %12063 = vmatprep.subr.bf16.mxu1 %v15647_v27  ;;  %15702 = vst [vmem:[#allocation53_spill] sm:$0xff] %v13999_v12  ;;  %7983 = vrot.lane.b32.xlu1 %v13857_v61, %s12545_s9 }
 0x1fb   : > { %v14004_v31 = vsel %vm538_vm4, %v13880_v25, %v13540_v6  ;;  %15705 = vst [vmem:[#allocation56_spill] sm:$0xff] %v14009_v17 }
 0x1fc   : > { %v2575_v59 = vpop.f32.mrf.mxu0  ;;  %v2614_v11 = vpop.f32.mrf.mxu1  ;;  %15703 = vst [vmem:[#allocation54_spill] sm:$0xff] %v14004_v31 }
 0x1fd   : > { %v14006_v44 = vpop.permute.xlu0 %10552  ;;  %v14018_v59 = vpop.permute.xlu1 %5312 }
 0x1fe   : > { %15704 = vst [vmem:[#allocation55_spill] sm:$0xff] %v14006_v44  ;;  %v11912_v32 = vpop.f32.mrf.mxu1  ;;  %v14011_v43 = vpop.f32.mrf.mxu0  ;;  %11309 = vmatmul.mubr.msk.bf16.vlgmr.msra.gmra.mxu0 %vm340_vm3, %v11307_v21  ;;  %7987 = vrot.lane.b32.xlu1 %v13884_v30, %s12545_s9 }
 0x1ff   : > { %5020 = vmatpush1.bf16.msra.mxu0 %v13999_v12  ;;  %5037 = vmatprep.mubr.bf16.mxu0 %v15646_v51  ;;  %v5098_v32 = vsel %vm538_vm4, %v15706_v62, %v13880_v25  ;;  %v11311_v25 = vld [vmem:[%s15522_s2 + $0x4c] sm:$0xf] }
 0x200   : > { %v14020_v11 = vpop.f32.mrf.mxu0  ;;  %v14022_v39 = vpop.f32.mrf.mxu1  ;;  %12060 = vmatmul.mubr.msk.bf16.vlgmr.msra.gmra.mxu1 %vm340_vm3, %v11307_v21  ;;  %11316 = vmatprep.subr.msk.bf16.mxu0 %vm344_vm2, %v14004_v31  ;;  %v5100_v21 = vsel %vm538_vm4, %v13540_v6, %v13899_v35  ;;  %v14045_v62 = vsel %vm344_vm2, %v5098_v32, 0 }
 0x201   : > { %12064 = vmatpush3.bf16.msra.mxu1 %v14009_v17  ;;  %12065 = vmatprep.mubr.msk.bf16.mxu1 %vm12540_vm0, %v15647_v27  ;;  %v14033_v44 = vpop.permute.xlu0 %10656  ;;  %15708 = vst [vmem:[#allocation57_spill] sm:$0xff] %v14045_v62  ;;  %v14055_v31 = vsel %vm344_vm2, %v5100_v21, 0  ;;  %v5206_v21 = vsel %vm648_vm5, %v13554_v3, %v13921_v47 }
 0x202   : > { %15707 = vst [vmem:[#allocation25_spill] sm:$0xff] %v14033_v44  ;;  %v2683_v12 = vpop.f32.mrf.mxu0  ;;  %v11917_v48 = vpop.f32.mrf.mxu1  ;;  %12069 = vmatprep.subr.bf16.mxu1 %v15647_v27  ;;  %15710 = vst [vmem:[#allocation59_spill] sm:$0xff] %v14055_v31  ;;  %8091 = vrot.lane.b32.xlu1 %v13857_v61, %s12546_s10  ;;  %v14091_v3 = vsel %vm344_vm2, %v5206_v21, 0 }
 0x203   : > { %v14050_v48 = vsel %vm648_vm5, %v13921_v47, %v13566_v49  ;;  %v14052_v12 = vpop.permute.xlu1 %5416  ;;  %15712 = vst [vmem:[#allocation61_spill] sm:$0xff] %v14091_v3 }
 0x204   : > { %v2684_v17 = vpop.f32.mrf.mxu0  ;;  %v2723_v44 = vpop.f32.mrf.mxu1  ;;  %15709 = vst [vmem:[#allocation58_spill] sm:$0xff] %v14050_v48 }
 0x205   : > { %v14064_v17 = vpop.permute.xlu0 %10660 }
 0x206   : > { %v11918_v6 = vpop.f32.mrf.mxu1  ;;  %v14057_v35 = vpop.f32.mrf.mxu0  ;;  %11313 = vmatmul.mubr.msk.bf16.vlgmr.msra.gmra.mxu0 %vm340_vm3, %v11311_v25  ;;  %15711 = vst [vmem:[#allocation60_spill] sm:$0xff] %v14064_v17  ;;  %8095 = vrot.lane.b32.xlu1 %v13884_v30, %s12546_s10 }
 0x207   : > { %5128 = vmatpush1.bf16.msra.mxu0 %v14045_v62  ;;  %5145 = vmatprep.mubr.bf16.mxu0 %v15646_v51 }
 0x208   : > { %v14066_v44 = vpop.f32.mrf.mxu0  ;;  %v14068_v32 = vpop.f32.mrf.mxu1  ;;  %12066 = vmatmul.mubr.msk.bf16.vlgmr.msra.gmra.mxu1 %vm340_vm3, %v11311_v25  ;;  %11320 = vmatprep.subr.msk.bf16.mxu0 %vm344_vm2, %v14050_v48  ;;  %v5208_v25 = vsel %vm648_vm5, %v13566_v49, %v13948_v7 }
 0x209   : > { %12070 = vmatpush3.bf16.msra.mxu1 %v14055_v31  ;;  %12071 = vmatprep.mubr.msk.bf16.mxu1 %vm12540_vm0, %v15647_v27  ;;  %v11315_v31 = vld [vmem:[%s15522_s2 + $0x50] sm:$0xf]  ;;  %v14088_v48 = vpop.permute.xlu1 %5420  ;;  %v14098_v62 = vpop.permute.xlu0 %10764  ;;  %v14101_v49 = vsel %vm344_vm2, %v5208_v25, 0  ;;  %v5314_v25 = vsel %vm758_vm6, %v13577_v54, %v13987_v29  ;;  %v11319_v54 = vld [vmem:[%s15522_s2 + $0x54] sm:$0xf] }
 0x20a   : > { %v2792_v6 = vpop.f32.mrf.mxu0  ;;  %v11923_v17 = vpop.f32.mrf.mxu1  ;;  %12075 = vmatprep.subr.bf16.mxu1 %v15647_v27  ;;  %15714 = vst [vmem:[#allocation63_spill] sm:$0xff] %v14098_v62  ;;  %15715 = vst [vmem:[#allocation64_spill] sm:$0xff] %v14101_v49  ;;  %8199 = vrot.lane.b32.xlu1 %v13857_v61, %s12547_s11 }
 0x20b   : > { %v14096_v6 = vsel %vm758_vm6, %v13987_v29, %v13589_v20 }
 0x20c   : > { %v2793_v47 = vpop.f32.mrf.mxu0  ;;  %v2832_v17 = vpop.f32.mrf.mxu1  ;;  %15713 = vst [vmem:[#allocation62_spill] sm:$0xff] %v14096_v6 }
 0x20d   : > { %v14123_v17 = vpop.permute.xlu1 %5524  ;;  %v14136_v29 = vpop.permute.xlu0 %10768 }
 0x20e   : > { %v11924_v7 = vpop.f32.mrf.mxu1  ;;  %v14103_v15 = vpop.f32.mrf.mxu0  ;;  %11317 = vmatmul.mubr.msk.bf16.vlgmr.msra.gmra.mxu0 %vm340_vm3, %v11315_v31  ;;  %15716 = vst [vmem:[#allocation65_spill] sm:$0xff] %v14136_v29  ;;  %8203 = vrot.lane.b32.xlu1 %v13884_v30, %s12547_s11  ;;  %v15762_v29 = vld [vmem:[#allocation29_spill] sm:$0xff] }
 0x20f   : > { %5236 = vmatpush1.bf16.msra.mxu0 %v14091_v3  ;;  %5253 = vmatprep.mubr.bf16.mxu0 %v15646_v51  ;;  %v2175_v3 = vadd.f32 %v13839_v42, %v13815_v28 }
 0x210   : > { %v14110_v21 = vpop.f32.mrf.mxu0  ;;  %v14112_v47 = vpop.f32.mrf.mxu1  ;;  %12072 = vmatmul.mubr.msk.bf16.vlgmr.msra.gmra.mxu1 %vm340_vm3, %v11315_v31  ;;  %11324 = vmatprep.subr.msk.bf16.mxu0 %vm344_vm2, %v14096_v6  ;;  %v2174_v31 = vadd.f32 %v13832_v34, %v13808_v40  ;;  %v2176_v40 = vadd.f32 %v13841_v13, %v13817_v1 }
 0x211   : > { %12076 = vmatpush3.bf16.msra.mxu1 %v14101_v49  ;;  %12077 = vmatprep.mubr.msk.bf16.mxu1 %vm12540_vm0, %v15647_v27  ;;  %v5316_v49 = vsel %vm758_vm6, %v13589_v20, %v14018_v59  ;;  %v14149_v20 = vsel %vm868_vm7, %v14052_v12, %v13612_v0  ;;  %v2284_v28 = vadd.f32 %v13870_v56, %v2175_v3  ;;  %v5529_v13 = vpop.permute.xlu1 %5528  ;;  %v14181_v3 = vpop.permute.xlu0 %10872 }
 0x212   : > { %v2901_v7 = vpop.f32.mrf.mxu0  ;;  %v11929_v62 = vpop.f32.mrf.mxu1  ;;  %12081 = vmatprep.subr.bf16.mxu1 %v15647_v27  ;;  %v2283_v34 = vadd.f32 %v13861_v19, %v2174_v31  ;;  %v14152_v59 = vsel %vm344_vm2, %v5316_v49, 0  ;;  %v2285_v1 = vadd.f32 %v13872_v46, %v2176_v40  ;;  %v5422_v49 = vsel %vm868_vm7, %v13600_v26, %v14052_v12  ;;  %15717 = vst [vmem:[#allocation66_spill] sm:$0xff] %v14181_v3  ;;  %v15760_v3 = vld [vmem:[#allocation5_spill] sm:$0xff] }
 0x213   : > { %v14139_v62 = vsel %vm344_vm2, %v5314_v25, 0  ;;  %8307 = vrot.lane.b32.xlu1 %v13857_v61, %s12548_s12  ;;  %v5424_v31 = vsel %vm868_vm7, %v13612_v0, %v14088_v48  ;;  %v14196_v40 = vsel %vm344_vm2, %v5422_v49, 0  ;;  %v14209_v0 = vsel %vm978_vm8, %v14123_v17, %v13633_v14 }
 0x214   : > { %v2902_v7 = vpop.f32.mrf.mxu0  ;;  %v2941_v6 = vpop.f32.mrf.mxu1  ;;  %v2398_v42 = vadd.f32 %v13894_v9, %v2283_v34  ;;  %v2399_v9 = vadd.f32 %v13903_v18, %v2284_v28  ;;  %v2400_v56 = vadd.f32 %v13905_v22, %v2285_v1  ;;  %15718 = vst [vmem:[#allocation67_spill] sm:$0xff] %v14209_v0  ;;  %v14212_v28 = vsel %vm344_vm2, %v5424_v31, 0 }
 0x215   : > { %v5633_v48 = vpop.permute.xlu1 %5632  ;;  %15719 = vst [vmem:[#allocation68_spill] sm:$0xff] %v14212_v28  ;;  %v14221_v49 = vpop.permute.xlu0 %10876 }
 0x216   : > { %v11930_v25 = vpop.f32.mrf.mxu1  ;;  %v14154_v7 = vpop.f32.mrf.mxu0  ;;  %11321 = vmatmul.mubr.msk.bf16.vlgmr.msra.gmra.mxu0 %vm340_vm3, %v11319_v54  ;;  %v2508_v46 = vadd.f32 %v13923_v4, %v2398_v42  ;;  %v2509_v18 = vadd.f32 %v13930_v36, %v2399_v9  ;;  %v2510_v4 = vadd.f32 %v13932_v23, %v2400_v56  ;;  %15720 = vst [vmem:[#allocation69_spill] sm:$0xff] %v14221_v49  ;;  %v14631_v49 = vsel %vm344_vm2, %v15760_v3, 0 }
 0x217   : > { %5344 = vmatpush1.bf16.msra.mxu0 %v14139_v62  ;;  %5361 = vmatprep.mubr.bf16.mxu0 %v15646_v51 }
 0x218   : > { %v14164_v19 = vpop.f32.mrf.mxu0  ;;  %v14166_v6 = vpop.f32.mrf.mxu1  ;;  %12078 = vmatmul.mubr.msk.bf16.vlgmr.msra.gmra.mxu1 %vm340_vm3, %v11319_v54  ;;  %11328 = vmatprep.subr.msk.bf16.mxu0 %vm344_vm2, %v14149_v20  ;;  %v2617_v22 = vadd.f32 %v13961_v60, %v2508_v46  ;;  %v11323_v54 = vld [vmem:[%s15522_s2 + $0x58] sm:$0xf]  ;;  %v2618_v36 = vadd.f32 %v13972_v58, %v2509_v18  ;;  %v2619_v60 = vadd.f32 %v13974_v50, %v2510_v4 }
 0x219   : > { %12082 = vmatpush3.bf16.msra.mxu1 %v14152_v59  ;;  %12083 = vmatprep.mubr.msk.bf16.mxu1 %vm12540_vm0, %v15647_v27 }
 0x21a   : > { %v3010_v26 = vpop.f32.mrf.mxu0  ;;  %v11935_v12 = vpop.f32.mrf.mxu1  ;;  %12087 = vmatprep.subr.bf16.mxu1 %v15647_v27  ;;  %v2726_v23 = vadd.f32 %v14011_v43, %v2617_v22  ;;  %8311 = vrot.lane.b32.xlu1 %v13884_v30, %s12548_s12  ;;  %v2727_v58 = vadd.f32 %v14020_v11, %v2618_v36  ;;  %v2728_v50 = vadd.f32 %v14022_v39, %v2619_v60 }
 0x21b   : > { %v5530_v30 = vsel %vm978_vm8, %v13623_v63, %v14123_v17 }
 0x21c   : > { %v3011_v34 = vpop.f32.mrf.mxu0  ;;  %v3050_v25 = vpop.f32.mrf.mxu1  ;;  %v2835_v43 = vadd.f32 %v14057_v35, %v2726_v23  ;;  %v2836_v11 = vadd.f32 %v14066_v44, %v2727_v58  ;;  %v2837_v39 = vadd.f32 %v14068_v32, %v2728_v50  ;;  %v5532_v44 = vsel %vm978_vm8, %v13633_v14, %v5529_v13 }
 0x21d   : > { %v5637_v32 = vpop.permute.xlu1 %5636  ;;  %v14248_v18 = vsel %vm344_vm2, %v5530_v30, 0  ;;  %v14256_v14 = vsel %vm1088_vm9, %v5633_v48, %v13654_v5  ;;  %v14259_v13 = vsel %vm344_vm2, %v5532_v44, 0  ;;  %v5638_v23 = vsel %vm1088_vm9, %v13644_v8, %v5633_v48 }
 0x21e   : > { %v11936_v1 = vpop.f32.mrf.mxu1  ;;  %v3115_v42 = vpop.f32.mrf.mxu0  ;;  %11325 = vmatmul.mubr.msk.bf16.vlgmr.msra.gmra.mxu0 %vm340_vm3, %v11323_v54  ;;  %v2944_v35 = vadd.f32 %v14103_v15, %v2835_v43  ;;  %v2945_v63 = vadd.f32 %v14110_v21, %v2836_v11  ;;  %v2946_v17 = vadd.f32 %v14112_v47, %v2837_v39  ;;  %v11327_v15 = vld [vmem:[%s15522_s2 + $0x5c] sm:$0xf]  ;;  %15721 = vst [vmem:[#allocation70_spill] sm:$0xff] %v14248_v18  ;;  %15722 = vst [vmem:[#allocation71_spill] sm:$0xff] %v14256_v14  ;;  %v11331_v11 = vld [vmem:[%s15522_s2 + $0x60] sm:$0xf] }
 0x21f   : > { %5452 = vmatpush1.bf16.msra.mxu0 %v14196_v40  ;;  %5469 = vmatprep.mubr.bf16.mxu0 %v15646_v51  ;;  %15723 = vst [vmem:[#allocation72_spill] sm:$0xff] %v14259_v13  ;;  %v5640_v30 = vsel %vm1088_vm9, %v13654_v5, %v5637_v32  ;;  %v14287_v39 = vsel %vm344_vm2, %v5638_v23, 0 }
 0x220   : > { %v3117_v9 = vpop.f32.mrf.mxu0  ;;  %v3156_v56 = vpop.f32.mrf.mxu1  ;;  %12084 = vmatmul.mubr.msk.bf16.vlgmr.msra.gmra.mxu1 %vm340_vm3, %v11323_v54  ;;  %11332 = vmatprep.subr.msk.bf16.mxu0 %vm344_vm2, %v14209_v0  ;;  %v3053_v12 = vadd.f32 %v14154_v7, %v2944_v35  ;;  %v3054_v21 = vadd.f32 %v14164_v19, %v2945_v63  ;;  %v3055_v47 = vadd.f32 %v14166_v6, %v2946_v17 }
 0x221   : > { %12088 = vmatpush3.bf16.msra.mxu1 %v14212_v28  ;;  %12089 = vmatprep.mubr.msk.bf16.mxu1 %vm12540_vm0, %v15647_v27  ;;  %v5741_v50 = vpop.permute.xlu1 %5740  ;;  %15724 = vst [vmem:[#allocation73_spill] sm:$0xff] %v14287_v39 }
 0x222   : > { %v3119_v46 = vpop.f32.mrf.mxu0  ;;  %v11941_v26 = vpop.f32.mrf.mxu1  ;;  %12093 = vmatprep.subr.bf16.mxu1 %v15647_v27  ;;  %v3162_v31 = vadd.f32 %v3115_v42, %v3053_v12  ;;  %v3163_v25 = vadd.f32 %v3117_v9, %v3054_v21  ;;  %v3164_v36 = vadd.f32 %v3156_v56, %v3055_v47  ;;  %v14292_v17 = vsel %vm1198_vm10, %v5741_v50, %v13675_v24 }
 0x223   : > { %v14252_v7 = vpop.permute.xlu0 %3276  ;;  %15725 = vst [vmem:[#allocation74_spill] sm:$0xff] %v14292_v17  ;;  %v14295_v12 = vsel %vm344_vm2, %v5640_v30, 0 }
 0x224   : > { %v3120_v4 = vpop.f32.mrf.mxu0  ;;  %v3159_v22 = vpop.f32.mrf.mxu1  ;;  %15726 = vst [vmem:[#allocation75_spill] sm:$0xff] %v14295_v12 }
 0x225   : > { %v5746_v22 = vsel %vm1198_vm10, %v13665_v33, %v5741_v50 }
 0x226   : > { %v11942_v54 = vpop.f32.mrf.mxu1  ;;  %v3224_v34 = vpop.f32.mrf.mxu0  ;;  %11329 = vmatmul.mubr.msk.bf16.vlgmr.msra.gmra.mxu0 %vm340_vm3, %v11327_v15 }
 0x227   : > { %v3271_v60 = vadd.f32 %v3224_v34, %v3162_v31  ;;  %5560 = vmatpush1.bf16.msra.mxu0 %v14248_v18  ;;  %5577 = vmatprep.mubr.bf16.mxu0 %v15646_v51  ;;  %v11335_v54 = vld [vmem:[%s15522_s2 + $0x64] sm:$0xf]  ;;  %v14317_v34 = vsel %vm344_vm2, %v5746_v22, 0 }
 0x228   : > { %v3226_v19 = vpop.f32.mrf.mxu0  ;;  %v3265_v6 = vpop.f32.mrf.mxu1  ;;  %12090 = vmatmul.mubr.msk.bf16.vlgmr.msra.gmra.mxu1 %vm340_vm3, %v11327_v15  ;;  %11336 = vmatprep.subr.msk.bf16.mxu0 %vm344_vm2, %v14256_v14  ;;  %15727 = vst [vmem:[#allocation76_spill] sm:$0xff] %v14317_v34 }
 0x229   : > { %v3279_v1 = vadd.f32 %v14252_v7, %v3271_v60  ;;  %v3272_v42 = vadd.f32 %v3226_v19, %v3163_v25  ;;  %v3273_v58 = vadd.f32 %v3265_v6, %v3164_v36  ;;  %12094 = vmatpush3.bf16.msra.mxu1 %v14259_v13  ;;  %12095 = vmatprep.mubr.msk.bf16.mxu1 %vm12540_vm0, %v15647_v27  ;;  %v5745_v15 = vpop.permute.xlu1 %5744 }
 0x22a   : > { %v3228_v8 = vpop.f32.mrf.mxu0  ;;  %v11947_v48 = vpop.f32.mrf.mxu1  ;;  %12099 = vmatprep.subr.bf16.mxu1 %v15647_v27  ;;  %v5748_v31 = vsel %vm1198_vm10, %v13675_v24, %v5745_v15 }
 0x22b   : > { %v3282_v43 = vmax.f32 %v3279_v1, 0.0  ;;  %v3280_v9 = vadd.f32 %v14252_v7, %v3272_v42  ;;  %v3281_v56 = vadd.f32 %v14252_v7, %v3273_v58  ;;  %v14320_v33 = vsel %vm344_vm2, %v5748_v31, 0  ;;  %v11339_v8 = vld [vmem:[%s15522_s2 + $0x68] sm:$0xf] }
 0x22c   : > { %v3229_v35 = vpop.f32.mrf.mxu0  ;;  %v3268_v46 = vpop.f32.mrf.mxu1  ;;  %15728 = vst [vmem:[#allocation77_spill] sm:$0xff] %v14320_v33 }
 0x22d   : > { %3285 = vst [vmem:[%s14276_s14] sm:$0xff] %v3282_v43  ;;  %v3283_v26 = vmax.f32 %v3280_v9, 0.0  ;;  %v3284_v63 = vmax.f32 %v3281_v56, 0.0 }
 0x22e   : > { %v11948_v5 = vpop.f32.mrf.mxu1  ;;  %v3327_v44 = vpop.f32.mrf.mxu0  ;;  %11333 = vmatmul.mubr.msk.bf16.vlgmr.msra.gmra.mxu0 %vm340_vm3, %v11331_v11 }
 0x22f   : > { %3286 = vst [vmem:[%s14276_s14 + $0x8] sm:$0xff] %v3283_v26  ;;  %3287 = vst [vmem:[%s14276_s14 + $0x10] sm:$0xff] %v3284_v63  ;;  %5668 = vmatpush1.bf16.msra.mxu0 %v14287_v39  ;;  %5685 = vmatprep.mubr.bf16.mxu0 %v15646_v51 }
 0x230   : > { %v3329_v32 = vpop.f32.mrf.mxu0  ;;  %v3368_v4 = vpop.f32.mrf.mxu1  ;;  %12096 = vmatmul.mubr.msk.bf16.vlgmr.msra.gmra.mxu1 %vm340_vm3, %v11331_v11  ;;  %11340 = vmatprep.subr.msk.bf16.mxu0 %vm344_vm2, %v14292_v17 }
 0x231   : > { %12100 = vmatpush3.bf16.msra.mxu1 %v14295_v12  ;;  %12101 = vmatprep.mubr.msk.bf16.mxu1 %vm12540_vm0, %v15647_v27 }
 0x232   : > { %v3331_v21 = vpop.f32.mrf.mxu0  ;;  %v11953_v47 = vpop.f32.mrf.mxu1  ;;  %12105 = vmatprep.subr.bf16.mxu1 %v15647_v27 }
 0x234   : > { %v3332_v25 = vpop.f32.mrf.mxu0  ;;  %v3371_v36 = vpop.f32.mrf.mxu1 }
 0x236   : > { %v11954_v60 = vpop.f32.mrf.mxu1  ;;  %v3411_v19 = vpop.f32.mrf.mxu0  ;;  %11337 = vmatmul.mubr.msk.bf16.vlgmr.msra.gmra.mxu0 %vm340_vm3, %v11335_v54 }
 0x237   : > { %v3412_v6 = vadd.f32 %v3411_v19, %v3327_v44  ;;  %5776 = vmatpush1.bf16.msra.mxu0 %v14317_v34  ;;  %5793 = vmatprep.mubr.bf16.mxu0 %v15646_v51 }
 0x238   : > { %11347 = vmatprep.subr.msk.bf16.mxu0 %vm344_vm2, %v13256_v53  ;;  %v3413_v24 = vpop.f32.mrf.mxu0  ;;  %v3452_v23 = vpop.f32.mrf.mxu1  ;;  %12102 = vmatmul.mubr.msk.bf16.vlgmr.msra.gmra.mxu1 %vm340_vm3, %v11335_v54 }
 0x239   : > { %v3414_v1 = vadd.f32 %v3413_v24, %v3329_v32  ;;  %v3453_v42 = vadd.f32 %v3452_v23, %v3368_v4  ;;  %12106 = vmatpush3.bf16.msra.mxu1 %v14320_v33  ;;  %12107 = vmatprep.mubr.msk.bf16.mxu1 %vm12540_vm0, %v15647_v27 }
 0x23a   : > { %v3415_v58 = vpop.f32.mrf.mxu0  ;;  %v11959_v50 = vpop.f32.mrf.mxu1  ;;  %12111 = vmatprep.subr.bf16.mxu1 %v15647_v27 }
 0x23c   : > { %v3416_v53 = vpop.f32.mrf.mxu0  ;;  %v3455_v48 = vpop.f32.mrf.mxu1 }
 0x23e   : > { %v11960_v43 = vpop.f32.mrf.mxu1  ;;  %v3496_v9 = vpop.f32.mrf.mxu0  ;;  %11341 = vmatmul.mubr.msk.bf16.vlgmr.msra.gmra.mxu0 %vm340_vm3, %v11339_v8 }
 0x23f   : > { %v3543_v56 = vadd.f32 %v3496_v9, %v3412_v6  ;;  %5875 = vmatpush1.bf16.msra.mxu0 %v13293_v2  ;;  %5892 = vmatprep.mubr.bf16.mxu0 %v15646_v51  ;;  %v11346_v2 = vld [vmem:[%s15522_s2 + $0x4] sm:$0xf] }
 0x240   : > { %v3498_v30 = vpop.f32.mrf.mxu0  ;;  %v3537_v11 = vpop.f32.mrf.mxu1  ;;  %12108 = vmatmul.mubr.msk.bf16.vlgmr.msra.gmra.mxu1 %vm340_vm3, %v11339_v8  ;;  %11350 = vmatprep.subr.msk.bf16.mxu0 %vm344_vm2, %v12811_v45 }
 0x241   : > { %v3544_v35 = vadd.f32 %v3498_v30, %v3414_v1  ;;  %v3545_v46 = vadd.f32 %v3537_v11, %v3453_v42  ;;  %12112 = vmatpush3.bf16.msra.mxu1 %v13299_v16  ;;  %12113 = vmatprep.mubr.msk.bf16.mxu1 %vm12540_vm0, %v15647_v27 }
 0x242   : > { %v3500_v26 = vpop.f32.mrf.mxu0  ;;  %v11965_v63 = vpop.f32.mrf.mxu1  ;;  %12117 = vmatprep.subr.bf16.mxu1 %v15647_v27 }
 0x244   : > { %v3501_v5 = vpop.f32.mrf.mxu0  ;;  %v3540_v44 = vpop.f32.mrf.mxu1 }
 0x245   : > { %v15731_v5 = vld [vmem:[#allocation9_spill] sm:$0xff]  ;;  %v15732_v44 = vld [vmem:[#allocation11_spill] sm:$0xff] }
 0x246   : > { %v11966_v15 = vpop.f32.mrf.mxu1  ;;  %v3584_v32 = vpop.f32.mrf.mxu0  ;;  %11348 = vmatmul.mubr.msk.bf16.vlgmr.msra.gmra.mxu0 %vm340_vm3, %v11346_v2 }
 0x247   : > { %v3631_v45 = vadd.f32 %v3584_v32, %v3543_v56  ;;  %5959 = vmatpush1.bf16.msra.mxu0 %v13253_v52  ;;  %5976 = vmatprep.mubr.bf16.mxu0 %v15646_v51  ;;  %v5855_v52 = vld [vmem:[%s15522_s2] sm:$0xf]  ;;  %v15730_v56 = vld [vmem:[#allocation7_spill] sm:$0xff] }
 0x248   : > { %11354 = vmatprep.subr.msk.bf16.mxu0 %vm344_vm2, %v13296_v10  ;;  %v3586_v16 = vpop.f32.mrf.mxu0  ;;  %v3625_v4 = vpop.f32.mrf.mxu1  ;;  %12114 = vmatmul.mubr.msk.bf16.vlgmr.msra.gmra.mxu1 %vm340_vm3, %v11346_v2 }
 0x249   : > { %v3632_v22 = vadd.f32 %v3586_v16, %v3544_v35  ;;  %v3633_v21 = vadd.f32 %v3625_v4, %v3545_v46  ;;  %12118 = vmatpush3.bf16.msra.mxu1 %v13266_v55  ;;  %12119 = vmatprep.mubr.msk.bf16.mxu1 %vm12540_vm0, %v15647_v27  ;;  %v15733_v4 = vld [vmem:[#allocation10_spill] sm:$0xff] }
 0x24a   : > { %v3588_v47 = vpop.f32.mrf.mxu0  ;;  %v11971_v31 = vpop.f32.mrf.mxu1  ;;  %12123 = vmatprep.subr.bf16.mxu1 %v15647_v27 }
 0x24b   : > { %v11361_v47 = vld [vmem:[%s15522_s2 + $0x10] sm:$0xf] }
 0x24c   : > { %v3589_v10 = vpop.f32.mrf.mxu0  ;;  %v3628_v54 = vpop.f32.mrf.mxu1 }
 0x24e   : > { %v11972_v25 = vpop.f32.mrf.mxu1  ;;  %v3672_v36 = vpop.f32.mrf.mxu0  ;;  %11351 = vmatmul.mubr.msk.bf16.vlgmr.msra.gmra.mxu0 %vm340_vm3, %v5855_v52 }
 0x24f   : > { %v3719_v60 = vadd.f32 %v3672_v36, %v3631_v45  ;;  %6044 = vmatpush1.bf16.msra.mxu0 %v13326_v37  ;;  %6061 = vmatprep.mubr.bf16.mxu0 %v15646_v51  ;;  %v11353_v37 = vld [vmem:[%s15522_s2 + $0x8] sm:$0xf]  ;;  %v15734_v36 = vld [vmem:[#allocation12_spill] sm:$0xff] }
 0x250   : > { %11358 = vmatprep.subr.msk.bf16.mxu0 %vm344_vm2, %v13329_v38  ;;  %v3674_v55 = vpop.f32.mrf.mxu0  ;;  %v3713_v19 = vpop.f32.mrf.mxu1  ;;  %12120 = vmatmul.mubr.msk.bf16.vlgmr.msra.gmra.mxu1 %vm340_vm3, %v5855_v52 }
 0x251   : > { %v3720_v6 = vadd.f32 %v3674_v55, %v3632_v22  ;;  %v3721_v24 = vadd.f32 %v3713_v19, %v3633_v21  ;;  %12124 = vmatpush3.bf16.msra.mxu1 %v13332_v41  ;;  %12125 = vmatprep.mubr.msk.bf16.mxu1 %vm12540_vm0, %v15647_v27  ;;  %v15729_v41 = vld [vmem:[#allocation8_spill] sm:$0xff] }
 0x252   : > { %v3676_v23 = vpop.f32.mrf.mxu0  ;;  %v11977_v1 = vpop.f32.mrf.mxu1  ;;  %12129 = vmatprep.subr.bf16.mxu1 %v15647_v27  ;;  %15761 = vst [vmem:[#allocation8_spill] sm:$0xff] %v14631_v49 }
 0x253   : > { %v15736_v23 = vld [vmem:[#allocation13_spill] sm:$0xff] }
 0x254   : > { %v3677_v38 = vpop.f32.mrf.mxu0  ;;  %v3716_v42 = vpop.f32.mrf.mxu1 }
 0x255   : > { %v11365_v38 = vld [vmem:[%s15522_s2 + $0x14] sm:$0xf] }
 0x256   : > { %v11978_v58 = vpop.f32.mrf.mxu1  ;;  %v3760_v50 = vpop.f32.mrf.mxu0  ;;  %11355 = vmatmul.mubr.msk.bf16.vlgmr.msra.gmra.mxu0 %vm340_vm3, %v11353_v37 }
 0x257   : > { %v3807_v8 = vadd.f32 %v3760_v50, %v3719_v60  ;;  %6132 = vmatpush1.bf16.msra.mxu0 %v13356_v57  ;;  %6149 = vmatprep.mubr.bf16.mxu0 %v15646_v51  ;;  %v11357_v57 = vld [vmem:[%s15522_s2 + $0xc] sm:$0xf]  ;;  %v15735_v60 = vld [vmem:[#allocation14_spill] sm:$0xff] }
 0x258   : > { %11362 = vmatprep.subr.msk.bf16.mxu0 %vm344_vm2, %v15729_v41  ;;  %v3762_v53 = vpop.f32.mrf.mxu0  ;;  %v3801_v48 = vpop.f32.mrf.mxu1  ;;  %12126 = vmatmul.mubr.msk.bf16.vlgmr.msra.gmra.mxu1 %vm340_vm3, %v11353_v37 }
 0x259   : > { %v3808_v43 = vadd.f32 %v3762_v53, %v3720_v6  ;;  %v3809_v9 = vadd.f32 %v3801_v48, %v3721_v24  ;;  %12130 = vmatpush3.bf16.msra.mxu1 %v15730_v56  ;;  %12131 = vmatprep.mubr.msk.bf16.mxu1 %vm12540_vm0, %v15647_v27  ;;  %v15737_v53 = vld [vmem:[#allocation15_spill] sm:$0xff]  ;;  %v15738_v48 = vld [vmem:[#allocation17_spill] sm:$0xff] }
 0x25a   : > { %v3764_v30 = vpop.f32.mrf.mxu0  ;;  %v11983_v11 = vpop.f32.mrf.mxu1  ;;  %12135 = vmatprep.subr.bf16.mxu1 %v15647_v27 }
 0x25b   : > { %v15739_v11 = vld [vmem:[#allocation16_spill] sm:$0xff] }
 0x25c   : > { %v3765_v35 = vpop.f32.mrf.mxu0  ;;  %v3804_v46 = vpop.f32.mrf.mxu1 }
 0x25d   : > { %v11369_v46 = vld [vmem:[%s15522_s2 + $0x18] sm:$0xf] }
 0x25e   : > { %v11984_v26 = vpop.f32.mrf.mxu1  ;;  %v3848_v63 = vpop.f32.mrf.mxu0  ;;  %11359 = vmatmul.mubr.msk.bf16.vlgmr.msra.gmra.mxu0 %vm340_vm3, %v11357_v57 }
 0x25f   : > { %v3895_v2 = vadd.f32 %v3848_v63, %v3807_v8  ;;  %6220 = vmatpush1.bf16.msra.mxu0 %v15731_v5  ;;  %6237 = vmatprep.mubr.bf16.mxu0 %v15646_v51 }
 0x260   : > { %11366 = vmatprep.subr.msk.bf16.mxu0 %vm344_vm2, %v15732_v44  ;;  %v3850_v15 = vpop.f32.mrf.mxu0  ;;  %v3889_v32 = vpop.f32.mrf.mxu1  ;;  %12132 = vmatmul.mubr.msk.bf16.vlgmr.msra.gmra.mxu1 %vm340_vm3, %v11357_v57 }
 0x261   : > { %v3896_v45 = vadd.f32 %v3850_v15, %v3808_v43  ;;  %v3897_v16 = vadd.f32 %v3889_v32, %v3809_v9  ;;  %12136 = vmatpush3.bf16.msra.mxu1 %v15733_v4  ;;  %12137 = vmatprep.mubr.msk.bf16.mxu1 %vm12540_vm0, %v15647_v27  ;;  %v15740_v15 = vld [vmem:[#allocation18_spill] sm:$0xff]  ;;  %v15741_v32 = vld [vmem:[#allocation20_spill] sm:$0xff] }
 0x262   : > { %v3852_v22 = vpop.f32.mrf.mxu0  ;;  %v11989_v21 = vpop.f32.mrf.mxu1  ;;  %12141 = vmatprep.subr.bf16.mxu1 %v15647_v27 }
 0x263   : > { %v15742_v21 = vld [vmem:[#allocation19_spill] sm:$0xff] }
 0x264   : > { %v3853_v31 = vpop.f32.mrf.mxu0  ;;  %v3892_v52 = vpop.f32.mrf.mxu1 }
 0x265   : > { %v11373_v52 = vld [vmem:[%s15522_s2 + $0x1c] sm:$0xf] }
 0x266   : > { %v11990_v10 = vpop.f32.mrf.mxu1  ;;  %v3936_v54 = vpop.f32.mrf.mxu0  ;;  %11363 = vmatmul.mubr.msk.bf16.vlgmr.msra.gmra.mxu0 %vm340_vm3, %v11361_v47 }
 0x267   : > { %v3983_v25 = vadd.f32 %v3936_v54, %v3895_v2  ;;  %6308 = vmatpush1.bf16.msra.mxu0 %v15734_v36  ;;  %6325 = vmatprep.mubr.bf16.mxu0 %v15646_v51 }
 0x268   : > { %11370 = vmatprep.subr.msk.bf16.mxu0 %vm344_vm2, %v15735_v60  ;;  %v3938_v55 = vpop.f32.mrf.mxu0  ;;  %v3977_v19 = vpop.f32.mrf.mxu1  ;;  %12138 = vmatmul.mubr.msk.bf16.vlgmr.msra.gmra.mxu1 %vm340_vm3, %v11361_v47 }
 0x269   : > { %v3984_v6 = vadd.f32 %v3938_v55, %v3896_v45  ;;  %v3985_v24 = vadd.f32 %v3977_v19, %v3897_v16  ;;  %12142 = vmatpush3.bf16.msra.mxu1 %v15736_v23  ;;  %12143 = vmatprep.mubr.msk.bf16.mxu1 %vm12540_vm0, %v15647_v27  ;;  %v15743_v55 = vld [vmem:[#allocation22_spill] sm:$0xff] }
 0x26a   : > { %v3940_v1 = vpop.f32.mrf.mxu0  ;;  %v11995_v37 = vpop.f32.mrf.mxu1  ;;  %12147 = vmatprep.subr.bf16.mxu1 %v15647_v27 }
 0x26b   : > { %v15745_v37 = vld [vmem:[#allocation24_spill] sm:$0xff] }
 0x26c   : > { %v3941_v42 = vpop.f32.mrf.mxu0  ;;  %v3980_v58 = vpop.f32.mrf.mxu1 }
 0x26d   : > { %v11377_v58 = vld [vmem:[%s15522_s2 + $0x20] sm:$0xf] }
 0x26e   : > { %v11996_v50 = vpop.f32.mrf.mxu1  ;;  %v4024_v8 = vpop.f32.mrf.mxu0  ;;  %11367 = vmatmul.mubr.msk.bf16.vlgmr.msra.gmra.mxu0 %vm340_vm3, %v11365_v38 }
 0x26f   : > { %v4071_v41 = vadd.f32 %v4024_v8, %v3983_v25  ;;  %6396 = vmatpush1.bf16.msra.mxu0 %v15737_v53  ;;  %6413 = vmatprep.mubr.bf16.mxu0 %v15646_v51 }
 0x270   : > { %11374 = vmatprep.subr.msk.bf16.mxu0 %vm344_vm2, %v15738_v48  ;;  %v4026_v43 = vpop.f32.mrf.mxu0  ;;  %v4065_v9 = vpop.f32.mrf.mxu1  ;;  %12144 = vmatmul.mubr.msk.bf16.vlgmr.msra.gmra.mxu1 %vm340_vm3, %v11365_v38 }
 0x271   : > { %v4072_v56 = vadd.f32 %v4026_v43, %v3984_v6  ;;  %v4073_v30 = vadd.f32 %v4065_v9, %v3985_v24  ;;  %12148 = vmatpush3.bf16.msra.mxu1 %v15739_v11  ;;  %12149 = vmatprep.mubr.msk.bf16.mxu1 %vm12540_vm0, %v15647_v27  ;;  %v15744_v24 = vld [vmem:[#allocation4_spill] sm:$0xff]  ;;  %v15746_v43 = vld [vmem:[#allocation2_spill] sm:$0xff]  ;;  %v15747_v9 = vld [vmem:[#allocation23_spill] sm:$0xff] }
 0x272   : > { %v4028_v57 = vpop.f32.mrf.mxu0  ;;  %v12001_v35 = vpop.f32.mrf.mxu1  ;;  %12153 = vmatprep.subr.bf16.mxu1 %v15647_v27 }
 0x273   : > { %v15748_v35 = vld [vmem:[#allocation3_spill] sm:$0xff] }
 0x274   : > { %v4029_v26 = vpop.f32.mrf.mxu0  ;;  %v4068_v63 = vpop.f32.mrf.mxu1 }
 0x275   : > { %v11381_v63 = vld [vmem:[%s15522_s2 + $0x24] sm:$0xf] }
 0x276   : > { %v12002_v2 = vpop.f32.mrf.mxu1  ;;  %v4112_v5 = vpop.f32.mrf.mxu0  ;;  %11371 = vmatmul.mubr.msk.bf16.vlgmr.msra.gmra.mxu0 %vm340_vm3, %v11369_v46 }
 0x277   : > { %v4159_v44 = vadd.f32 %v4112_v5, %v4071_v41  ;;  %6484 = vmatpush1.bf16.msra.mxu0 %v15740_v15  ;;  %6501 = vmatprep.mubr.bf16.mxu0 %v15646_v51 }
 0x278   : > { %11378 = vmatprep.subr.msk.bf16.mxu0 %vm344_vm2, %v15741_v32  ;;  %v4114_v45 = vpop.f32.mrf.mxu0  ;;  %v4153_v16 = vpop.f32.mrf.mxu1  ;;  %12150 = vmatmul.mubr.msk.bf16.vlgmr.msra.gmra.mxu1 %vm340_vm3, %v11369_v46 }
 0x279   : > { %v4160_v4 = vadd.f32 %v4114_v45, %v4072_v56  ;;  %v4161_v22 = vadd.f32 %v4153_v16, %v4073_v30  ;;  %12154 = vmatpush3.bf16.msra.mxu1 %v15742_v21  ;;  %12155 = vmatprep.mubr.msk.bf16.mxu1 %vm12540_vm0, %v15647_v27  ;;  %v15749_v45 = vld [vmem:[#allocation53_spill] sm:$0xff]  ;;  %v15750_v16 = vld [vmem:[#allocation54_spill] sm:$0xff] }
 0x27a   : > { %v4116_v47 = vpop.f32.mrf.mxu0  ;;  %v12007_v31 = vpop.f32.mrf.mxu1  ;;  %12159 = vmatprep.subr.bf16.mxu1 %v15647_v27 }
 0x27b   : > { %v15751_v31 = vld [vmem:[#allocation56_spill] sm:$0xff] }
 0x27c   : > { %v4117_v10 = vpop.f32.mrf.mxu0  ;;  %v4156_v54 = vpop.f32.mrf.mxu1 }
 0x27d   : > { %v11385_v54 = vld [vmem:[%s15522_s2 + $0x28] sm:$0xf] }
 0x27e   : > { %v12008_v25 = vpop.f32.mrf.mxu1  ;;  %v4200_v36 = vpop.f32.mrf.mxu0  ;;  %11375 = vmatmul.mubr.msk.bf16.vlgmr.msra.gmra.mxu0 %vm340_vm3, %v11373_v52 }
 0x27f   : > { %v4247_v60 = vadd.f32 %v4200_v36, %v4159_v44  ;;  %6572 = vmatpush1.bf16.msra.mxu0 %v15743_v55  ;;  %6589 = vmatprep.mubr.bf16.mxu0 %v15646_v51 }
 0x280   : > { %v4202_v19 = vpop.f32.mrf.mxu0  ;;  %v4241_v6 = vpop.f32.mrf.mxu1  ;;  %12156 = vmatmul.mubr.msk.bf16.vlgmr.msra.gmra.mxu1 %vm340_vm3, %v11373_v52  ;;  %11382 = vmatprep.subr.msk.bf16.mxu0 %vm344_vm2, %v15744_v24 }
 0x281   : > { %v4248_v23 = vadd.f32 %v4202_v19, %v4160_v4  ;;  %v4249_v1 = vadd.f32 %v4241_v6, %v4161_v22  ;;  %12160 = vmatpush3.bf16.msra.mxu1 %v15745_v37  ;;  %12161 = vmatprep.mubr.msk.bf16.mxu1 %vm12540_vm0, %v15647_v27  ;;  %v15752_v6 = vld [vmem:[#allocation57_spill] sm:$0xff] }
 0x282   : > { %v4204_v38 = vpop.f32.mrf.mxu0  ;;  %v12013_v42 = vpop.f32.mrf.mxu1  ;;  %12165 = vmatprep.subr.bf16.mxu1 %v15647_v27 }
 0x284   : > { %v4205_v50 = vpop.f32.mrf.mxu0  ;;  %v4244_v8 = vpop.f32.mrf.mxu1 }
 0x286   : > { %v12014_v41 = vpop.f32.mrf.mxu1  ;;  %v4288_v53 = vpop.f32.mrf.mxu0  ;;  %11379 = vmatmul.mubr.msk.bf16.vlgmr.msra.gmra.mxu0 %vm340_vm3, %v11377_v58 }
 0x287   : > { %v4335_v48 = vadd.f32 %v4288_v53, %v4247_v60  ;;  %6660 = vmatpush1.bf16.msra.mxu0 %v15746_v43  ;;  %6677 = vmatprep.mubr.bf16.mxu0 %v15646_v51  ;;  %v11389_v41 = vld [vmem:[%s15522_s2 + $0x2c] sm:$0xf] }
 0x288   : > { %11386 = vmatprep.subr.msk.bf16.mxu0 %vm344_vm2, %v15747_v9  ;;  %v4290_v56 = vpop.f32.mrf.mxu0  ;;  %v4329_v30 = vpop.f32.mrf.mxu1  ;;  %12162 = vmatmul.mubr.msk.bf16.vlgmr.msra.gmra.mxu1 %vm340_vm3, %v11377_v58  ;;  %v15754_v58 = vld [vmem:[#allocation59_spill] sm:$0xff] }
 0x289   : > { %v4336_v11 = vadd.f32 %v4290_v56, %v4248_v23  ;;  %v4337_v57 = vadd.f32 %v4329_v30, %v4249_v1  ;;  %12166 = vmatpush3.bf16.msra.mxu1 %v15748_v35  ;;  %12167 = vmatprep.mubr.msk.bf16.mxu1 %vm12540_vm0, %v15647_v27  ;;  %v15753_v23 = vld [vmem:[#allocation58_spill] sm:$0xff] }
 0x28a   : > { %v4292_v46 = vpop.f32.mrf.mxu0  ;;  %v12019_v26 = vpop.f32.mrf.mxu1  ;;  %12171 = vmatprep.subr.bf16.mxu1 %v15647_v27 }
 0x28b   : > { %v15756_v46 = vld [vmem:[#allocation62_spill] sm:$0xff] }
 0x28c   : > { %v4293_v2 = vpop.f32.mrf.mxu0  ;;  %v4332_v5 = vpop.f32.mrf.mxu1 }
 0x28e   : > { %v12020_v44 = vpop.f32.mrf.mxu1  ;;  %v4376_v15 = vpop.f32.mrf.mxu0  ;;  %11383 = vmatmul.mubr.msk.bf16.vlgmr.msra.gmra.mxu0 %vm340_vm3, %v11381_v63 }
 0x28f   : > { %v4423_v32 = vadd.f32 %v4376_v15, %v4335_v48  ;;  %6748 = vmatpush1.bf16.msra.mxu0 %v15749_v45  ;;  %6765 = vmatprep.mubr.bf16.mxu0 %v15646_v51  ;;  %v15757_v44 = vld [vmem:[#allocation64_spill] sm:$0xff] }
 0x290   : > { %11390 = vmatprep.subr.msk.bf16.mxu0 %vm344_vm2, %v15750_v16  ;;  %v4378_v4 = vpop.f32.mrf.mxu0  ;;  %v4417_v22 = vpop.f32.mrf.mxu1  ;;  %12168 = vmatmul.mubr.msk.bf16.vlgmr.msra.gmra.mxu1 %vm340_vm3, %v11381_v63 }
 0x291   : > { %v4424_v21 = vadd.f32 %v4378_v4, %v4336_v11  ;;  %v4425_v47 = vadd.f32 %v4417_v22, %v4337_v57  ;;  %12172 = vmatpush3.bf16.msra.mxu1 %v15751_v31  ;;  %12173 = vmatprep.mubr.msk.bf16.mxu1 %vm12540_vm0, %v15647_v27  ;;  %v15755_v57 = vld [vmem:[#allocation61_spill] sm:$0xff]  ;;  %v11393_v4 = vld [vmem:[%s15522_s2 + $0x30] sm:$0xf] }
 0x292   : > { %v4380_v52 = vpop.f32.mrf.mxu0  ;;  %v12025_v10 = vpop.f32.mrf.mxu1  ;;  %12177 = vmatprep.subr.bf16.mxu1 %v15647_v27 }
 0x294   : > { %v4381_v25 = vpop.f32.mrf.mxu0  ;;  %v4420_v36 = vpop.f32.mrf.mxu1 }
 0x296   : > { %v12026_v60 = vpop.f32.mrf.mxu1  ;;  %v4464_v55 = vpop.f32.mrf.mxu0  ;;  %11387 = vmatmul.mubr.msk.bf16.vlgmr.msra.gmra.mxu0 %vm340_vm3, %v11385_v54 }
 0x297   : > { %v4511_v19 = vadd.f32 %v4464_v55, %v4423_v32  ;;  %6836 = vmatpush1.bf16.msra.mxu0 %v15752_v6  ;;  %6853 = vmatprep.mubr.bf16.mxu0 %v15646_v51 }
 0x298   : > { %11394 = vmatprep.subr.msk.bf16.mxu0 %vm344_vm2, %v15753_v23  ;;  %v4466_v1 = vpop.f32.mrf.mxu0  ;;  %v4505_v37 = vpop.f32.mrf.mxu1  ;;  %12174 = vmatmul.mubr.msk.bf16.vlgmr.msra.gmra.mxu1 %vm340_vm3, %v11385_v54 }
 0x299   : > { %v4512_v38 = vadd.f32 %v4466_v1, %v4424_v21  ;;  %v4513_v42 = vadd.f32 %v4505_v37, %v4425_v47  ;;  %12178 = vmatpush3.bf16.msra.mxu1 %v15754_v58  ;;  %12179 = vmatprep.mubr.msk.bf16.mxu1 %vm12540_vm0, %v15647_v27  ;;  %v11397_v1 = vld [vmem:[%s15522_s2 + $0x34] sm:$0xf] }
 0x29a   : > { %v4468_v50 = vpop.f32.mrf.mxu0  ;;  %v12031_v8 = vpop.f32.mrf.mxu1  ;;  %12183 = vmatprep.subr.bf16.mxu1 %v15647_v27 }
 0x29c   : > { %v4469_v53 = vpop.f32.mrf.mxu0  ;;  %v4508_v48 = vpop.f32.mrf.mxu1 }
 0x29e   : > { %v12032_v56 = vpop.f32.mrf.mxu1  ;;  %v4552_v30 = vpop.f32.mrf.mxu0  ;;  %11391 = vmatmul.mubr.msk.bf16.vlgmr.msra.gmra.mxu0 %vm340_vm3, %v11389_v41 }
 0x29f   : > { %v4599_v11 = vadd.f32 %v4552_v30, %v4511_v19  ;;  %6924 = vmatpush1.bf16.msra.mxu0 %v15755_v57  ;;  %6941 = vmatprep.mubr.bf16.mxu0 %v15646_v51  ;;  %v11401_v30 = vld [vmem:[%s15522_s2 + $0x38] sm:$0xf] }
 0x2a0   : > { %11398 = vmatprep.subr.msk.bf16.mxu0 %vm344_vm2, %v15756_v46  ;;  %v4554_v26 = vpop.f32.mrf.mxu0  ;;  %v4593_v63 = vpop.f32.mrf.mxu1  ;;  %12180 = vmatmul.mubr.msk.bf16.vlgmr.msra.gmra.mxu1 %vm340_vm3, %v11389_v41 }
 0x2a1   : > { %v4600_v2 = vadd.f32 %v4554_v26, %v4512_v38  ;;  %v4601_v5 = vadd.f32 %v4593_v63, %v4513_v42  ;;  %12184 = vmatpush3.bf16.msra.mxu1 %v15757_v44  ;;  %12185 = vmatprep.mubr.msk.bf16.mxu1 %vm12540_vm0, %v15647_v27  ;;  %v14523_v42 = vpop.permute.xlu1 %7551 }
 0x2a2   : > { %v4556_v15 = vpop.f32.mrf.mxu0  ;;  %v12037_v32 = vpop.f32.mrf.mxu1  ;;  %12189 = vmatprep.subr.bf16.mxu1 %v15647_v27 }
 0x2a4   : > { %v4557_v22 = vpop.f32.mrf.mxu0  ;;  %v4596_v21 = vpop.f32.mrf.mxu1 }
 0x2a6   : > { %v12038_v47 = vpop.f32.mrf.mxu1  ;;  %v4640_v52 = vpop.f32.mrf.mxu0  ;;  %11395 = vmatmul.mubr.msk.bf16.vlgmr.msra.gmra.mxu0 %vm340_vm3, %v11393_v4 }
 0x2a7   : > { %v14505_v10 = vadd.f32 %v4640_v52, %v4599_v11  ;;  %7012 = vmatpush1.bf16.msra.mxu0 %v14139_v62  ;;  %7029 = vmatprep.mubr.bf16.mxu0 %v15646_v51  ;;  %v14544_v11 = vpop.permute.xlu1 %7555  ;;  %v15759_v47 = vld [vmem:[#allocation27_spill] sm:$0xff] }
 0x2a8   : > { %11402 = vmatprep.subr.msk.bf16.mxu0 %vm344_vm2, %v14149_v20  ;;  %v4642_v54 = vpop.f32.mrf.mxu0  ;;  %v4681_v25 = vpop.f32.mrf.mxu1  ;;  %12186 = vmatmul.mubr.msk.bf16.vlgmr.msra.gmra.mxu1 %vm340_vm3, %v11393_v4  ;;  %v14571_v52 = vcombine.high %v15759_v47, %v15759_v47 }
 0x2a9   : > { %v14512_v36 = vadd.f32 %v4642_v54, %v4600_v2  ;;  %v14514_v60 = vadd.f32 %v4681_v25, %v4601_v5  ;;  %12190 = vmatpush3.bf16.msra.mxu1 %v14152_v59  ;;  %12191 = vmatprep.mubr.msk.bf16.mxu1 %vm12540_vm0, %v15647_v27  ;;  %v15758_v2 = vld [vmem:[#allocation26_spill] sm:$0xff] }
 0x2aa   : > { %v4644_v55 = vpop.f32.mrf.mxu0  ;;  %v12043_v19 = vpop.f32.mrf.mxu1  ;;  %12195 = vmatprep.subr.bf16.mxu1 %v15647_v27  ;;  %v14548_v5 = vcombine.high %v15758_v2, %v15758_v2  ;;  %v15764_v2 = vld [vmem:[#allocation6_spill] sm:$0xff] }
 0x2ab   : > { %v14567_v21 = vpop.permute.xlu1 %7659  ;;  %v11405_v55 = vld [vmem:[%s15522_s2 + $0x3c] sm:$0xf] }
 0x2ac   : > { %v4645_v37 = vpop.f32.mrf.mxu0  ;;  %v4684_v38 = vpop.f32.mrf.mxu1  ;;  %10118 = vrot.lane.b32.xlu1 %v14548_v5, %s12541_s5 }
 0x2ae   : > { %v12044_v50 = vpop.f32.mrf.mxu1  ;;  %v14525_v8 = vpop.f32.mrf.mxu0  ;;  %11399 = vmatmul.mubr.msk.bf16.vlgmr.msra.gmra.mxu0 %vm340_vm3, %v11397_v1 }
 0x2af   : > { %7100 = vmatpush1.bf16.msra.mxu0 %v14196_v40  ;;  %7117 = vmatprep.mubr.bf16.mxu0 %v15646_v51  ;;  %v14584_v50 = vpop.permute.xlu1 %7663 }
 0x2b0   : > { %11406 = vmatprep.subr.msk.bf16.mxu0 %vm344_vm2, %v14209_v0  ;;  %v14532_v41 = vpop.f32.mrf.mxu0  ;;  %v14534_v53 = vpop.f32.mrf.mxu1  ;;  %12192 = vmatmul.mubr.msk.bf16.vlgmr.msra.gmra.mxu1 %vm340_vm3, %v11397_v1 }
 0x2b1   : > { %12196 = vmatpush3.bf16.msra.mxu1 %v14212_v28  ;;  %12197 = vmatprep.mubr.msk.bf16.mxu1 %vm12540_vm0, %v15647_v27  ;;  %v4777_v28 = vadd.f32 %v14534_v53, %v14514_v60 }
 0x2b2   : > { %v4732_v48 = vpop.f32.mrf.mxu0  ;;  %v12049_v56 = vpop.f32.mrf.mxu1  ;;  %12201 = vmatprep.subr.bf16.mxu1 %v15647_v27  ;;  %10122 = vrot.lane.b32.xlu1 %v14571_v52, %s12541_s5 }
 0x2b4   : > { %v4733_v26 = vpop.f32.mrf.mxu0  ;;  %v4772_v63 = vpop.f32.mrf.mxu1 }
 0x2b5   : > { %v11409_v63 = vld [vmem:[%s15522_s2 + $0x40] sm:$0xf] }
 0x2b6   : > { %v12050_v15 = vpop.f32.mrf.mxu1  ;;  %v14550_v32 = vpop.f32.mrf.mxu0  ;;  %11403 = vmatmul.mubr.msk.bf16.vlgmr.msra.gmra.mxu0 %vm340_vm3, %v11401_v30  ;;  %10226 = vrot.lane.b32.xlu1 %v14548_v5, %s12542_s6 }
 0x2b7   : > { %7188 = vmatpush1.bf16.msra.mxu0 %v14248_v18  ;;  %7205 = vmatprep.mubr.bf16.mxu0 %v15646_v51 }
 0x2b8   : > { %11410 = vmatprep.subr.msk.bf16.mxu0 %vm344_vm2, %v14256_v14  ;;  %v14559_v4 = vpop.f32.mrf.mxu0  ;;  %v14561_v22 = vpop.f32.mrf.mxu1  ;;  %12198 = vmatmul.mubr.msk.bf16.vlgmr.msra.gmra.mxu1 %vm340_vm3, %v11401_v30 }
 0x2b9   : > { %12202 = vmatpush3.bf16.msra.mxu1 %v14259_v13  ;;  %12203 = vmatprep.mubr.msk.bf16.mxu1 %vm12540_vm0, %v15647_v27  ;;  %v4865_v60 = vadd.f32 %v14561_v22, %v4777_v28 }
 0x2ba   : > { %v4820_v54 = vpop.f32.mrf.mxu0  ;;  %v12055_v25 = vpop.f32.mrf.mxu1  ;;  %12207 = vmatprep.subr.bf16.mxu1 %v15647_v27  ;;  %10230 = vrot.lane.b32.xlu1 %v14571_v52, %s12542_s6 }
 0x2bb   : > { %v14602_v25 = vpop.permute.xlu1 %7767 }
 0x2bc   : > { %v4821_v19 = vpop.f32.mrf.mxu0  ;;  %v4860_v1 = vpop.f32.mrf.mxu1 }
 0x2be   : > { %v12056_v37 = vpop.f32.mrf.mxu1  ;;  %v14579_v38 = vpop.f32.mrf.mxu0  ;;  %11407 = vmatmul.mubr.msk.bf16.vlgmr.msra.gmra.mxu0 %vm340_vm3, %v11405_v55  ;;  %10334 = vrot.lane.b32.xlu1 %v14548_v5, %s12543_s7 }
 0x2bf   : > { %7276 = vmatpush1.bf16.msra.mxu0 %v14287_v39  ;;  %7293 = vmatprep.mubr.bf16.mxu0 %v15646_v51 }
 0x2c0   : > { %11414 = vmatprep.subr.msk.bf16.mxu0 %vm344_vm2, %v14292_v17  ;;  %v14588_v48 = vpop.f32.mrf.mxu0  ;;  %v14590_v56 = vpop.f32.mrf.mxu1  ;;  %12204 = vmatmul.mubr.msk.bf16.vlgmr.msra.gmra.mxu1 %vm340_vm3, %v11405_v55 }
 0x2c1   : > { %12208 = vmatpush3.bf16.msra.mxu1 %v14295_v12  ;;  %12209 = vmatprep.mubr.msk.bf16.mxu1 %vm12540_vm0, %v15647_v27 }
 0x2c2   : > { %v4934_v30 = vpop.f32.mrf.mxu0  ;;  %v12061_v26 = vpop.f32.mrf.mxu1  ;;  %12213 = vmatprep.subr.bf16.mxu1 %v15647_v27  ;;  %10338 = vrot.lane.b32.xlu1 %v14571_v52, %s12543_s7 }
 0x2c4   : > { %v4935_v15 = vpop.f32.mrf.mxu0  ;;  %v4974_v54 = vpop.f32.mrf.mxu1 }
 0x2c5   : > { %v11413_v15 = vld [vmem:[%s15522_s2 + $0x44] sm:$0xf] }
 0x2c6   : > { %v12062_v55 = vpop.f32.mrf.mxu1  ;;  %v14604_v19 = vpop.f32.mrf.mxu0  ;;  %11411 = vmatmul.mubr.msk.bf16.vlgmr.msra.gmra.mxu0 %vm340_vm3, %v11409_v63  ;;  %10442 = vrot.lane.b32.xlu1 %v14548_v5, %s12544_s8 }
 0x2c7   : > { %7364 = vmatpush1.bf16.msra.mxu0 %v14317_v34  ;;  %7381 = vmatprep.mubr.bf16.mxu0 %v15646_v51 }
 0x2c8   : > { %v14611_v1 = vpop.f32.mrf.mxu0  ;;  %v14613_v37 = vpop.f32.mrf.mxu1  ;;  %12210 = vmatmul.mubr.msk.bf16.vlgmr.msra.gmra.mxu1 %vm340_vm3, %v11409_v63  ;;  %11418 = vmatprep.subr.msk.bf16.mxu0 %vm344_vm2, %v13857_v61 }
 0x2c9   : > { %12214 = vmatpush3.bf16.msra.mxu1 %v14320_v33  ;;  %12215 = vmatprep.mubr.msk.bf16.mxu1 %vm12540_vm0, %v15647_v27  ;;  %v14627_v63 = vpop.permute.xlu1 %7771  ;;  %v14643_v33 = vsel %vm344_vm2, %v15764_v2, 0 }
 0x2ca   : > { %v5043_v30 = vpop.f32.mrf.mxu0  ;;  %v12067_v26 = vpop.f32.mrf.mxu1  ;;  %12219 = vmatprep.subr.bf16.mxu1 %v15647_v27  ;;  %15765 = vst [vmem:[#allocation9_spill] sm:$0xff] %v14643_v33  ;;  %10446 = vrot.lane.b32.xlu1 %v14571_v52, %s12544_s8 }
 0x2cb   : > { %v14636_v30 = vsel %vm336_vm1, %v14523_v42, %v15762_v29 }
 0x2cc   : > { %v5044_v54 = vpop.f32.mrf.mxu0  ;;  %v5083_v55 = vpop.f32.mrf.mxu1  ;;  %15763 = vst [vmem:[#allocation7_spill] sm:$0xff] %v14636_v30 }
 0x2cd   : > { %v15766_v55 = vld [vmem:[#allocation28_spill] sm:$0xff] }
 0x2ce   : > { %v12068_v26 = vpop.f32.mrf.mxu1  ;;  %v14638_v47 = vpop.f32.mrf.mxu0  ;;  %11415 = vmatmul.mubr.msk.bf16.vlgmr.msra.gmra.mxu0 %vm340_vm3, %v11413_v15  ;;  %v7557_v2 = vsel %vm336_vm1, %v15766_v55, %v14523_v42  ;;  %v11417_v42 = vld [vmem:[%s15522_s2 + $0x48] sm:$0xf]  ;;  %10550 = vrot.lane.b32.xlu1 %v14548_v5, %s12545_s9 }
 0x2cf   : > { %7478 = vmatpush1.bf16.msra.mxu0 %v14631_v49  ;;  %7495 = vmatprep.mubr.bf16.mxu0 %v15646_v51  ;;  %v14662_v26 = vpop.permute.xlu1 %7875  ;;  %v14674_v55 = vsel %vm344_vm2, %v7557_v2, 0 }
 0x2d0   : > { %v14649_v3 = vpop.f32.mrf.mxu0  ;;  %v14651_v54 = vpop.f32.mrf.mxu1  ;;  %12216 = vmatmul.mubr.msk.bf16.vlgmr.msra.gmra.mxu1 %vm340_vm3, %v11413_v15  ;;  %11422 = vmatprep.subr.msk.bf16.mxu0 %vm344_vm2, %v14636_v30  ;;  %v7559_v15 = vsel %vm336_vm1, %v15762_v29, %v14544_v11  ;;  %15767 = vst [vmem:[#allocation11_spill] sm:$0xff] %v14674_v55 }
 0x2d1   : > { %12220 = vmatpush3.bf16.msra.mxu1 %v14643_v33  ;;  %12221 = vmatprep.mubr.msk.bf16.mxu1 %vm12540_vm0, %v15647_v27  ;;  %v14682_v34 = vsel %vm344_vm2, %v7559_v15, 0 }
 0x2d2   : > { %v5151_v49 = vpop.f32.mrf.mxu0  ;;  %v12073_v61 = vpop.f32.mrf.mxu1  ;;  %12225 = vmatprep.subr.bf16.mxu1 %v15647_v27  ;;  %15770 = vst [vmem:[#allocation12_spill] sm:$0xff] %v14682_v34  ;;  %10554 = vrot.lane.b32.xlu1 %v14571_v52, %s12545_s9 }
 0x2d3   : > { %v15768_v49 = vld [vmem:[#allocation31_spill] sm:$0xff]  ;;  %v14691_v29 = vpop.permute.xlu1 %7879 }
 0x2d4   : > { %v5152_v33 = vpop.f32.mrf.mxu0  ;;  %v5191_v30 = vpop.f32.mrf.mxu1  ;;  %v14679_v61 = vsel %vm538_vm4, %v14567_v21, %v15768_v49 }
 0x2d5   : > { %15769 = vst [vmem:[#allocation10_spill] sm:$0xff] %v14679_v61 }
 0x2d6   : > { %v12074_v12 = vpop.f32.mrf.mxu1  ;;  %v14684_v17 = vpop.f32.mrf.mxu0  ;;  %11419 = vmatmul.mubr.msk.bf16.vlgmr.msra.gmra.mxu0 %vm340_vm3, %v11417_v42  ;;  %10658 = vrot.lane.b32.xlu1 %v14548_v5, %s12546_s10 }
 0x2d7   : > { %7587 = vmatpush1.bf16.msra.mxu0 %v14674_v55  ;;  %7604 = vmatprep.mubr.bf16.mxu0 %v15646_v51  ;;  %v15771_v12 = vld [vmem:[#allocation30_spill] sm:$0xff]  ;;  %v14723_v55 = vpop.permute.xlu1 %7983 }
 0x2d8   : > { %v14693_v33 = vpop.f32.mrf.mxu0  ;;  %v14695_v11 = vpop.f32.mrf.mxu1  ;;  %12222 = vmatmul.mubr.msk.bf16.vlgmr.msra.gmra.mxu1 %vm340_vm3, %v11417_v42  ;;  %11426 = vmatprep.subr.msk.bf16.mxu0 %vm344_vm2, %v14679_v61  ;;  %v7665_v30 = vsel %vm538_vm4, %v15771_v12, %v14567_v21  ;;  %v7667_v42 = vsel %vm538_vm4, %v15768_v49, %v14584_v50 }
 0x2d9   : > { %12226 = vmatpush3.bf16.msra.mxu1 %v14682_v34  ;;  %12227 = vmatprep.mubr.msk.bf16.mxu1 %vm12540_vm0, %v15647_v27  ;;  %v11421_v34 = vld [vmem:[%s15522_s2 + $0x4c] sm:$0xf]  ;;  %v14716_v21 = vsel %vm344_vm2, %v7665_v30, 0  ;;  %v14726_v39 = vsel %vm344_vm2, %v7667_v42, 0  ;;  %v15776_v42 = vld [vmem:[#allocation32_spill] sm:$0xff] }
 0x2da   : > { %v5259_v2 = vpop.f32.mrf.mxu0  ;;  %v12079_v15 = vpop.f32.mrf.mxu1  ;;  %12231 = vmatprep.subr.bf16.mxu1 %v15647_v27  ;;  %15772 = vst [vmem:[#allocation14_spill] sm:$0xff] %v14716_v21  ;;  %15775 = vst [vmem:[#allocation15_spill] sm:$0xff] %v14726_v39  ;;  %10662 = vrot.lane.b32.xlu1 %v14571_v52, %s12546_s10 }
 0x2db   : > { %v15773_v2 = vld [vmem:[#allocation33_spill] sm:$0xff] }
 0x2dc   : > { %v5260_v12 = vpop.f32.mrf.mxu0  ;;  %v5299_v61 = vpop.f32.mrf.mxu1  ;;  %v14721_v15 = vsel %vm648_vm5, %v14602_v25, %v15773_v2 }
 0x2dd   : > { %15774 = vst [vmem:[#allocation13_spill] sm:$0xff] %v14721_v15  ;;  %v7773_v12 = vsel %vm648_vm5, %v15776_v42, %v14602_v25 }
 0x2de   : > { %v12080_v50 = vpop.f32.mrf.mxu1  ;;  %v14728_v49 = vpop.f32.mrf.mxu0  ;;  %11423 = vmatmul.mubr.msk.bf16.vlgmr.msra.gmra.mxu0 %vm340_vm3, %v11421_v34  ;;  %v14760_v25 = vsel %vm344_vm2, %v7773_v12, 0  ;;  %10766 = vrot.lane.b32.xlu1 %v14548_v5, %s12547_s11 }
 0x2df   : > { %7695 = vmatpush1.bf16.msra.mxu0 %v14716_v21  ;;  %7712 = vmatprep.mubr.bf16.mxu0 %v15646_v51  ;;  %15777 = vst [vmem:[#allocation17_spill] sm:$0xff] %v14760_v25 }
 0x2e0   : > { %v14735_v61 = vpop.f32.mrf.mxu0  ;;  %v14737_v30 = vpop.f32.mrf.mxu1  ;;  %12228 = vmatmul.mubr.msk.bf16.vlgmr.msra.gmra.mxu1 %vm340_vm3, %v11421_v34  ;;  %11430 = vmatprep.subr.msk.bf16.mxu0 %vm344_vm2, %v14721_v15  ;;  %v7775_v34 = vsel %vm648_vm5, %v15773_v2, %v14627_v63 }
 0x2e1   : > { %12232 = vmatpush3.bf16.msra.mxu1 %v14726_v39  ;;  %12233 = vmatprep.mubr.msk.bf16.mxu1 %vm12540_vm0, %v15647_v27  ;;  %v11425_v39 = vld [vmem:[%s15522_s2 + $0x50] sm:$0xf]  ;;  %v14757_v15 = vpop.permute.xlu1 %7987  ;;  %v14768_v14 = vsel %vm344_vm2, %v7775_v34, 0  ;;  %v15781_v34 = vld [vmem:[#allocation34_spill] sm:$0xff] }
 0x2e2   : > { %v5367_v50 = vpop.f32.mrf.mxu0  ;;  %v12085_v21 = vpop.f32.mrf.mxu1  ;;  %12237 = vmatprep.subr.bf16.mxu1 %v15647_v27  ;;  %15780 = vst [vmem:[#allocation18_spill] sm:$0xff] %v14768_v14  ;;  %10770 = vrot.lane.b32.xlu1 %v14571_v52, %s12547_s11 }
 0x2e3   : > { %v15778_v50 = vld [vmem:[#allocation35_spill] sm:$0xff] }
 0x2e4   : > { %v5368_v42 = vpop.f32.mrf.mxu0  ;;  %v5407_v21 = vpop.f32.mrf.mxu1  ;;  %v14765_v13 = vsel %vm758_vm6, %v14662_v26, %v15778_v50 }
 0x2e5   : > { %15779 = vst [vmem:[#allocation16_spill] sm:$0xff] %v14765_v13  ;;  %v7881_v21 = vsel %vm758_vm6, %v15781_v34, %v14662_v26  ;;  %v11429_v26 = vld [vmem:[%s15522_s2 + $0x54] sm:$0xf] }
 0x2e6   : > { %v12086_v63 = vpop.f32.mrf.mxu1  ;;  %v14770_v2 = vpop.f32.mrf.mxu0  ;;  %11427 = vmatmul.mubr.msk.bf16.vlgmr.msra.gmra.mxu0 %vm340_vm3, %v11425_v39  ;;  %v14804_v34 = vsel %vm344_vm2, %v7881_v21, 0  ;;  %10874 = vrot.lane.b32.xlu1 %v14548_v5, %s12548_s12 }
 0x2e7   : > { %7803 = vmatpush1.bf16.msra.mxu0 %v14760_v25  ;;  %7820 = vmatprep.mubr.bf16.mxu0 %v15646_v51  ;;  %v14790_v63 = vpop.permute.xlu1 %8091 }
 0x2e8   : > { %v14777_v12 = vpop.f32.mrf.mxu0  ;;  %v14779_v42 = vpop.f32.mrf.mxu1  ;;  %12234 = vmatmul.mubr.msk.bf16.vlgmr.msra.gmra.mxu1 %vm340_vm3, %v11425_v39  ;;  %11434 = vmatprep.subr.msk.bf16.mxu0 %vm344_vm2, %v14765_v13  ;;  %v4775_v39 = vadd.f32 %v14525_v8, %v14505_v10  ;;  %v4776_v13 = vadd.f32 %v14532_v41, %v14512_v36  ;;  %v15782_v8 = vld [vmem:[#allocation37_spill] sm:$0xff] }
 0x2e9   : > { %12238 = vmatpush3.bf16.msra.mxu1 %v14768_v14  ;;  %12239 = vmatprep.mubr.msk.bf16.mxu1 %vm12540_vm0, %v15647_v27  ;;  %v7883_v14 = vsel %vm758_vm6, %v15778_v50, %v14691_v29  ;;  %v14814_v29 = vsel %vm868_vm7, %v14723_v55, %v15782_v8 }
 0x2ea   : > { %v5475_v25 = vpop.f32.mrf.mxu0  ;;  %v12091_v18 = vpop.f32.mrf.mxu1  ;;  %12243 = vmatprep.subr.bf16.mxu1 %v15647_v27  ;;  %v4863_v10 = vadd.f32 %v14550_v32, %v4775_v39  ;;  %v14817_v50 = vsel %vm344_vm2, %v7883_v14, 0  ;;  %v4864_v36 = vadd.f32 %v14559_v4, %v4776_v13  ;;  %v15783_v39 = vld [vmem:[#allocation36_spill] sm:$0xff]  ;;  %v4979_v13 = vadd.f32 %v14590_v56, %v4865_v60  ;;  %10878 = vrot.lane.b32.xlu1 %v14571_v52, %s12548_s12 }
 0x2eb   : > { %v8096_v53 = vpop.permute.xlu1 %8095 }
 0x2ec   : > { %v5476_v18 = vpop.f32.mrf.mxu0  ;;  %v5515_v25 = vpop.f32.mrf.mxu1  ;;  %v4977_v41 = vadd.f32 %v14579_v38, %v4863_v10  ;;  %v4978_v28 = vadd.f32 %v14588_v48, %v4864_v36  ;;  %v5088_v48 = vadd.f32 %v14613_v37, %v4979_v13  ;;  %v15785_v13 = vld [vmem:[#allocation38_spill] sm:$0xff] }
 0x2ed   : > { %v7989_v18 = vsel %vm868_vm7, %v15783_v39, %v14723_v55 }
 0x2ee   : > { %v12092_v21 = vpop.f32.mrf.mxu1  ;;  %v5579_v0 = vpop.f32.mrf.mxu0  ;;  %11431 = vmatmul.mubr.msk.bf16.vlgmr.msra.gmra.mxu0 %vm340_vm3, %v11429_v26  ;;  %v5086_v4 = vadd.f32 %v14604_v19, %v4977_v41  ;;  %v5087_v55 = vadd.f32 %v14611_v1, %v4978_v28  ;;  %v7991_v19 = vsel %vm868_vm7, %v15782_v8, %v14757_v15  ;;  %v14852_v25 = vsel %vm344_vm2, %v7989_v18, 0 }
 0x2ef   : > { %7911 = vmatpush1.bf16.msra.mxu0 %v14804_v34  ;;  %7928 = vmatprep.mubr.bf16.mxu0 %v15646_v51  ;;  %v5196_v1 = vadd.f32 %v14651_v54, %v5088_v48  ;;  %v8200_v15 = vpop.permute.xlu1 %8199  ;;  %v14863_v8 = vsel %vm344_vm2, %v7991_v19, 0 }
 0x2f0   : > { %v5581_v14 = vpop.f32.mrf.mxu0  ;;  %v5620_v32 = vpop.f32.mrf.mxu1  ;;  %12240 = vmatmul.mubr.msk.bf16.vlgmr.msra.gmra.mxu1 %vm340_vm3, %v11429_v26  ;;  %11438 = vmatprep.subr.msk.bf16.mxu0 %vm344_vm2, %v14814_v29  ;;  %v5194_v56 = vadd.f32 %v14638_v47, %v5086_v4  ;;  %v11433_v26 = vld [vmem:[%s15522_s2 + $0x58] sm:$0xf]  ;;  %v5195_v36 = vadd.f32 %v14649_v3, %v5087_v55  ;;  %v15784_v47 = vld [vmem:[#allocation39_spill] sm:$0xff]  ;;  %v8097_v4 = vsel %vm978_vm8, %v15785_v13, %v14790_v63 }
 0x2f1   : > { %12244 = vmatpush3.bf16.msra.mxu1 %v14817_v50  ;;  %12245 = vmatprep.mubr.msk.bf16.mxu1 %vm12540_vm0, %v15647_v27  ;;  %v14860_v60 = vsel %vm978_vm8, %v14790_v63, %v15784_v47  ;;  %v14894_v48 = vsel %vm344_vm2, %v8097_v4, 0 }
 0x2f2   : > { %v5583_v22 = vpop.f32.mrf.mxu0  ;;  %v12097_v38 = vpop.f32.mrf.mxu1  ;;  %12249 = vmatprep.subr.bf16.mxu1 %v15647_v27  ;;  %v5302_v37 = vadd.f32 %v14684_v17, %v5194_v56  ;;  %v5303_v3 = vadd.f32 %v14693_v33, %v5195_v36  ;;  %v5304_v17 = vadd.f32 %v14695_v11, %v5196_v1 }
 0x2f4   : > { %v5584_v10 = vpop.f32.mrf.mxu0  ;;  %v5623_v21 = vpop.f32.mrf.mxu1  ;;  %v5410_v54 = vadd.f32 %v14728_v49, %v5302_v37  ;;  %v5411_v52 = vadd.f32 %v14735_v61, %v5303_v3  ;;  %v5412_v33 = vadd.f32 %v14737_v30, %v5304_v17  ;;  %v8099_v61 = vsel %vm978_vm8, %v15784_v47, %v8096_v53  ;;  %v11437_v30 = vld [vmem:[%s15522_s2 + $0x5c] sm:$0xf] }
 0x2f6   : > { %v12098_v41 = vpop.f32.mrf.mxu1  ;;  %v5687_v39 = vpop.f32.mrf.mxu0  ;;  %11435 = vmatmul.mubr.msk.bf16.vlgmr.msra.gmra.mxu0 %vm340_vm3, %v11433_v26  ;;  %v5518_v11 = vadd.f32 %v14770_v2, %v5410_v54  ;;  %v5519_v63 = vadd.f32 %v14777_v12, %v5411_v52  ;;  %v5520_v38 = vadd.f32 %v14779_v42, %v5412_v33  ;;  %v15786_v12 = vld [vmem:[#allocation41_spill] sm:$0xff] }
 0x2f7   : > { %8019 = vmatpush1.bf16.msra.mxu0 %v14852_v25  ;;  %8036 = vmatprep.mubr.bf16.mxu0 %v15646_v51  ;;  %v8204_v2 = vpop.permute.xlu1 %8203  ;;  %v14898_v42 = vsel %vm1088_vm9, %v8200_v15, %v15786_v12  ;;  %v15787_v41 = vld [vmem:[#allocation40_spill] sm:$0xff] }
 0x2f8   : > { %v5689_v18 = vpop.f32.mrf.mxu0  ;;  %v5728_v28 = vpop.f32.mrf.mxu1  ;;  %12246 = vmatmul.mubr.msk.bf16.vlgmr.msra.gmra.mxu1 %vm340_vm3, %v11433_v26  ;;  %11442 = vmatprep.subr.msk.bf16.mxu0 %vm344_vm2, %v14860_v60  ;;  %v5626_v55 = vadd.f32 %v5579_v0, %v5518_v11  ;;  %v5627_v26 = vadd.f32 %v5581_v14, %v5519_v63  ;;  %v5628_v10 = vadd.f32 %v5620_v32, %v5520_v38  ;;  %v14901_v0 = vsel %vm344_vm2, %v8099_v61, 0  ;;  %v11441_v11 = vld [vmem:[%s15522_s2 + $0x60] sm:$0xf]  ;;  %v15788_v61 = vld [vmem:[#allocation43_spill] sm:$0xff] }
 0x2f9   : > { %12250 = vmatpush3.bf16.msra.mxu1 %v14863_v8  ;;  %12251 = vmatprep.mubr.msk.bf16.mxu1 %vm12540_vm0, %v15647_v27  ;;  %v8207_v33 = vsel %vm1088_vm9, %v15786_v12, %v8204_v2  ;;  %v15789_v12 = vld [vmem:[#allocation42_spill] sm:$0xff] }
 0x2fa   : > { %v5691_v49 = vpop.f32.mrf.mxu0  ;;  %v12103_v22 = vpop.f32.mrf.mxu1  ;;  %12255 = vmatprep.subr.bf16.mxu1 %v15647_v27  ;;  %v5734_v21 = vadd.f32 %v5687_v39, %v5626_v55  ;;  %v5735_v1 = vadd.f32 %v5689_v18, %v5627_v26  ;;  %v5736_v37 = vadd.f32 %v5728_v28, %v5628_v10  ;;  %v8205_v39 = vsel %vm1088_vm9, %v15787_v41, %v8200_v15 }
 0x2fb   : > { %v8308_v18 = vpop.permute.xlu1 %8307  ;;  %v14924_v49 = vsel %vm344_vm2, %v8205_v39, 0 }
 0x2fc   : > { %v5692_v56 = vpop.f32.mrf.mxu0  ;;  %v5731_v19 = vpop.f32.mrf.mxu1 }
 0x2fd   : > { %v14932_v56 = vsel %vm344_vm2, %v8207_v33, 0  ;;  %v11449_v33 = vld [vmem:[%s15522_s2 + $0x68] sm:$0xf] }
 0x2fe   : > { %v12104_v53 = vpop.f32.mrf.mxu1  ;;  %v5795_v36 = vpop.f32.mrf.mxu0  ;;  %11439 = vmatmul.mubr.msk.bf16.vlgmr.msra.gmra.mxu0 %vm340_vm3, %v11437_v30 }
 0x2ff   : > { %v5842_v47 = vadd.f32 %v5795_v36, %v5734_v21  ;;  %8127 = vmatpush1.bf16.msra.mxu0 %v14894_v48  ;;  %8144 = vmatprep.mubr.bf16.mxu0 %v15646_v51  ;;  %v8312_v26 = vpop.permute.xlu1 %8311  ;;  %v8313_v53 = vsel %vm1198_vm10, %v15789_v12, %v8308_v18 }
 0x300   : > { %v5797_v14 = vpop.f32.mrf.mxu0  ;;  %v5836_v32 = vpop.f32.mrf.mxu1  ;;  %12252 = vmatmul.mubr.msk.bf16.vlgmr.msra.gmra.mxu1 %vm340_vm3, %v11437_v30  ;;  %11446 = vmatprep.subr.msk.bf16.mxu0 %vm344_vm2, %v14898_v42  ;;  %v14929_v30 = vsel %vm1198_vm10, %v8308_v18, %v15788_v61 }
 0x301   : > { %v5845_v3 = vadd.f32 %v5842_v47, %v14252_v7  ;;  %v5843_v17 = vadd.f32 %v5797_v14, %v5735_v1  ;;  %v5844_v54 = vadd.f32 %v5836_v32, %v5736_v37  ;;  %12256 = vmatpush3.bf16.msra.mxu1 %v14901_v0  ;;  %12257 = vmatprep.mubr.msk.bf16.mxu1 %vm12540_vm0, %v15647_v27  ;;  %v11445_v47 = vld [vmem:[%s15522_s2 + $0x64] sm:$0xf]  ;;  %v14954_v14 = vsel %vm344_vm2, %v8313_v53, 0 }
 0x302   : > { %v5799_v28 = vpop.f32.mrf.mxu0  ;;  %v12109_v13 = vpop.f32.mrf.mxu1  ;;  %12261 = vmatprep.subr.bf16.mxu1 %v15647_v27  ;;  %v8315_v37 = vsel %vm1198_vm10, %v15788_v61, %v8312_v26 }
 0x303   : > { %v5848_v4 = vmax.f32 %v5845_v3, 0.0  ;;  %v5846_v15 = vadd.f32 %v5843_v17, %v14252_v7  ;;  %v5847_v52 = vadd.f32 %v5844_v54, %v14252_v7  ;;  %v14957_v39 = vsel %vm344_vm2, %v8315_v37, 0 }
 0x304   : > { %v5800_v22 = vpop.f32.mrf.mxu0  ;;  %v5839_v63 = vpop.f32.mrf.mxu1 }
 0x305   : > { %11343 = vst [vmem:[%s14276_s14 + $0x18] sm:$0xff] %v5848_v4  ;;  %v5849_v38 = vmax.f32 %v5846_v15, 0.0  ;;  %v5850_v55 = vmax.f32 %v5847_v52, 0.0 }
 0x306   : > { %v12110_v2 = vpop.f32.mrf.mxu1  ;;  %v5894_v19 = vpop.f32.mrf.mxu0  ;;  %11443 = vmatmul.mubr.msk.bf16.vlgmr.msra.gmra.mxu0 %vm340_vm3, %v11441_v11 }
 0x307   : > { %11344 = vst [vmem:[%s14276_s14 + $0x20] sm:$0xff] %v5849_v38  ;;  %11345 = vst [vmem:[%s14276_s14 + $0x28] sm:$0xff] %v5850_v55  ;;  %8235 = vmatpush1.bf16.msra.mxu0 %v14924_v49  ;;  %8252 = vmatprep.mubr.bf16.mxu0 %v15646_v51 }
 0x308   : > { %v5896_v10 = vpop.f32.mrf.mxu0  ;;  %v5935_v21 = vpop.f32.mrf.mxu1  ;;  %12258 = vmatmul.mubr.msk.bf16.vlgmr.msra.gmra.mxu1 %vm340_vm3, %v11441_v11  ;;  %11450 = vmatprep.subr.msk.bf16.mxu0 %vm344_vm2, %v14929_v30 }
 0x309   : > { %12262 = vmatpush3.bf16.msra.mxu1 %v14932_v56  ;;  %12263 = vmatprep.mubr.msk.bf16.mxu1 %vm12540_vm0, %v15647_v27 }
 0x30a   : > { %v5898_v36 = vpop.f32.mrf.mxu0  ;;  %v12115_v1 = vpop.f32.mrf.mxu1  ;;  %12267 = vmatprep.subr.bf16.mxu1 %v15647_v27 }
 0x30c   : > { %v5899_v32 = vpop.f32.mrf.mxu0  ;;  %v5938_v41 = vpop.f32.mrf.mxu1 }
 0x30e   : > { %v12116_v3 = vpop.f32.mrf.mxu1  ;;  %v5978_v17 = vpop.f32.mrf.mxu0  ;;  %11447 = vmatmul.mubr.msk.bf16.vlgmr.msra.gmra.mxu0 %vm340_vm3, %v11445_v47 }
 0x30f   : > { %v5979_v54 = vadd.f32 %v5978_v17, %v5894_v19  ;;  %8343 = vmatpush1.bf16.msra.mxu0 %v14954_v14  ;;  %8360 = vmatprep.mubr.bf16.mxu0 %v15646_v51 }
 0x310   : > { %11457 = vmatprep.subr.msk.bf16.mxu0 %vm344_vm2, %v15747_v9  ;;  %v5980_v18 = vpop.f32.mrf.mxu0  ;;  %v6019_v28 = vpop.f32.mrf.mxu1  ;;  %12264 = vmatmul.mubr.msk.bf16.vlgmr.msra.gmra.mxu1 %vm340_vm3, %v11445_v47 }
 0x311   : > { %v5981_v13 = vadd.f32 %v5980_v18, %v5896_v10  ;;  %v6020_v4 = vadd.f32 %v6019_v28, %v5935_v21  ;;  %12268 = vmatpush3.bf16.msra.mxu1 %v14957_v39  ;;  %12269 = vmatprep.mubr.msk.bf16.mxu1 %vm12540_vm0, %v15647_v27 }
 0x312   : > { %v5982_v15 = vpop.f32.mrf.mxu0  ;;  %v12121_v52 = vpop.f32.mrf.mxu1  ;;  %12273 = vmatprep.subr.bf16.mxu1 %v15647_v27 }
 0x314   : > { %v5983_v9 = vpop.f32.mrf.mxu0  ;;  %v6022_v11 = vpop.f32.mrf.mxu1 }
 0x316   : > { %v12122_v22 = vpop.f32.mrf.mxu1  ;;  %v6063_v63 = vpop.f32.mrf.mxu0  ;;  %11451 = vmatmul.mubr.msk.bf16.vlgmr.msra.gmra.mxu0 %vm340_vm3, %v11449_v33 }
 0x317   : > { %v6110_v38 = vadd.f32 %v6063_v63, %v5979_v54  ;;  %8442 = vmatpush1.bf16.msra.mxu0 %v15749_v45  ;;  %8459 = vmatprep.mubr.bf16.mxu0 %v15646_v51  ;;  %v11456_v45 = vld [vmem:[%s15522_s2 + $0x4] sm:$0xf] }
 0x318   : > { %v6065_v55 = vpop.f32.mrf.mxu0  ;;  %v6104_v61 = vpop.f32.mrf.mxu1  ;;  %12270 = vmatmul.mubr.msk.bf16.vlgmr.msra.gmra.mxu1 %vm340_vm3, %v11449_v33  ;;  %11460 = vmatprep.subr.msk.bf16.mxu0 %vm344_vm2, %v15744_v24 }
 0x319   : > { %v6111_v2 = vadd.f32 %v6065_v55, %v5981_v13  ;;  %v6112_v19 = vadd.f32 %v6104_v61, %v6020_v4  ;;  %12274 = vmatpush3.bf16.msra.mxu1 %v15751_v31  ;;  %12275 = vmatprep.mubr.msk.bf16.mxu1 %vm12540_vm0, %v15647_v27 }
 0x31a   : > { %v6067_v26 = vpop.f32.mrf.mxu0  ;;  %v12127_v10 = vpop.f32.mrf.mxu1  ;;  %12279 = vmatprep.subr.bf16.mxu1 %v15647_v27 }
 0x31c   : > { %v6068_v21 = vpop.f32.mrf.mxu0  ;;  %v6107_v12 = vpop.f32.mrf.mxu1 }
 0x31e   : > { %v12128_v53 = vpop.f32.mrf.mxu1  ;;  %v6151_v36 = vpop.f32.mrf.mxu0  ;;  %11458 = vmatmul.mubr.msk.bf16.vlgmr.msra.gmra.mxu0 %vm340_vm3, %v11456_v45 }
 0x31f   : > { %v6198_v24 = vadd.f32 %v6151_v36, %v6110_v38  ;;  %8526 = vmatpush1.bf16.msra.mxu0 %v15746_v43  ;;  %8543 = vmatprep.mubr.bf16.mxu0 %v15646_v51  ;;  %v8422_v43 = vld [vmem:[%s15522_s2] sm:$0xf] }
 0x320   : > { %11464 = vmatprep.subr.msk.bf16.mxu0 %vm344_vm2, %v15750_v16  ;;  %v6153_v31 = vpop.f32.mrf.mxu0  ;;  %v6192_v1 = vpop.f32.mrf.mxu1  ;;  %12276 = vmatmul.mubr.msk.bf16.vlgmr.msra.gmra.mxu1 %vm340_vm3, %v11456_v45 }
 0x321   : > { %v6199_v37 = vadd.f32 %v6153_v31, %v6111_v2  ;;  %v6200_v47 = vadd.f32 %v6192_v1, %v6112_v19  ;;  %12280 = vmatpush3.bf16.msra.mxu1 %v15748_v35  ;;  %12281 = vmatprep.mubr.msk.bf16.mxu1 %vm12540_vm0, %v15647_v27 }
 0x322   : > { %v6155_v32 = vpop.f32.mrf.mxu0  ;;  %v12133_v41 = vpop.f32.mrf.mxu1  ;;  %12285 = vmatprep.subr.bf16.mxu1 %v15647_v27 }
 0x324   : > { %v6156_v16 = vpop.f32.mrf.mxu0  ;;  %v6195_v3 = vpop.f32.mrf.mxu1 }
 0x325   : > { %v15791_v3 = vld [vmem:[#allocation68_spill] sm:$0xff] }
 0x326   : > { %v12134_v17 = vpop.f32.mrf.mxu1  ;;  %v6239_v54 = vpop.f32.mrf.mxu0  ;;  %11461 = vmatmul.mubr.msk.bf16.vlgmr.msra.gmra.mxu0 %vm340_vm3, %v8422_v43 }
 0x327   : > { %v6286_v18 = vadd.f32 %v6239_v54, %v6198_v24  ;;  %8611 = vmatpush1.bf16.msra.mxu0 %v15752_v6  ;;  %8628 = vmatprep.mubr.bf16.mxu0 %v15646_v51  ;;  %v11463_v6 = vld [vmem:[%s15522_s2 + $0x8] sm:$0xf] }
 0x328   : > { %11468 = vmatprep.subr.msk.bf16.mxu0 %vm344_vm2, %v15753_v23  ;;  %v6241_v35 = vpop.f32.mrf.mxu0  ;;  %v6280_v28 = vpop.f32.mrf.mxu1  ;;  %12282 = vmatmul.mubr.msk.bf16.vlgmr.msra.gmra.mxu1 %vm340_vm3, %v8422_v43 }
 0x329   : > { %v6287_v13 = vadd.f32 %v6241_v35, %v6199_v37  ;;  %v6288_v4 = vadd.f32 %v6280_v28, %v6200_v47  ;;  %12286 = vmatpush3.bf16.msra.mxu1 %v15754_v58  ;;  %12287 = vmatprep.mubr.msk.bf16.mxu1 %vm12540_vm0, %v15647_v27 }
 0x32a   : > { %v6243_v15 = vpop.f32.mrf.mxu0  ;;  %v12139_v52 = vpop.f32.mrf.mxu1  ;;  %12291 = vmatprep.subr.bf16.mxu1 %v15647_v27 }
 0x32b   : > { %v15792_v15 = vld [vmem:[#allocation70_spill] sm:$0xff]  ;;  %v15793_v52 = vld [vmem:[#allocation71_spill] sm:$0xff] }
 0x32c   : > { %v6244_v23 = vpop.f32.mrf.mxu0  ;;  %v6283_v33 = vpop.f32.mrf.mxu1 }
 0x32e   : > { %v12140_v9 = vpop.f32.mrf.mxu1  ;;  %v6327_v11 = vpop.f32.mrf.mxu0  ;;  %11465 = vmatmul.mubr.msk.bf16.vlgmr.msra.gmra.mxu0 %vm340_vm3, %v11463_v6 }
 0x32f   : > { %v6374_v22 = vadd.f32 %v6327_v11, %v6286_v18  ;;  %8699 = vmatpush1.bf16.msra.mxu0 %v15755_v57  ;;  %8716 = vmatprep.mubr.bf16.mxu0 %v15646_v51  ;;  %v11467_v57 = vld [vmem:[%s15522_s2 + $0xc] sm:$0xf]  ;;  %v15794_v11 = vld [vmem:[#allocation72_spill] sm:$0xff] }
 0x330   : > { %11472 = vmatprep.subr.msk.bf16.mxu0 %vm344_vm2, %v15756_v46  ;;  %v6329_v58 = vpop.f32.mrf.mxu0  ;;  %v6368_v63 = vpop.f32.mrf.mxu1  ;;  %12288 = vmatmul.mubr.msk.bf16.vlgmr.msra.gmra.mxu1 %vm340_vm3, %v11463_v6 }
 0x331   : > { %v6375_v38 = vadd.f32 %v6329_v58, %v6287_v13  ;;  %v6376_v55 = vadd.f32 %v6368_v63, %v6288_v4  ;;  %12292 = vmatpush3.bf16.msra.mxu1 %v15757_v44  ;;  %12293 = vmatprep.mubr.msk.bf16.mxu1 %vm12540_vm0, %v15647_v27  ;;  %v11479_v63 = vld [vmem:[%s15522_s2 + $0x18] sm:$0xf] }
 0x332   : > { %v6331_v61 = vpop.f32.mrf.mxu0  ;;  %v12145_v2 = vpop.f32.mrf.mxu1  ;;  %12297 = vmatprep.subr.bf16.mxu1 %v15647_v27 }
 0x334   : > { %v6332_v46 = vpop.f32.mrf.mxu0  ;;  %v6371_v19 = vpop.f32.mrf.mxu1 }
 0x335   : > { %v15795_v46 = vld [vmem:[#allocation73_spill] sm:$0xff]  ;;  %v15796_v19 = vld [vmem:[#allocation74_spill] sm:$0xff] }
 0x336   : > { %v12146_v26 = vpop.f32.mrf.mxu1  ;;  %v6415_v10 = vpop.f32.mrf.mxu0  ;;  %11469 = vmatmul.mubr.msk.bf16.vlgmr.msra.gmra.mxu0 %vm340_vm3, %v11467_v57 }
 0x337   : > { %v6462_v45 = vadd.f32 %v6415_v10, %v6374_v22  ;;  %8787 = vmatpush1.bf16.msra.mxu0 %v14139_v62  ;;  %8804 = vmatprep.mubr.bf16.mxu0 %v15646_v51  ;;  %v11471_v62 = vld [vmem:[%s15522_s2 + $0x10] sm:$0xf] }
 0x338   : > { %11476 = vmatprep.subr.msk.bf16.mxu0 %vm344_vm2, %v14149_v20  ;;  %v6417_v44 = vpop.f32.mrf.mxu0  ;;  %v6456_v21 = vpop.f32.mrf.mxu1  ;;  %12294 = vmatmul.mubr.msk.bf16.vlgmr.msra.gmra.mxu1 %vm340_vm3, %v11467_v57 }
 0x339   : > { %v6463_v12 = vadd.f32 %v6417_v44, %v6375_v38  ;;  %v6464_v53 = vadd.f32 %v6456_v21, %v6376_v55  ;;  %12298 = vmatpush3.bf16.msra.mxu1 %v14152_v59  ;;  %12299 = vmatprep.mubr.msk.bf16.mxu1 %vm12540_vm0, %v15647_v27  ;;  %v15790_v59 = vld [vmem:[#allocation67_spill] sm:$0xff] }
 0x33a   : > { %v6419_v36 = vpop.f32.mrf.mxu0  ;;  %v12151_v24 = vpop.f32.mrf.mxu1  ;;  %12303 = vmatprep.subr.bf16.mxu1 %v15647_v27  ;;  %v15797_v21 = vld [vmem:[#allocation75_spill] sm:$0xff] }
 0x33b   : > { %v11483_v36 = vld [vmem:[%s15522_s2 + $0x1c] sm:$0xf] }
 0x33c   : > { %v6420_v20 = vpop.f32.mrf.mxu0  ;;  %v6459_v31 = vpop.f32.mrf.mxu1 }
 0x33e   : > { %v12152_v1 = vpop.f32.mrf.mxu1  ;;  %v6503_v37 = vpop.f32.mrf.mxu0  ;;  %11473 = vmatmul.mubr.msk.bf16.vlgmr.msra.gmra.mxu0 %vm340_vm3, %v11471_v62 }
 0x33f   : > { %v6550_v47 = vadd.f32 %v6503_v37, %v6462_v45  ;;  %8875 = vmatpush1.bf16.msra.mxu0 %v14196_v40  ;;  %8892 = vmatprep.mubr.bf16.mxu0 %v15646_v51  ;;  %v11475_v40 = vld [vmem:[%s15522_s2 + $0x14] sm:$0xf] }
 0x340   : > { %11480 = vmatprep.subr.msk.bf16.mxu0 %vm344_vm2, %v15790_v59  ;;  %v6505_v32 = vpop.f32.mrf.mxu0  ;;  %v6544_v41 = vpop.f32.mrf.mxu1  ;;  %12300 = vmatmul.mubr.msk.bf16.vlgmr.msra.gmra.mxu1 %vm340_vm3, %v11471_v62  ;;  %v15798_v37 = vld [vmem:[#allocation76_spill] sm:$0xff] }
 0x341   : > { %v6551_v43 = vadd.f32 %v6505_v32, %v6463_v12  ;;  %v6552_v16 = vadd.f32 %v6544_v41, %v6464_v53  ;;  %12304 = vmatpush3.bf16.msra.mxu1 %v15791_v3  ;;  %12305 = vmatprep.mubr.msk.bf16.mxu1 %vm12540_vm0, %v15647_v27  ;;  %v15799_v32 = vld [vmem:[#allocation45_spill] sm:$0xff] }
 0x342   : > { %v6507_v17 = vpop.f32.mrf.mxu0  ;;  %v12157_v54 = vpop.f32.mrf.mxu1  ;;  %12309 = vmatprep.subr.bf16.mxu1 %v15647_v27 }
 0x343   : > { %v11487_v54 = vld [vmem:[%s15522_s2 + $0x20] sm:$0xf] }
 0x344   : > { %v6508_v18 = vpop.f32.mrf.mxu0  ;;  %v6547_v35 = vpop.f32.mrf.mxu1 }
 0x346   : > { %v12158_v28 = vpop.f32.mrf.mxu1  ;;  %v6591_v13 = vpop.f32.mrf.mxu0  ;;  %11477 = vmatmul.mubr.msk.bf16.vlgmr.msra.gmra.mxu0 %vm340_vm3, %v11475_v40 }
 0x347   : > { %v6638_v4 = vadd.f32 %v6591_v13, %v6550_v47  ;;  %8963 = vmatpush1.bf16.msra.mxu0 %v15792_v15  ;;  %8980 = vmatprep.mubr.bf16.mxu0 %v15646_v51  ;;  %v15802_v15 = vld [vmem:[#allocation7_spill] sm:$0xff] }
 0x348   : > { %11484 = vmatprep.subr.msk.bf16.mxu0 %vm344_vm2, %v15793_v52  ;;  %v6593_v6 = vpop.f32.mrf.mxu0  ;;  %v6632_v23 = vpop.f32.mrf.mxu1  ;;  %12306 = vmatmul.mubr.msk.bf16.vlgmr.msra.gmra.mxu1 %vm340_vm3, %v11475_v40 }
 0x349   : > { %v6639_v33 = vadd.f32 %v6593_v6, %v6551_v43  ;;  %v6640_v9 = vadd.f32 %v6632_v23, %v6552_v16  ;;  %12310 = vmatpush3.bf16.msra.mxu1 %v15794_v11  ;;  %12311 = vmatprep.mubr.msk.bf16.mxu1 %vm12540_vm0, %v15647_v27  ;;  %v15800_v16 = vld [vmem:[#allocation77_spill] sm:$0xff] }
 0x34a   : > { %v6595_v22 = vpop.f32.mrf.mxu0  ;;  %v12163_v58 = vpop.f32.mrf.mxu1  ;;  %12315 = vmatprep.subr.bf16.mxu1 %v15647_v27 }
 0x34b   : > { %v11491_v58 = vld [vmem:[%s15522_s2 + $0x24] sm:$0xf] }
 0x34c   : > { %v6596_v38 = vpop.f32.mrf.mxu0  ;;  %v6635_v55 = vpop.f32.mrf.mxu1 }
 0x34e   : > { %v12164_v61 = vpop.f32.mrf.mxu1  ;;  %v6679_v2 = vpop.f32.mrf.mxu0  ;;  %11481 = vmatmul.mubr.msk.bf16.vlgmr.msra.gmra.mxu0 %vm340_vm3, %v11479_v63 }
 0x34f   : > { %v6726_v57 = vadd.f32 %v6679_v2, %v6638_v4  ;;  %9051 = vmatpush1.bf16.msra.mxu0 %v15795_v46  ;;  %9068 = vmatprep.mubr.bf16.mxu0 %v15646_v51  ;;  %v15801_v4 = vld [vmem:[#allocation8_spill] sm:$0xff]  ;;  %v15805_v46 = vld [vmem:[#allocation10_spill] sm:$0xff] }
 0x350   : > { %11488 = vmatprep.subr.msk.bf16.mxu0 %vm344_vm2, %v15796_v19  ;;  %v6681_v26 = vpop.f32.mrf.mxu0  ;;  %v6720_v10 = vpop.f32.mrf.mxu1  ;;  %12312 = vmatmul.mubr.msk.bf16.vlgmr.msra.gmra.mxu1 %vm340_vm3, %v11479_v63 }
 0x351   : > { %v6727_v45 = vadd.f32 %v6681_v26, %v6639_v33  ;;  %v6728_v44 = vadd.f32 %v6720_v10, %v6640_v9  ;;  %12316 = vmatpush3.bf16.msra.mxu1 %v15797_v21  ;;  %12317 = vmatprep.mubr.msk.bf16.mxu1 %vm12540_vm0, %v15647_v27  ;;  %v15803_v9 = vld [vmem:[#allocation9_spill] sm:$0xff] }
 0x352   : > { %v6683_v12 = vpop.f32.mrf.mxu0  ;;  %v12169_v53 = vpop.f32.mrf.mxu1  ;;  %12321 = vmatprep.subr.bf16.mxu1 %v15647_v27 }
 0x353   : > { %v11495_v53 = vld [vmem:[%s15522_s2 + $0x28] sm:$0xf] }
 0x354   : > { %v6684_v24 = vpop.f32.mrf.mxu0  ;;  %v6723_v62 = vpop.f32.mrf.mxu1 }
 0x356   : > { %v12170_v20 = vpop.f32.mrf.mxu1  ;;  %v6767_v31 = vpop.f32.mrf.mxu0  ;;  %11485 = vmatmul.mubr.msk.bf16.vlgmr.msra.gmra.mxu0 %vm340_vm3, %v11483_v36 }
 0x357   : > { %v6814_v1 = vadd.f32 %v6767_v31, %v6726_v57  ;;  %9139 = vmatpush1.bf16.msra.mxu0 %v15798_v37  ;;  %9156 = vmatprep.mubr.bf16.mxu0 %v15646_v51  ;;  %v15804_v57 = vld [vmem:[#allocation11_spill] sm:$0xff]  ;;  %v15808_v37 = vld [vmem:[#allocation13_spill] sm:$0xff] }
 0x358   : > { %v6769_v47 = vpop.f32.mrf.mxu0  ;;  %v6808_v59 = vpop.f32.mrf.mxu1  ;;  %12318 = vmatmul.mubr.msk.bf16.vlgmr.msra.gmra.mxu1 %vm340_vm3, %v11483_v36  ;;  %11492 = vmatprep.subr.msk.bf16.mxu0 %vm344_vm2, %v15799_v32 }
 0x359   : > { %v6815_v41 = vadd.f32 %v6769_v47, %v6727_v45  ;;  %v6816_v43 = vadd.f32 %v6808_v59, %v6728_v44  ;;  %12322 = vmatpush3.bf16.msra.mxu1 %v15800_v16  ;;  %12323 = vmatprep.mubr.msk.bf16.mxu1 %vm12540_vm0, %v15647_v27  ;;  %v15806_v44 = vld [vmem:[#allocation12_spill] sm:$0xff] }
 0x35a   : > { %v6771_v3 = vpop.f32.mrf.mxu0  ;;  %v12175_v17 = vpop.f32.mrf.mxu1  ;;  %12327 = vmatprep.subr.bf16.mxu1 %v15647_v27 }
 0x35b   : > { %v11499_v17 = vld [vmem:[%s15522_s2 + $0x2c] sm:$0xf] }
 0x35c   : > { %v6772_v40 = vpop.f32.mrf.mxu0  ;;  %v6811_v18 = vpop.f32.mrf.mxu1 }
 0x35e   : > { %v12176_v35 = vpop.f32.mrf.mxu1  ;;  %v6855_v28 = vpop.f32.mrf.mxu0  ;;  %11489 = vmatmul.mubr.msk.bf16.vlgmr.msra.gmra.mxu0 %vm340_vm3, %v11487_v54 }
 0x35f   : > { %v6902_v13 = vadd.f32 %v6855_v28, %v6814_v1  ;;  %9227 = vmatpush1.bf16.msra.mxu0 %v15801_v4  ;;  %9244 = vmatprep.mubr.bf16.mxu0 %v15646_v51  ;;  %v15807_v1 = vld [vmem:[#allocation14_spill] sm:$0xff]  ;;  %v15811_v4 = vld [vmem:[#allocation16_spill] sm:$0xff] }
 0x360   : > { %11496 = vmatprep.subr.msk.bf16.mxu0 %vm344_vm2, %v15802_v15  ;;  %v6857_v52 = vpop.f32.mrf.mxu0  ;;  %v6896_v6 = vpop.f32.mrf.mxu1  ;;  %12324 = vmatmul.mubr.msk.bf16.vlgmr.msra.gmra.mxu1 %vm340_vm3, %v11487_v54 }
 0x361   : > { %v6903_v23 = vadd.f32 %v6857_v52, %v6815_v41  ;;  %v6904_v33 = vadd.f32 %v6896_v6, %v6816_v43  ;;  %12328 = vmatpush3.bf16.msra.mxu1 %v15803_v9  ;;  %12329 = vmatprep.mubr.msk.bf16.mxu1 %vm12540_vm0, %v15647_v27  ;;  %v15809_v43 = vld [vmem:[#allocation15_spill] sm:$0xff] }
 0x362   : > { %v6859_v11 = vpop.f32.mrf.mxu0  ;;  %v12181_v22 = vpop.f32.mrf.mxu1  ;;  %12333 = vmatprep.subr.bf16.mxu1 %v15647_v27 }
 0x363   : > { %v11503_v22 = vld [vmem:[%s15522_s2 + $0x30] sm:$0xf] }
 0x364   : > { %v6860_v63 = vpop.f32.mrf.mxu0  ;;  %v6899_v38 = vpop.f32.mrf.mxu1 }
 0x366   : > { %v12182_v55 = vpop.f32.mrf.mxu1  ;;  %v6943_v61 = vpop.f32.mrf.mxu0  ;;  %11493 = vmatmul.mubr.msk.bf16.vlgmr.msra.gmra.mxu0 %vm340_vm3, %v11491_v58 }
 0x367   : > { %v6990_v2 = vadd.f32 %v6943_v61, %v6902_v13  ;;  %9315 = vmatpush1.bf16.msra.mxu0 %v15804_v57  ;;  %9332 = vmatprep.mubr.bf16.mxu0 %v15646_v51  ;;  %v15810_v13 = vld [vmem:[#allocation17_spill] sm:$0xff] }
 0x368   : > { %11500 = vmatprep.subr.msk.bf16.mxu0 %vm344_vm2, %v15805_v46  ;;  %v6945_v19 = vpop.f32.mrf.mxu0  ;;  %v6984_v26 = vpop.f32.mrf.mxu1  ;;  %12330 = vmatmul.mubr.msk.bf16.vlgmr.msra.gmra.mxu1 %vm340_vm3, %v11491_v58 }
 0x369   : > { %v6991_v10 = vadd.f32 %v6945_v19, %v6903_v23  ;;  %v6992_v45 = vadd.f32 %v6984_v26, %v6904_v33  ;;  %12334 = vmatpush3.bf16.msra.mxu1 %v15806_v44  ;;  %12335 = vmatprep.mubr.msk.bf16.mxu1 %vm12540_vm0, %v15647_v27  ;;  %v15812_v33 = vld [vmem:[#allocation18_spill] sm:$0xff]  ;;  %v15160_v44 = vpop.permute.xlu1 %10118 }
 0x36a   : > { %v6947_v21 = vpop.f32.mrf.mxu0  ;;  %v12187_v12 = vpop.f32.mrf.mxu1  ;;  %12339 = vmatprep.subr.bf16.mxu1 %v15647_v27 }
 0x36c   : > { %v6948_v36 = vpop.f32.mrf.mxu0  ;;  %v6987_v24 = vpop.f32.mrf.mxu1 }
 0x36e   : > { %v12188_v62 = vpop.f32.mrf.mxu1  ;;  %v7031_v20 = vpop.f32.mrf.mxu0  ;;  %11497 = vmatmul.mubr.msk.bf16.vlgmr.msra.gmra.mxu0 %vm340_vm3, %v11495_v53 }
 0x36f   : > { %v7078_v31 = vadd.f32 %v7031_v20, %v6990_v2  ;;  %9403 = vmatpush1.bf16.msra.mxu0 %v15807_v1  ;;  %9420 = vmatprep.mubr.bf16.mxu0 %v15646_v51 }
 0x370   : > { %11504 = vmatprep.subr.msk.bf16.mxu0 %vm344_vm2, %v15808_v37  ;;  %v7033_v47 = vpop.f32.mrf.mxu0  ;;  %v7072_v59 = vpop.f32.mrf.mxu1  ;;  %12336 = vmatmul.mubr.msk.bf16.vlgmr.msra.gmra.mxu1 %vm340_vm3, %v11495_v53 }
 0x371   : > { %v7079_v32 = vadd.f32 %v7033_v47, %v6991_v10  ;;  %v7080_v41 = vadd.f32 %v7072_v59, %v6992_v45  ;;  %12340 = vmatpush3.bf16.msra.mxu1 %v15809_v43  ;;  %12341 = vmatprep.mubr.msk.bf16.mxu1 %vm12540_vm0, %v15647_v27 }
 0x372   : > { %v7035_v16 = vpop.f32.mrf.mxu0  ;;  %v12193_v3 = vpop.f32.mrf.mxu1  ;;  %12345 = vmatprep.subr.bf16.mxu1 %v15647_v27 }
 0x374   : > { %v7036_v54 = vpop.f32.mrf.mxu0  ;;  %v7075_v40 = vpop.f32.mrf.mxu1 }
 0x375   : > { %v11519_v40 = vld [vmem:[%s15522_s2 + $0x40] sm:$0xf] }
 0x376   : > { %v12194_v18 = vpop.f32.mrf.mxu1  ;;  %v7119_v35 = vpop.f32.mrf.mxu0  ;;  %11501 = vmatmul.mubr.msk.bf16.vlgmr.msra.gmra.mxu0 %vm340_vm3, %v11499_v17 }
 0x377   : > { %v7166_v28 = vadd.f32 %v7119_v35, %v7078_v31  ;;  %9491 = vmatpush1.bf16.msra.mxu0 %v15810_v13  ;;  %9508 = vmatprep.mubr.bf16.mxu0 %v15646_v51 }
 0x378   : > { %11508 = vmatprep.subr.msk.bf16.mxu0 %vm344_vm2, %v15811_v4  ;;  %v7121_v15 = vpop.f32.mrf.mxu0  ;;  %v7160_v52 = vpop.f32.mrf.mxu1  ;;  %12342 = vmatmul.mubr.msk.bf16.vlgmr.msra.gmra.mxu1 %vm340_vm3, %v11499_v17 }
 0x379   : > { %v7167_v6 = vadd.f32 %v7121_v15, %v7079_v32  ;;  %v7168_v23 = vadd.f32 %v7160_v52, %v7080_v41  ;;  %12346 = vmatpush3.bf16.msra.mxu1 %v15812_v33  ;;  %12347 = vmatprep.mubr.msk.bf16.mxu1 %vm12540_vm0, %v15647_v27 }
 0x37a   : > { %v7123_v9 = vpop.f32.mrf.mxu0  ;;  %v12199_v11 = vpop.f32.mrf.mxu1  ;;  %12351 = vmatprep.subr.bf16.mxu1 %v15647_v27 }
 0x37b   : > { %v15813_v9 = vld [vmem:[#allocation26_spill] sm:$0xff] }
 0x37c   : > { %v7124_v58 = vpop.f32.mrf.mxu0  ;;  %v7163_v63 = vpop.f32.mrf.mxu1  ;;  %v15814_v11 = vld [vmem:[#allocation46_spill] sm:$0xff] }
 0x37d   : > { %v15815_v63 = vld [vmem:[#allocation27_spill] sm:$0xff] }
 0x37e   : > { %v12200_v38 = vpop.f32.mrf.mxu1  ;;  %v7207_v55 = vpop.f32.mrf.mxu0  ;;  %11505 = vmatmul.mubr.msk.bf16.vlgmr.msra.gmra.mxu0 %vm340_vm3, %v11503_v22 }
 0x37f   : > { %v15142_v61 = vadd.f32 %v7207_v55, %v7166_v28  ;;  %9579 = vmatpush1.bf16.msra.mxu0 %v14804_v34  ;;  %9596 = vmatprep.mubr.bf16.mxu0 %v15646_v51  ;;  %v10028_v38 = vsel %vm344_vm2, %v15815_v63, 0 }
 0x380   : > { %11512 = vmatprep.subr.msk.bf16.mxu0 %vm344_vm2, %v14814_v29  ;;  %v7209_v2 = vpop.f32.mrf.mxu0  ;;  %v7248_v57 = vpop.f32.mrf.mxu1  ;;  %12348 = vmatmul.mubr.msk.bf16.vlgmr.msra.gmra.mxu1 %vm340_vm3, %v11503_v22  ;;  %v11507_v29 = vld [vmem:[%s15522_s2 + $0x34] sm:$0xf] }
 0x381   : > { %v15149_v46 = vadd.f32 %v7209_v2, %v7167_v6  ;;  %v15151_v19 = vadd.f32 %v7248_v57, %v7168_v23  ;;  %12352 = vmatpush3.bf16.msra.mxu1 %v14817_v50  ;;  %12353 = vmatprep.mubr.msk.bf16.mxu1 %vm12540_vm0, %v15647_v27  ;;  %v15816_v57 = vld [vmem:[#allocation44_spill] sm:$0xff] }
 0x382   : > { %v7211_v26 = vpop.f32.mrf.mxu0  ;;  %v12205_v34 = vpop.f32.mrf.mxu1  ;;  %12357 = vmatprep.subr.bf16.mxu1 %v15647_v27 }
 0x383   : > { %v10124_v26 = vsel %vm336_vm1, %v15816_v57, %v15160_v44 }
 0x384   : > { %v7212_v10 = vpop.f32.mrf.mxu0  ;;  %v7251_v45 = vpop.f32.mrf.mxu1 }
 0x386   : > { %v12206_v21 = vpop.f32.mrf.mxu1  ;;  %v15162_v12 = vpop.f32.mrf.mxu0  ;;  %11509 = vmatmul.mubr.msk.bf16.vlgmr.msra.gmra.mxu0 %vm340_vm3, %v11507_v29 }
 0x387   : > { %9667 = vmatpush1.bf16.msra.mxu0 %v14852_v25  ;;  %9684 = vmatprep.mubr.bf16.mxu0 %v15646_v51  ;;  %v11511_v25 = vld [vmem:[%s15522_s2 + $0x38] sm:$0xf]  ;;  %v11527_v21 = vld [vmem:[%s15522_s2 + $0x48] sm:$0xf] }
 0x388   : > { %11516 = vmatprep.subr.msk.bf16.mxu0 %vm344_vm2, %v14860_v60  ;;  %v15169_v50 = vpop.f32.mrf.mxu0  ;;  %v15171_v53 = vpop.f32.mrf.mxu1  ;;  %12354 = vmatmul.mubr.msk.bf16.vlgmr.msra.gmra.mxu1 %vm340_vm3, %v11507_v29 }
 0x389   : > { %12358 = vmatpush3.bf16.msra.mxu1 %v14863_v8  ;;  %12359 = vmatprep.mubr.msk.bf16.mxu1 %vm12540_vm0, %v15647_v27  ;;  %v15181_v60 = vpop.permute.xlu1 %10122 }
 0x38a   : > { %v7299_v36 = vpop.f32.mrf.mxu0  ;;  %v12211_v24 = vpop.f32.mrf.mxu1  ;;  %12363 = vmatprep.subr.bf16.mxu1 %v15647_v27  ;;  %v10126_v45 = vsel %vm336_vm1, %v15814_v11, %v15181_v60 }
 0x38c   : > { %v7300_v62 = vpop.f32.mrf.mxu0  ;;  %v7339_v20 = vpop.f32.mrf.mxu1 }
 0x38d   : > { %v15198_v47 = vpop.permute.xlu1 %10226  ;;  %v10137_v20 = vsel %vm344_vm2, %v10126_v45, 0 }
 0x38e   : > { %v12212_v31 = vpop.f32.mrf.mxu1  ;;  %v15183_v1 = vpop.f32.mrf.mxu0  ;;  %11513 = vmatmul.mubr.msk.bf16.vlgmr.msra.gmra.mxu0 %vm340_vm3, %v11511_v25 }
 0x38f   : > { %9755 = vmatpush1.bf16.msra.mxu0 %v14894_v48  ;;  %9772 = vmatprep.mubr.bf16.mxu0 %v15646_v51 }
 0x390   : > { %11520 = vmatprep.subr.msk.bf16.mxu0 %vm344_vm2, %v14898_v42  ;;  %v15190_v8 = vpop.f32.mrf.mxu0  ;;  %v15192_v37 = vpop.f32.mrf.mxu1  ;;  %12360 = vmatmul.mubr.msk.bf16.vlgmr.msra.gmra.mxu1 %vm340_vm3, %v11511_v25  ;;  %v11515_v42 = vld [vmem:[%s15522_s2 + $0x3c] sm:$0xf]  ;;  %v15817_v25 = vld [vmem:[#allocation48_spill] sm:$0xff] }
 0x391   : > { %12364 = vmatpush3.bf16.msra.mxu1 %v14901_v0  ;;  %12365 = vmatprep.mubr.msk.bf16.mxu1 %vm12540_vm0, %v15647_v27  ;;  %v15209_v0 = vpop.permute.xlu1 %10230  ;;  %v10233_v62 = vsel %vm538_vm4, %v15198_v47, %v15817_v25 }
 0x392   : > { %v7387_v59 = vpop.f32.mrf.mxu0  ;;  %v12217_v48 = vpop.f32.mrf.mxu1  ;;  %12369 = vmatprep.subr.bf16.mxu1 %v15647_v27 }
 0x394   : > { %v7388_v32 = vpop.f32.mrf.mxu0  ;;  %v7427_v41 = vpop.f32.mrf.mxu1 }
 0x395   : > { %v15225_v35 = vpop.permute.xlu1 %10334  ;;  %v15818_v32 = vld [vmem:[#allocation47_spill] sm:$0xff] }
 0x396   : > { %v12218_v43 = vpop.f32.mrf.mxu1  ;;  %v15204_v16 = vpop.f32.mrf.mxu0  ;;  %11517 = vmatmul.mubr.msk.bf16.vlgmr.msra.gmra.mxu0 %vm340_vm3, %v11515_v42  ;;  %v10232_v41 = vsel %vm538_vm4, %v15818_v32, %v15198_v47  ;;  %v15819_v47 = vld [vmem:[#allocation50_spill] sm:$0xff] }
 0x397   : > { %9843 = vmatpush1.bf16.msra.mxu0 %v14924_v49  ;;  %9860 = vmatprep.mubr.bf16.mxu0 %v15646_v51 }
 0x398   : > { %11524 = vmatprep.subr.msk.bf16.mxu0 %vm344_vm2, %v14929_v30  ;;  %v15213_v3 = vpop.f32.mrf.mxu0  ;;  %v15215_v17 = vpop.f32.mrf.mxu1  ;;  %12366 = vmatmul.mubr.msk.bf16.vlgmr.msra.gmra.mxu1 %vm340_vm3, %v11515_v42 }
 0x399   : > { %12370 = vmatpush3.bf16.msra.mxu1 %v14932_v56  ;;  %12371 = vmatprep.mubr.msk.bf16.mxu1 %vm12540_vm0, %v15647_v27  ;;  %v15246_v6 = vpop.permute.xlu1 %10338 }
 0x39a   : > { %v7501_v54 = vpop.f32.mrf.mxu0  ;;  %v12223_v49 = vpop.f32.mrf.mxu1  ;;  %12375 = vmatprep.subr.bf16.mxu1 %v15647_v27  ;;  %v10342_v63 = vsel %vm648_vm5, %v15819_v47, %v15246_v6 }
 0x39b   : > { %v10234_v49 = vsel %vm538_vm4, %v15817_v25, %v15209_v0  ;;  %v15822_v25 = vld [vmem:[#allocation51_spill] sm:$0xff] }
 0x39c   : > { %v7502_v30 = vpop.f32.mrf.mxu0  ;;  %v7541_v18 = vpop.f32.mrf.mxu1 }
 0x39d   : > { %v15270_v34 = vpop.permute.xlu1 %10442  ;;  %v10239_v30 = vsel %vm344_vm2, %v10232_v41, 0  ;;  %v7342_v41 = vadd.f32 %v15162_v12, %v15142_v61  ;;  %v15823_v61 = vld [vmem:[#allocation55_spill] sm:$0xff] }
 0x39e   : > { %v12224_v28 = vpop.f32.mrf.mxu1  ;;  %v15227_v13 = vpop.f32.mrf.mxu0  ;;  %11521 = vmatmul.mubr.msk.bf16.vlgmr.msra.gmra.mxu0 %vm340_vm3, %v11519_v40 }
 0x39f   : > { %9931 = vmatpush1.bf16.msra.mxu0 %v14954_v14  ;;  %9948 = vmatprep.mubr.bf16.mxu0 %v15646_v51  ;;  %v11523_v14 = vld [vmem:[%s15522_s2 + $0x44] sm:$0xf] }
 0x3a0   : > { %v15232_v56 = vpop.f32.mrf.mxu0  ;;  %v15234_v4 = vpop.f32.mrf.mxu1  ;;  %12372 = vmatmul.mubr.msk.bf16.vlgmr.msra.gmra.mxu1 %vm340_vm3, %v11519_v40  ;;  %11528 = vmatprep.subr.msk.bf16.mxu0 %vm344_vm2, %v14548_v5  ;;  %v10022_v5 = vsel %vm344_vm2, %v15813_v9, 0  ;;  %v11531_v40 = vld [vmem:[%s15522_s2 + $0x4c] sm:$0xf] }
 0x3a1   : > { %12376 = vmatpush3.bf16.msra.mxu1 %v14957_v39  ;;  %12377 = vmatprep.mubr.msk.bf16.mxu1 %vm12540_vm0, %v15647_v27  ;;  %v10125_v39 = vsel %vm336_vm1, %v15160_v44, %v15814_v11  ;;  %v10131_v44 = vsel %vm344_vm2, %v10124_v26, 0  ;;  %v10447_v60 = vpop.permute.xlu1 %10446 }
 0x3a2   : > { %v7610_v15 = vpop.f32.mrf.mxu0  ;;  %v12229_v52 = vpop.f32.mrf.mxu1  ;;  %12381 = vmatprep.subr.bf16.mxu1 %v15647_v27 }
 0x3a3   : > { %v10341_v15 = vsel %vm648_vm5, %v15225_v35, %v15819_v47 }
 0x3a4   : > { %v7611_v23 = vpop.f32.mrf.mxu0  ;;  %v7650_v33 = vpop.f32.mrf.mxu1 }
 0x3a5   : > { %v15310_v52 = vpop.permute.xlu1 %10550 }
 0x3a6   : > { %v12230_v22 = vpop.f32.mrf.mxu1  ;;  %v15253_v58 = vpop.f32.mrf.mxu0  ;;  %11525 = vmatmul.mubr.msk.bf16.vlgmr.msra.gmra.mxu0 %vm340_vm3, %v11523_v14  ;;  %v10557_v12 = vsel %vm868_vm7, %v15310_v52, %v15823_v61 }
 0x3a7   : > { %10045 = vmatpush1.bf16.msra.mxu0 %v10022_v5  ;;  %10062 = vmatprep.mubr.bf16.mxu0 %v15646_v51  ;;  %v15820_v5 = vld [vmem:[#allocation49_spill] sm:$0xff] }
 0x3a8   : > { %v15259_v55 = vpop.f32.mrf.mxu0  ;;  %v15261_v2 = vpop.f32.mrf.mxu1  ;;  %12378 = vmatmul.mubr.msk.bf16.vlgmr.msra.gmra.mxu1 %vm340_vm3, %v11523_v14  ;;  %11532 = vmatprep.subr.msk.bf16.mxu0 %vm344_vm2, %v10125_v39  ;;  %v10245_v14 = vsel %vm344_vm2, %v10234_v49, 0  ;;  %v10340_v11 = vsel %vm648_vm5, %v15820_v5, %v15225_v35 }
 0x3a9   : > { %12382 = vmatpush3.bf16.msra.mxu1 %v10028_v38  ;;  %12383 = vmatprep.mubr.msk.bf16.mxu1 %vm12540_vm0, %v15647_v27  ;;  %v11535_v38 = vld [vmem:[%s15522_s2 + $0x50] sm:$0xf]  ;;  %v10555_v57 = vpop.permute.xlu1 %10554  ;;  %v10347_v26 = vsel %vm344_vm2, %v10340_v11, 0 }
 0x3aa   : > { %v7718_v29 = vpop.f32.mrf.mxu0  ;;  %v12235_v10 = vpop.f32.mrf.mxu1  ;;  %12387 = vmatprep.subr.bf16.mxu1 %v15647_v27 }
 0x3ab   : > { %v15821_v10 = vld [vmem:[#allocation52_spill] sm:$0xff] }
 0x3ac   : > { %v7719_v36 = vpop.f32.mrf.mxu0  ;;  %v7758_v24 = vpop.f32.mrf.mxu1  ;;  %v10449_v45 = vsel %vm758_vm6, %v15270_v34, %v15821_v10 }
 0x3ae   : > { %v12236_v31 = vpop.f32.mrf.mxu1  ;;  %v15284_v59 = vpop.f32.mrf.mxu0  ;;  %11529 = vmatmul.mubr.msk.bf16.vlgmr.msra.gmra.mxu0 %vm340_vm3, %v11527_v21 }
 0x3af   : > { %10154 = vmatpush1.bf16.msra.mxu0 %v10131_v44  ;;  %10171 = vmatprep.mubr.bf16.mxu0 %v15646_v51 }
 0x3b0   : > { %v15288_v48 = vpop.f32.mrf.mxu0  ;;  %v15290_v42 = vpop.f32.mrf.mxu1  ;;  %12384 = vmatmul.mubr.msk.bf16.vlgmr.msra.gmra.mxu1 %vm340_vm3, %v11527_v21  ;;  %11536 = vmatprep.subr.msk.bf16.mxu0 %vm344_vm2, %v10233_v62  ;;  %v10353_v21 = vsel %vm344_vm2, %v10342_v63, 0  ;;  %v10448_v62 = vsel %vm758_vm6, %v15822_v25, %v15270_v34 }
 0x3b1   : > { %12388 = vmatpush3.bf16.msra.mxu1 %v10137_v20  ;;  %12389 = vmatprep.mubr.msk.bf16.mxu1 %vm12540_vm0, %v15647_v27  ;;  %v15355_v20 = vpop.permute.xlu1 %10658  ;;  %v10455_v34 = vsel %vm344_vm2, %v10448_v62, 0  ;;  %v15826_v62 = vld [vmem:[#allocation25_spill] sm:$0xff] }
 0x3b2   : > { %v7826_v43 = vpop.f32.mrf.mxu0  ;;  %v12241_v54 = vpop.f32.mrf.mxu1  ;;  %12393 = vmatprep.subr.bf16.mxu1 %v15647_v27 }
 0x3b3   : > { %v10450_v43 = vsel %vm758_vm6, %v15821_v10, %v10447_v60  ;;  %v11539_v54 = vld [vmem:[%s15522_s2 + $0x54] sm:$0xf] }
 0x3b4   : > { %v7827_v18 = vpop.f32.mrf.mxu0  ;;  %v7866_v28 = vpop.f32.mrf.mxu1  ;;  %v10461_v60 = vsel %vm344_vm2, %v10450_v43, 0 }
 0x3b5   : > { %v7344_v18 = vadd.f32 %v15171_v53, %v15151_v19  ;;  %v7430_v28 = vadd.f32 %v15183_v1, %v7342_v41  ;;  %v10663_v19 = vpop.permute.xlu1 %10662  ;;  %v15824_v1 = vld [vmem:[#allocation21_spill] sm:$0xff] }
 0x3b6   : > { %v12242_v23 = vpop.f32.mrf.mxu1  ;;  %v15313_v33 = vpop.f32.mrf.mxu0  ;;  %11533 = vmatmul.mubr.msk.bf16.vlgmr.msra.gmra.mxu0 %vm340_vm3, %v11531_v40  ;;  %v10556_v5 = vsel %vm868_vm7, %v15824_v1, %v15310_v52 }
 0x3b7   : > { %10262 = vmatpush1.bf16.msra.mxu0 %v10239_v30  ;;  %10279 = vmatprep.mubr.bf16.mxu0 %v15646_v51  ;;  %v7343_v30 = vadd.f32 %v15169_v50, %v15149_v46  ;;  %v7432_v23 = vadd.f32 %v15192_v37, %v7344_v18  ;;  %v7544_v46 = vadd.f32 %v15204_v16, %v7430_v28 }
 0x3b8   : > { %v15317_v0 = vpop.f32.mrf.mxu0  ;;  %v15319_v9 = vpop.f32.mrf.mxu1  ;;  %12390 = vmatmul.mubr.msk.bf16.vlgmr.msra.gmra.mxu1 %vm340_vm3, %v11531_v40  ;;  %11540 = vmatprep.subr.msk.bf16.mxu0 %vm344_vm2, %v10341_v15 }
 0x3b9   : > { %12394 = vmatpush3.bf16.msra.mxu1 %v10245_v14  ;;  %12395 = vmatprep.mubr.msk.bf16.mxu1 %vm12540_vm0, %v15647_v27  ;;  %v7431_v14 = vadd.f32 %v15190_v8, %v7343_v30  ;;  %v7546_v37 = vadd.f32 %v15215_v17, %v7432_v23  ;;  %v7653_v16 = vadd.f32 %v15227_v13, %v7544_v46  ;;  %v11543_v17 = vld [vmem:[%s15522_s2 + $0x58] sm:$0xf]  ;;  %v10563_v13 = vsel %vm344_vm2, %v10556_v5, 0  ;;  %v10767_v10 = vpop.permute.xlu1 %10766 }
 0x3ba   : > { %v7934_v39 = vpop.f32.mrf.mxu0  ;;  %v12247_v22 = vpop.f32.mrf.mxu1  ;;  %12399 = vmatprep.subr.bf16.mxu1 %v15647_v27 }
 0x3bb   : > { %v7545_v8 = vadd.f32 %v15213_v3, %v7431_v14  ;;  %v7655_v52 = vadd.f32 %v15234_v4, %v7546_v37  ;;  %v7761_v63 = vadd.f32 %v15253_v58, %v7653_v16  ;;  %v10558_v3 = vsel %vm868_vm7, %v15823_v61, %v10555_v57  ;;  %v15825_v4 = vld [vmem:[#allocation60_spill] sm:$0xff]  ;;  %v15827_v61 = vld [vmem:[#allocation65_spill] sm:$0xff] }
 0x3bc   : > { %v7935_v29 = vpop.f32.mrf.mxu0  ;;  %v7974_v35 = vpop.f32.mrf.mxu1  ;;  %v10665_v58 = vsel %vm978_vm8, %v15355_v20, %v15825_v4  ;;  %v10569_v57 = vsel %vm344_vm2, %v10558_v3, 0 }
 0x3bd   : > { %v7654_v22 = vadd.f32 %v15232_v56, %v7545_v8  ;;  %v7763_v35 = vadd.f32 %v15261_v2, %v7655_v52  ;;  %v7869_v56 = vadd.f32 %v15284_v59, %v7761_v63  ;;  %v11551_v63 = vld [vmem:[%s15522_s2 + $0x60] sm:$0xf] }
 0x3be   : > { %v12248_v44 = vpop.f32.mrf.mxu1  ;;  %v15340_v36 = vpop.f32.mrf.mxu0  ;;  %11537 = vmatmul.mubr.msk.bf16.vlgmr.msra.gmra.mxu0 %vm340_vm3, %v11535_v38 }
 0x3bf   : > { %10370 = vmatpush1.bf16.msra.mxu0 %v10347_v26  ;;  %10387 = vmatprep.mubr.bf16.mxu0 %v15646_v51  ;;  %v7762_v29 = vadd.f32 %v15259_v55, %v7654_v22  ;;  %v7871_v25 = vadd.f32 %v15290_v42, %v7763_v35  ;;  %v7977_v55 = vadd.f32 %v15313_v33, %v7869_v56 }
 0x3c0   : > { %v15344_v6 = vpop.f32.mrf.mxu0  ;;  %v15346_v24 = vpop.f32.mrf.mxu1  ;;  %12396 = vmatmul.mubr.msk.bf16.vlgmr.msra.gmra.mxu1 %vm340_vm3, %v11535_v38  ;;  %11544 = vmatprep.subr.msk.bf16.mxu0 %vm344_vm2, %v10449_v45 }
 0x3c1   : > { %12400 = vmatpush3.bf16.msra.mxu1 %v10353_v21  ;;  %12401 = vmatprep.mubr.msk.bf16.mxu1 %vm12540_vm0, %v15647_v27  ;;  %v7870_v44 = vadd.f32 %v15288_v48, %v7762_v29  ;;  %v7979_v48 = vadd.f32 %v15319_v9, %v7871_v25  ;;  %v8085_v42 = vadd.f32 %v15340_v36, %v7977_v55  ;;  %v11547_v9 = vld [vmem:[%s15522_s2 + $0x5c] sm:$0xf]  ;;  %v10771_v36 = vpop.permute.xlu1 %10770 }
 0x3c2   : > { %v8042_v31 = vpop.f32.mrf.mxu0  ;;  %v12253_v32 = vpop.f32.mrf.mxu1  ;;  %12405 = vmatprep.subr.bf16.mxu1 %v15647_v27  ;;  %v10774_v52 = vsel %vm1088_vm9, %v15827_v61, %v10771_v36  ;;  %v15829_v29 = vld [vmem:[#allocation69_spill] sm:$0xff] }
 0x3c3   : > { %v10664_v31 = vsel %vm978_vm8, %v15826_v62, %v15355_v20  ;;  %v7978_v32 = vadd.f32 %v15317_v0, %v7870_v44  ;;  %v8087_v20 = vadd.f32 %v15346_v24, %v7979_v48  ;;  %v10666_v0 = vsel %vm978_vm8, %v15825_v4, %v10663_v19  ;;  %v15828_v19 = vld [vmem:[#allocation63_spill] sm:$0xff] }
 0x3c4   : > { %v8043_v49 = vpop.f32.mrf.mxu0  ;;  %v8082_v40 = vpop.f32.mrf.mxu1  ;;  %v10677_v24 = vsel %vm344_vm2, %v10666_v0, 0  ;;  %v10785_v56 = vsel %vm344_vm2, %v10774_v52, 0 }
 0x3c5   : > { %v8086_v43 = vadd.f32 %v15344_v6, %v7978_v32  ;;  %v10773_v6 = vsel %vm1088_vm9, %v10767_v10, %v15827_v61  ;;  %v10875_v8 = vpop.permute.xlu1 %10874 }
 0x3c6   : > { %v12254_v47 = vpop.f32.mrf.mxu1  ;;  %v8146_v15 = vpop.f32.mrf.mxu0  ;;  %11541 = vmatmul.mubr.msk.bf16.vlgmr.msra.gmra.mxu0 %vm340_vm3, %v11539_v54  ;;  %v10881_v35 = vsel %vm1198_vm10, %v10875_v8, %v15829_v29 }
 0x3c7   : > { %10478 = vmatpush1.bf16.msra.mxu0 %v10455_v34  ;;  %10495 = vmatprep.mubr.bf16.mxu0 %v15646_v51  ;;  %v10671_v34 = vsel %vm344_vm2, %v10664_v31, 0 }
 0x3c8   : > { %v8148_v50 = vpop.f32.mrf.mxu0  ;;  %v8187_v53 = vpop.f32.mrf.mxu1  ;;  %12402 = vmatmul.mubr.msk.bf16.vlgmr.msra.gmra.mxu1 %vm340_vm3, %v11539_v54  ;;  %11548 = vmatprep.subr.msk.bf16.mxu0 %vm344_vm2, %v10557_v12  ;;  %v8193_v54 = vadd.f32 %v8146_v15, %v8085_v42 }
 0x3c9   : > { %12406 = vmatpush3.bf16.msra.mxu1 %v10461_v60  ;;  %12407 = vmatprep.mubr.msk.bf16.mxu1 %vm12540_vm0, %v15647_v27  ;;  %v8194_v30 = vadd.f32 %v8148_v50, %v8086_v43  ;;  %v8195_v18 = vadd.f32 %v8187_v53, %v8087_v20  ;;  %v10772_v50 = vsel %vm1088_vm9, %v15828_v19, %v10767_v10  ;;  %v10879_v10 = vpop.permute.xlu1 %10878 }
 0x3ca   : > { %v8150_v11 = vpop.f32.mrf.mxu0  ;;  %v12259_v39 = vpop.f32.mrf.mxu1  ;;  %12411 = vmatprep.subr.bf16.mxu1 %v15647_v27  ;;  %v10779_v3 = vsel %vm344_vm2, %v10772_v50, 0 }
 0x3cc   : > { %v8151_v38 = vpop.f32.mrf.mxu0  ;;  %v8190_v26 = vpop.f32.mrf.mxu1 }
 0x3ce   : > { %v12260_v45 = vpop.f32.mrf.mxu1  ;;  %v8254_v21 = vpop.f32.mrf.mxu0  ;;  %11545 = vmatmul.mubr.msk.bf16.vlgmr.msra.gmra.mxu0 %vm340_vm3, %v11543_v17 }
 0x3cf   : > { %10586 = vmatpush1.bf16.msra.mxu0 %v10563_v13  ;;  %10603 = vmatprep.mubr.bf16.mxu0 %v15646_v51  ;;  %v8301_v28 = vadd.f32 %v8254_v21, %v8193_v54  ;;  %v15830_v21 = vld [vmem:[#allocation66_spill] sm:$0xff] }
 0x3d0   : > { %v8256_v2 = vpop.f32.mrf.mxu0  ;;  %v8295_v59 = vpop.f32.mrf.mxu1  ;;  %12408 = vmatmul.mubr.msk.bf16.vlgmr.msra.gmra.mxu1 %vm340_vm3, %v11543_v17  ;;  %11552 = vmatprep.subr.msk.bf16.mxu0 %vm344_vm2, %v10665_v58  ;;  %v10880_v44 = vsel %vm1198_vm10, %v15830_v21, %v10875_v8 }
 0x3d1   : > { %12412 = vmatpush3.bf16.msra.mxu1 %v10569_v57  ;;  %12413 = vmatprep.mubr.msk.bf16.mxu1 %vm12540_vm0, %v15647_v27  ;;  %v8302_v47 = vadd.f32 %v8256_v2, %v8194_v30  ;;  %v8303_v15 = vadd.f32 %v8295_v59, %v8195_v18  ;;  %v10882_v2 = vsel %vm1198_vm10, %v15829_v29, %v10879_v10  ;;  %v11555_v59 = vld [vmem:[%s15522_s2 + $0x64] sm:$0xf]  ;;  %v10887_v62 = vsel %vm344_vm2, %v10880_v44, 0 }
 0x3d2   : > { %v8258_v33 = vpop.f32.mrf.mxu0  ;;  %v12265_v41 = vpop.f32.mrf.mxu1  ;;  %12417 = vmatprep.subr.bf16.mxu1 %v15647_v27  ;;  %v10893_v48 = vsel %vm344_vm2, %v10882_v2, 0 }
 0x3d4   : > { %v8259_v49 = vpop.f32.mrf.mxu0  ;;  %v8298_v40 = vpop.f32.mrf.mxu1 }
 0x3d6   : > { %v12266_v12 = vpop.f32.mrf.mxu1  ;;  %v8362_v60 = vpop.f32.mrf.mxu0  ;;  %11549 = vmatmul.mubr.msk.bf16.vlgmr.msra.gmra.mxu0 %vm340_vm3, %v11547_v9 }
 0x3d7   : > { %v8409_v14 = vadd.f32 %v8362_v60, %v8301_v28  ;;  %10694 = vmatpush1.bf16.msra.mxu0 %v10671_v34  ;;  %10711 = vmatprep.mubr.bf16.mxu0 %v15646_v51  ;;  %v11559_v34 = vld [vmem:[%s15522_s2 + $0x68] sm:$0xf] }
 0x3d8   : > { %v8364_v23 = vpop.f32.mrf.mxu0  ;;  %v8403_v46 = vpop.f32.mrf.mxu1  ;;  %12414 = vmatmul.mubr.msk.bf16.vlgmr.msra.gmra.mxu1 %vm340_vm3, %v11547_v9  ;;  %11556 = vmatprep.subr.msk.bf16.mxu0 %vm344_vm2, %v10773_v6 }
 0x3d9   : > { %v8412_v53 = vadd.f32 %v8409_v14, %v14252_v7  ;;  %v8410_v1 = vadd.f32 %v8364_v23, %v8302_v47  ;;  %v8411_v5 = vadd.f32 %v8403_v46, %v8303_v15  ;;  %12418 = vmatpush3.bf16.msra.mxu1 %v10677_v24  ;;  %12419 = vmatprep.mubr.msk.bf16.mxu1 %vm12540_vm0, %v15647_v27 }
 0x3da   : > { %v8366_v37 = vpop.f32.mrf.mxu0  ;;  %v12271_v16 = vpop.f32.mrf.mxu1  ;;  %12423 = vmatprep.subr.bf16.mxu1 %v15647_v27 }
 0x3db   : > { %v8415_v11 = vmax.f32 %v8412_v53, 0.0  ;;  %v8413_v39 = vadd.f32 %v8410_v1, %v14252_v7  ;;  %v8414_v22 = vadd.f32 %v8411_v5, %v14252_v7 }
 0x3dc   : > { %v8367_v17 = vpop.f32.mrf.mxu0  ;;  %v8406_v13 = vpop.f32.mrf.mxu1 }
 0x3dd   : > { %11453 = vst [vmem:[%s14276_s14 + $0x30] sm:$0xff] %v8415_v11  ;;  %v8416_v38 = vmax.f32 %v8413_v39, 0.0  ;;  %v8417_v26 = vmax.f32 %v8414_v22, 0.0 }
 0x3de   : > { %v12272_v4 = vpop.f32.mrf.mxu1  ;;  %v8461_v58 = vpop.f32.mrf.mxu0  ;;  %11553 = vmatmul.mubr.msk.bf16.vlgmr.msra.gmra.mxu0 %vm340_vm3, %v11551_v63 }
 0x3df   : > { %11454 = vst [vmem:[%s14276_s14 + $0x38] sm:$0xff] %v8416_v38  ;;  %11455 = vst [vmem:[%s14276_s14 + $0x40] sm:$0xff] %v8417_v26  ;;  %10802 = vmatpush1.bf16.msra.mxu0 %v10779_v3  ;;  %10819 = vmatprep.mubr.bf16.mxu0 %v15646_v51 }
 0x3e0   : > { %v8463_v57 = vpop.f32.mrf.mxu0  ;;  %v8502_v45 = vpop.f32.mrf.mxu1  ;;  %12420 = vmatmul.mubr.msk.bf16.vlgmr.msra.gmra.mxu1 %vm340_vm3, %v11551_v63  ;;  %11560 = vmatprep.subr.msk.bf16.mxu0 %vm344_vm2, %v10881_v35 }
 0x3e1   : > { %12424 = vmatpush3.bf16.msra.mxu1 %v10785_v56  ;;  %12425 = vmatprep.mubr.msk.bf16.mxu1 %vm12540_vm0, %v15647_v27 }
 0x3e2   : > { %v8465_v25 = vpop.f32.mrf.mxu0  ;;  %v12277_v55 = vpop.f32.mrf.mxu1  ;;  %12429 = vmatprep.subr.bf16.mxu1 %v15647_v27 }
 0x3e4   : > { %v8466_v31 = vpop.f32.mrf.mxu0  ;;  %v8505_v32 = vpop.f32.mrf.mxu1 }
 0x3e6   : > { %v12278_v42 = vpop.f32.mrf.mxu1  ;;  %v8545_v33 = vpop.f32.mrf.mxu0  ;;  %11557 = vmatmul.mubr.msk.bf16.vlgmr.msra.gmra.mxu0 %vm340_vm3, %v11555_v59 }
 0x3e7   : > { %v8546_v41 = vadd.f32 %v8545_v33, %v8461_v58  ;;  %10910 = vmatpush1.bf16.msra.mxu0 %v10887_v62  ;;  %10927 = vmatprep.mubr.bf16.mxu0 %v15646_v51 }
 0x3e8   : > { %v8547_v43 = vpop.f32.mrf.mxu0  ;;  %v8586_v20 = vpop.f32.mrf.mxu1  ;;  %12426 = vmatmul.mubr.msk.bf16.vlgmr.msra.gmra.mxu1 %vm340_vm3, %v11555_v59 }
 0x3e9   : > { %v8548_v54 = vadd.f32 %v8547_v43, %v8463_v57  ;;  %v8587_v0 = vadd.f32 %v8586_v20, %v8502_v45  ;;  %12430 = vmatpush3.bf16.msra.mxu1 %v10893_v48  ;;  %12431 = vmatprep.mubr.msk.bf16.mxu1 %vm12540_vm0, %v15647_v27 }
 0x3ea   : > { %v8549_v9 = vpop.f32.mrf.mxu0  ;;  %v12283_v36 = vpop.f32.mrf.mxu1 }
 0x3ec   : > { %v8550_v49 = vpop.f32.mrf.mxu0  ;;  %v8589_v40 = vpop.f32.mrf.mxu1 }
 0x3ee   : > { %v12284_v30 = vpop.f32.mrf.mxu1  ;;  %v8630_v51 = vpop.f32.mrf.mxu0  ;;  %11561 = vmatmul.mubr.msk.bf16.vlgmr.msra.gmra.mxu0 %vm340_vm3, %v11559_v34 }
 0x3ef   : > { %v8677_v18 = vadd.f32 %v8630_v51, %v8546_v41 }
 0x3f0   : > { %v8632_v28 = vpop.f32.mrf.mxu0  ;;  %v8671_v61 = vpop.f32.mrf.mxu1  ;;  %12432 = vmatmul.mubr.msk.bf16.vlgmr.msra.gmra.mxu1 %vm340_vm3, %v11559_v34 }
 0x3f1   : > { %v8678_v6 = vadd.f32 %v8632_v28, %v8548_v54  ;;  %v8679_v24 = vadd.f32 %v8671_v61, %v8587_v0 }
 0x3f2   : > { %v8634_v27 = vpop.f32.mrf.mxu0  ;;  %v12289_v12 = vpop.f32.mrf.mxu1 }
 0x3f4   : > { %v8635_v60 = vpop.f32.mrf.mxu0  ;;  %v8674_v47 = vpop.f32.mrf.mxu1 }
 0x3f6   : > { %v12290_v15 = vpop.f32.mrf.mxu1  ;;  %v8718_v14 = vpop.f32.mrf.mxu0 }
 0x3f7   : > { %v8765_v23 = vadd.f32 %v8718_v14, %v8677_v18 }
 0x3f8   : > { %v8720_v46 = vpop.f32.mrf.mxu0  ;;  %v8759_v19 = vpop.f32.mrf.mxu1 }
 0x3f9   : > { %v8766_v50 = vadd.f32 %v8720_v46, %v8678_v6  ;;  %v8767_v53 = vadd.f32 %v8759_v19, %v8679_v24 }
 0x3fa   : > { %v8722_v1 = vpop.f32.mrf.mxu0  ;;  %v12295_v5 = vpop.f32.mrf.mxu1 }
 0x3fc   : > { %v8723_v8 = vpop.f32.mrf.mxu0  ;;  %v8762_v37 = vpop.f32.mrf.mxu1 }
 0x3fe   : > { %v12296_v16 = vpop.f32.mrf.mxu1  ;;  %v8806_v11 = vpop.f32.mrf.mxu0 }
 0x3ff   : > { %v8853_v39 = vadd.f32 %v8806_v11, %v8765_v23 }
 0x400   : > { %v8808_v22 = vpop.f32.mrf.mxu0  ;;  %v8847_v52 = vpop.f32.mrf.mxu1 }
 0x401   : > { %v8854_v63 = vadd.f32 %v8808_v22, %v8766_v50  ;;  %v8855_v3 = vadd.f32 %v8847_v52, %v8767_v53 }
 0x402   : > { %v8810_v17 = vpop.f32.mrf.mxu0  ;;  %v12301_v13 = vpop.f32.mrf.mxu1 }
 0x404   : > { %v8811_v38 = vpop.f32.mrf.mxu0  ;;  %v8850_v26 = vpop.f32.mrf.mxu1 }
 0x406   : > { %v12302_v29 = vpop.f32.mrf.mxu1  ;;  %v8894_v35 = vpop.f32.mrf.mxu0 }
 0x407   : > { %v8941_v56 = vadd.f32 %v8894_v35, %v8853_v39 }
 0x408   : > { %v8896_v4 = vpop.f32.mrf.mxu0  ;;  %v8935_v58 = vpop.f32.mrf.mxu1 }
 0x409   : > { %v8942_v10 = vadd.f32 %v8896_v4, %v8854_v63  ;;  %v8943_v57 = vadd.f32 %v8935_v58, %v8855_v3 }
 0x40a   : > { %v8898_v45 = vpop.f32.mrf.mxu0  ;;  %v12307_v21 = vpop.f32.mrf.mxu1 }
 0x40c   : > { %v8899_v44 = vpop.f32.mrf.mxu0  ;;  %v8938_v25 = vpop.f32.mrf.mxu1 }
 0x40e   : > { %v12308_v55 = vpop.f32.mrf.mxu1  ;;  %v8982_v2 = vpop.f32.mrf.mxu0 }
 0x40f   : > { %v9029_v59 = vadd.f32 %v8982_v2, %v8941_v56 }
 0x410   : > { %v8984_v62 = vpop.f32.mrf.mxu0  ;;  %v9023_v31 = vpop.f32.mrf.mxu1 }
 0x411   : > { %v9030_v32 = vadd.f32 %v8984_v62, %v8942_v10  ;;  %v9031_v48 = vadd.f32 %v9023_v31, %v8943_v57 }
 0x412   : > { %v8986_v42 = vpop.f32.mrf.mxu0  ;;  %v12313_v33 = vpop.f32.mrf.mxu1 }
 0x414   : > { %v8987_v41 = vpop.f32.mrf.mxu0  ;;  %v9026_v43 = vpop.f32.mrf.mxu1 }
 0x416   : > { %v12314_v20 = vpop.f32.mrf.mxu1  ;;  %v9070_v54 = vpop.f32.mrf.mxu0 }
 0x417   : > { %v9117_v0 = vadd.f32 %v9070_v54, %v9029_v59 }
 0x418   : > { %v9072_v9 = vpop.f32.mrf.mxu0  ;;  %v9111_v36 = vpop.f32.mrf.mxu1 }
 0x419   : > { %v9118_v34 = vadd.f32 %v9072_v9, %v9030_v32  ;;  %v9119_v49 = vadd.f32 %v9111_v36, %v9031_v48 }
 0x41a   : > { %v9074_v40 = vpop.f32.mrf.mxu0  ;;  %v12319_v30 = vpop.f32.mrf.mxu1 }
 0x41c   : > { %v9075_v51 = vpop.f32.mrf.mxu0  ;;  %v9114_v18 = vpop.f32.mrf.mxu1 }
 0x41e   : > { %v12320_v28 = vpop.f32.mrf.mxu1  ;;  %v9158_v61 = vpop.f32.mrf.mxu0 }
 0x41f   : > { %v9205_v6 = vadd.f32 %v9158_v61, %v9117_v0 }
 0x420   : > { %v9160_v24 = vpop.f32.mrf.mxu0  ;;  %v9199_v27 = vpop.f32.mrf.mxu1 }
 0x421   : > { %v9206_v12 = vadd.f32 %v9160_v24, %v9118_v34  ;;  %v9207_v60 = vadd.f32 %v9199_v27, %v9119_v49 }
 0x422   : > { %v9162_v47 = vpop.f32.mrf.mxu0  ;;  %v12325_v15 = vpop.f32.mrf.mxu1 }
 0x424   : > { %v9163_v14 = vpop.f32.mrf.mxu0  ;;  %v9202_v23 = vpop.f32.mrf.mxu1 }
 0x426   : > { %v12326_v46 = vpop.f32.mrf.mxu1  ;;  %v9246_v19 = vpop.f32.mrf.mxu0 }
 0x427   : > { %v9293_v50 = vadd.f32 %v9246_v19, %v9205_v6 }
 0x428   : > { %v9248_v53 = vpop.f32.mrf.mxu0  ;;  %v9287_v1 = vpop.f32.mrf.mxu1 }
 0x429   : > { %v9294_v5 = vadd.f32 %v9248_v53, %v9206_v12  ;;  %v9295_v8 = vadd.f32 %v9287_v1, %v9207_v60 }
 0x42a   : > { %v9250_v37 = vpop.f32.mrf.mxu0  ;;  %v12331_v16 = vpop.f32.mrf.mxu1 }
 0x42c   : > { %v9251_v11 = vpop.f32.mrf.mxu0  ;;  %v9290_v39 = vpop.f32.mrf.mxu1 }
 0x42e   : > { %v12332_v22 = vpop.f32.mrf.mxu1  ;;  %v9334_v52 = vpop.f32.mrf.mxu0 }
 0x42f   : > { %v9381_v63 = vadd.f32 %v9334_v52, %v9293_v50 }
 0x430   : > { %v9336_v3 = vpop.f32.mrf.mxu0  ;;  %v9375_v17 = vpop.f32.mrf.mxu1 }
 0x431   : > { %v9382_v13 = vadd.f32 %v9336_v3, %v9294_v5  ;;  %v9383_v38 = vadd.f32 %v9375_v17, %v9295_v8 }
 0x432   : > { %v9338_v26 = vpop.f32.mrf.mxu0  ;;  %v12337_v29 = vpop.f32.mrf.mxu1 }
 0x434   : > { %v9339_v35 = vpop.f32.mrf.mxu0  ;;  %v9378_v56 = vpop.f32.mrf.mxu1 }
 0x436   : > { %v12338_v4 = vpop.f32.mrf.mxu1  ;;  %v9422_v58 = vpop.f32.mrf.mxu0 }
 0x437   : > { %v9469_v10 = vadd.f32 %v9422_v58, %v9381_v63 }
 0x438   : > { %v9424_v57 = vpop.f32.mrf.mxu0  ;;  %v9463_v45 = vpop.f32.mrf.mxu1 }
 0x439   : > { %v9470_v21 = vadd.f32 %v9424_v57, %v9382_v13  ;;  %v9471_v44 = vadd.f32 %v9463_v45, %v9383_v38 }
 0x43a   : > { %v9426_v25 = vpop.f32.mrf.mxu0  ;;  %v12343_v55 = vpop.f32.mrf.mxu1 }
 0x43c   : > { %v9427_v2 = vpop.f32.mrf.mxu0  ;;  %v9466_v59 = vpop.f32.mrf.mxu1 }
 0x43e   : > { %v12344_v62 = vpop.f32.mrf.mxu1  ;;  %v9510_v31 = vpop.f32.mrf.mxu0 }
 0x43f   : > { %v9557_v32 = vadd.f32 %v9510_v31, %v9469_v10 }
 0x440   : > { %v9512_v48 = vpop.f32.mrf.mxu0  ;;  %v9551_v42 = vpop.f32.mrf.mxu1 }
 0x441   : > { %v9558_v33 = vadd.f32 %v9512_v48, %v9470_v21  ;;  %v9559_v41 = vadd.f32 %v9551_v42, %v9471_v44 }
 0x442   : > { %v9514_v43 = vpop.f32.mrf.mxu0  ;;  %v12349_v20 = vpop.f32.mrf.mxu1 }
 0x444   : > { %v9515_v54 = vpop.f32.mrf.mxu0  ;;  %v9554_v0 = vpop.f32.mrf.mxu1 }
 0x446   : > { %v12350_v9 = vpop.f32.mrf.mxu1  ;;  %v9598_v36 = vpop.f32.mrf.mxu0 }
 0x447   : > { %v9645_v34 = vadd.f32 %v9598_v36, %v9557_v32 }
 0x448   : > { %v9600_v49 = vpop.f32.mrf.mxu0  ;;  %v9639_v40 = vpop.f32.mrf.mxu1 }
 0x449   : > { %v9646_v30 = vadd.f32 %v9600_v49, %v9558_v33  ;;  %v9647_v51 = vadd.f32 %v9639_v40, %v9559_v41 }
 0x44a   : > { %v9602_v18 = vpop.f32.mrf.mxu0  ;;  %v12355_v28 = vpop.f32.mrf.mxu1 }
 0x44c   : > { %v9603_v61 = vpop.f32.mrf.mxu0  ;;  %v9642_v6 = vpop.f32.mrf.mxu1 }
 0x44e   : > { %v12356_v24 = vpop.f32.mrf.mxu1  ;;  %v9686_v27 = vpop.f32.mrf.mxu0 }
 0x44f   : > { %v9733_v12 = vadd.f32 %v9686_v27, %v9645_v34 }
 0x450   : > { %v9688_v60 = vpop.f32.mrf.mxu0  ;;  %v9727_v47 = vpop.f32.mrf.mxu1 }
 0x451   : > { %v9734_v15 = vadd.f32 %v9688_v60, %v9646_v30  ;;  %v9735_v14 = vadd.f32 %v9727_v47, %v9647_v51 }
 0x452   : > { %v9690_v23 = vpop.f32.mrf.mxu0  ;;  %v12361_v46 = vpop.f32.mrf.mxu1 }
 0x454   : > { %v9691_v19 = vpop.f32.mrf.mxu0  ;;  %v9730_v50 = vpop.f32.mrf.mxu1 }
 0x456   : > { %v12362_v53 = vpop.f32.mrf.mxu1  ;;  %v9774_v1 = vpop.f32.mrf.mxu0 }
 0x457   : > { %v15484_v5 = vadd.f32 %v9774_v1, %v9733_v12 }
 0x458   : > { %v9776_v8 = vpop.f32.mrf.mxu0  ;;  %v9815_v37 = vpop.f32.mrf.mxu1 }
 0x459   : > { %v15486_v16 = vadd.f32 %v9776_v8, %v9734_v15  ;;  %v15488_v11 = vadd.f32 %v9815_v37, %v9735_v14 }
 0x45a   : > { %v9778_v39 = vpop.f32.mrf.mxu0  ;;  %v12367_v22 = vpop.f32.mrf.mxu1 }
 0x45c   : > { %v9779_v52 = vpop.f32.mrf.mxu0  ;;  %v9818_v63 = vpop.f32.mrf.mxu1 }
 0x45e   : > { %v12368_v3 = vpop.f32.mrf.mxu1  ;;  %v9862_v17 = vpop.f32.mrf.mxu0 }
 0x460   : > { %v15490_v13 = vpop.f32.mrf.mxu0  ;;  %v15492_v38 = vpop.f32.mrf.mxu1 }
 0x462   : > { %v9866_v26 = vpop.f32.mrf.mxu0  ;;  %v12373_v29 = vpop.f32.mrf.mxu1 }
 0x463   : > { %v9909_v29 = vadd.f32 %v9862_v17, %v15484_v5 }
 0x464   : > { %v9867_v35 = vpop.f32.mrf.mxu0  ;;  %v9906_v56 = vpop.f32.mrf.mxu1 }
 0x466   : > { %v12374_v4 = vpop.f32.mrf.mxu1  ;;  %v9950_v58 = vpop.f32.mrf.mxu0 }
 0x467   : > { %v9910_v4 = vadd.f32 %v15490_v13, %v15486_v16 }
 0x468   : > { %v9952_v10 = vpop.f32.mrf.mxu0  ;;  %v9991_v57 = vpop.f32.mrf.mxu1 }
 0x46a   : > { %v9954_v45 = vpop.f32.mrf.mxu0  ;;  %v12379_v21 = vpop.f32.mrf.mxu1 }
 0x46b   : > { %v9911_v45 = vadd.f32 %v15492_v38, %v15488_v11  ;;  %v9997_v21 = vadd.f32 %v9950_v58, %v9909_v29 }
 0x46c   : > { %v9955_v44 = vpop.f32.mrf.mxu0  ;;  %v9994_v25 = vpop.f32.mrf.mxu1 }
 0x46e   : > { %v12380_v55 = vpop.f32.mrf.mxu1  ;;  %v10064_v2 = vpop.f32.mrf.mxu0 }
 0x46f   : > { %v9998_v55 = vadd.f32 %v9952_v10, %v9910_v4 }
 0x470   : > { %v10066_v59 = vpop.f32.mrf.mxu0  ;;  %v10105_v62 = vpop.f32.mrf.mxu1 }
 0x472   : > { %v10068_v31 = vpop.f32.mrf.mxu0  ;;  %v12385_v32 = vpop.f32.mrf.mxu1 }
 0x473   : > { %v9999_v31 = vadd.f32 %v9991_v57, %v9911_v45  ;;  %v10111_v32 = vadd.f32 %v10064_v2, %v9997_v21 }
 0x474   : > { %v10069_v48 = vpop.f32.mrf.mxu0  ;;  %v10108_v42 = vpop.f32.mrf.mxu1 }
 0x476   : > { %v12386_v33 = vpop.f32.mrf.mxu1  ;;  %v10173_v41 = vpop.f32.mrf.mxu0 }
 0x477   : > { %v10112_v33 = vadd.f32 %v10066_v59, %v9998_v55 }
 0x478   : > { %v10175_v43 = vpop.f32.mrf.mxu0  ;;  %v10214_v20 = vpop.f32.mrf.mxu1 }
 0x47a   : > { %v10177_v54 = vpop.f32.mrf.mxu0  ;;  %v12391_v0 = vpop.f32.mrf.mxu1 }
 0x47b   : > { %v10113_v54 = vadd.f32 %v10105_v62, %v9999_v31  ;;  %v10220_v0 = vadd.f32 %v10173_v41, %v10111_v32 }
 0x47c   : > { %v10178_v9 = vpop.f32.mrf.mxu0  ;;  %v10217_v36 = vpop.f32.mrf.mxu1 }
 0x47d   : > { %v10221_v9 = vadd.f32 %v10175_v43, %v10112_v33  ;;  %v10222_v36 = vadd.f32 %v10214_v20, %v10113_v54 }
 0x47e   : > { %v12392_v34 = vpop.f32.mrf.mxu1  ;;  %v10281_v49 = vpop.f32.mrf.mxu0 }
 0x47f   : > { %v10328_v34 = vadd.f32 %v10281_v49, %v10220_v0 }
 0x480   : > { %v10283_v40 = vpop.f32.mrf.mxu0  ;;  %v10322_v30 = vpop.f32.mrf.mxu1 }
 0x481   : > { %v10330_v11 = vadd.f32 %v10322_v30, %v10222_v36 }
 0x482   : > { %v10285_v51 = vpop.f32.mrf.mxu0  ;;  %v12397_v18 = vpop.f32.mrf.mxu1 }
 0x483   : > { %v10329_v51 = vadd.f32 %v10283_v40, %v10221_v9 }
 0x484   : > { %v10286_v28 = vpop.f32.mrf.mxu0  ;;  %v10325_v61 = vpop.f32.mrf.mxu1 }
 0x486   : > { %v12398_v6 = vpop.f32.mrf.mxu1  ;;  %v10389_v24 = vpop.f32.mrf.mxu0 }
 0x487   : > { %v10436_v38 = vadd.f32 %v10389_v24, %v10328_v34 }
 0x488   : > { %v10391_v27 = vpop.f32.mrf.mxu0  ;;  %v10430_v12 = vpop.f32.mrf.mxu1 }
 0x489   : > { %v10437_v10 = vadd.f32 %v10391_v27, %v10329_v51  ;;  %v10438_v57 = vadd.f32 %v10430_v12, %v10330_v11 }
 0x48a   : > { %v10393_v60 = vpop.f32.mrf.mxu0  ;;  %v12403_v47 = vpop.f32.mrf.mxu1 }
 0x48c   : > { %v10394_v15 = vpop.f32.mrf.mxu0  ;;  %v10433_v14 = vpop.f32.mrf.mxu1 }
 0x48e   : > { %v12404_v23 = vpop.f32.mrf.mxu1  ;;  %v10497_v46 = vpop.f32.mrf.mxu0 }
 0x48f   : > { %v10544_v2 = vadd.f32 %v10497_v46, %v10436_v38 }
 0x490   : > { %v10499_v19 = vpop.f32.mrf.mxu0  ;;  %v10538_v50 = vpop.f32.mrf.mxu1 }
 0x491   : > { %v10545_v59 = vadd.f32 %v10499_v19, %v10437_v10  ;;  %v10546_v62 = vadd.f32 %v10538_v50, %v10438_v57 }
 0x492   : > { %v10501_v53 = vpop.f32.mrf.mxu0  ;;  %v12409_v1 = vpop.f32.mrf.mxu1 }
 0x494   : > { %v10502_v8 = vpop.f32.mrf.mxu0  ;;  %v10541_v37 = vpop.f32.mrf.mxu1 }
 0x496   : > { %v12410_v39 = vpop.f32.mrf.mxu1  ;;  %v10605_v22 = vpop.f32.mrf.mxu0 }
 0x497   : > { %v10652_v41 = vadd.f32 %v10605_v22, %v10544_v2 }
 0x498   : > { %v10607_v52 = vpop.f32.mrf.mxu0  ;;  %v10646_v63 = vpop.f32.mrf.mxu1 }
 0x499   : > { %v10653_v43 = vadd.f32 %v10607_v52, %v10545_v59  ;;  %v10654_v20 = vadd.f32 %v10646_v63, %v10546_v62 }
 0x49a   : > { %v10609_v3 = vpop.f32.mrf.mxu0  ;;  %v12415_v26 = vpop.f32.mrf.mxu1 }
 0x49c   : > { %v10610_v35 = vpop.f32.mrf.mxu0  ;;  %v10649_v56 = vpop.f32.mrf.mxu1 }
 0x49e   : > { %v12416_v44 = vpop.f32.mrf.mxu1  ;;  %v10713_v25 = vpop.f32.mrf.mxu0 }
 0x49f   : > { %v10760_v49 = vadd.f32 %v10713_v25, %v10652_v41 }
 0x4a0   : > { %v10715_v48 = vpop.f32.mrf.mxu0  ;;  %v10754_v42 = vpop.f32.mrf.mxu1 }
 0x4a1   : > { %v10761_v40 = vadd.f32 %v10715_v48, %v10653_v43  ;;  %v10762_v30 = vadd.f32 %v10754_v42, %v10654_v20 }
 0x4a2   : > { %v10717_v5 = vpop.f32.mrf.mxu0  ;;  %v12421_v17 = vpop.f32.mrf.mxu1 }
 0x4a4   : > { %v10718_v16 = vpop.f32.mrf.mxu0  ;;  %v10757_v13 = vpop.f32.mrf.mxu1 }
 0x4a6   : > { %v12422_v58 = vpop.f32.mrf.mxu1  ;;  %v10821_v18 = vpop.f32.mrf.mxu0 }
 0x4a7   : > { %v10868_v24 = vadd.f32 %v10821_v18, %v10760_v49 }
 0x4a8   : > { %v10823_v28 = vpop.f32.mrf.mxu0  ;;  %v10862_v61 = vpop.f32.mrf.mxu1 }
 0x4a9   : > { %v10869_v27 = vadd.f32 %v10823_v28, %v10761_v40  ;;  %v10870_v12 = vadd.f32 %v10862_v61, %v10762_v30 }
 0x4aa   : > { %v10825_v6 = vpop.f32.mrf.mxu0  ;;  %v12427_v60 = vpop.f32.mrf.mxu1 }
 0x4ac   : > { %v10826_v47 = vpop.f32.mrf.mxu0  ;;  %v10865_v15 = vpop.f32.mrf.mxu1 }
 0x4ae   : > { %v12428_v14 = vpop.f32.mrf.mxu1  ;;  %v10929_v23 = vpop.f32.mrf.mxu0 }
 0x4af   : > { %v10976_v46 = vadd.f32 %v10929_v23, %v10868_v24 }
 0x4b0   : > { %v10931_v53 = vpop.f32.mrf.mxu0  ;;  %v10970_v19 = vpop.f32.mrf.mxu1 }
 0x4b1   : > { %v10979_v50 = vadd.f32 %v10976_v46, %v14252_v7  ;;  %v10977_v1 = vadd.f32 %v10931_v53, %v10869_v27  ;;  %v10978_v8 = vadd.f32 %v10970_v19, %v10870_v12 }
 0x4b2   : > { %v10933_v37 = vpop.f32.mrf.mxu0  ;;  %v12433_v39 = vpop.f32.mrf.mxu1 }
 0x4b3   : > { %v10982_v22 = vmax.f32 %v10979_v50, 0.0  ;;  %v10980_v52 = vadd.f32 %v10977_v1, %v14252_v7  ;;  %v10981_v63 = vadd.f32 %v10978_v8, %v14252_v7 }
 0x4b4   : > { %v10934_v3 = vpop.f32.mrf.mxu0  ;;  %v10973_v26 = vpop.f32.mrf.mxu1 }
 0x4b5   : > { %11563 = vst [vmem:[%s14276_s14 + $0x48] sm:$0xff] %v10982_v22  ;;  %v10983_v29 = vmax.f32 %v10980_v52, 0.0  ;;  %v10984_v35 = vmax.f32 %v10981_v63, 0.0 }
 0x4b6   : > { %v12434_v56 = vpop.f32.mrf.mxu1 }
 0x4b7   : > { %11564 = vst [vmem:[%s14276_s14 + $0x50] sm:$0xff] %v10983_v29  ;;  %11565 = vst [vmem:[%s14276_s14 + $0x58] sm:$0xff] %v10984_v35 }
 0x4b8 PF: > { %s14_s19 = sadd.s32 1, %s12535_s19   ;;  %s15831_s15 = smov %s12527_s17 }
 0x4b9   : > { %p11_p9 = scmp.ge.s32.totalorder %s14_s19, 10   ;;  %s15832_s16 = smov %s12531_s18 }
 0x4ba   : > { %s15833_s17 = smov %s15836_s20  ;;  %s15834_s18 = smov %s15840_s21 }
 0x4bb   :  { %13 = sbr.rel (!%p11_p9) target bundleno = 3 (0x3), region = 102 }

</bundles_post_ra>
